<compile_context>
chip_gen: v7x
topology: tpu7x:2x2x1
jax: 0.10.0
libtpu: 0.0.40
codegen_flags: <defaults>
</compile_context>

<pallas_src>
import functools

import numpy as np
import jax
import jax.numpy as jnp
from jax.experimental import pallas as pl
from jax.experimental.pallas import tpu as pltpu


FILTER = 5
HIDDENS = [16, 32, 64, 64, 128, 128]       # hiddens_half in the PyTorch module
HIDDEN_INS = [16, 16, 32, 64, 64, 128]     # hidden_ins_half


# ---------------------------------------------------------------------------
# In-kernel math for one Conv1d (+folded BN) layer, channels-last [L, C]
# ---------------------------------------------------------------------------
def _conv_layer(h, w_ref, b_ref, cfg, padbuf):
    """Returns f32 [l_out, Cout].  w_ref is the merged-tap weight [Cin, K*Cout]."""
    L, C = h.shape
    k, stride, pad = cfg["k"], cfg["stride"], cfg["pad"]
    cout = cfg["cout"]

    if stride == 1:
        lp = L + 2 * pad
        l_out = lp - k + 1
        if pad > 0:
            # zero-pad through the reusable VMEM scratch buffer (no HBM traffic)
            padbuf[0:pad, 0:C] = jnp.zeros((pad, C), jnp.float32)
            padbuf[pad + L:lp, 0:C] = jnp.zeros((pad, C), jnp.float32)
            padbuf[pad:pad + L, 0:C] = h
            hp = padbuf[0:lp, 0:C]
        else:
            hp = h
        # One big MXU matmul over all taps, then K diagonal slices summed.
        p_all = jnp.dot(hp, w_ref[...], preferred_element_type=jnp.float32)
        acc = p_all[0:l_out, 0:cout]
        for m in range(1, k):
            acc = acc + p_all[m:m + l_out, m * cout:(m + 1) * cout]
    else:
        # stride 2: polyphase (even / odd input rows).  Row gather + zero
        # padding are expressed as one 0/1 selection matmul per phase, applied
        # before the weight matmul (exact, no extra rounding, no strided loads).
        l_out = (L + 2 * pad - k) // 2 + 1
        te = (k + 1) // 2                     # number of even taps (0,2,4,...)
        to = k // 2                           # number of odd taps  (1,3,...)
        ne = l_out + te - 1
        no = l_out + to - 1

        rows = jax.lax.broadcasted_iota(jnp.int32, (ne, L), 0)
        cols = jax.lax.broadcasted_iota(jnp.int32, (ne, L), 1)
        sel_e = (cols == 2 * rows - pad).astype(jnp.float32)
        z_e = jnp.dot(sel_e, h, preferred_element_type=jnp.float32)   # hp[2j]

        rows = jax.lax.broadcasted_iota(jnp.int32, (no, L), 0)
        cols = jax.lax.broadcasted_iota(jnp.int32, (no, L), 1)
        sel_o = (cols == 2 * rows + 1 - pad).astype(jnp.float32)
        z_o = jnp.dot(sel_o, h, preferred_element_type=jnp.float32)   # hp[2j+1]

        pe = jnp.dot(z_e, w_ref[:, 0:te * cout],
                     preferred_element_type=jnp.float32)               # even taps
        po = jnp.dot(z_o, w_ref[:, te * cout:k * cout],
                     preferred_element_type=jnp.float32)               # odd taps
        acc = pe[0:l_out, 0:cout]
        for e in range(1, te):
            acc = acc + pe[e:e + l_out, e * cout:(e + 1) * cout]
        for o in range(to):
            acc = acc + po[o:o + l_out, o * cout:(o + 1) * cout]

    return acc + b_ref[...].astype(jnp.float32)


def _encoder_kernel(*refs, cfgs):
    """Whole EncoderSplit forward for one batch row, all layers fused."""
    n = len(cfgs)
    x_ref = refs[0]
    o_ref = refs[1 + 2 * n]
    padbuf = refs[2 + 2 * n]

    h = x_ref[...].astype(jnp.float32)            # [L0, 4] channels-last
    identity = None
    for i, cfg in enumerate(cfgs):
        w_ref = refs[1 + 2 * i]
        b_ref = refs[2 + 2 * i]
        acc = _conv_layer(h, w_ref, b_ref, cfg, padbuf)
        if cfg["add_res"]:
            acc = acc + identity                  # fused residual add
        if cfg["relu"]:
            acc = jnp.maximum(acc, 0.0)
        h = acc
        if cfg["save_res"]:
            identity = h                          # stash block identity
    o_ref[...] = h.astype(o_ref.dtype)            # single lane-dense HBM store


# ---------------------------------------------------------------------------
# One-time weight preparation (BN folding + merged-tap layout) — hoisted out
# ---------------------------------------------------------------------------
def _fold_bn(w, b, bn, eps=1e-5):
    gamma, beta, mean, var = bn
    s = gamma / jnp.sqrt(var + eps)
    return w * s[:, None, None], (b - mean) * s + beta


def _prep_layer(p, *, stride, relu, save_res=False, add_res=False, has_bn=True):
    w, b = p["w"], p["b"]
    if has_bn:
        w, b = _fold_bn(w, b, p["bn"])
    cout, cin, k = w.shape
    wt = jnp.transpose(w, (1, 2, 0))                      # [cin, k, cout]
    if stride == 2:
        order = list(range(0, k, 2)) + list(range(1, k, 2))   # even taps first
        wt = wt[:, np.asarray(order), :]
    wcat = wt.reshape(cin, k * cout)                      # merged-tap weight
    cfg = dict(k=k, stride=stride, pad=k // 2, relu=relu,
               save_res=save_res, add_res=add_res, cin=cin, cout=cout)
    return wcat, b.reshape(1, cout), cfg


def prepare_encoder(params):
    ws, bs, cfgs = [], [], []

    def push(p, **kw):
        w, b, c = _prep_layer(p, **kw)
        ws.append(w), bs.append(b), cfgs.append(c)

    push(params["start"], stride=2, relu=True)
    for bp in params["blocks"]:
        push(bp["scale"], stride=2, relu=True, save_res=True)
        push(bp["res1"], stride=1, relu=True)
        push(bp["res2"], stride=1, relu=True, add_res=True)
    push(params["end"], stride=1, relu=False, has_bn=False)
    return ws, bs, cfgs


# ---------------------------------------------------------------------------
# EncoderSplit forward — ONE pallas_call
# ---------------------------------------------------------------------------
def encoder_split_pallas(x_ncl, prepped):
    ws, bs, cfgs = prepped
    B, _, L0 = x_ncl.shape
    xs = jnp.transpose(x_ncl[:, :4, :], (0, 2, 1))        # [B, L0, 4]

    # static length simulation -> final length + pad-buffer size
    l, max_lp = L0, 8
    for cfg in cfgs:
        k, s, p = cfg["k"], cfg["stride"], cfg["pad"]
        if s == 1 and p > 0:
            max_lp = max(max_lp, l + 2 * p)
        l = (l + 2 * p - k) // s + 1
    l_final = l
    max_lp = (max_lp + 7) // 8 * 8
    buf_c = max(128, max(c["cin"] for c in cfgs))
    cout_final = cfgs[-1]["cout"]

    in_specs = [pl.BlockSpec((None, L0, 4), lambda b: (b, 0, 0))]
    args = [xs]
    for w, bias in zip(ws, bs):
        in_specs.append(pl.BlockSpec(w.shape, lambda b: (0, 0)))
        in_specs.append(pl.BlockSpec(bias.shape, lambda b: (0, 0)))
        args += [w, bias]

    out = pl.pallas_call(
        functools.partial(_encoder_kernel, cfgs=tuple(cfgs)),
        out_shape=jax.ShapeDtypeStruct((B, l_final, cout_final), jnp.float32),
        grid=(B,),
        in_specs=in_specs,
        out_specs=pl.BlockSpec((None, l_final, cout_final), lambda b: (b, 0, 0)),
        scratch_shapes=[pltpu.VMEM((max_lp, buf_c), jnp.float32)],
        compiler_params=pltpu.CompilerParams(
            dimension_semantics=("parallel",),
            vmem_limit_bytes=32 * 1024 * 1024,
        ),
    )(*args)
    return jnp.transpose(out, (0, 2, 1))                  # [B, Cout, L_final]


# ---------------------------------------------------------------------------
# Pure-JAX reference (eval-mode forward, same parameters)
# ---------------------------------------------------------------------------
def _ref_conv(x, w, b, stride, pad):
    y = jax.lax.conv_general_dilated(
        x, w, window_strides=(stride,), padding=[(pad, pad)],
        dimension_numbers=("NCH", "OIH", "NCH"))
    return y + b[None, :, None]


def _ref_bn(x, bn, eps=1e-5):
    gamma, beta, mean, var = bn
    inv = gamma / jnp.sqrt(var + eps)
    return (x - mean[None, :, None]) * inv[None, :, None] + beta[None, :, None]


def _ref_cbr(x, p, stride, pad, relu=True):
    y = _ref_bn(_ref_conv(x, p["w"], p["b"], stride, pad), p["bn"])
    return jnp.maximum(y, 0.0) if relu else y


def encoder_split_ref(x, params):
    seq = x[:, :4, :]
    h = _ref_cbr(seq, params["start"], 2, 1)
    pad = FILTER // 2
    for bp in params["blocks"]:
        scaled = _ref_cbr(h, bp["scale"], 2, pad)
        r = _ref_cbr(scaled, bp["res1"], 1, pad)
        res = _ref_cbr(r, bp["res2"], 1, pad, relu=False)
        h = jnp.maximum(res + scaled, 0.0)
    return _ref_conv(h, params["end"]["w"], params["end"]["b"], 1, 0)


# ---------------------------------------------------------------------------
# Deterministic parameter construction
# ---------------------------------------------------------------------------
def _init_conv(key, cout, cin, k):
    kw, kb = jax.random.split(key)
    bound = 1.0 / np.sqrt(cin * k)
    w = jax.random.uniform(kw, (cout, cin, k), jnp.float32, -bound, bound)
    b = jax.random.uniform(kb, (cout,), jnp.float32, -bound, bound)
    return w, b


def _init_bn(key, c):
    k1, k2, k3, k4 = jax.random.split(key, 4)
    gamma = jax.random.uniform(k1, (c,), jnp.float32, 0.5, 1.5)
    beta = 0.1 * jax.random.normal(k2, (c,), jnp.float32)
    mean = 0.1 * jax.random.normal(k3, (c,), jnp.float32)
    var = jax.random.uniform(k4, (c,), jnp.float32, 0.5, 1.5)
    return (gamma, beta, mean, var)


def _init_conv_bn(key, cout, cin, k):
    kc, kb = jax.random.split(key)
    w, b = _init_conv(kc, cout, cin, k)
    return {"w": w, "b": b, "bn": _init_bn(kb, cout)}


def init_params(key, output_size=128):
    keys = jax.random.split(key, 2 + 3 * len(HIDDENS))
    params = {"start": _init_conv_bn(keys[0], 16, 4, 3), "blocks": []}
    it = 1
    for hi, h in zip(HIDDEN_INS, HIDDENS):
        params["blocks"].append({
            "scale": _init_conv_bn(keys[it], h, hi, FILTER),
            "res1": _init_conv_bn(keys[it + 1], h, h, FILTER),
            "res2": _init_conv_bn(keys[it + 2], h, h, FILTER),
        })
        it += 3
    w, b = _init_conv(keys[it], output_size, 128, 1)
    params["end"] = {"w": w, "b": b}
    return params


# ---------------------------------------------------------------------------
# Main
# ---------------------------------------------------------------------------
if __name__ == "__main__":
    B, C, L = 2, 4, 256      # small shapes consistent with the module (7x /2)

    root = jax.random.PRNGKey(0)
    kx, kp = jax.random.split(root)
    x = jax.random.normal(kx, (B, C, L), dtype=jnp.float32)
    params = init_params(kp)

    prepped = prepare_encoder(params)        # one-time weight prep (hoisted)

    out = jax.block_until_ready(encoder_split_pallas(x, prepped))
    ref = jax.block_until_ready(encoder_split_ref(x, params))

    assert out.shape == ref.shape == (B, 128, L // 128), (out.shape, ref.shape)
    np.testing.assert_allclose(np.asarray(out), np.asarray(ref),
                               rtol=2e-2, atol=2e-2)

    print("KERNEL_OK")
</pallas_src>

<mosaic_0001>
module attributes {stable_mosaic.version = 11 : i64} {
  func.func @_encoder_kernel(%arg0: i32, %arg1: memref<1x256x4xf32, #tpu.memory_space<vmem>>, %arg2: memref<4x48xf32, #tpu.memory_space<vmem>>, %arg3: memref<1x16xf32, #tpu.memory_space<vmem>>, %arg4: memref<16x80xf32, #tpu.memory_space<vmem>>, %arg5: memref<1x16xf32, #tpu.memory_space<vmem>>, %arg6: memref<16x80xf32, #tpu.memory_space<vmem>>, %arg7: memref<1x16xf32, #tpu.memory_space<vmem>>, %arg8: memref<16x80xf32, #tpu.memory_space<vmem>>, %arg9: memref<1x16xf32, #tpu.memory_space<vmem>>, %arg10: memref<16x160xf32, #tpu.memory_space<vmem>>, %arg11: memref<1x32xf32, #tpu.memory_space<vmem>>, %arg12: memref<32x160xf32, #tpu.memory_space<vmem>>, %arg13: memref<1x32xf32, #tpu.memory_space<vmem>>, %arg14: memref<32x160xf32, #tpu.memory_space<vmem>>, %arg15: memref<1x32xf32, #tpu.memory_space<vmem>>, %arg16: memref<32x320xf32, #tpu.memory_space<vmem>>, %arg17: memref<1x64xf32, #tpu.memory_space<vmem>>, %arg18: memref<64x320xf32, #tpu.memory_space<vmem>>, %arg19: memref<1x64xf32, #tpu.memory_space<vmem>>, %arg20: memref<64x320xf32, #tpu.memory_space<vmem>>, %arg21: memref<1x64xf32, #tpu.memory_space<vmem>>, %arg22: memref<64x320xf32, #tpu.memory_space<vmem>>, %arg23: memref<1x64xf32, #tpu.memory_space<vmem>>, %arg24: memref<64x320xf32, #tpu.memory_space<vmem>>, %arg25: memref<1x64xf32, #tpu.memory_space<vmem>>, %arg26: memref<64x320xf32, #tpu.memory_space<vmem>>, %arg27: memref<1x64xf32, #tpu.memory_space<vmem>>, %arg28: memref<64x640xf32, #tpu.memory_space<vmem>>, %arg29: memref<1x128xf32, #tpu.memory_space<vmem>>, %arg30: memref<128x640xf32, #tpu.memory_space<vmem>>, %arg31: memref<1x128xf32, #tpu.memory_space<vmem>>, %arg32: memref<128x640xf32, #tpu.memory_space<vmem>>, %arg33: memref<1x128xf32, #tpu.memory_space<vmem>>, %arg34: memref<128x640xf32, #tpu.memory_space<vmem>>, %arg35: memref<1x128xf32, #tpu.memory_space<vmem>>, %arg36: memref<128x640xf32, #tpu.memory_space<vmem>>, %arg37: memref<1x128xf32, #tpu.memory_space<vmem>>, %arg38: memref<128x640xf32, #tpu.memory_space<vmem>>, %arg39: memref<1x128xf32, #tpu.memory_space<vmem>>, %arg40: memref<128x128xf32, #tpu.memory_space<vmem>>, %arg41: memref<1x128xf32, #tpu.memory_space<vmem>>, %arg42: memref<1x2x128xf32, #tpu.memory_space<vmem>>, %arg43: memref<72x128xf32, #tpu.memory_space<vmem>>) attributes {dimension_semantics = [#tpu.dimension_semantics<parallel>], iteration_bounds = array<i64: 2>, scalar_prefetch = 0 : i64, scratch_operands = 1 : i64, tpu.core_type = #tpu.core_type<tc>, window_params = [{transform_indices = @transform_0, window_bounds = array<i64: 1, 256, 4>}, {pipeline_mode = #tpu.pipeline_mode<synchronous>, transform_indices = @transform_1, window_bounds = array<i64: 4, 48>}, {pipeline_mode = #tpu.pipeline_mode<synchronous>, transform_indices = @transform_2, window_bounds = array<i64: 1, 16>}, {pipeline_mode = #tpu.pipeline_mode<synchronous>, transform_indices = @transform_3, window_bounds = array<i64: 16, 80>}, {pipeline_mode = #tpu.pipeline_mode<synchronous>, transform_indices = @transform_4, window_bounds = array<i64: 1, 16>}, {pipeline_mode = #tpu.pipeline_mode<synchronous>, transform_indices = @transform_5, window_bounds = array<i64: 16, 80>}, {pipeline_mode = #tpu.pipeline_mode<synchronous>, transform_indices = @transform_6, window_bounds = array<i64: 1, 16>}, {pipeline_mode = #tpu.pipeline_mode<synchronous>, transform_indices = @transform_7, window_bounds = array<i64: 16, 80>}, {pipeline_mode = #tpu.pipeline_mode<synchronous>, transform_indices = @transform_8, window_bounds = array<i64: 1, 16>}, {pipeline_mode = #tpu.pipeline_mode<synchronous>, transform_indices = @transform_9, window_bounds = array<i64: 16, 160>}, {pipeline_mode = #tpu.pipeline_mode<synchronous>, transform_indices = @transform_10, window_bounds = array<i64: 1, 32>}, {pipeline_mode = #tpu.pipeline_mode<synchronous>, transform_indices = @transform_11, window_bounds = array<i64: 32, 160>}, {pipeline_mode = #tpu.pipeline_mode<synchronous>, transform_indices = @transform_12, window_bounds = array<i64: 1, 32>}, {pipeline_mode = #tpu.pipeline_mode<synchronous>, transform_indices = @transform_13, window_bounds = array<i64: 32, 160>}, {pipeline_mode = #tpu.pipeline_mode<synchronous>, transform_indices = @transform_14, window_bounds = array<i64: 1, 32>}, {pipeline_mode = #tpu.pipeline_mode<synchronous>, transform_indices = @transform_15, window_bounds = array<i64: 32, 320>}, {pipeline_mode = #tpu.pipeline_mode<synchronous>, transform_indices = @transform_16, window_bounds = array<i64: 1, 64>}, {pipeline_mode = #tpu.pipeline_mode<synchronous>, transform_indices = @transform_17, window_bounds = array<i64: 64, 320>}, {pipeline_mode = #tpu.pipeline_mode<synchronous>, transform_indices = @transform_18, window_bounds = array<i64: 1, 64>}, {pipeline_mode = #tpu.pipeline_mode<synchronous>, transform_indices = @transform_19, window_bounds = array<i64: 64, 320>}, {pipeline_mode = #tpu.pipeline_mode<synchronous>, transform_indices = @transform_20, window_bounds = array<i64: 1, 64>}, {pipeline_mode = #tpu.pipeline_mode<synchronous>, transform_indices = @transform_21, window_bounds = array<i64: 64, 320>}, {pipeline_mode = #tpu.pipeline_mode<synchronous>, transform_indices = @transform_22, window_bounds = array<i64: 1, 64>}, {pipeline_mode = #tpu.pipeline_mode<synchronous>, transform_indices = @transform_23, window_bounds = array<i64: 64, 320>}, {pipeline_mode = #tpu.pipeline_mode<synchronous>, transform_indices = @transform_24, window_bounds = array<i64: 1, 64>}, {pipeline_mode = #tpu.pipeline_mode<synchronous>, transform_indices = @transform_25, window_bounds = array<i64: 64, 320>}, {pipeline_mode = #tpu.pipeline_mode<synchronous>, transform_indices = @transform_26, window_bounds = array<i64: 1, 64>}, {pipeline_mode = #tpu.pipeline_mode<synchronous>, transform_indices = @transform_27, window_bounds = array<i64: 64, 640>}, {pipeline_mode = #tpu.pipeline_mode<synchronous>, transform_indices = @transform_28, window_bounds = array<i64: 1, 128>}, {pipeline_mode = #tpu.pipeline_mode<synchronous>, transform_indices = @transform_29, window_bounds = array<i64: 128, 640>}, {pipeline_mode = #tpu.pipeline_mode<synchronous>, transform_indices = @transform_30, window_bounds = array<i64: 1, 128>}, {pipeline_mode = #tpu.pipeline_mode<synchronous>, transform_indices = @transform_31, window_bounds = array<i64: 128, 640>}, {pipeline_mode = #tpu.pipeline_mode<synchronous>, transform_indices = @transform_32, window_bounds = array<i64: 1, 128>}, {pipeline_mode = #tpu.pipeline_mode<synchronous>, transform_indices = @transform_33, window_bounds = array<i64: 128, 640>}, {pipeline_mode = #tpu.pipeline_mode<synchronous>, transform_indices = @transform_34, window_bounds = array<i64: 1, 128>}, {pipeline_mode = #tpu.pipeline_mode<synchronous>, transform_indices = @transform_35, window_bounds = array<i64: 128, 640>}, {pipeline_mode = #tpu.pipeline_mode<synchronous>, transform_indices = @transform_36, window_bounds = array<i64: 1, 128>}, {pipeline_mode = #tpu.pipeline_mode<synchronous>, transform_indices = @transform_37, window_bounds = array<i64: 128, 640>}, {pipeline_mode = #tpu.pipeline_mode<synchronous>, transform_indices = @transform_38, window_bounds = array<i64: 1, 128>}, {pipeline_mode = #tpu.pipeline_mode<synchronous>, transform_indices = @transform_39, window_bounds = array<i64: 128, 128>}, {pipeline_mode = #tpu.pipeline_mode<synchronous>, transform_indices = @transform_40, window_bounds = array<i64: 1, 128>}, {transform_indices = @transform_41, window_bounds = array<i64: 1, 2, 128>}]} {
    %c0 = arith.constant 0 : index
    %c0_0 = arith.constant 0 : index
    %c0_1 = arith.constant 0 : index
    %0 = vector.load %arg1[%c0, %c0_0, %c0_1] : memref<1x256x4xf32, #tpu.memory_space<vmem>>, vector<1x256x4xf32>
    %1 = vector.shape_cast %0 : vector<1x256x4xf32> to vector<256x4xf32>
    %2 = tpu.iota {dimensions = array<i32: 0>} : vector<129x256xi32>
    %3 = tpu.iota {dimensions = array<i32: 1>} : vector<129x256xi32>
    %c2_i32 = arith.constant 2 : i32
    %4 = vector.broadcast %c2_i32 : i32 to vector<129x256xi32>
    %5 = arith.muli %4, %2 : vector<129x256xi32>
    %c1_i32 = arith.constant 1 : i32
    %6 = vector.broadcast %c1_i32 : i32 to vector<129x256xi32>
    %7 = arith.subi %5, %6 : vector<129x256xi32>
    %8 = arith.cmpi eq, %3, %7 : vector<129x256xi32>
    %9 = arith.extui %8 : vector<129x256xi1> to vector<129x256xi32>
    %10 = arith.sitofp %9 : vector<129x256xi32> to vector<129x256xf32>
    %cst = arith.constant dense<0.000000e+00> : vector<129x4xf32>
    %11 = tpu.matmul %10, %1, %cst {dimension_numbers = #tpu.dot_dimension_numbers<[1], [0], [0], [1], [0, 0, 1, 1], [], []>} : vector<129x256xf32>, vector<256x4xf32>, vector<129x4xf32> -> vector<129x4xf32>
    %12 = tpu.iota {dimensions = array<i32: 0>} : vector<128x256xi32>
    %13 = tpu.iota {dimensions = array<i32: 1>} : vector<128x256xi32>
    %c2_i32_2 = arith.constant 2 : i32
    %14 = vector.broadcast %c2_i32_2 : i32 to vector<128x256xi32>
    %15 = arith.muli %14, %12 : vector<128x256xi32>
    %c1_i32_3 = arith.constant 1 : i32
    %16 = vector.broadcast %c1_i32_3 : i32 to vector<128x256xi32>
    %17 = arith.addi %15, %16 : vector<128x256xi32>
    %c1_i32_4 = arith.constant 1 : i32
    %18 = vector.broadcast %c1_i32_4 : i32 to vector<128x256xi32>
    %19 = arith.subi %17, %18 : vector<128x256xi32>
    %20 = arith.cmpi eq, %13, %19 : vector<128x256xi32>
    %21 = arith.extui %20 : vector<128x256xi1> to vector<128x256xi32>
    %22 = arith.sitofp %21 : vector<128x256xi32> to vector<128x256xf32>
    %cst_5 = arith.constant dense<0.000000e+00> : vector<128x4xf32>
    %23 = tpu.matmul %22, %1, %cst_5 {dimension_numbers = #tpu.dot_dimension_numbers<[1], [0], [0], [1], [0, 0, 1, 1], [], []>} : vector<128x256xf32>, vector<256x4xf32>, vector<128x4xf32> -> vector<128x4xf32>
    %c0_6 = arith.constant 0 : index
    %c0_7 = arith.constant 0 : index
    %24 = vector.load %arg2[%c0_6, %c0_7] : memref<4x48xf32, #tpu.memory_space<vmem>>, vector<4x32xf32>
    %cst_8 = arith.constant dense<0.000000e+00> : vector<129x32xf32>
    %25 = tpu.matmul %11, %24, %cst_8 {dimension_numbers = #tpu.dot_dimension_numbers<[1], [0], [0], [1], [0, 0, 1, 1], [], []>} : vector<129x4xf32>, vector<4x32xf32>, vector<129x32xf32> -> vector<129x32xf32>
    %c0_9 = arith.constant 0 : index
    %c32 = arith.constant 32 : index
    %26 = vector.load %arg2[%c0_9, %c32] : memref<4x48xf32, #tpu.memory_space<vmem>>, vector<4x16xf32>
    %cst_10 = arith.constant dense<0.000000e+00> : vector<128x16xf32>
    %27 = tpu.matmul %23, %26, %cst_10 {dimension_numbers = #tpu.dot_dimension_numbers<[1], [0], [0], [1], [0, 0, 1, 1], [], []>} : vector<128x4xf32>, vector<4x16xf32>, vector<128x16xf32> -> vector<128x16xf32>
    %28 = vector.extract_strided_slice %25 {offsets = [0, 0], sizes = [128, 16], strides = [1, 1]} : vector<129x32xf32> to vector<128x16xf32>
    %29 = vector.extract_strided_slice %25 {offsets = [1, 16], sizes = [128, 16], strides = [1, 1]} : vector<129x32xf32> to vector<128x16xf32>
    %30 = arith.addf %28, %29 : vector<128x16xf32>
    %31 = arith.addf %30, %27 : vector<128x16xf32>
    %c0_11 = arith.constant 0 : index
    %c0_12 = arith.constant 0 : index
    %32 = vector.load %arg3[%c0_11, %c0_12] : memref<1x16xf32, #tpu.memory_space<vmem>>, vector<1x16xf32>
    %33 = vector.broadcast %32 : vector<1x16xf32> to vector<128x16xf32>
    %34 = arith.addf %31, %33 : vector<128x16xf32>
    %cst_13 = arith.constant 0.000000e+00 : f32
    %35 = vector.broadcast %cst_13 : f32 to vector<128x16xf32>
    %36 = arith.maximumf %34, %35 : vector<128x16xf32>
    %37 = tpu.iota {dimensions = array<i32: 0>} : vector<66x128xi32>
    %38 = tpu.iota {dimensions = array<i32: 1>} : vector<66x128xi32>
    %c2_i32_14 = arith.constant 2 : i32
    %39 = vector.broadcast %c2_i32_14 : i32 to vector<66x128xi32>
    %40 = arith.muli %39, %37 : vector<66x128xi32>
    %c2_i32_15 = arith.constant 2 : i32
    %41 = vector.broadcast %c2_i32_15 : i32 to vector<66x128xi32>
    %42 = arith.subi %40, %41 : vector<66x128xi32>
    %43 = arith.cmpi eq, %38, %42 : vector<66x128xi32>
    %44 = arith.extui %43 : vector<66x128xi1> to vector<66x128xi32>
    %45 = arith.sitofp %44 : vector<66x128xi32> to vector<66x128xf32>
    %cst_16 = arith.constant dense<0.000000e+00> : vector<66x16xf32>
    %46 = tpu.matmul %45, %36, %cst_16 {dimension_numbers = #tpu.dot_dimension_numbers<[1], [0], [0], [1], [0, 0, 1, 1], [], []>} : vector<66x128xf32>, vector<128x16xf32>, vector<66x16xf32> -> vector<66x16xf32>
    %47 = tpu.iota {dimensions = array<i32: 0>} : vector<65x128xi32>
    %48 = tpu.iota {dimensions = array<i32: 1>} : vector<65x128xi32>
    %c2_i32_17 = arith.constant 2 : i32
    %49 = vector.broadcast %c2_i32_17 : i32 to vector<65x128xi32>
    %50 = arith.muli %49, %47 : vector<65x128xi32>
    %c1_i32_18 = arith.constant 1 : i32
    %51 = vector.broadcast %c1_i32_18 : i32 to vector<65x128xi32>
    %52 = arith.addi %50, %51 : vector<65x128xi32>
    %c2_i32_19 = arith.constant 2 : i32
    %53 = vector.broadcast %c2_i32_19 : i32 to vector<65x128xi32>
    %54 = arith.subi %52, %53 : vector<65x128xi32>
    %55 = arith.cmpi eq, %48, %54 : vector<65x128xi32>
    %56 = arith.extui %55 : vector<65x128xi1> to vector<65x128xi32>
    %57 = arith.sitofp %56 : vector<65x128xi32> to vector<65x128xf32>
    %cst_20 = arith.constant dense<0.000000e+00> : vector<65x16xf32>
    %58 = tpu.matmul %57, %36, %cst_20 {dimension_numbers = #tpu.dot_dimension_numbers<[1], [0], [0], [1], [0, 0, 1, 1], [], []>} : vector<65x128xf32>, vector<128x16xf32>, vector<65x16xf32> -> vector<65x16xf32>
    %c0_21 = arith.constant 0 : index
    %c0_22 = arith.constant 0 : index
    %59 = vector.load %arg4[%c0_21, %c0_22] : memref<16x80xf32, #tpu.memory_space<vmem>>, vector<16x48xf32>
    %cst_23 = arith.constant dense<0.000000e+00> : vector<66x48xf32>
    %60 = tpu.matmul %46, %59, %cst_23 {dimension_numbers = #tpu.dot_dimension_numbers<[1], [0], [0], [1], [0, 0, 1, 1], [], []>} : vector<66x16xf32>, vector<16x48xf32>, vector<66x48xf32> -> vector<66x48xf32>
    %c0_24 = arith.constant 0 : index
    %c48 = arith.constant 48 : index
    %61 = vector.load %arg4[%c0_24, %c48] : memref<16x80xf32, #tpu.memory_space<vmem>>, vector<16x32xf32>
    %cst_25 = arith.constant dense<0.000000e+00> : vector<65x32xf32>
    %62 = tpu.matmul %58, %61, %cst_25 {dimension_numbers = #tpu.dot_dimension_numbers<[1], [0], [0], [1], [0, 0, 1, 1], [], []>} : vector<65x16xf32>, vector<16x32xf32>, vector<65x32xf32> -> vector<65x32xf32>
    %63 = vector.extract_strided_slice %60 {offsets = [0, 0], sizes = [64, 16], strides = [1, 1]} : vector<66x48xf32> to vector<64x16xf32>
    %64 = vector.extract_strided_slice %60 {offsets = [1, 16], sizes = [64, 16], strides = [1, 1]} : vector<66x48xf32> to vector<64x16xf32>
    %65 = arith.addf %63, %64 : vector<64x16xf32>
    %66 = vector.extract_strided_slice %60 {offsets = [2, 32], sizes = [64, 16], strides = [1, 1]} : vector<66x48xf32> to vector<64x16xf32>
    %67 = arith.addf %65, %66 : vector<64x16xf32>
    %68 = vector.extract_strided_slice %62 {offsets = [0, 0], sizes = [64, 16], strides = [1, 1]} : vector<65x32xf32> to vector<64x16xf32>
    %69 = arith.addf %67, %68 : vector<64x16xf32>
    %70 = vector.extract_strided_slice %62 {offsets = [1, 16], sizes = [64, 16], strides = [1, 1]} : vector<65x32xf32> to vector<64x16xf32>
    %71 = arith.addf %69, %70 : vector<64x16xf32>
    %c0_26 = arith.constant 0 : index
    %c0_27 = arith.constant 0 : index
    %72 = vector.load %arg5[%c0_26, %c0_27] : memref<1x16xf32, #tpu.memory_space<vmem>>, vector<1x16xf32>
    %73 = vector.broadcast %72 : vector<1x16xf32> to vector<64x16xf32>
    %74 = arith.addf %71, %73 : vector<64x16xf32>
    %cst_28 = arith.constant 0.000000e+00 : f32
    %75 = vector.broadcast %cst_28 : f32 to vector<64x16xf32>
    %76 = arith.maximumf %74, %75 : vector<64x16xf32>
    %cst_29 = arith.constant 0.000000e+00 : f32
    %77 = vector.broadcast %cst_29 : f32 to vector<2x16xf32>
    %c0_30 = arith.constant 0 : index
    %c0_31 = arith.constant 0 : index
    %78 = vector.load %arg43[%c0_30, %c0_31] : memref<72x128xf32, #tpu.memory_space<vmem>>, vector<2x16xf32>
    tpu.vector_store %arg43[%c0_30, %c0_31], %77 {strides = array<i32>} : memref<72x128xf32, #tpu.memory_space<vmem>>, vector<2x16xf32>,
    %cst_32 = arith.constant 0.000000e+00 : f32
    %79 = vector.broadcast %cst_32 : f32 to vector<2x16xf32>
    %c66 = arith.constant 66 : index
    %c0_33 = arith.constant 0 : index
    %80 = vector.load %arg43[%c66, %c0_33] : memref<72x128xf32, #tpu.memory_space<vmem>>, vector<2x16xf32>
    tpu.vector_store %arg43[%c66, %c0_33], %79 {strides = array<i32>} : memref<72x128xf32, #tpu.memory_space<vmem>>, vector<2x16xf32>,
    %c2 = arith.constant 2 : index
    %c0_34 = arith.constant 0 : index
    %81 = vector.load %arg43[%c2, %c0_34] : memref<72x128xf32, #tpu.memory_space<vmem>>, vector<64x16xf32>
    tpu.vector_store %arg43[%c2, %c0_34], %76 {strides = array<i32>} : memref<72x128xf32, #tpu.memory_space<vmem>>, vector<64x16xf32>,
    %c0_35 = arith.constant 0 : index
    %c0_36 = arith.constant 0 : index
    %82 = vector.load %arg43[%c0_35, %c0_36] : memref<72x128xf32, #tpu.memory_space<vmem>>, vector<68x16xf32>
    %c0_37 = arith.constant 0 : index
    %c0_38 = arith.constant 0 : index
    %83 = vector.load %arg6[%c0_37, %c0_38] : memref<16x80xf32, #tpu.memory_space<vmem>>, vector<16x80xf32>
    %cst_39 = arith.constant dense<0.000000e+00> : vector<68x80xf32>
    %84 = tpu.matmul %82, %83, %cst_39 {dimension_numbers = #tpu.dot_dimension_numbers<[1], [0], [0], [1], [0, 0, 1, 1], [], []>} : vector<68x16xf32>, vector<16x80xf32>, vector<68x80xf32> -> vector<68x80xf32>
    %85 = vector.extract_strided_slice %84 {offsets = [0, 0], sizes = [64, 16], strides = [1, 1]} : vector<68x80xf32> to vector<64x16xf32>
    %86 = vector.extract_strided_slice %84 {offsets = [1, 16], sizes = [64, 16], strides = [1, 1]} : vector<68x80xf32> to vector<64x16xf32>
    %87 = arith.addf %85, %86 : vector<64x16xf32>
    %88 = vector.extract_strided_slice %84 {offsets = [2, 32], sizes = [64, 16], strides = [1, 1]} : vector<68x80xf32> to vector<64x16xf32>
    %89 = arith.addf %87, %88 : vector<64x16xf32>
    %90 = vector.extract_strided_slice %84 {offsets = [3, 48], sizes = [64, 16], strides = [1, 1]} : vector<68x80xf32> to vector<64x16xf32>
    %91 = arith.addf %89, %90 : vector<64x16xf32>
    %92 = vector.extract_strided_slice %84 {offsets = [4, 64], sizes = [64, 16], strides = [1, 1]} : vector<68x80xf32> to vector<64x16xf32>
    %93 = arith.addf %91, %92 : vector<64x16xf32>
    %c0_40 = arith.constant 0 : index
    %c0_41 = arith.constant 0 : index
    %94 = vector.load %arg7[%c0_40, %c0_41] : memref<1x16xf32, #tpu.memory_space<vmem>>, vector<1x16xf32>
    %95 = vector.broadcast %94 : vector<1x16xf32> to vector<64x16xf32>
    %96 = arith.addf %93, %95 : vector<64x16xf32>
    %cst_42 = arith.constant 0.000000e+00 : f32
    %97 = vector.broadcast %cst_42 : f32 to vector<64x16xf32>
    %98 = arith.maximumf %96, %97 : vector<64x16xf32>
    %cst_43 = arith.constant 0.000000e+00 : f32
    %99 = vector.broadcast %cst_43 : f32 to vector<2x16xf32>
    %c0_44 = arith.constant 0 : index
    %c0_45 = arith.constant 0 : index
    %100 = vector.load %arg43[%c0_44, %c0_45] : memref<72x128xf32, #tpu.memory_space<vmem>>, vector<2x16xf32>
    tpu.vector_store %arg43[%c0_44, %c0_45], %99 {strides = array<i32>} : memref<72x128xf32, #tpu.memory_space<vmem>>, vector<2x16xf32>,
    %cst_46 = arith.constant 0.000000e+00 : f32
    %101 = vector.broadcast %cst_46 : f32 to vector<2x16xf32>
    %c66_47 = arith.constant 66 : index
    %c0_48 = arith.constant 0 : index
    %102 = vector.load %arg43[%c66_47, %c0_48] : memref<72x128xf32, #tpu.memory_space<vmem>>, vector<2x16xf32>
    tpu.vector_store %arg43[%c66_47, %c0_48], %101 {strides = array<i32>} : memref<72x128xf32, #tpu.memory_space<vmem>>, vector<2x16xf32>,
    %c2_49 = arith.constant 2 : index
    %c0_50 = arith.constant 0 : index
    %103 = vector.load %arg43[%c2_49, %c0_50] : memref<72x128xf32, #tpu.memory_space<vmem>>, vector<64x16xf32>
    tpu.vector_store %arg43[%c2_49, %c0_50], %98 {strides = array<i32>} : memref<72x128xf32, #tpu.memory_space<vmem>>, vector<64x16xf32>,
    %c0_51 = arith.constant 0 : index
    %c0_52 = arith.constant 0 : index
    %104 = vector.load %arg43[%c0_51, %c0_52] : memref<72x128xf32, #tpu.memory_space<vmem>>, vector<68x16xf32>
    %c0_53 = arith.constant 0 : index
    %c0_54 = arith.constant 0 : index
    %105 = vector.load %arg8[%c0_53, %c0_54] : memref<16x80xf32, #tpu.memory_space<vmem>>, vector<16x80xf32>
    %cst_55 = arith.constant dense<0.000000e+00> : vector<68x80xf32>
    %106 = tpu.matmul %104, %105, %cst_55 {dimension_numbers = #tpu.dot_dimension_numbers<[1], [0], [0], [1], [0, 0, 1, 1], [], []>} : vector<68x16xf32>, vector<16x80xf32>, vector<68x80xf32> -> vector<68x80xf32>
    %107 = vector.extract_strided_slice %106 {offsets = [0, 0], sizes = [64, 16], strides = [1, 1]} : vector<68x80xf32> to vector<64x16xf32>
    %108 = vector.extract_strided_slice %106 {offsets = [1, 16], sizes = [64, 16], strides = [1, 1]} : vector<68x80xf32> to vector<64x16xf32>
    %109 = arith.addf %107, %108 : vector<64x16xf32>
    %110 = vector.extract_strided_slice %106 {offsets = [2, 32], sizes = [64, 16], strides = [1, 1]} : vector<68x80xf32> to vector<64x16xf32>
    %111 = arith.addf %109, %110 : vector<64x16xf32>
    %112 = vector.extract_strided_slice %106 {offsets = [3, 48], sizes = [64, 16], strides = [1, 1]} : vector<68x80xf32> to vector<64x16xf32>
    %113 = arith.addf %111, %112 : vector<64x16xf32>
    %114 = vector.extract_strided_slice %106 {offsets = [4, 64], sizes = [64, 16], strides = [1, 1]} : vector<68x80xf32> to vector<64x16xf32>
    %115 = arith.addf %113, %114 : vector<64x16xf32>
    %c0_56 = arith.constant 0 : index
    %c0_57 = arith.constant 0 : index
    %116 = vector.load %arg9[%c0_56, %c0_57] : memref<1x16xf32, #tpu.memory_space<vmem>>, vector<1x16xf32>
    %117 = vector.broadcast %116 : vector<1x16xf32> to vector<64x16xf32>
    %118 = arith.addf %115, %117 : vector<64x16xf32>
    %119 = arith.addf %118, %76 : vector<64x16xf32>
    %cst_58 = arith.constant 0.000000e+00 : f32
    %120 = vector.broadcast %cst_58 : f32 to vector<64x16xf32>
    %121 = arith.maximumf %119, %120 : vector<64x16xf32>
    %122 = tpu.iota {dimensions = array<i32: 0>} : vector<34x64xi32>
    %123 = tpu.iota {dimensions = array<i32: 1>} : vector<34x64xi32>
    %c2_i32_59 = arith.constant 2 : i32
    %124 = vector.broadcast %c2_i32_59 : i32 to vector<34x64xi32>
    %125 = arith.muli %124, %122 : vector<34x64xi32>
    %c2_i32_60 = arith.constant 2 : i32
    %126 = vector.broadcast %c2_i32_60 : i32 to vector<34x64xi32>
    %127 = arith.subi %125, %126 : vector<34x64xi32>
    %128 = arith.cmpi eq, %123, %127 : vector<34x64xi32>
    %129 = arith.extui %128 : vector<34x64xi1> to vector<34x64xi32>
    %130 = arith.sitofp %129 : vector<34x64xi32> to vector<34x64xf32>
    %cst_61 = arith.constant dense<0.000000e+00> : vector<34x16xf32>
    %131 = tpu.matmul %130, %121, %cst_61 {dimension_numbers = #tpu.dot_dimension_numbers<[1], [0], [0], [1], [0, 0, 1, 1], [], []>} : vector<34x64xf32>, vector<64x16xf32>, vector<34x16xf32> -> vector<34x16xf32>
    %132 = tpu.iota {dimensions = array<i32: 0>} : vector<33x64xi32>
    %133 = tpu.iota {dimensions = array<i32: 1>} : vector<33x64xi32>
    %c2_i32_62 = arith.constant 2 : i32
    %134 = vector.broadcast %c2_i32_62 : i32 to vector<33x64xi32>
    %135 = arith.muli %134, %132 : vector<33x64xi32>
    %c1_i32_63 = arith.constant 1 : i32
    %136 = vector.broadcast %c1_i32_63 : i32 to vector<33x64xi32>
    %137 = arith.addi %135, %136 : vector<33x64xi32>
    %c2_i32_64 = arith.constant 2 : i32
    %138 = vector.broadcast %c2_i32_64 : i32 to vector<33x64xi32>
    %139 = arith.subi %137, %138 : vector<33x64xi32>
    %140 = arith.cmpi eq, %133, %139 : vector<33x64xi32>
    %141 = arith.extui %140 : vector<33x64xi1> to vector<33x64xi32>
    %142 = arith.sitofp %141 : vector<33x64xi32> to vector<33x64xf32>
    %cst_65 = arith.constant dense<0.000000e+00> : vector<33x16xf32>
    %143 = tpu.matmul %142, %121, %cst_65 {dimension_numbers = #tpu.dot_dimension_numbers<[1], [0], [0], [1], [0, 0, 1, 1], [], []>} : vector<33x64xf32>, vector<64x16xf32>, vector<33x16xf32> -> vector<33x16xf32>
    %c0_66 = arith.constant 0 : index
    %c0_67 = arith.constant 0 : index
    %144 = vector.load %arg10[%c0_66, %c0_67] : memref<16x160xf32, #tpu.memory_space<vmem>>, vector<16x96xf32>
    %cst_68 = arith.constant dense<0.000000e+00> : vector<34x96xf32>
    %145 = tpu.matmul %131, %144, %cst_68 {dimension_numbers = #tpu.dot_dimension_numbers<[1], [0], [0], [1], [0, 0, 1, 1], [], []>} : vector<34x16xf32>, vector<16x96xf32>, vector<34x96xf32> -> vector<34x96xf32>
    %c0_69 = arith.constant 0 : index
    %c96 = arith.constant 96 : index
    %146 = vector.load %arg10[%c0_69, %c96] : memref<16x160xf32, #tpu.memory_space<vmem>>, vector<16x64xf32>
    %cst_70 = arith.constant dense<0.000000e+00> : vector<33x64xf32>
    %147 = tpu.matmul %143, %146, %cst_70 {dimension_numbers = #tpu.dot_dimension_numbers<[1], [0], [0], [1], [0, 0, 1, 1], [], []>} : vector<33x16xf32>, vector<16x64xf32>, vector<33x64xf32> -> vector<33x64xf32>
    %148 = vector.extract_strided_slice %145 {offsets = [0, 0], sizes = [32, 32], strides = [1, 1]} : vector<34x96xf32> to vector<32x32xf32>
    %149 = vector.extract_strided_slice %145 {offsets = [1, 32], sizes = [32, 32], strides = [1, 1]} : vector<34x96xf32> to vector<32x32xf32>
    %150 = arith.addf %148, %149 : vector<32x32xf32>
    %151 = vector.extract_strided_slice %145 {offsets = [2, 64], sizes = [32, 32], strides = [1, 1]} : vector<34x96xf32> to vector<32x32xf32>
    %152 = arith.addf %150, %151 : vector<32x32xf32>
    %153 = vector.extract_strided_slice %147 {offsets = [0, 0], sizes = [32, 32], strides = [1, 1]} : vector<33x64xf32> to vector<32x32xf32>
    %154 = arith.addf %152, %153 : vector<32x32xf32>
    %155 = vector.extract_strided_slice %147 {offsets = [1, 32], sizes = [32, 32], strides = [1, 1]} : vector<33x64xf32> to vector<32x32xf32>
    %156 = arith.addf %154, %155 : vector<32x32xf32>
    %c0_71 = arith.constant 0 : index
    %c0_72 = arith.constant 0 : index
    %157 = vector.load %arg11[%c0_71, %c0_72] : memref<1x32xf32, #tpu.memory_space<vmem>>, vector<1x32xf32>
    %158 = vector.broadcast %157 : vector<1x32xf32> to vector<32x32xf32>
    %159 = arith.addf %156, %158 : vector<32x32xf32>
    %cst_73 = arith.constant 0.000000e+00 : f32
    %160 = vector.broadcast %cst_73 : f32 to vector<32x32xf32>
    %161 = arith.maximumf %159, %160 : vector<32x32xf32>
    %cst_74 = arith.constant 0.000000e+00 : f32
    %162 = vector.broadcast %cst_74 : f32 to vector<2x32xf32>
    %c0_75 = arith.constant 0 : index
    %c0_76 = arith.constant 0 : index
    %163 = vector.load %arg43[%c0_75, %c0_76] : memref<72x128xf32, #tpu.memory_space<vmem>>, vector<2x32xf32>
    tpu.vector_store %arg43[%c0_75, %c0_76], %162 {strides = array<i32>} : memref<72x128xf32, #tpu.memory_space<vmem>>, vector<2x32xf32>,
    %cst_77 = arith.constant 0.000000e+00 : f32
    %164 = vector.broadcast %cst_77 : f32 to vector<2x32xf32>
    %c34 = arith.constant 34 : index
    %c0_78 = arith.constant 0 : index
    %165 = vector.load %arg43[%c34, %c0_78] : memref<72x128xf32, #tpu.memory_space<vmem>>, vector<2x32xf32>
    tpu.vector_store %arg43[%c34, %c0_78], %164 {strides = array<i32>} : memref<72x128xf32, #tpu.memory_space<vmem>>, vector<2x32xf32>,
    %c2_79 = arith.constant 2 : index
    %c0_80 = arith.constant 0 : index
    %166 = vector.load %arg43[%c2_79, %c0_80] : memref<72x128xf32, #tpu.memory_space<vmem>>, vector<32x32xf32>
    tpu.vector_store %arg43[%c2_79, %c0_80], %161 {strides = array<i32>} : memref<72x128xf32, #tpu.memory_space<vmem>>, vector<32x32xf32>,
    %c0_81 = arith.constant 0 : index
    %c0_82 = arith.constant 0 : index
    %167 = vector.load %arg43[%c0_81, %c0_82] : memref<72x128xf32, #tpu.memory_space<vmem>>, vector<36x32xf32>
    %c0_83 = arith.constant 0 : index
    %c0_84 = arith.constant 0 : index
    %168 = vector.load %arg12[%c0_83, %c0_84] : memref<32x160xf32, #tpu.memory_space<vmem>>, vector<32x160xf32>
    %cst_85 = arith.constant dense<0.000000e+00> : vector<36x160xf32>
    %169 = tpu.matmul %167, %168, %cst_85 {dimension_numbers = #tpu.dot_dimension_numbers<[1], [0], [0], [1], [0, 0, 1, 1], [], []>} : vector<36x32xf32>, vector<32x160xf32>, vector<36x160xf32> -> vector<36x160xf32>
    %170 = vector.extract_strided_slice %169 {offsets = [0, 0], sizes = [32, 32], strides = [1, 1]} : vector<36x160xf32> to vector<32x32xf32>
    %171 = vector.extract_strided_slice %169 {offsets = [1, 32], sizes = [32, 32], strides = [1, 1]} : vector<36x160xf32> to vector<32x32xf32>
    %172 = arith.addf %170, %171 : vector<32x32xf32>
    %173 = vector.extract_strided_slice %169 {offsets = [2, 64], sizes = [32, 32], strides = [1, 1]} : vector<36x160xf32> to vector<32x32xf32>
    %174 = arith.addf %172, %173 : vector<32x32xf32>
    %175 = vector.extract_strided_slice %169 {offsets = [3, 96], sizes = [32, 32], strides = [1, 1]} : vector<36x160xf32> to vector<32x32xf32>
    %176 = arith.addf %174, %175 : vector<32x32xf32>
    %177 = vector.extract_strided_slice %169 {offsets = [4, 128], sizes = [32, 32], strides = [1, 1]} : vector<36x160xf32> to vector<32x32xf32>
    %178 = arith.addf %176, %177 : vector<32x32xf32>
    %c0_86 = arith.constant 0 : index
    %c0_87 = arith.constant 0 : index
    %179 = vector.load %arg13[%c0_86, %c0_87] : memref<1x32xf32, #tpu.memory_space<vmem>>, vector<1x32xf32>
    %180 = vector.broadcast %179 : vector<1x32xf32> to vector<32x32xf32>
    %181 = arith.addf %178, %180 : vector<32x32xf32>
    %cst_88 = arith.constant 0.000000e+00 : f32
    %182 = vector.broadcast %cst_88 : f32 to vector<32x32xf32>
    %183 = arith.maximumf %181, %182 : vector<32x32xf32>
    %cst_89 = arith.constant 0.000000e+00 : f32
    %184 = vector.broadcast %cst_89 : f32 to vector<2x32xf32>
    %c0_90 = arith.constant 0 : index
    %c0_91 = arith.constant 0 : index
    %185 = vector.load %arg43[%c0_90, %c0_91] : memref<72x128xf32, #tpu.memory_space<vmem>>, vector<2x32xf32>
    tpu.vector_store %arg43[%c0_90, %c0_91], %184 {strides = array<i32>} : memref<72x128xf32, #tpu.memory_space<vmem>>, vector<2x32xf32>,
    %cst_92 = arith.constant 0.000000e+00 : f32
    %186 = vector.broadcast %cst_92 : f32 to vector<2x32xf32>
    %c34_93 = arith.constant 34 : index
    %c0_94 = arith.constant 0 : index
    %187 = vector.load %arg43[%c34_93, %c0_94] : memref<72x128xf32, #tpu.memory_space<vmem>>, vector<2x32xf32>
    tpu.vector_store %arg43[%c34_93, %c0_94], %186 {strides = array<i32>} : memref<72x128xf32, #tpu.memory_space<vmem>>, vector<2x32xf32>,
    %c2_95 = arith.constant 2 : index
    %c0_96 = arith.constant 0 : index
    %188 = vector.load %arg43[%c2_95, %c0_96] : memref<72x128xf32, #tpu.memory_space<vmem>>, vector<32x32xf32>
    tpu.vector_store %arg43[%c2_95, %c0_96], %183 {strides = array<i32>} : memref<72x128xf32, #tpu.memory_space<vmem>>, vector<32x32xf32>,
    %c0_97 = arith.constant 0 : index
    %c0_98 = arith.constant 0 : index
    %189 = vector.load %arg43[%c0_97, %c0_98] : memref<72x128xf32, #tpu.memory_space<vmem>>, vector<36x32xf32>
    %c0_99 = arith.constant 0 : index
    %c0_100 = arith.constant 0 : index
    %190 = vector.load %arg14[%c0_99, %c0_100] : memref<32x160xf32, #tpu.memory_space<vmem>>, vector<32x160xf32>
    %cst_101 = arith.constant dense<0.000000e+00> : vector<36x160xf32>
    %191 = tpu.matmul %189, %190, %cst_101 {dimension_numbers = #tpu.dot_dimension_numbers<[1], [0], [0], [1], [0, 0, 1, 1], [], []>} : vector<36x32xf32>, vector<32x160xf32>, vector<36x160xf32> -> vector<36x160xf32>
    %192 = vector.extract_strided_slice %191 {offsets = [0, 0], sizes = [32, 32], strides = [1, 1]} : vector<36x160xf32> to vector<32x32xf32>
    %193 = vector.extract_strided_slice %191 {offsets = [1, 32], sizes = [32, 32], strides = [1, 1]} : vector<36x160xf32> to vector<32x32xf32>
    %194 = arith.addf %192, %193 : vector<32x32xf32>
    %195 = vector.extract_strided_slice %191 {offsets = [2, 64], sizes = [32, 32], strides = [1, 1]} : vector<36x160xf32> to vector<32x32xf32>
    %196 = arith.addf %194, %195 : vector<32x32xf32>
    %197 = vector.extract_strided_slice %191 {offsets = [3, 96], sizes = [32, 32], strides = [1, 1]} : vector<36x160xf32> to vector<32x32xf32>
    %198 = arith.addf %196, %197 : vector<32x32xf32>
    %199 = vector.extract_strided_slice %191 {offsets = [4, 128], sizes = [32, 32], strides = [1, 1]} : vector<36x160xf32> to vector<32x32xf32>
    %200 = arith.addf %198, %199 : vector<32x32xf32>
    %c0_102 = arith.constant 0 : index
    %c0_103 = arith.constant 0 : index
    %201 = vector.load %arg15[%c0_102, %c0_103] : memref<1x32xf32, #tpu.memory_space<vmem>>, vector<1x32xf32>
    %202 = vector.broadcast %201 : vector<1x32xf32> to vector<32x32xf32>
    %203 = arith.addf %200, %202 : vector<32x32xf32>
    %204 = arith.addf %203, %161 : vector<32x32xf32>
    %cst_104 = arith.constant 0.000000e+00 : f32
    %205 = vector.broadcast %cst_104 : f32 to vector<32x32xf32>
    %206 = arith.maximumf %204, %205 : vector<32x32xf32>
    %207 = tpu.iota {dimensions = array<i32: 0>} : vector<18x32xi32>
    %208 = tpu.iota {dimensions = array<i32: 1>} : vector<18x32xi32>
    %c2_i32_105 = arith.constant 2 : i32
    %209 = vector.broadcast %c2_i32_105 : i32 to vector<18x32xi32>
    %210 = arith.muli %209, %207 : vector<18x32xi32>
    %c2_i32_106 = arith.constant 2 : i32
    %211 = vector.broadcast %c2_i32_106 : i32 to vector<18x32xi32>
    %212 = arith.subi %210, %211 : vector<18x32xi32>
    %213 = arith.cmpi eq, %208, %212 : vector<18x32xi32>
    %214 = arith.extui %213 : vector<18x32xi1> to vector<18x32xi32>
    %215 = arith.sitofp %214 : vector<18x32xi32> to vector<18x32xf32>
    %cst_107 = arith.constant dense<0.000000e+00> : vector<18x32xf32>
    %216 = tpu.matmul %215, %206, %cst_107 {dimension_numbers = #tpu.dot_dimension_numbers<[1], [0], [0], [1], [0, 0, 1, 1], [], []>} : vector<18x32xf32>, vector<32x32xf32>, vector<18x32xf32> -> vector<18x32xf32>
    %217 = tpu.iota {dimensions = array<i32: 0>} : vector<17x32xi32>
    %218 = tpu.iota {dimensions = array<i32: 1>} : vector<17x32xi32>
    %c2_i32_108 = arith.constant 2 : i32
    %219 = vector.broadcast %c2_i32_108 : i32 to vector<17x32xi32>
    %220 = arith.muli %219, %217 : vector<17x32xi32>
    %c1_i32_109 = arith.constant 1 : i32
    %221 = vector.broadcast %c1_i32_109 : i32 to vector<17x32xi32>
    %222 = arith.addi %220, %221 : vector<17x32xi32>
    %c2_i32_110 = arith.constant 2 : i32
    %223 = vector.broadcast %c2_i32_110 : i32 to vector<17x32xi32>
    %224 = arith.subi %222, %223 : vector<17x32xi32>
    %225 = arith.cmpi eq, %218, %224 : vector<17x32xi32>
    %226 = arith.extui %225 : vector<17x32xi1> to vector<17x32xi32>
    %227 = arith.sitofp %226 : vector<17x32xi32> to vector<17x32xf32>
    %cst_111 = arith.constant dense<0.000000e+00> : vector<17x32xf32>
    %228 = tpu.matmul %227, %206, %cst_111 {dimension_numbers = #tpu.dot_dimension_numbers<[1], [0], [0], [1], [0, 0, 1, 1], [], []>} : vector<17x32xf32>, vector<32x32xf32>, vector<17x32xf32> -> vector<17x32xf32>
    %c0_112 = arith.constant 0 : index
    %c0_113 = arith.constant 0 : index
    %229 = vector.load %arg16[%c0_112, %c0_113] : memref<32x320xf32, #tpu.memory_space<vmem>>, vector<32x192xf32>
    %cst_114 = arith.constant dense<0.000000e+00> : vector<18x192xf32>
    %230 = tpu.matmul %216, %229, %cst_114 {dimension_numbers = #tpu.dot_dimension_numbers<[1], [0], [0], [1], [0, 0, 1, 1], [], []>} : vector<18x32xf32>, vector<32x192xf32>, vector<18x192xf32> -> vector<18x192xf32>
    %c0_115 = arith.constant 0 : index
    %c192 = arith.constant 192 : index
    %231 = vector.load %arg16[%c0_115, %c192] : memref<32x320xf32, #tpu.memory_space<vmem>>, vector<32x128xf32>
    %cst_116 = arith.constant dense<0.000000e+00> : vector<17x128xf32>
    %232 = tpu.matmul %228, %231, %cst_116 {dimension_numbers = #tpu.dot_dimension_numbers<[1], [0], [0], [1], [0, 0, 1, 1], [], []>} : vector<17x32xf32>, vector<32x128xf32>, vector<17x128xf32> -> vector<17x128xf32>
    %233 = vector.extract_strided_slice %230 {offsets = [0, 0], sizes = [16, 64], strides = [1, 1]} : vector<18x192xf32> to vector<16x64xf32>
    %234 = vector.extract_strided_slice %230 {offsets = [1, 64], sizes = [16, 64], strides = [1, 1]} : vector<18x192xf32> to vector<16x64xf32>
    %235 = arith.addf %233, %234 : vector<16x64xf32>
    %236 = vector.extract_strided_slice %230 {offsets = [2, 128], sizes = [16, 64], strides = [1, 1]} : vector<18x192xf32> to vector<16x64xf32>
    %237 = arith.addf %235, %236 : vector<16x64xf32>
    %238 = vector.extract_strided_slice %232 {offsets = [0, 0], sizes = [16, 64], strides = [1, 1]} : vector<17x128xf32> to vector<16x64xf32>
    %239 = arith.addf %237, %238 : vector<16x64xf32>
    %240 = vector.extract_strided_slice %232 {offsets = [1, 64], sizes = [16, 64], strides = [1, 1]} : vector<17x128xf32> to vector<16x64xf32>
    %241 = arith.addf %239, %240 : vector<16x64xf32>
    %c0_117 = arith.constant 0 : index
    %c0_118 = arith.constant 0 : index
    %242 = vector.load %arg17[%c0_117, %c0_118] : memref<1x64xf32, #tpu.memory_space<vmem>>, vector<1x64xf32>
    %243 = vector.broadcast %242 : vector<1x64xf32> to vector<16x64xf32>
    %244 = arith.addf %241, %243 : vector<16x64xf32>
    %cst_119 = arith.constant 0.000000e+00 : f32
    %245 = vector.broadcast %cst_119 : f32 to vector<16x64xf32>
    %246 = arith.maximumf %244, %245 : vector<16x64xf32>
    %cst_120 = arith.constant 0.000000e+00 : f32
    %247 = vector.broadcast %cst_120 : f32 to vector<2x64xf32>
    %c0_121 = arith.constant 0 : index
    %c0_122 = arith.constant 0 : index
    %248 = vector.load %arg43[%c0_121, %c0_122] : memref<72x128xf32, #tpu.memory_space<vmem>>, vector<2x64xf32>
    tpu.vector_store %arg43[%c0_121, %c0_122], %247 {strides = array<i32>} : memref<72x128xf32, #tpu.memory_space<vmem>>, vector<2x64xf32>,
    %cst_123 = arith.constant 0.000000e+00 : f32
    %249 = vector.broadcast %cst_123 : f32 to vector<2x64xf32>
    %c18 = arith.constant 18 : index
    %c0_124 = arith.constant 0 : index
    %250 = vector.load %arg43[%c18, %c0_124] : memref<72x128xf32, #tpu.memory_space<vmem>>, vector<2x64xf32>
    tpu.vector_store %arg43[%c18, %c0_124], %249 {strides = array<i32>} : memref<72x128xf32, #tpu.memory_space<vmem>>, vector<2x64xf32>,
    %c2_125 = arith.constant 2 : index
    %c0_126 = arith.constant 0 : index
    %251 = vector.load %arg43[%c2_125, %c0_126] : memref<72x128xf32, #tpu.memory_space<vmem>>, vector<16x64xf32>
    tpu.vector_store %arg43[%c2_125, %c0_126], %246 {strides = array<i32>} : memref<72x128xf32, #tpu.memory_space<vmem>>, vector<16x64xf32>,
    %c0_127 = arith.constant 0 : index
    %c0_128 = arith.constant 0 : index
    %252 = vector.load %arg43[%c0_127, %c0_128] : memref<72x128xf32, #tpu.memory_space<vmem>>, vector<20x64xf32>
    %c0_129 = arith.constant 0 : index
    %c0_130 = arith.constant 0 : index
    %253 = vector.load %arg18[%c0_129, %c0_130] : memref<64x320xf32, #tpu.memory_space<vmem>>, vector<64x320xf32>
    %cst_131 = arith.constant dense<0.000000e+00> : vector<20x320xf32>
    %254 = tpu.matmul %252, %253, %cst_131 {dimension_numbers = #tpu.dot_dimension_numbers<[1], [0], [0], [1], [0, 0, 1, 1], [], []>} : vector<20x64xf32>, vector<64x320xf32>, vector<20x320xf32> -> vector<20x320xf32>
    %255 = vector.extract_strided_slice %254 {offsets = [0, 0], sizes = [16, 64], strides = [1, 1]} : vector<20x320xf32> to vector<16x64xf32>
    %256 = vector.extract_strided_slice %254 {offsets = [1, 64], sizes = [16, 64], strides = [1, 1]} : vector<20x320xf32> to vector<16x64xf32>
    %257 = arith.addf %255, %256 : vector<16x64xf32>
    %258 = vector.extract_strided_slice %254 {offsets = [2, 128], sizes = [16, 64], strides = [1, 1]} : vector<20x320xf32> to vector<16x64xf32>
    %259 = arith.addf %257, %258 : vector<16x64xf32>
    %260 = vector.extract_strided_slice %254 {offsets = [3, 192], sizes = [16, 64], strides = [1, 1]} : vector<20x320xf32> to vector<16x64xf32>
    %261 = arith.addf %259, %260 : vector<16x64xf32>
    %262 = vector.extract_strided_slice %254 {offsets = [4, 256], sizes = [16, 64], strides = [1, 1]} : vector<20x320xf32> to vector<16x64xf32>
    %263 = arith.addf %261, %262 : vector<16x64xf32>
    %c0_132 = arith.constant 0 : index
    %c0_133 = arith.constant 0 : index
    %264 = vector.load %arg19[%c0_132, %c0_133] : memref<1x64xf32, #tpu.memory_space<vmem>>, vector<1x64xf32>
    %265 = vector.broadcast %264 : vector<1x64xf32> to vector<16x64xf32>
    %266 = arith.addf %263, %265 : vector<16x64xf32>
    %cst_134 = arith.constant 0.000000e+00 : f32
    %267 = vector.broadcast %cst_134 : f32 to vector<16x64xf32>
    %268 = arith.maximumf %266, %267 : vector<16x64xf32>
    %cst_135 = arith.constant 0.000000e+00 : f32
    %269 = vector.broadcast %cst_135 : f32 to vector<2x64xf32>
    %c0_136 = arith.constant 0 : index
    %c0_137 = arith.constant 0 : index
    %270 = vector.load %arg43[%c0_136, %c0_137] : memref<72x128xf32, #tpu.memory_space<vmem>>, vector<2x64xf32>
    tpu.vector_store %arg43[%c0_136, %c0_137], %269 {strides = array<i32>} : memref<72x128xf32, #tpu.memory_space<vmem>>, vector<2x64xf32>,
    %cst_138 = arith.constant 0.000000e+00 : f32
    %271 = vector.broadcast %cst_138 : f32 to vector<2x64xf32>
    %c18_139 = arith.constant 18 : index
    %c0_140 = arith.constant 0 : index
    %272 = vector.load %arg43[%c18_139, %c0_140] : memref<72x128xf32, #tpu.memory_space<vmem>>, vector<2x64xf32>
    tpu.vector_store %arg43[%c18_139, %c0_140], %271 {strides = array<i32>} : memref<72x128xf32, #tpu.memory_space<vmem>>, vector<2x64xf32>,
    %c2_141 = arith.constant 2 : index
    %c0_142 = arith.constant 0 : index
    %273 = vector.load %arg43[%c2_141, %c0_142] : memref<72x128xf32, #tpu.memory_space<vmem>>, vector<16x64xf32>
    tpu.vector_store %arg43[%c2_141, %c0_142], %268 {strides = array<i32>} : memref<72x128xf32, #tpu.memory_space<vmem>>, vector<16x64xf32>,
    %c0_143 = arith.constant 0 : index
    %c0_144 = arith.constant 0 : index
    %274 = vector.load %arg43[%c0_143, %c0_144] : memref<72x128xf32, #tpu.memory_space<vmem>>, vector<20x64xf32>
    %c0_145 = arith.constant 0 : index
    %c0_146 = arith.constant 0 : index
    %275 = vector.load %arg20[%c0_145, %c0_146] : memref<64x320xf32, #tpu.memory_space<vmem>>, vector<64x320xf32>
    %cst_147 = arith.constant dense<0.000000e+00> : vector<20x320xf32>
    %276 = tpu.matmul %274, %275, %cst_147 {dimension_numbers = #tpu.dot_dimension_numbers<[1], [0], [0], [1], [0, 0, 1, 1], [], []>} : vector<20x64xf32>, vector<64x320xf32>, vector<20x320xf32> -> vector<20x320xf32>
    %277 = vector.extract_strided_slice %276 {offsets = [0, 0], sizes = [16, 64], strides = [1, 1]} : vector<20x320xf32> to vector<16x64xf32>
    %278 = vector.extract_strided_slice %276 {offsets = [1, 64], sizes = [16, 64], strides = [1, 1]} : vector<20x320xf32> to vector<16x64xf32>
    %279 = arith.addf %277, %278 : vector<16x64xf32>
    %280 = vector.extract_strided_slice %276 {offsets = [2, 128], sizes = [16, 64], strides = [1, 1]} : vector<20x320xf32> to vector<16x64xf32>
    %281 = arith.addf %279, %280 : vector<16x64xf32>
    %282 = vector.extract_strided_slice %276 {offsets = [3, 192], sizes = [16, 64], strides = [1, 1]} : vector<20x320xf32> to vector<16x64xf32>
    %283 = arith.addf %281, %282 : vector<16x64xf32>
    %284 = vector.extract_strided_slice %276 {offsets = [4, 256], sizes = [16, 64], strides = [1, 1]} : vector<20x320xf32> to vector<16x64xf32>
    %285 = arith.addf %283, %284 : vector<16x64xf32>
    %c0_148 = arith.constant 0 : index
    %c0_149 = arith.constant 0 : index
    %286 = vector.load %arg21[%c0_148, %c0_149] : memref<1x64xf32, #tpu.memory_space<vmem>>, vector<1x64xf32>
    %287 = vector.broadcast %286 : vector<1x64xf32> to vector<16x64xf32>
    %288 = arith.addf %285, %287 : vector<16x64xf32>
    %289 = arith.addf %288, %246 : vector<16x64xf32>
    %cst_150 = arith.constant 0.000000e+00 : f32
    %290 = vector.broadcast %cst_150 : f32 to vector<16x64xf32>
    %291 = arith.maximumf %289, %290 : vector<16x64xf32>
    %292 = tpu.iota {dimensions = array<i32: 0>} : vector<10x16xi32>
    %293 = tpu.iota {dimensions = array<i32: 1>} : vector<10x16xi32>
    %c2_i32_151 = arith.constant 2 : i32
    %294 = vector.broadcast %c2_i32_151 : i32 to vector<10x16xi32>
    %295 = arith.muli %294, %292 : vector<10x16xi32>
    %c2_i32_152 = arith.constant 2 : i32
    %296 = vector.broadcast %c2_i32_152 : i32 to vector<10x16xi32>
    %297 = arith.subi %295, %296 : vector<10x16xi32>
    %298 = arith.cmpi eq, %293, %297 : vector<10x16xi32>
    %299 = arith.extui %298 : vector<10x16xi1> to vector<10x16xi32>
    %300 = arith.sitofp %299 : vector<10x16xi32> to vector<10x16xf32>
    %cst_153 = arith.constant dense<0.000000e+00> : vector<10x64xf32>
    %301 = tpu.matmul %300, %291, %cst_153 {dimension_numbers = #tpu.dot_dimension_numbers<[1], [0], [0], [1], [0, 0, 1, 1], [], []>} : vector<10x16xf32>, vector<16x64xf32>, vector<10x64xf32> -> vector<10x64xf32>
    %302 = tpu.iota {dimensions = array<i32: 0>} : vector<9x16xi32>
    %303 = tpu.iota {dimensions = array<i32: 1>} : vector<9x16xi32>
    %c2_i32_154 = arith.constant 2 : i32
    %304 = vector.broadcast %c2_i32_154 : i32 to vector<9x16xi32>
    %305 = arith.muli %304, %302 : vector<9x16xi32>
    %c1_i32_155 = arith.constant 1 : i32
    %306 = vector.broadcast %c1_i32_155 : i32 to vector<9x16xi32>
    %307 = arith.addi %305, %306 : vector<9x16xi32>
    %c2_i32_156 = arith.constant 2 : i32
    %308 = vector.broadcast %c2_i32_156 : i32 to vector<9x16xi32>
    %309 = arith.subi %307, %308 : vector<9x16xi32>
    %310 = arith.cmpi eq, %303, %309 : vector<9x16xi32>
    %311 = arith.extui %310 : vector<9x16xi1> to vector<9x16xi32>
    %312 = arith.sitofp %311 : vector<9x16xi32> to vector<9x16xf32>
    %cst_157 = arith.constant dense<0.000000e+00> : vector<9x64xf32>
    %313 = tpu.matmul %312, %291, %cst_157 {dimension_numbers = #tpu.dot_dimension_numbers<[1], [0], [0], [1], [0, 0, 1, 1], [], []>} : vector<9x16xf32>, vector<16x64xf32>, vector<9x64xf32> -> vector<9x64xf32>
    %c0_158 = arith.constant 0 : index
    %c0_159 = arith.constant 0 : index
    %314 = vector.load %arg22[%c0_158, %c0_159] : memref<64x320xf32, #tpu.memory_space<vmem>>, vector<64x192xf32>
    %cst_160 = arith.constant dense<0.000000e+00> : vector<10x192xf32>
    %315 = tpu.matmul %301, %314, %cst_160 {dimension_numbers = #tpu.dot_dimension_numbers<[1], [0], [0], [1], [0, 0, 1, 1], [], []>} : vector<10x64xf32>, vector<64x192xf32>, vector<10x192xf32> -> vector<10x192xf32>
    %c0_161 = arith.constant 0 : index
    %c192_162 = arith.constant 192 : index
    %316 = vector.load %arg22[%c0_161, %c192_162] : memref<64x320xf32, #tpu.memory_space<vmem>>, vector<64x128xf32>
    %cst_163 = arith.constant dense<0.000000e+00> : vector<9x128xf32>
    %317 = tpu.matmul %313, %316, %cst_163 {dimension_numbers = #tpu.dot_dimension_numbers<[1], [0], [0], [1], [0, 0, 1, 1], [], []>} : vector<9x64xf32>, vector<64x128xf32>, vector<9x128xf32> -> vector<9x128xf32>
    %318 = vector.extract_strided_slice %315 {offsets = [0, 0], sizes = [8, 64], strides = [1, 1]} : vector<10x192xf32> to vector<8x64xf32>
    %319 = vector.extract_strided_slice %315 {offsets = [1, 64], sizes = [8, 64], strides = [1, 1]} : vector<10x192xf32> to vector<8x64xf32>
    %320 = arith.addf %318, %319 : vector<8x64xf32>
    %321 = vector.extract_strided_slice %315 {offsets = [2, 128], sizes = [8, 64], strides = [1, 1]} : vector<10x192xf32> to vector<8x64xf32>
    %322 = arith.addf %320, %321 : vector<8x64xf32>
    %323 = vector.extract_strided_slice %317 {offsets = [0, 0], sizes = [8, 64], strides = [1, 1]} : vector<9x128xf32> to vector<8x64xf32>
    %324 = arith.addf %322, %323 : vector<8x64xf32>
    %325 = vector.extract_strided_slice %317 {offsets = [1, 64], sizes = [8, 64], strides = [1, 1]} : vector<9x128xf32> to vector<8x64xf32>
    %326 = arith.addf %324, %325 : vector<8x64xf32>
    %c0_164 = arith.constant 0 : index
    %c0_165 = arith.constant 0 : index
    %327 = vector.load %arg23[%c0_164, %c0_165] : memref<1x64xf32, #tpu.memory_space<vmem>>, vector<1x64xf32>
    %328 = vector.broadcast %327 : vector<1x64xf32> to vector<8x64xf32>
    %329 = arith.addf %326, %328 : vector<8x64xf32>
    %cst_166 = arith.constant 0.000000e+00 : f32
    %330 = vector.broadcast %cst_166 : f32 to vector<8x64xf32>
    %331 = arith.maximumf %329, %330 : vector<8x64xf32>
    %cst_167 = arith.constant 0.000000e+00 : f32
    %332 = vector.broadcast %cst_167 : f32 to vector<2x64xf32>
    %c0_168 = arith.constant 0 : index
    %c0_169 = arith.constant 0 : index
    %333 = vector.load %arg43[%c0_168, %c0_169] : memref<72x128xf32, #tpu.memory_space<vmem>>, vector<2x64xf32>
    tpu.vector_store %arg43[%c0_168, %c0_169], %332 {strides = array<i32>} : memref<72x128xf32, #tpu.memory_space<vmem>>, vector<2x64xf32>,
    %cst_170 = arith.constant 0.000000e+00 : f32
    %334 = vector.broadcast %cst_170 : f32 to vector<2x64xf32>
    %c10 = arith.constant 10 : index
    %c0_171 = arith.constant 0 : index
    %335 = vector.load %arg43[%c10, %c0_171] : memref<72x128xf32, #tpu.memory_space<vmem>>, vector<2x64xf32>
    tpu.vector_store %arg43[%c10, %c0_171], %334 {strides = array<i32>} : memref<72x128xf32, #tpu.memory_space<vmem>>, vector<2x64xf32>,
    %c2_172 = arith.constant 2 : index
    %c0_173 = arith.constant 0 : index
    %336 = vector.load %arg43[%c2_172, %c0_173] : memref<72x128xf32, #tpu.memory_space<vmem>>, vector<8x64xf32>
    tpu.vector_store %arg43[%c2_172, %c0_173], %331 {strides = array<i32>} : memref<72x128xf32, #tpu.memory_space<vmem>>, vector<8x64xf32>,
    %c0_174 = arith.constant 0 : index
    %c0_175 = arith.constant 0 : index
    %337 = vector.load %arg43[%c0_174, %c0_175] : memref<72x128xf32, #tpu.memory_space<vmem>>, vector<12x64xf32>
    %c0_176 = arith.constant 0 : index
    %c0_177 = arith.constant 0 : index
    %338 = vector.load %arg24[%c0_176, %c0_177] : memref<64x320xf32, #tpu.memory_space<vmem>>, vector<64x320xf32>
    %cst_178 = arith.constant dense<0.000000e+00> : vector<12x320xf32>
    %339 = tpu.matmul %337, %338, %cst_178 {dimension_numbers = #tpu.dot_dimension_numbers<[1], [0], [0], [1], [0, 0, 1, 1], [], []>} : vector<12x64xf32>, vector<64x320xf32>, vector<12x320xf32> -> vector<12x320xf32>
    %340 = vector.extract_strided_slice %339 {offsets = [0, 0], sizes = [8, 64], strides = [1, 1]} : vector<12x320xf32> to vector<8x64xf32>
    %341 = vector.extract_strided_slice %339 {offsets = [1, 64], sizes = [8, 64], strides = [1, 1]} : vector<12x320xf32> to vector<8x64xf32>
    %342 = arith.addf %340, %341 : vector<8x64xf32>
    %343 = vector.extract_strided_slice %339 {offsets = [2, 128], sizes = [8, 64], strides = [1, 1]} : vector<12x320xf32> to vector<8x64xf32>
    %344 = arith.addf %342, %343 : vector<8x64xf32>
    %345 = vector.extract_strided_slice %339 {offsets = [3, 192], sizes = [8, 64], strides = [1, 1]} : vector<12x320xf32> to vector<8x64xf32>
    %346 = arith.addf %344, %345 : vector<8x64xf32>
    %347 = vector.extract_strided_slice %339 {offsets = [4, 256], sizes = [8, 64], strides = [1, 1]} : vector<12x320xf32> to vector<8x64xf32>
    %348 = arith.addf %346, %347 : vector<8x64xf32>
    %c0_179 = arith.constant 0 : index
    %c0_180 = arith.constant 0 : index
    %349 = vector.load %arg25[%c0_179, %c0_180] : memref<1x64xf32, #tpu.memory_space<vmem>>, vector<1x64xf32>
    %350 = vector.broadcast %349 : vector<1x64xf32> to vector<8x64xf32>
    %351 = arith.addf %348, %350 : vector<8x64xf32>
    %cst_181 = arith.constant 0.000000e+00 : f32
    %352 = vector.broadcast %cst_181 : f32 to vector<8x64xf32>
    %353 = arith.maximumf %351, %352 : vector<8x64xf32>
    %cst_182 = arith.constant 0.000000e+00 : f32
    %354 = vector.broadcast %cst_182 : f32 to vector<2x64xf32>
    %c0_183 = arith.constant 0 : index
    %c0_184 = arith.constant 0 : index
    %355 = vector.load %arg43[%c0_183, %c0_184] : memref<72x128xf32, #tpu.memory_space<vmem>>, vector<2x64xf32>
    tpu.vector_store %arg43[%c0_183, %c0_184], %354 {strides = array<i32>} : memref<72x128xf32, #tpu.memory_space<vmem>>, vector<2x64xf32>,
    %cst_185 = arith.constant 0.000000e+00 : f32
    %356 = vector.broadcast %cst_185 : f32 to vector<2x64xf32>
    %c10_186 = arith.constant 10 : index
    %c0_187 = arith.constant 0 : index
    %357 = vector.load %arg43[%c10_186, %c0_187] : memref<72x128xf32, #tpu.memory_space<vmem>>, vector<2x64xf32>
    tpu.vector_store %arg43[%c10_186, %c0_187], %356 {strides = array<i32>} : memref<72x128xf32, #tpu.memory_space<vmem>>, vector<2x64xf32>,
    %c2_188 = arith.constant 2 : index
    %c0_189 = arith.constant 0 : index
    %358 = vector.load %arg43[%c2_188, %c0_189] : memref<72x128xf32, #tpu.memory_space<vmem>>, vector<8x64xf32>
    tpu.vector_store %arg43[%c2_188, %c0_189], %353 {strides = array<i32>} : memref<72x128xf32, #tpu.memory_space<vmem>>, vector<8x64xf32>,
    %c0_190 = arith.constant 0 : index
    %c0_191 = arith.constant 0 : index
    %359 = vector.load %arg43[%c0_190, %c0_191] : memref<72x128xf32, #tpu.memory_space<vmem>>, vector<12x64xf32>
    %c0_192 = arith.constant 0 : index
    %c0_193 = arith.constant 0 : index
    %360 = vector.load %arg26[%c0_192, %c0_193] : memref<64x320xf32, #tpu.memory_space<vmem>>, vector<64x320xf32>
    %cst_194 = arith.constant dense<0.000000e+00> : vector<12x320xf32>
    %361 = tpu.matmul %359, %360, %cst_194 {dimension_numbers = #tpu.dot_dimension_numbers<[1], [0], [0], [1], [0, 0, 1, 1], [], []>} : vector<12x64xf32>, vector<64x320xf32>, vector<12x320xf32> -> vector<12x320xf32>
    %362 = vector.extract_strided_slice %361 {offsets = [0, 0], sizes = [8, 64], strides = [1, 1]} : vector<12x320xf32> to vector<8x64xf32>
    %363 = vector.extract_strided_slice %361 {offsets = [1, 64], sizes = [8, 64], strides = [1, 1]} : vector<12x320xf32> to vector<8x64xf32>
    %364 = arith.addf %362, %363 : vector<8x64xf32>
    %365 = vector.extract_strided_slice %361 {offsets = [2, 128], sizes = [8, 64], strides = [1, 1]} : vector<12x320xf32> to vector<8x64xf32>
    %366 = arith.addf %364, %365 : vector<8x64xf32>
    %367 = vector.extract_strided_slice %361 {offsets = [3, 192], sizes = [8, 64], strides = [1, 1]} : vector<12x320xf32> to vector<8x64xf32>
    %368 = arith.addf %366, %367 : vector<8x64xf32>
    %369 = vector.extract_strided_slice %361 {offsets = [4, 256], sizes = [8, 64], strides = [1, 1]} : vector<12x320xf32> to vector<8x64xf32>
    %370 = arith.addf %368, %369 : vector<8x64xf32>
    %c0_195 = arith.constant 0 : index
    %c0_196 = arith.constant 0 : index
    %371 = vector.load %arg27[%c0_195, %c0_196] : memref<1x64xf32, #tpu.memory_space<vmem>>, vector<1x64xf32>
    %372 = vector.broadcast %371 : vector<1x64xf32> to vector<8x64xf32>
    %373 = arith.addf %370, %372 : vector<8x64xf32>
    %374 = arith.addf %373, %331 : vector<8x64xf32>
    %cst_197 = arith.constant 0.000000e+00 : f32
    %375 = vector.broadcast %cst_197 : f32 to vector<8x64xf32>
    %376 = arith.maximumf %374, %375 : vector<8x64xf32>
    %377 = tpu.iota {dimensions = array<i32: 0>} : vector<6x8xi32>
    %378 = tpu.iota {dimensions = array<i32: 1>} : vector<6x8xi32>
    %c2_i32_198 = arith.constant 2 : i32
    %379 = vector.broadcast %c2_i32_198 : i32 to vector<6x8xi32>
    %380 = arith.muli %379, %377 : vector<6x8xi32>
    %c2_i32_199 = arith.constant 2 : i32
    %381 = vector.broadcast %c2_i32_199 : i32 to vector<6x8xi32>
    %382 = arith.subi %380, %381 : vector<6x8xi32>
    %383 = arith.cmpi eq, %378, %382 : vector<6x8xi32>
    %384 = arith.extui %383 : vector<6x8xi1> to vector<6x8xi32>
    %385 = arith.sitofp %384 : vector<6x8xi32> to vector<6x8xf32>
    %cst_200 = arith.constant dense<0.000000e+00> : vector<6x64xf32>
    %386 = tpu.matmul %385, %376, %cst_200 {dimension_numbers = #tpu.dot_dimension_numbers<[1], [0], [0], [1], [0, 0, 1, 1], [], []>} : vector<6x8xf32>, vector<8x64xf32>, vector<6x64xf32> -> vector<6x64xf32>
    %387 = tpu.iota {dimensions = array<i32: 0>} : vector<5x8xi32>
    %388 = tpu.iota {dimensions = array<i32: 1>} : vector<5x8xi32>
    %c2_i32_201 = arith.constant 2 : i32
    %389 = vector.broadcast %c2_i32_201 : i32 to vector<5x8xi32>
    %390 = arith.muli %389, %387 : vector<5x8xi32>
    %c1_i32_202 = arith.constant 1 : i32
    %391 = vector.broadcast %c1_i32_202 : i32 to vector<5x8xi32>
    %392 = arith.addi %390, %391 : vector<5x8xi32>
    %c2_i32_203 = arith.constant 2 : i32
    %393 = vector.broadcast %c2_i32_203 : i32 to vector<5x8xi32>
    %394 = arith.subi %392, %393 : vector<5x8xi32>
    %395 = arith.cmpi eq, %388, %394 : vector<5x8xi32>
    %396 = arith.extui %395 : vector<5x8xi1> to vector<5x8xi32>
    %397 = arith.sitofp %396 : vector<5x8xi32> to vector<5x8xf32>
    %cst_204 = arith.constant dense<0.000000e+00> : vector<5x64xf32>
    %398 = tpu.matmul %397, %376, %cst_204 {dimension_numbers = #tpu.dot_dimension_numbers<[1], [0], [0], [1], [0, 0, 1, 1], [], []>} : vector<5x8xf32>, vector<8x64xf32>, vector<5x64xf32> -> vector<5x64xf32>
    %c0_205 = arith.constant 0 : index
    %c0_206 = arith.constant 0 : index
    %399 = vector.load %arg28[%c0_205, %c0_206] : memref<64x640xf32, #tpu.memory_space<vmem>>, vector<64x384xf32>
    %cst_207 = arith.constant dense<0.000000e+00> : vector<6x384xf32>
    %400 = tpu.matmul %386, %399, %cst_207 {dimension_numbers = #tpu.dot_dimension_numbers<[1], [0], [0], [1], [0, 0, 1, 1], [], []>} : vector<6x64xf32>, vector<64x384xf32>, vector<6x384xf32> -> vector<6x384xf32>
    %c0_208 = arith.constant 0 : index
    %c384 = arith.constant 384 : index
    %401 = vector.load %arg28[%c0_208, %c384] : memref<64x640xf32, #tpu.memory_space<vmem>>, vector<64x256xf32>
    %cst_209 = arith.constant dense<0.000000e+00> : vector<5x256xf32>
    %402 = tpu.matmul %398, %401, %cst_209 {dimension_numbers = #tpu.dot_dimension_numbers<[1], [0], [0], [1], [0, 0, 1, 1], [], []>} : vector<5x64xf32>, vector<64x256xf32>, vector<5x256xf32> -> vector<5x256xf32>
    %403 = vector.extract_strided_slice %400 {offsets = [0, 0], sizes = [4, 128], strides = [1, 1]} : vector<6x384xf32> to vector<4x128xf32>
    %404 = vector.extract_strided_slice %400 {offsets = [1, 128], sizes = [4, 128], strides = [1, 1]} : vector<6x384xf32> to vector<4x128xf32>
    %405 = arith.addf %403, %404 : vector<4x128xf32>
    %406 = vector.extract_strided_slice %400 {offsets = [2, 256], sizes = [4, 128], strides = [1, 1]} : vector<6x384xf32> to vector<4x128xf32>
    %407 = arith.addf %405, %406 : vector<4x128xf32>
    %408 = vector.extract_strided_slice %402 {offsets = [0, 0], sizes = [4, 128], strides = [1, 1]} : vector<5x256xf32> to vector<4x128xf32>
    %409 = arith.addf %407, %408 : vector<4x128xf32>
    %410 = vector.extract_strided_slice %402 {offsets = [1, 128], sizes = [4, 128], strides = [1, 1]} : vector<5x256xf32> to vector<4x128xf32>
    %411 = arith.addf %409, %410 : vector<4x128xf32>
    %c0_210 = arith.constant 0 : index
    %c0_211 = arith.constant 0 : index
    %412 = vector.load %arg29[%c0_210, %c0_211] : memref<1x128xf32, #tpu.memory_space<vmem>>, vector<1x128xf32>
    %413 = vector.broadcast %412 : vector<1x128xf32> to vector<4x128xf32>
    %414 = arith.addf %411, %413 : vector<4x128xf32>
    %cst_212 = arith.constant 0.000000e+00 : f32
    %415 = vector.broadcast %cst_212 : f32 to vector<4x128xf32>
    %416 = arith.maximumf %414, %415 : vector<4x128xf32>
    %cst_213 = arith.constant 0.000000e+00 : f32
    %417 = vector.broadcast %cst_213 : f32 to vector<2x128xf32>
    %c0_214 = arith.constant 0 : index
    %c0_215 = arith.constant 0 : index
    %418 = vector.load %arg43[%c0_214, %c0_215] : memref<72x128xf32, #tpu.memory_space<vmem>>, vector<2x128xf32>
    tpu.vector_store %arg43[%c0_214, %c0_215], %417 {strides = array<i32>} : memref<72x128xf32, #tpu.memory_space<vmem>>, vector<2x128xf32>,
    %cst_216 = arith.constant 0.000000e+00 : f32
    %419 = vector.broadcast %cst_216 : f32 to vector<2x128xf32>
    %c6 = arith.constant 6 : index
    %c0_217 = arith.constant 0 : index
    %420 = vector.load %arg43[%c6, %c0_217] : memref<72x128xf32, #tpu.memory_space<vmem>>, vector<2x128xf32>
    tpu.vector_store %arg43[%c6, %c0_217], %419 {strides = array<i32>} : memref<72x128xf32, #tpu.memory_space<vmem>>, vector<2x128xf32>,
    %c2_218 = arith.constant 2 : index
    %c0_219 = arith.constant 0 : index
    %421 = vector.load %arg43[%c2_218, %c0_219] : memref<72x128xf32, #tpu.memory_space<vmem>>, vector<4x128xf32>
    tpu.vector_store %arg43[%c2_218, %c0_219], %416 {strides = array<i32>} : memref<72x128xf32, #tpu.memory_space<vmem>>, vector<4x128xf32>,
    %c0_220 = arith.constant 0 : index
    %c0_221 = arith.constant 0 : index
    %422 = vector.load %arg43[%c0_220, %c0_221] : memref<72x128xf32, #tpu.memory_space<vmem>>, vector<8x128xf32>
    %c0_222 = arith.constant 0 : index
    %c0_223 = arith.constant 0 : index
    %423 = vector.load %arg30[%c0_222, %c0_223] : memref<128x640xf32, #tpu.memory_space<vmem>>, vector<128x640xf32>
    %cst_224 = arith.constant dense<0.000000e+00> : vector<8x640xf32>
    %424 = tpu.matmul %422, %423, %cst_224 {dimension_numbers = #tpu.dot_dimension_numbers<[1], [0], [0], [1], [0, 0, 1, 1], [], []>} : vector<8x128xf32>, vector<128x640xf32>, vector<8x640xf32> -> vector<8x640xf32>
    %425 = vector.extract_strided_slice %424 {offsets = [0, 0], sizes = [4, 128], strides = [1, 1]} : vector<8x640xf32> to vector<4x128xf32>
    %426 = vector.extract_strided_slice %424 {offsets = [1, 128], sizes = [4, 128], strides = [1, 1]} : vector<8x640xf32> to vector<4x128xf32>
    %427 = arith.addf %425, %426 : vector<4x128xf32>
    %428 = vector.extract_strided_slice %424 {offsets = [2, 256], sizes = [4, 128], strides = [1, 1]} : vector<8x640xf32> to vector<4x128xf32>
    %429 = arith.addf %427, %428 : vector<4x128xf32>
    %430 = vector.extract_strided_slice %424 {offsets = [3, 384], sizes = [4, 128], strides = [1, 1]} : vector<8x640xf32> to vector<4x128xf32>
    %431 = arith.addf %429, %430 : vector<4x128xf32>
    %432 = vector.extract_strided_slice %424 {offsets = [4, 512], sizes = [4, 128], strides = [1, 1]} : vector<8x640xf32> to vector<4x128xf32>
    %433 = arith.addf %431, %432 : vector<4x128xf32>
    %c0_225 = arith.constant 0 : index
    %c0_226 = arith.constant 0 : index
    %434 = vector.load %arg31[%c0_225, %c0_226] : memref<1x128xf32, #tpu.memory_space<vmem>>, vector<1x128xf32>
    %435 = vector.broadcast %434 : vector<1x128xf32> to vector<4x128xf32>
    %436 = arith.addf %433, %435 : vector<4x128xf32>
    %cst_227 = arith.constant 0.000000e+00 : f32
    %437 = vector.broadcast %cst_227 : f32 to vector<4x128xf32>
    %438 = arith.maximumf %436, %437 : vector<4x128xf32>
    %cst_228 = arith.constant 0.000000e+00 : f32
    %439 = vector.broadcast %cst_228 : f32 to vector<2x128xf32>
    %c0_229 = arith.constant 0 : index
    %c0_230 = arith.constant 0 : index
    %440 = vector.load %arg43[%c0_229, %c0_230] : memref<72x128xf32, #tpu.memory_space<vmem>>, vector<2x128xf32>
    tpu.vector_store %arg43[%c0_229, %c0_230], %439 {strides = array<i32>} : memref<72x128xf32, #tpu.memory_space<vmem>>, vector<2x128xf32>,
    %cst_231 = arith.constant 0.000000e+00 : f32
    %441 = vector.broadcast %cst_231 : f32 to vector<2x128xf32>
    %c6_232 = arith.constant 6 : index
    %c0_233 = arith.constant 0 : index
    %442 = vector.load %arg43[%c6_232, %c0_233] : memref<72x128xf32, #tpu.memory_space<vmem>>, vector<2x128xf32>
    tpu.vector_store %arg43[%c6_232, %c0_233], %441 {strides = array<i32>} : memref<72x128xf32, #tpu.memory_space<vmem>>, vector<2x128xf32>,
    %c2_234 = arith.constant 2 : index
    %c0_235 = arith.constant 0 : index
    %443 = vector.load %arg43[%c2_234, %c0_235] : memref<72x128xf32, #tpu.memory_space<vmem>>, vector<4x128xf32>
    tpu.vector_store %arg43[%c2_234, %c0_235], %438 {strides = array<i32>} : memref<72x128xf32, #tpu.memory_space<vmem>>, vector<4x128xf32>,
    %c0_236 = arith.constant 0 : index
    %c0_237 = arith.constant 0 : index
    %444 = vector.load %arg43[%c0_236, %c0_237] : memref<72x128xf32, #tpu.memory_space<vmem>>, vector<8x128xf32>
    %c0_238 = arith.constant 0 : index
    %c0_239 = arith.constant 0 : index
    %445 = vector.load %arg32[%c0_238, %c0_239] : memref<128x640xf32, #tpu.memory_space<vmem>>, vector<128x640xf32>
    %cst_240 = arith.constant dense<0.000000e+00> : vector<8x640xf32>
    %446 = tpu.matmul %444, %445, %cst_240 {dimension_numbers = #tpu.dot_dimension_numbers<[1], [0], [0], [1], [0, 0, 1, 1], [], []>} : vector<8x128xf32>, vector<128x640xf32>, vector<8x640xf32> -> vector<8x640xf32>
    %447 = vector.extract_strided_slice %446 {offsets = [0, 0], sizes = [4, 128], strides = [1, 1]} : vector<8x640xf32> to vector<4x128xf32>
    %448 = vector.extract_strided_slice %446 {offsets = [1, 128], sizes = [4, 128], strides = [1, 1]} : vector<8x640xf32> to vector<4x128xf32>
    %449 = arith.addf %447, %448 : vector<4x128xf32>
    %450 = vector.extract_strided_slice %446 {offsets = [2, 256], sizes = [4, 128], strides = [1, 1]} : vector<8x640xf32> to vector<4x128xf32>
    %451 = arith.addf %449, %450 : vector<4x128xf32>
    %452 = vector.extract_strided_slice %446 {offsets = [3, 384], sizes = [4, 128], strides = [1, 1]} : vector<8x640xf32> to vector<4x128xf32>
    %453 = arith.addf %451, %452 : vector<4x128xf32>
    %454 = vector.extract_strided_slice %446 {offsets = [4, 512], sizes = [4, 128], strides = [1, 1]} : vector<8x640xf32> to vector<4x128xf32>
    %455 = arith.addf %453, %454 : vector<4x128xf32>
    %c0_241 = arith.constant 0 : index
    %c0_242 = arith.constant 0 : index
    %456 = vector.load %arg33[%c0_241, %c0_242] : memref<1x128xf32, #tpu.memory_space<vmem>>, vector<1x128xf32>
    %457 = vector.broadcast %456 : vector<1x128xf32> to vector<4x128xf32>
    %458 = arith.addf %455, %457 : vector<4x128xf32>
    %459 = arith.addf %458, %416 : vector<4x128xf32>
    %cst_243 = arith.constant 0.000000e+00 : f32
    %460 = vector.broadcast %cst_243 : f32 to vector<4x128xf32>
    %461 = arith.maximumf %459, %460 : vector<4x128xf32>
    %462 = tpu.iota {dimensions = array<i32: 0>} : vector<4x4xi32>
    %463 = tpu.iota {dimensions = array<i32: 1>} : vector<4x4xi32>
    %c2_i32_244 = arith.constant 2 : i32
    %464 = vector.broadcast %c2_i32_244 : i32 to vector<4x4xi32>
    %465 = arith.muli %464, %462 : vector<4x4xi32>
    %c2_i32_245 = arith.constant 2 : i32
    %466 = vector.broadcast %c2_i32_245 : i32 to vector<4x4xi32>
    %467 = arith.subi %465, %466 : vector<4x4xi32>
    %468 = arith.cmpi eq, %463, %467 : vector<4x4xi32>
    %469 = arith.extui %468 : vector<4x4xi1> to vector<4x4xi32>
    %470 = arith.sitofp %469 : vector<4x4xi32> to vector<4x4xf32>
    %cst_246 = arith.constant dense<0.000000e+00> : vector<4x128xf32>
    %471 = tpu.matmul %470, %461, %cst_246 {dimension_numbers = #tpu.dot_dimension_numbers<[1], [0], [0], [1], [0, 0, 1, 1], [], []>} : vector<4x4xf32>, vector<4x128xf32>, vector<4x128xf32> -> vector<4x128xf32>
    %472 = tpu.iota {dimensions = array<i32: 0>} : vector<3x4xi32>
    %473 = tpu.iota {dimensions = array<i32: 1>} : vector<3x4xi32>
    %c2_i32_247 = arith.constant 2 : i32
    %474 = vector.broadcast %c2_i32_247 : i32 to vector<3x4xi32>
    %475 = arith.muli %474, %472 : vector<3x4xi32>
    %c1_i32_248 = arith.constant 1 : i32
    %476 = vector.broadcast %c1_i32_248 : i32 to vector<3x4xi32>
    %477 = arith.addi %475, %476 : vector<3x4xi32>
    %c2_i32_249 = arith.constant 2 : i32
    %478 = vector.broadcast %c2_i32_249 : i32 to vector<3x4xi32>
    %479 = arith.subi %477, %478 : vector<3x4xi32>
    %480 = arith.cmpi eq, %473, %479 : vector<3x4xi32>
    %481 = arith.extui %480 : vector<3x4xi1> to vector<3x4xi32>
    %482 = arith.sitofp %481 : vector<3x4xi32> to vector<3x4xf32>
    %cst_250 = arith.constant dense<0.000000e+00> : vector<3x128xf32>
    %483 = tpu.matmul %482, %461, %cst_250 {dimension_numbers = #tpu.dot_dimension_numbers<[1], [0], [0], [1], [0, 0, 1, 1], [], []>} : vector<3x4xf32>, vector<4x128xf32>, vector<3x128xf32> -> vector<3x128xf32>
    %c0_251 = arith.constant 0 : index
    %c0_252 = arith.constant 0 : index
    %484 = vector.load %arg34[%c0_251, %c0_252] : memref<128x640xf32, #tpu.memory_space<vmem>>, vector<128x384xf32>
    %cst_253 = arith.constant dense<0.000000e+00> : vector<4x384xf32>
    %485 = tpu.matmul %471, %484, %cst_253 {dimension_numbers = #tpu.dot_dimension_numbers<[1], [0], [0], [1], [0, 0, 1, 1], [], []>} : vector<4x128xf32>, vector<128x384xf32>, vector<4x384xf32> -> vector<4x384xf32>
    %c0_254 = arith.constant 0 : index
    %c384_255 = arith.constant 384 : index
    %486 = vector.load %arg34[%c0_254, %c384_255] : memref<128x640xf32, #tpu.memory_space<vmem>>, vector<128x256xf32>
    %cst_256 = arith.constant dense<0.000000e+00> : vector<3x256xf32>
    %487 = tpu.matmul %483, %486, %cst_256 {dimension_numbers = #tpu.dot_dimension_numbers<[1], [0], [0], [1], [0, 0, 1, 1], [], []>} : vector<3x128xf32>, vector<128x256xf32>, vector<3x256xf32> -> vector<3x256xf32>
    %488 = vector.extract_strided_slice %485 {offsets = [0, 0], sizes = [2, 128], strides = [1, 1]} : vector<4x384xf32> to vector<2x128xf32>
    %489 = vector.extract_strided_slice %485 {offsets = [1, 128], sizes = [2, 128], strides = [1, 1]} : vector<4x384xf32> to vector<2x128xf32>
    %490 = arith.addf %488, %489 : vector<2x128xf32>
    %491 = vector.extract_strided_slice %485 {offsets = [2, 256], sizes = [2, 128], strides = [1, 1]} : vector<4x384xf32> to vector<2x128xf32>
    %492 = arith.addf %490, %491 : vector<2x128xf32>
    %493 = vector.extract_strided_slice %487 {offsets = [0, 0], sizes = [2, 128], strides = [1, 1]} : vector<3x256xf32> to vector<2x128xf32>
    %494 = arith.addf %492, %493 : vector<2x128xf32>
    %495 = vector.extract_strided_slice %487 {offsets = [1, 128], sizes = [2, 128], strides = [1, 1]} : vector<3x256xf32> to vector<2x128xf32>
    %496 = arith.addf %494, %495 : vector<2x128xf32>
    %c0_257 = arith.constant 0 : index
    %c0_258 = arith.constant 0 : index
    %497 = vector.load %arg35[%c0_257, %c0_258] : memref<1x128xf32, #tpu.memory_space<vmem>>, vector<1x128xf32>
    %498 = vector.broadcast %497 : vector<1x128xf32> to vector<2x128xf32>
    %499 = arith.addf %496, %498 : vector<2x128xf32>
    %cst_259 = arith.constant 0.000000e+00 : f32
    %500 = vector.broadcast %cst_259 : f32 to vector<2x128xf32>
    %501 = arith.maximumf %499, %500 : vector<2x128xf32>
    %cst_260 = arith.constant 0.000000e+00 : f32
    %502 = vector.broadcast %cst_260 : f32 to vector<2x128xf32>
    %c0_261 = arith.constant 0 : index
    %c0_262 = arith.constant 0 : index
    %503 = vector.load %arg43[%c0_261, %c0_262] : memref<72x128xf32, #tpu.memory_space<vmem>>, vector<2x128xf32>
    tpu.vector_store %arg43[%c0_261, %c0_262], %502 {strides = array<i32>} : memref<72x128xf32, #tpu.memory_space<vmem>>, vector<2x128xf32>,
    %cst_263 = arith.constant 0.000000e+00 : f32
    %504 = vector.broadcast %cst_263 : f32 to vector<2x128xf32>
    %c4 = arith.constant 4 : index
    %c0_264 = arith.constant 0 : index
    %505 = vector.load %arg43[%c4, %c0_264] : memref<72x128xf32, #tpu.memory_space<vmem>>, vector<2x128xf32>
    tpu.vector_store %arg43[%c4, %c0_264], %504 {strides = array<i32>} : memref<72x128xf32, #tpu.memory_space<vmem>>, vector<2x128xf32>,
    %c2_265 = arith.constant 2 : index
    %c0_266 = arith.constant 0 : index
    %506 = vector.load %arg43[%c2_265, %c0_266] : memref<72x128xf32, #tpu.memory_space<vmem>>, vector<2x128xf32>
    tpu.vector_store %arg43[%c2_265, %c0_266], %501 {strides = array<i32>} : memref<72x128xf32, #tpu.memory_space<vmem>>, vector<2x128xf32>,
    %c0_267 = arith.constant 0 : index
    %c0_268 = arith.constant 0 : index
    %507 = vector.load %arg43[%c0_267, %c0_268] : memref<72x128xf32, #tpu.memory_space<vmem>>, vector<6x128xf32>
    %c0_269 = arith.constant 0 : index
    %c0_270 = arith.constant 0 : index
    %508 = vector.load %arg36[%c0_269, %c0_270] : memref<128x640xf32, #tpu.memory_space<vmem>>, vector<128x640xf32>
    %cst_271 = arith.constant dense<0.000000e+00> : vector<6x640xf32>
    %509 = tpu.matmul %507, %508, %cst_271 {dimension_numbers = #tpu.dot_dimension_numbers<[1], [0], [0], [1], [0, 0, 1, 1], [], []>} : vector<6x128xf32>, vector<128x640xf32>, vector<6x640xf32> -> vector<6x640xf32>
    %510 = vector.extract_strided_slice %509 {offsets = [0, 0], sizes = [2, 128], strides = [1, 1]} : vector<6x640xf32> to vector<2x128xf32>
    %511 = vector.extract_strided_slice %509 {offsets = [1, 128], sizes = [2, 128], strides = [1, 1]} : vector<6x640xf32> to vector<2x128xf32>
    %512 = arith.addf %510, %511 : vector<2x128xf32>
    %513 = vector.extract_strided_slice %509 {offsets = [2, 256], sizes = [2, 128], strides = [1, 1]} : vector<6x640xf32> to vector<2x128xf32>
    %514 = arith.addf %512, %513 : vector<2x128xf32>
    %515 = vector.extract_strided_slice %509 {offsets = [3, 384], sizes = [2, 128], strides = [1, 1]} : vector<6x640xf32> to vector<2x128xf32>
    %516 = arith.addf %514, %515 : vector<2x128xf32>
    %517 = vector.extract_strided_slice %509 {offsets = [4, 512], sizes = [2, 128], strides = [1, 1]} : vector<6x640xf32> to vector<2x128xf32>
    %518 = arith.addf %516, %517 : vector<2x128xf32>
    %c0_272 = arith.constant 0 : index
    %c0_273 = arith.constant 0 : index
    %519 = vector.load %arg37[%c0_272, %c0_273] : memref<1x128xf32, #tpu.memory_space<vmem>>, vector<1x128xf32>
    %520 = vector.broadcast %519 : vector<1x128xf32> to vector<2x128xf32>
    %521 = arith.addf %518, %520 : vector<2x128xf32>
    %cst_274 = arith.constant 0.000000e+00 : f32
    %522 = vector.broadcast %cst_274 : f32 to vector<2x128xf32>
    %523 = arith.maximumf %521, %522 : vector<2x128xf32>
    %cst_275 = arith.constant 0.000000e+00 : f32
    %524 = vector.broadcast %cst_275 : f32 to vector<2x128xf32>
    %c0_276 = arith.constant 0 : index
    %c0_277 = arith.constant 0 : index
    %525 = vector.load %arg43[%c0_276, %c0_277] : memref<72x128xf32, #tpu.memory_space<vmem>>, vector<2x128xf32>
    tpu.vector_store %arg43[%c0_276, %c0_277], %524 {strides = array<i32>} : memref<72x128xf32, #tpu.memory_space<vmem>>, vector<2x128xf32>,
    %cst_278 = arith.constant 0.000000e+00 : f32
    %526 = vector.broadcast %cst_278 : f32 to vector<2x128xf32>
    %c4_279 = arith.constant 4 : index
    %c0_280 = arith.constant 0 : index
    %527 = vector.load %arg43[%c4_279, %c0_280] : memref<72x128xf32, #tpu.memory_space<vmem>>, vector<2x128xf32>
    tpu.vector_store %arg43[%c4_279, %c0_280], %526 {strides = array<i32>} : memref<72x128xf32, #tpu.memory_space<vmem>>, vector<2x128xf32>,
    %c2_281 = arith.constant 2 : index
    %c0_282 = arith.constant 0 : index
    %528 = vector.load %arg43[%c2_281, %c0_282] : memref<72x128xf32, #tpu.memory_space<vmem>>, vector<2x128xf32>
    tpu.vector_store %arg43[%c2_281, %c0_282], %523 {strides = array<i32>} : memref<72x128xf32, #tpu.memory_space<vmem>>, vector<2x128xf32>,
    %c0_283 = arith.constant 0 : index
    %c0_284 = arith.constant 0 : index
    %529 = vector.load %arg43[%c0_283, %c0_284] : memref<72x128xf32, #tpu.memory_space<vmem>>, vector<6x128xf32>
    %c0_285 = arith.constant 0 : index
    %c0_286 = arith.constant 0 : index
    %530 = vector.load %arg38[%c0_285, %c0_286] : memref<128x640xf32, #tpu.memory_space<vmem>>, vector<128x640xf32>
    %cst_287 = arith.constant dense<0.000000e+00> : vector<6x640xf32>
    %531 = tpu.matmul %529, %530, %cst_287 {dimension_numbers = #tpu.dot_dimension_numbers<[1], [0], [0], [1], [0, 0, 1, 1], [], []>} : vector<6x128xf32>, vector<128x640xf32>, vector<6x640xf32> -> vector<6x640xf32>
    %532 = vector.extract_strided_slice %531 {offsets = [0, 0], sizes = [2, 128], strides = [1, 1]} : vector<6x640xf32> to vector<2x128xf32>
    %533 = vector.extract_strided_slice %531 {offsets = [1, 128], sizes = [2, 128], strides = [1, 1]} : vector<6x640xf32> to vector<2x128xf32>
    %534 = arith.addf %532, %533 : vector<2x128xf32>
    %535 = vector.extract_strided_slice %531 {offsets = [2, 256], sizes = [2, 128], strides = [1, 1]} : vector<6x640xf32> to vector<2x128xf32>
    %536 = arith.addf %534, %535 : vector<2x128xf32>
    %537 = vector.extract_strided_slice %531 {offsets = [3, 384], sizes = [2, 128], strides = [1, 1]} : vector<6x640xf32> to vector<2x128xf32>
    %538 = arith.addf %536, %537 : vector<2x128xf32>
    %539 = vector.extract_strided_slice %531 {offsets = [4, 512], sizes = [2, 128], strides = [1, 1]} : vector<6x640xf32> to vector<2x128xf32>
    %540 = arith.addf %538, %539 : vector<2x128xf32>
    %c0_288 = arith.constant 0 : index
    %c0_289 = arith.constant 0 : index
    %541 = vector.load %arg39[%c0_288, %c0_289] : memref<1x128xf32, #tpu.memory_space<vmem>>, vector<1x128xf32>
    %542 = vector.broadcast %541 : vector<1x128xf32> to vector<2x128xf32>
    %543 = arith.addf %540, %542 : vector<2x128xf32>
    %544 = arith.addf %543, %501 : vector<2x128xf32>
    %cst_290 = arith.constant 0.000000e+00 : f32
    %545 = vector.broadcast %cst_290 : f32 to vector<2x128xf32>
    %546 = arith.maximumf %544, %545 : vector<2x128xf32>
    %c0_291 = arith.constant 0 : index
    %c0_292 = arith.constant 0 : index
    %547 = vector.load %arg40[%c0_291, %c0_292] : memref<128x128xf32, #tpu.memory_space<vmem>>, vector<128x128xf32>
    %cst_293 = arith.constant dense<0.000000e+00> : vector<2x128xf32>
    %548 = tpu.matmul %546, %547, %cst_293 {dimension_numbers = #tpu.dot_dimension_numbers<[1], [0], [0], [1], [0, 0, 1, 1], [], []>} : vector<2x128xf32>, vector<128x128xf32>, vector<2x128xf32> -> vector<2x128xf32>
    %c0_294 = arith.constant 0 : index
    %c0_295 = arith.constant 0 : index
    %549 = vector.load %arg41[%c0_294, %c0_295] : memref<1x128xf32, #tpu.memory_space<vmem>>, vector<1x128xf32>
    %550 = vector.broadcast %549 : vector<1x128xf32> to vector<2x128xf32>
    %551 = arith.addf %548, %550 : vector<2x128xf32>
    %c0_296 = arith.constant 0 : index
    %c0_297 = arith.constant 0 : index
    %c0_298 = arith.constant 0 : index
    %552 = vector.load %arg42[%c0_296, %c0_297, %c0_298] : memref<1x2x128xf32, #tpu.memory_space<vmem>>, vector<1x2x128xf32>
    %553 = vector.shape_cast %552 : vector<1x2x128xf32> to vector<2x128xf32>
    %554 = vector.shape_cast %551 : vector<2x128xf32> to vector<1x2x128xf32>
    tpu.vector_store %arg42[%c0_296, %c0_297, %c0_298], %554 {strides = array<i32>} : memref<1x2x128xf32, #tpu.memory_space<vmem>>, vector<1x2x128xf32>,
    return
  }
  func.func @transform_0(%arg0: i32) -> (i32, i32, i32) {
    %c0_i32 = arith.constant 0 : i32
    %c0_i32_0 = arith.constant 0 : i32
    %c0_i32_1 = arith.constant 0 : i32
    return %arg0, %c0_i32, %c0_i32_0 : i32, i32, i32
  }
  func.func @transform_1(%arg0: i32) -> (i32, i32) {
    %c0_i32 = arith.constant 0 : i32
    %c0_i32_0 = arith.constant 0 : i32
    %c0_i32_1 = arith.constant 0 : i32
    return %c0_i32, %c0_i32_0 : i32, i32
  }
  func.func @transform_2(%arg0: i32) -> (i32, i32) {
    %c0_i32 = arith.constant 0 : i32
    %c0_i32_0 = arith.constant 0 : i32
    %c0_i32_1 = arith.constant 0 : i32
    return %c0_i32, %c0_i32_0 : i32, i32
  }
  func.func @transform_3(%arg0: i32) -> (i32, i32) {
    %c0_i32 = arith.constant 0 : i32
    %c0_i32_0 = arith.constant 0 : i32
    %c0_i32_1 = arith.constant 0 : i32
    return %c0_i32, %c0_i32_0 : i32, i32
  }
  func.func @transform_4(%arg0: i32) -> (i32, i32) {
    %c0_i32 = arith.constant 0 : i32
    %c0_i32_0 = arith.constant 0 : i32
    %c0_i32_1 = arith.constant 0 : i32
    return %c0_i32, %c0_i32_0 : i32, i32
  }
  func.func @transform_5(%arg0: i32) -> (i32, i32) {
    %c0_i32 = arith.constant 0 : i32
    %c0_i32_0 = arith.constant 0 : i32
    %c0_i32_1 = arith.constant 0 : i32
    return %c0_i32, %c0_i32_0 : i32, i32
  }
  func.func @transform_6(%arg0: i32) -> (i32, i32) {
    %c0_i32 = arith.constant 0 : i32
    %c0_i32_0 = arith.constant 0 : i32
    %c0_i32_1 = arith.constant 0 : i32
    return %c0_i32, %c0_i32_0 : i32, i32
  }
  func.func @transform_7(%arg0: i32) -> (i32, i32) {
    %c0_i32 = arith.constant 0 : i32
    %c0_i32_0 = arith.constant 0 : i32
    %c0_i32_1 = arith.constant 0 : i32
    return %c0_i32, %c0_i32_0 : i32, i32
  }
  func.func @transform_8(%arg0: i32) -> (i32, i32) {
    %c0_i32 = arith.constant 0 : i32
    %c0_i32_0 = arith.constant 0 : i32
    %c0_i32_1 = arith.constant 0 : i32
    return %c0_i32, %c0_i32_0 : i32, i32
  }
  func.func @transform_9(%arg0: i32) -> (i32, i32) {
    %c0_i32 = arith.constant 0 : i32
    %c0_i32_0 = arith.constant 0 : i32
    %c0_i32_1 = arith.constant 0 : i32
    return %c0_i32, %c0_i32_0 : i32, i32
  }
  func.func @transform_10(%arg0: i32) -> (i32, i32) {
    %c0_i32 = arith.constant 0 : i32
    %c0_i32_0 = arith.constant 0 : i32
    %c0_i32_1 = arith.constant 0 : i32
    return %c0_i32, %c0_i32_0 : i32, i32
  }
  func.func @transform_11(%arg0: i32) -> (i32, i32) {
    %c0_i32 = arith.constant 0 : i32
    %c0_i32_0 = arith.constant 0 : i32
    %c0_i32_1 = arith.constant 0 : i32
    return %c0_i32, %c0_i32_0 : i32, i32
  }
  func.func @transform_12(%arg0: i32) -> (i32, i32) {
    %c0_i32 = arith.constant 0 : i32
    %c0_i32_0 = arith.constant 0 : i32
    %c0_i32_1 = arith.constant 0 : i32
    return %c0_i32, %c0_i32_0 : i32, i32
  }
  func.func @transform_13(%arg0: i32) -> (i32, i32) {
    %c0_i32 = arith.constant 0 : i32
    %c0_i32_0 = arith.constant 0 : i32
    %c0_i32_1 = arith.constant 0 : i32
    return %c0_i32, %c0_i32_0 : i32, i32
  }
  func.func @transform_14(%arg0: i32) -> (i32, i32) {
    %c0_i32 = arith.constant 0 : i32
    %c0_i32_0 = arith.constant 0 : i32
    %c0_i32_1 = arith.constant 0 : i32
    return %c0_i32, %c0_i32_0 : i32, i32
  }
  func.func @transform_15(%arg0: i32) -> (i32, i32) {
    %c0_i32 = arith.constant 0 : i32
    %c0_i32_0 = arith.constant 0 : i32
    %c0_i32_1 = arith.constant 0 : i32
    return %c0_i32, %c0_i32_0 : i32, i32
  }
  func.func @transform_16(%arg0: i32) -> (i32, i32) {
    %c0_i32 = arith.constant 0 : i32
    %c0_i32_0 = arith.constant 0 : i32
    %c0_i32_1 = arith.constant 0 : i32
    return %c0_i32, %c0_i32_0 : i32, i32
  }
  func.func @transform_17(%arg0: i32) -> (i32, i32) {
    %c0_i32 = arith.constant 0 : i32
    %c0_i32_0 = arith.constant 0 : i32
    %c0_i32_1 = arith.constant 0 : i32
    return %c0_i32, %c0_i32_0 : i32, i32
  }
  func.func @transform_18(%arg0: i32) -> (i32, i32) {
    %c0_i32 = arith.constant 0 : i32
    %c0_i32_0 = arith.constant 0 : i32
    %c0_i32_1 = arith.constant 0 : i32
    return %c0_i32, %c0_i32_0 : i32, i32
  }
  func.func @transform_19(%arg0: i32) -> (i32, i32) {
    %c0_i32 = arith.constant 0 : i32
    %c0_i32_0 = arith.constant 0 : i32
    %c0_i32_1 = arith.constant 0 : i32
    return %c0_i32, %c0_i32_0 : i32, i32
  }
  func.func @transform_20(%arg0: i32) -> (i32, i32) {
    %c0_i32 = arith.constant 0 : i32
    %c0_i32_0 = arith.constant 0 : i32
    %c0_i32_1 = arith.constant 0 : i32
    return %c0_i32, %c0_i32_0 : i32, i32
  }
  func.func @transform_21(%arg0: i32) -> (i32, i32) {
    %c0_i32 = arith.constant 0 : i32
    %c0_i32_0 = arith.constant 0 : i32
    %c0_i32_1 = arith.constant 0 : i32
    return %c0_i32, %c0_i32_0 : i32, i32
  }
  func.func @transform_22(%arg0: i32) -> (i32, i32) {
    %c0_i32 = arith.constant 0 : i32
    %c0_i32_0 = arith.constant 0 : i32
    %c0_i32_1 = arith.constant 0 : i32
    return %c0_i32, %c0_i32_0 : i32, i32
  }
  func.func @transform_23(%arg0: i32) -> (i32, i32) {
    %c0_i32 = arith.constant 0 : i32
    %c0_i32_0 = arith.constant 0 : i32
    %c0_i32_1 = arith.constant 0 : i32
    return %c0_i32, %c0_i32_0 : i32, i32
  }
  func.func @transform_24(%arg0: i32) -> (i32, i32) {
    %c0_i32 = arith.constant 0 : i32
    %c0_i32_0 = arith.constant 0 : i32
    %c0_i32_1 = arith.constant 0 : i32
    return %c0_i32, %c0_i32_0 : i32, i32
  }
  func.func @transform_25(%arg0: i32) -> (i32, i32) {
    %c0_i32 = arith.constant 0 : i32
    %c0_i32_0 = arith.constant 0 : i32
    %c0_i32_1 = arith.constant 0 : i32
    return %c0_i32, %c0_i32_0 : i32, i32
  }
  func.func @transform_26(%arg0: i32) -> (i32, i32) {
    %c0_i32 = arith.constant 0 : i32
    %c0_i32_0 = arith.constant 0 : i32
    %c0_i32_1 = arith.constant 0 : i32
    return %c0_i32, %c0_i32_0 : i32, i32
  }
  func.func @transform_27(%arg0: i32) -> (i32, i32) {
    %c0_i32 = arith.constant 0 : i32
    %c0_i32_0 = arith.constant 0 : i32
    %c0_i32_1 = arith.constant 0 : i32
    return %c0_i32, %c0_i32_0 : i32, i32
  }
  func.func @transform_28(%arg0: i32) -> (i32, i32) {
    %c0_i32 = arith.constant 0 : i32
    %c0_i32_0 = arith.constant 0 : i32
    %c0_i32_1 = arith.constant 0 : i32
    return %c0_i32, %c0_i32_0 : i32, i32
  }
  func.func @transform_29(%arg0: i32) -> (i32, i32) {
    %c0_i32 = arith.constant 0 : i32
    %c0_i32_0 = arith.constant 0 : i32
    %c0_i32_1 = arith.constant 0 : i32
    return %c0_i32, %c0_i32_0 : i32, i32
  }
  func.func @transform_30(%arg0: i32) -> (i32, i32) {
    %c0_i32 = arith.constant 0 : i32
    %c0_i32_0 = arith.constant 0 : i32
    %c0_i32_1 = arith.constant 0 : i32
    return %c0_i32, %c0_i32_0 : i32, i32
  }
  func.func @transform_31(%arg0: i32) -> (i32, i32) {
    %c0_i32 = arith.constant 0 : i32
    %c0_i32_0 = arith.constant 0 : i32
    %c0_i32_1 = arith.constant 0 : i32
    return %c0_i32, %c0_i32_0 : i32, i32
  }
  func.func @transform_32(%arg0: i32) -> (i32, i32) {
    %c0_i32 = arith.constant 0 : i32
    %c0_i32_0 = arith.constant 0 : i32
    %c0_i32_1 = arith.constant 0 : i32
    return %c0_i32, %c0_i32_0 : i32, i32
  }
  func.func @transform_33(%arg0: i32) -> (i32, i32) {
    %c0_i32 = arith.constant 0 : i32
    %c0_i32_0 = arith.constant 0 : i32
    %c0_i32_1 = arith.constant 0 : i32
    return %c0_i32, %c0_i32_0 : i32, i32
  }
  func.func @transform_34(%arg0: i32) -> (i32, i32) {
    %c0_i32 = arith.constant 0 : i32
    %c0_i32_0 = arith.constant 0 : i32
    %c0_i32_1 = arith.constant 0 : i32
    return %c0_i32, %c0_i32_0 : i32, i32
  }
  func.func @transform_35(%arg0: i32) -> (i32, i32) {
    %c0_i32 = arith.constant 0 : i32
    %c0_i32_0 = arith.constant 0 : i32
    %c0_i32_1 = arith.constant 0 : i32
    return %c0_i32, %c0_i32_0 : i32, i32
  }
  func.func @transform_36(%arg0: i32) -> (i32, i32) {
    %c0_i32 = arith.constant 0 : i32
    %c0_i32_0 = arith.constant 0 : i32
    %c0_i32_1 = arith.constant 0 : i32
    return %c0_i32, %c0_i32_0 : i32, i32
  }
  func.func @transform_37(%arg0: i32) -> (i32, i32) {
    %c0_i32 = arith.constant 0 : i32
    %c0_i32_0 = arith.constant 0 : i32
    %c0_i32_1 = arith.constant 0 : i32
    return %c0_i32, %c0_i32_0 : i32, i32
  }
  func.func @transform_38(%arg0: i32) -> (i32, i32) {
    %c0_i32 = arith.constant 0 : i32
    %c0_i32_0 = arith.constant 0 : i32
    %c0_i32_1 = arith.constant 0 : i32
    return %c0_i32, %c0_i32_0 : i32, i32
  }
  func.func @transform_39(%arg0: i32) -> (i32, i32) {
    %c0_i32 = arith.constant 0 : i32
    %c0_i32_0 = arith.constant 0 : i32
    %c0_i32_1 = arith.constant 0 : i32
    return %c0_i32, %c0_i32_0 : i32, i32
  }
  func.func @transform_40(%arg0: i32) -> (i32, i32) {
    %c0_i32 = arith.constant 0 : i32
    %c0_i32_0 = arith.constant 0 : i32
    %c0_i32_1 = arith.constant 0 : i32
    return %c0_i32, %c0_i32_0 : i32, i32
  }
  func.func @transform_41(%arg0: i32) -> (i32, i32, i32) {
    %c0_i32 = arith.constant 0 : i32
    %c0_i32_0 = arith.constant 0 : i32
    %c0_i32_1 = arith.constant 0 : i32
    return %arg0, %c0_i32, %c0_i32_0 : i32, i32, i32
  }
}

</mosaic_0001>

<bundles_post_ra>
// kernel: tpu_custom_call.1
= control target key start
LH: loop header
LB: loop body
LE: loop exit
PB: predicated region body
PF: predicated region fallthrough
CT: control target
= control target key end

     0   :  { %s14006_s6 = smov 1   ;;  %s14007_s10 = smov 2   ;;  %s17195_s0 = inlined_call_operand.smem [shape: u32[42], index: -1, kind: input, shape index: {}] }
   0x1   :  { %s14105_s5 = sld [smem:[%s17195_s0]]   ;;  %s14008_s14 = smov 3  }
   0x2   :  { %s14110_s9 = sld [smem:[%s17195_s0 + %s14006_s6]]   ;;  %s14009_s18 = smov 4  }
   0x3   :  { %s14115_s13 = sld [smem:[%s17195_s0 + %s14007_s10]]   ;;  %s14010_s22 = smov 5  }
   0x4   :  { %s14120_s17 = sld [smem:[%s17195_s0 + %s14008_s14]]   ;;  %s14011_s26 = smov 6  }
   0x5   :  { %s14125_s21 = sld [smem:[%s17195_s0 + %s14009_s18]]   ;;  %s14012_s30 = smov 7  }
   0x6   :  { %s14130_s25 = sld [smem:[%s17195_s0 + %s14010_s22]]   ;;  %s14013_s4 = smov 8  }
   0x7   :  { %17248 = sst [smem:[#allocation72_spill]] %s14105_s5  ;;  %s14014_s10 = smov 9  }
   0x8   :  { %17249 = sst [smem:[#allocation73_spill]] %s14110_s9  ;;  %s14015_s15 = smov 10  }
   0x9   :  { %17250 = sst [smem:[#allocation74_spill]] %s14115_s13  ;;  %s14016_s20 = smov 11  }
   0xa   :  { %17251 = sst [smem:[#allocation75_spill]] %s14120_s17  ;;  %s14018_s1 = smov 13  }
   0xb   :  { %17252 = sst [smem:[#allocation76_spill]] %s14125_s21  ;;  %s14019_s7 = smov 14  }
   0xc   :  { %17253 = sst [smem:[#allocation77_spill]] %s14130_s25  ;;  %s14021_s22 = smov 16  }
   0xd   :  { %s14135_s29 = sld [smem:[%s17195_s0 + %s14011_s26]]   ;;  %s14017_s26 = smov 12  }
   0xe   :  { %s14140_s3 = sld [smem:[%s17195_s0 + %s14012_s30]]   ;;  %s14022_s28 = smov 17  }
   0xf   :  { %s14145_s8 = sld [smem:[%s17195_s0 + %s14013_s4]]  }
  0x10   :  { %s14150_s14 = sld [smem:[%s17195_s0 + %s14014_s10]]  }
  0x11   :  { %s14155_s19 = sld [smem:[%s17195_s0 + %s14015_s15]]   ;;  %s14020_s15 = smov 15  }
  0x12   :  { %s14160_s24 = sld [smem:[%s17195_s0 + %s14016_s20]]  }
  0x13   :  { %s14165_s30 = sld [smem:[%s17195_s0 + %s14017_s26]]  }
  0x14   :  { %17254 = sst [smem:[#allocation78_spill]] %s14140_s3 }
  0x15   :  { %17255 = sst [smem:[#allocation79_spill]] %s14145_s8 }
  0x16   :  { %17256 = sst [smem:[#allocation80_spill]] %s14150_s14 }
  0x17   :  { %s14170_s6 = sld [smem:[%s17195_s0 + %s14018_s1]]  }
  0x18   :  { %17257 = sst [smem:[#allocation81_spill]] %s14160_s24 }
  0x19   :  { %s14175_s12 = sld [smem:[%s17195_s0 + %s14019_s7]]   ;;  %s14023_s7 = smov 18  }
  0x1a   :  { %s14180_s20 = sld [smem:[%s17195_s0 + %s14020_s15]]   ;;  %s14024_s15 = smov 19  }
  0x1b   :  { %s14185_s27 = sld [smem:[%s17195_s0 + %s14021_s22]]   ;;  %s14025_s22 = smov 20  }
  0x1c   :  { %s14190_s4 = sld [smem:[%s17195_s0 + %s14022_s28]]   ;;  %s14026_s28 = smov 21  }
  0x1d   :  { %17258 = sst [smem:[#allocation82_spill]] %s14170_s6 }
  0x1e   :  { %s14195_s13 = sld [smem:[%s17195_s0 + %s14023_s7]]   ;;  %s14027_s7 = smov 22  }
  0x1f   :  { %17259 = sst [smem:[#allocation83_spill]] %s14175_s12 }
  0x20   :  { %17260 = sst [smem:[#allocation84_spill]] %s14180_s20 }
  0x21   :  { %s14200_s9 = sld [smem:[%s17195_s0 + %s14024_s15]]   ;;  %s14028_s15 = smov 23  }
  0x22   :  { %17261 = sst [smem:[#allocation85_spill]] %s14190_s4 }
  0x23   :  { %s14205_s5 = sld [smem:[%s17195_s0 + %s14025_s22]]   ;;  %s14029_s22 = smov 24  }
  0x24   :  { %17262 = sst [smem:[#allocation86_spill]] %s14195_s13 }
  0x25   :  { %s14210_s4 = sld [smem:[%s17195_s0 + %s14026_s28]]   ;;  %s14030_s28 = smov 25  }
  0x26   :  { %s14215_s20 = sld [smem:[%s17195_s0 + %s14027_s7]]   ;;  %s14031_s7 = smov 26  }
  0x27   :  { %17263 = sst [smem:[#allocation87_spill]] %s14200_s9 }
  0x28   :  { %s14220_s9 = sld [smem:[%s17195_s0 + %s14028_s15]]   ;;  %s14032_s15 = smov 27  }
  0x29   :  { %17264 = sst [smem:[#allocation88_spill]] %s14205_s5 }
  0x2a   :  { %s14225_s6 = sld [smem:[%s17195_s0 + %s14029_s22]]   ;;  %s14033_s22 = smov 28  }
  0x2b   :  { %17265 = sst [smem:[#allocation89_spill]] %s14210_s4 }
  0x2c   :  { %s14230_s4 = sld [smem:[%s17195_s0 + %s14030_s28]]   ;;  %s14034_s28 = smov 29  }
  0x2d   :  { %s14235_s24 = sld [smem:[%s17195_s0 + %s14031_s7]]   ;;  %s14035_s7 = smov 30  }
  0x2e   :  { %17266 = sst [smem:[#allocation90_spill]] %s14220_s9 }
  0x2f   :  { %s14240_s9 = sld [smem:[%s17195_s0 + %s14032_s15]]   ;;  %s14036_s15 = smov 31  }
  0x30   :  { %17267 = sst [smem:[#allocation91_spill]] %s14225_s6 }
  0x31   :  { %s14245_s14 = sld [smem:[%s17195_s0 + %s14033_s22]]   ;;  %s14037_s22 = smov 32  }
  0x32   :  { %17268 = sst [smem:[#allocation92_spill]] %s14230_s4 }
  0x33   :  { %s14250_s4 = sld [smem:[%s17195_s0 + %s14034_s28]]   ;;  %s14038_s28 = smov 33  }
  0x34   :  { %s14255_s3 = sld [smem:[%s17195_s0 + %s14035_s7]]   ;;  %s14039_s7 = smov 34  }
  0x35   :  { %17269 = sst [smem:[#allocation93_spill]] %s14240_s9 }
  0x36   :  { %s14260_s9 = sld [smem:[%s17195_s0 + %s14036_s15]]   ;;  %s14040_s15 = smov 35  }
  0x37   :  { %17270 = sst [smem:[#allocation94_spill]] %s14245_s14 }
  0x38   :  { %s14265_s25 = sld [smem:[%s17195_s0 + %s14037_s22]]   ;;  %s14041_s22 = smov 36  }
  0x39   :  { %17271 = sst [smem:[#allocation95_spill]] %s14250_s4 }
  0x3a   :  { %17272 = sst [smem:[#allocation96_spill]] %s14255_s3 }
  0x3b   :  { %s14270_s4 = sld [smem:[%s17195_s0 + %s14038_s28]]   ;;  %s14042_s28 = smov 37  }
  0x3c   :  { %17273 = sst [smem:[#allocation97_spill]] %s14260_s9 }
  0x3d   :  { %s14275_s17 = sld [smem:[%s17195_s0 + %s14039_s7]]   ;;  %s14043_s7 = smov 38  }
  0x3e   :  { %17274 = sst [smem:[#allocation98_spill]] %s14265_s25 }
  0x3f   :  { %s14280_s9 = sld [smem:[%s17195_s0 + %s14040_s15]]   ;;  %s14044_s15 = smov 39  }
  0x40   :  { %s14285_s25 = sld [smem:[%s17195_s0 + %s14041_s22]]   ;;  %s14045_s22 = smov 40  }
  0x41   :  { %17275 = sst [smem:[#allocation99_spill]] %s14270_s4 }
  0x42   :  { %s14290_s4 = sld [smem:[%s17195_s0 + %s14042_s28]]   ;;  %s14046_s28 = smov 41  }
  0x43   :  { %17276 = sst [smem:[#allocation100_spill]] %s14275_s17 }
  0x44   :  { %s14295_s17 = sld [smem:[%s17195_s0 + %s14043_s7]]  }
  0x45   :  { %17277 = sst [smem:[#allocation101_spill]] %s14280_s9 }
  0x46   :  { %17278 = sst [smem:[#allocation102_spill]] %s14285_s25 }
  0x47   :  { %s14300_s9 = sld [smem:[%s17195_s0 + %s14044_s15]]  }
  0x48   :  { %17279 = sst [smem:[#allocation103_spill]] %s14290_s4 }
  0x49   :  { %s14305_s25 = sld [smem:[%s17195_s0 + %s14045_s22]]  }
  0x4a   :  { %s14310_s4 = sld [smem:[%s17195_s0 + %s14046_s28]]  }
  0x4b   :  { %88 = vsyncpa [#allocation4], 0 }
  0x4c   :  { %89 = vsyncpa [#allocation7], 0 }
  0x4d   :  { %90 = vsyncpa [#allocation10], 0 }
  0x4e   :  { %91 = vsyncpa [#allocation13], 0 }
  0x4f   :  { %92 = vsyncpa [#allocation16], 0 }
  0x50   :  { %93 = vsyncpa [#allocation19], 0 }
  0x51   :  { %94 = vsyncpa [#allocation22], 0 }
  0x52   :  { %95 = vsyncpa [#allocation25], 0 }
  0x53   :  { %96 = vsyncpa [#allocation28], 0 }
  0x54   :  { %97 = vsyncpa [#allocation31], 0 }
  0x55   :  { %98 = vsyncpa [#allocation34], 0 }
  0x56   :  { %99 = vsyncpa [#allocation37], 0 }
  0x57   :  { %100 = vsyncpa [#allocation40], 0 }
  0x58   :  { %101 = vsyncpa [#allocation43], 0 }
  0x59   :  { %102 = vsyncpa [#allocation46], 0 }
  0x5a   :  { %103 = vsyncpa [#allocation49], 0 }
  0x5b   :  { %104 = vsyncpa [#allocation52], 0 }
  0x5c   :  { %105 = vsyncpa [#allocation5], 0 }
  0x5d   :  { %107 = vsyncpa [#allocation5 + $0x1], 0  ;;  %s14312_s0 = smov 0   ;;  %s14314_s7 = smov 0  }
  0x5e   :  { %s14316_s10 = smov 0   ;;  %s14318_s11 = smov 0  }
  0x5f LB: > { %s17280_s14 = sld [smem:[#allocation94_spill]]  ;;  %s17282_s12 = sld [smem:[#allocation83_spill]]  ;;  %s14004_s11 = sphi %s14318_s11, %s17358_s11   ;;  %s14000_s10 = sphi %s14316_s10, %s17363_s10   ;;  %s13996_s7 = sphi %s14314_s7, %s17362_s7   ;;  %s13992_s0 = sphi %s14312_s0, %s17361_s0  }
  0x60   : > { %s17281_s13 = sld [smem:[#allocation86_spill]]  ;;  %s17283_s8 = sld [smem:[#allocation79_spill]] }
  0x61   : > { %s17284_s6 = sld [smem:[#allocation91_spill]]  ;;  %s17285_s5 = sld [smem:[#allocation88_spill]] }
  0x62   : > { %s17286_s3 = sld [smem:[#allocation96_spill]]  ;;  %s17287_s21 = sld [smem:[#allocation76_spill]] }
  0x63   : > { %17288 = sst [smem:[#allocation104_spill]] %s14000_s10  ;;  %s14333_s15 = sadd.s32 4294967295, %s14004_s11  }
  0x64   : > { %s10026_s16 = sadd.s32 4294967294, %s14004_s11   ;;  %s14337_s18 = sadd.s32 1, %s14004_s11  }
  0x65   : > { %17289 = sst [smem:[#allocation105_spill]] %s14337_s18  ;;  %s986_s22 = sadd.s32 1, %s14000_s10 }
  0x66   : > { %s983_s23 = ssub.s32 %s14004_s11, %s14337_s18  ;;  %p996_p0 = scmp.ne.s32.totalorder %s14000_s10, %s13996_s7 }
  0x67   : > { %p984_p1 = scmp.eq.s32.totalorder %s983_s23, 0  ;;  %p997_p2 = scmp.eq.s32.totalorder %s14333_s15, 1 }
  0x68   : > { %p1002_p3 = scmp.ne.s32.totalorder %s13996_s7, %s13992_s0  ;;  %p1003_p4 = scmp.eq.s32.totalorder %s10026_s16, 1 }
  0x69   : > { %s14348_s26 = scalar_select %p984_p1, %s14000_s10, %s986_s22  }
  0x6a   : > { %p14350_p5 = por %p997_p2, %p996_p0  ;;  %p14354_p6 = por %p1003_p4, %p1002_p3 }
  0x6b   : > { %17290 = sst [smem:[#allocation106_spill]] %s14348_s26  ;;  %p10027_p7 = scmp.ge.s32.totalorder %s14004_s11, 1 }
  0x6c   : > { %s17291_s28 = scalar_select %p14350_p5, 1, 0 }
  0x6d   : > { %s17292_s1 = scalar_select %p14354_p6, 1, 0 }
  0x6e   : > { %p1010_p8 = scmp.lt.s32.totalorder %s14004_s11, 3 }
  0x6f   : > { %17293 = sst [smem:[#allocation107_spill]] %s17292_s1 }
  0x70   : > { %p14360_p9 = pnand %p10027_p7, %p1010_p8 }
  0x71   : > { %p12780_p10 = scmp.eq.s32.totalorder (!%p14360_p9), %s14333_s15, 0  ;;  %s14047_s16 = smov (!%p14360_p9), [#allocation6]  }
  0x72   : > { %1014 = sbr.rel (%p14360_p9) target bundleno = 886 (0x376), region = 12  ;;  %s1042_s22 = sshll.u32 (!%p14360_p9), %s14047_s16, 4  ;;  %s1043_s22 = int_to_ptr.vmem [resolvable:$true] %s1042_s22 }
  0x73   : > { %s14048_s23 = smov (!%p14360_p9), [#allocation9]   ;;  %s13042_s10 = scalar_lea.hbm (!%p14360_p9), %s17287_s21, 16 }
  0x74   : > { %s1066_s26 = sshll.u32 (!%p14360_p9), %s14048_s23, 4  ;;  %p13043_p11 = scmp.ne.s32.totalorder (!%p14360_p9), %s17287_s21, %s13042_s10  ;;  %s1067_s26 = int_to_ptr.vmem [resolvable:$true] %s1066_s26 }
  0x75   : > { %p13048_p0 = scmp.lt.u32.totalorder (!%p14360_p9), %s13042_s10, %s17287_s21 }
  0x76   : > { %p13044_p12 = pnand (!%p14360_p9), %p13043_p11, %p12780_p10 }
  0x78   : > { %p13045_p13 = pneg (!%p14360_p9), %p13044_p12 }
  0x7a   : > { %p13050_p1 = pnand %p13048_p0, %p13045_p13 }
  0x7c   : > { %13053 = shalt.err (!%p13050_p1)
}
  0x7d   : > { %s13054_s18 = scalar_lea.vmem %s1043_s22, 16  ;;  %s13060_s1 = scalar_lea.vmem %s1043_s22, 32 }
  0x7e   : > { %p13055_p2 = scmp.ne.s32.totalorder %s1043_s22, %s13054_s18  ;;  %p13061_p7 = scmp.lt.s32.totalorder %s1043_s22, %s1043_s22 }
  0x7f   : > { %p13062_p8 = scmp.lt.s32.totalorder %s13060_s1, %s13054_s18 }
  0x80   : > { %p13056_p3 = pnand %p13055_p2, %p12780_p10 }
  0x81   : > { %p13063_p6 = por %p13062_p8, %p13061_p7 }
  0x82   : > { %p13057_p4 = pneg %p13056_p3 }
  0x84   : > { %p13064_p5 = pnand %p13063_p6, %p13057_p4 }
  0x86   : > { %13067 = shalt.err (!%p13064_p5)
}
  0x87   : > { %12649 = dma.hbm_to_vmem [thread:$0]  (%p12780_p10), %s17287_s21, 16, %s1043_s22, [#allocation7]  }
  0x88   : > { %s13068_s10 = scalar_lea.hbm %s14135_s29, 16 }
  0x89   : > { %p13069_p11 = scmp.ne.s32.totalorder %s14135_s29, %s13068_s10  ;;  %p13074_p0 = scmp.lt.u32.totalorder %s13068_s10, %s14135_s29 }
  0x8b   : > { %p13070_p12 = pnand %p13069_p11, %p12780_p10 }
  0x8d   : > { %p13071_p13 = pneg %p13070_p12 }
  0x8f   : > { %p13076_p1 = pnand %p13074_p0, %p13071_p13 }
  0x91   : > { %13079 = shalt.err (!%p13076_p1)
}
  0x92   : > { %s13080_s18 = scalar_lea.vmem %s1067_s26, 16  ;;  %s13086_s1 = scalar_lea.vmem %s1067_s26, 32 }
  0x93   : > { %p13081_p5 = scmp.ne.s32.totalorder %s1067_s26, %s13080_s18  ;;  %p13087_p3 = scmp.lt.s32.totalorder %s1067_s26, %s1067_s26 }
  0x94   : > { %p13088_p4 = scmp.lt.s32.totalorder %s13086_s1, %s13080_s18 }
  0x95   : > { %p13082_p6 = pnand %p13081_p5, %p12780_p10 }
  0x96   : > { %p13089_p7 = por %p13088_p4, %p13087_p3 }
  0x97   : > { %p13083_p2 = pneg %p13082_p6 }
  0x99   : > { %p13090_p8 = pnand %p13089_p7, %p13083_p2 }
  0x9b   : > { %13093 = shalt.err (!%p13090_p8)
}
  0x9c   : > { %12653 = dma.hbm_to_vmem [thread:$0]  (%p12780_p10), %s14135_s29, 16, %s1067_s26, [#allocation10]  }
  0x9d   : > { %s14049_s16 = smov [#allocation12]   ;;  %s14050_s23 = smov [#allocation15]  }
  0x9e   : > { %s1090_s22 = sshll.u32 %s14049_s16, 4  ;;  %s1114_s10 = sshll.u32 %s14050_s23, 4  ;;  %s1091_s22 = int_to_ptr.vmem [resolvable:$true] %s1090_s22  ;;  %s1115_s10 = int_to_ptr.vmem [resolvable:$true] %s1114_s10 }
  0x9f   : > { %s13094_s21 = scalar_lea.hbm %s17283_s8, 16 }
  0xa0   : > { %p13095_p11 = scmp.ne.s32.totalorder %s17283_s8, %s13094_s21  ;;  %p13100_p0 = scmp.lt.u32.totalorder %s13094_s21, %s17283_s8 }
  0xa2   : > { %p13096_p12 = pnand %p13095_p11, %p12780_p10 }
  0xa4   : > { %p13097_p13 = pneg %p13096_p12 }
  0xa6   : > { %p13102_p1 = pnand %p13100_p0, %p13097_p13 }
  0xa8   : > { %13105 = shalt.err (!%p13102_p1)
}
  0xa9   : > { %s13106_s18 = scalar_lea.vmem %s1091_s22, 16  ;;  %s13112_s26 = scalar_lea.vmem %s1091_s22, 32 }
  0xaa   : > { %p13107_p5 = scmp.ne.s32.totalorder %s1091_s22, %s13106_s18  ;;  %p13113_p3 = scmp.lt.s32.totalorder %s1091_s22, %s1091_s22 }
  0xab   : > { %p13114_p4 = scmp.lt.s32.totalorder %s13112_s26, %s13106_s18 }
  0xac   : > { %p13108_p6 = pnand %p13107_p5, %p12780_p10 }
  0xad   : > { %p13115_p7 = por %p13114_p4, %p13113_p3 }
  0xae   : > { %p13109_p2 = pneg %p13108_p6 }
  0xb0   : > { %p13116_p8 = pnand %p13115_p7, %p13109_p2 }
  0xb2   : > { %13119 = shalt.err (!%p13116_p8)
}
  0xb3   : > { %12657 = dma.hbm_to_vmem [thread:$0]  (%p12780_p10), %s17283_s8, 16, %s1091_s22, [#allocation13]  }
  0xb4   : > { %s13120_s21 = scalar_lea.hbm %s14155_s19, 16 }
  0xb5   : > { %p13121_p11 = scmp.ne.s32.totalorder %s14155_s19, %s13120_s21  ;;  %p13126_p0 = scmp.lt.u32.totalorder %s13120_s21, %s14155_s19 }
  0xb7   : > { %p13122_p12 = pnand %p13121_p11, %p12780_p10 }
  0xb9   : > { %p13123_p13 = pneg %p13122_p12 }
  0xbb   : > { %p13128_p1 = pnand %p13126_p0, %p13123_p13 }
  0xbd   : > { %13131 = shalt.err (!%p13128_p1)
}
  0xbe   : > { %s13132_s1 = scalar_lea.vmem %s1115_s10, 16  ;;  %s13138_s16 = scalar_lea.vmem %s1115_s10, 32 }
  0xbf   : > { %p13133_p5 = scmp.ne.s32.totalorder %s1115_s10, %s13132_s1  ;;  %p13139_p3 = scmp.lt.s32.totalorder %s1115_s10, %s1115_s10 }
  0xc0   : > { %p13140_p4 = scmp.lt.s32.totalorder %s13138_s16, %s13132_s1 }
  0xc1   : > { %p13134_p6 = pnand %p13133_p5, %p12780_p10 }
  0xc2   : > { %p13141_p7 = por %p13140_p4, %p13139_p3 }
  0xc3   : > { %p13135_p2 = pneg %p13134_p6 }
  0xc5   : > { %p13142_p8 = pnand %p13141_p7, %p13135_p2 }
  0xc7   : > { %13145 = shalt.err (!%p13142_p8)
}
  0xc8   : > { %12661 = dma.hbm_to_vmem [thread:$0]  (%p12780_p10), %s14155_s19, 16, %s1115_s10, [#allocation16]  }
  0xc9   : > { %s14051_s22 = smov [#allocation18]   ;;  %s14052_s18 = smov [#allocation21]  }
  0xca   : > { %s1138_s23 = sshll.u32 %s14051_s22, 4  ;;  %s1162_s26 = sshll.u32 %s14052_s18, 4  ;;  %s1139_s23 = int_to_ptr.vmem [resolvable:$true] %s1138_s23  ;;  %s1163_s26 = int_to_ptr.vmem [resolvable:$true] %s1162_s26 }
  0xcb   : > { %s13146_s21 = scalar_lea.hbm %s14165_s30, 16 }
  0xcc   : > { %p13147_p11 = scmp.ne.s32.totalorder %s14165_s30, %s13146_s21  ;;  %p13152_p0 = scmp.lt.u32.totalorder %s13146_s21, %s14165_s30 }
  0xce   : > { %p13148_p12 = pnand %p13147_p11, %p12780_p10 }
  0xd0   : > { %p13149_p13 = pneg %p13148_p12 }
  0xd2   : > { %p13154_p1 = pnand %p13152_p0, %p13149_p13 }
  0xd4   : > { %13157 = shalt.err (!%p13154_p1)
}
  0xd5   : > { %s13158_s1 = scalar_lea.vmem %s1139_s23, 16  ;;  %s13164_s10 = scalar_lea.vmem %s1139_s23, 32 }
  0xd6   : > { %p13159_p5 = scmp.ne.s32.totalorder %s1139_s23, %s13158_s1  ;;  %p13165_p3 = scmp.lt.s32.totalorder %s1139_s23, %s1139_s23 }
  0xd7   : > { %p13166_p4 = scmp.lt.s32.totalorder %s13164_s10, %s13158_s1 }
  0xd8   : > { %p13160_p6 = pnand %p13159_p5, %p12780_p10 }
  0xd9   : > { %p13167_p7 = por %p13166_p4, %p13165_p3 }
  0xda   : > { %p13161_p2 = pneg %p13160_p6 }
  0xdc   : > { %p13168_p8 = pnand %p13167_p7, %p13161_p2 }
  0xde   : > { %13171 = shalt.err (!%p13168_p8)
}
  0xdf   : > { %12665 = dma.hbm_to_vmem [thread:$0]  (%p12780_p10), %s14165_s30, 16, %s1139_s23, [#allocation19]  }
  0xe0   : > { %s13172_s16 = scalar_lea.hbm %s17282_s12, 16 }
  0xe1   : > { %p13173_p11 = scmp.ne.s32.totalorder %s17282_s12, %s13172_s16  ;;  %p13178_p0 = scmp.lt.u32.totalorder %s13172_s16, %s17282_s12 }
  0xe3   : > { %p13174_p12 = pnand %p13173_p11, %p12780_p10 }
  0xe5   : > { %p13175_p13 = pneg %p13174_p12 }
  0xe7   : > { %p13180_p1 = pnand %p13178_p0, %p13175_p13 }
  0xe9   : > { %13183 = shalt.err (!%p13180_p1)
}
  0xea   : > { %s13184_s22 = scalar_lea.vmem %s1163_s26, 16  ;;  %s13190_s18 = scalar_lea.vmem %s1163_s26, 32 }
  0xeb   : > { %p13185_p5 = scmp.ne.s32.totalorder %s1163_s26, %s13184_s22  ;;  %p13191_p3 = scmp.lt.s32.totalorder %s1163_s26, %s1163_s26 }
  0xec   : > { %p13192_p4 = scmp.lt.s32.totalorder %s13190_s18, %s13184_s22 }
  0xed   : > { %p13186_p6 = pnand %p13185_p5, %p12780_p10 }
  0xee   : > { %p13193_p7 = por %p13192_p4, %p13191_p3 }
  0xef   : > { %p13187_p2 = pneg %p13186_p6 }
  0xf1   : > { %p13194_p8 = pnand %p13193_p7, %p13187_p2 }
  0xf3   : > { %13197 = shalt.err (!%p13194_p8)
}
  0xf4   : > { %12669 = dma.hbm_to_vmem [thread:$0]  (%p12780_p10), %s17282_s12, 16, %s1163_s26, [#allocation22]  }
  0xf5   : > { %s14053_s23 = smov [#allocation24]   ;;  %s14054_s1 = smov [#allocation27]  }
  0xf6   : > { %s1186_s21 = sshll.u32 %s14053_s23, 4  ;;  %s1210_s10 = sshll.u32 %s14054_s1, 4  ;;  %s1187_s21 = int_to_ptr.vmem [resolvable:$true] %s1186_s21  ;;  %s1211_s10 = int_to_ptr.vmem [resolvable:$true] %s1210_s10 }
  0xf7   : > { %s13198_s16 = scalar_lea.hbm %s14185_s27, 16 }
  0xf8   : > { %p13199_p11 = scmp.ne.s32.totalorder %s14185_s27, %s13198_s16  ;;  %p13204_p0 = scmp.lt.u32.totalorder %s13198_s16, %s14185_s27 }
  0xfa   : > { %p13200_p12 = pnand %p13199_p11, %p12780_p10 }
  0xfc   : > { %p13201_p13 = pneg %p13200_p12 }
  0xfe   : > { %p13206_p1 = pnand %p13204_p0, %p13201_p13 }
 0x100   : > { %13209 = shalt.err (!%p13206_p1)
}
 0x101   : > { %s13210_s22 = scalar_lea.vmem %s1187_s21, 16  ;;  %s13216_s26 = scalar_lea.vmem %s1187_s21, 32 }
 0x102   : > { %p13211_p5 = scmp.ne.s32.totalorder %s1187_s21, %s13210_s22  ;;  %p13217_p3 = scmp.lt.s32.totalorder %s1187_s21, %s1187_s21 }
 0x103   : > { %p13218_p4 = scmp.lt.s32.totalorder %s13216_s26, %s13210_s22 }
 0x104   : > { %p13212_p6 = pnand %p13211_p5, %p12780_p10 }
 0x105   : > { %p13219_p7 = por %p13218_p4, %p13217_p3 }
 0x106   : > { %p13213_p2 = pneg %p13212_p6 }
 0x108   : > { %p13220_p8 = pnand %p13219_p7, %p13213_p2 }
 0x10a   : > { %13223 = shalt.err (!%p13220_p8)
}
 0x10b   : > { %12673 = dma.hbm_to_vmem [thread:$0]  (%p12780_p10), %s14185_s27, 16, %s1187_s21, [#allocation25]  }
 0x10c   : > { %s13224_s18 = scalar_lea.hbm %s17281_s13, 16 }
 0x10d   : > { %p13225_p11 = scmp.ne.s32.totalorder %s17281_s13, %s13224_s18  ;;  %p13230_p0 = scmp.lt.u32.totalorder %s13224_s18, %s17281_s13 }
 0x10f   : > { %p13226_p12 = pnand %p13225_p11, %p12780_p10 }
 0x111   : > { %p13227_p13 = pneg %p13226_p12 }
 0x113   : > { %p13232_p1 = pnand %p13230_p0, %p13227_p13 }
 0x115   : > { %13235 = shalt.err (!%p13232_p1)
}
 0x116   : > { %s13236_s23 = scalar_lea.vmem %s1211_s10, 16  ;;  %s13242_s1 = scalar_lea.vmem %s1211_s10, 32 }
 0x117   : > { %p13237_p5 = scmp.ne.s32.totalorder %s1211_s10, %s13236_s23  ;;  %p13243_p3 = scmp.lt.s32.totalorder %s1211_s10, %s1211_s10 }
 0x118   : > { %p13244_p4 = scmp.lt.s32.totalorder %s13242_s1, %s13236_s23 }
 0x119   : > { %p13238_p6 = pnand %p13237_p5, %p12780_p10 }
 0x11a   : > { %p13245_p7 = por %p13244_p4, %p13243_p3 }
 0x11b   : > { %p13239_p2 = pneg %p13238_p6 }
 0x11d   : > { %p13246_p8 = pnand %p13245_p7, %p13239_p2 }
 0x11f   : > { %13249 = shalt.err (!%p13246_p8)
}
 0x120   : > { %12677 = dma.hbm_to_vmem [thread:$0]  (%p12780_p10), %s17281_s13, 16, %s1211_s10, [#allocation28]  }
 0x121   : > { %s14055_s21 = smov [#allocation30]   ;;  %s14056_s22 = smov [#allocation33]  }
 0x122   : > { %s1234_s16 = sshll.u32 %s14055_s21, 4  ;;  %s1258_s26 = sshll.u32 %s14056_s22, 4  ;;  %s1235_s16 = int_to_ptr.vmem [resolvable:$true] %s1234_s16  ;;  %s1259_s26 = int_to_ptr.vmem [resolvable:$true] %s1258_s26 }
 0x123   : > { %s13250_s18 = scalar_lea.hbm %s17285_s5, 16 }
 0x124   : > { %p13251_p11 = scmp.ne.s32.totalorder %s17285_s5, %s13250_s18  ;;  %p13256_p0 = scmp.lt.u32.totalorder %s13250_s18, %s17285_s5 }
 0x126   : > { %p13252_p12 = pnand %p13251_p11, %p12780_p10 }
 0x128   : > { %p13253_p13 = pneg %p13252_p12 }
 0x12a   : > { %p13258_p1 = pnand %p13256_p0, %p13253_p13 }
 0x12c   : > { %13261 = shalt.err (!%p13258_p1)
}
 0x12d   : > { %s13262_s23 = scalar_lea.vmem %s1235_s16, 16  ;;  %s13268_s10 = scalar_lea.vmem %s1235_s16, 32 }
 0x12e   : > { %p13263_p5 = scmp.ne.s32.totalorder %s1235_s16, %s13262_s23  ;;  %p13269_p3 = scmp.lt.s32.totalorder %s1235_s16, %s1235_s16 }
 0x12f   : > { %p13270_p4 = scmp.lt.s32.totalorder %s13268_s10, %s13262_s23 }
 0x130   : > { %p13264_p6 = pnand %p13263_p5, %p12780_p10 }
 0x131   : > { %p13271_p7 = por %p13270_p4, %p13269_p3 }
 0x132   : > { %p13265_p2 = pneg %p13264_p6 }
 0x134   : > { %p13272_p8 = pnand %p13271_p7, %p13265_p2 }
 0x136   : > { %13275 = shalt.err (!%p13272_p8)
}
 0x137   : > { %12681 = dma.hbm_to_vmem [thread:$0]  (%p12780_p10), %s17285_s5, 16, %s1235_s16, [#allocation31]  }
 0x138   : > { %s13276_s1 = scalar_lea.hbm %s14215_s20, 16 }
 0x139   : > { %p13277_p11 = scmp.ne.s32.totalorder %s14215_s20, %s13276_s1  ;;  %p13282_p0 = scmp.lt.u32.totalorder %s13276_s1, %s14215_s20 }
 0x13b   : > { %p13278_p12 = pnand %p13277_p11, %p12780_p10 }
 0x13d   : > { %p13279_p13 = pneg %p13278_p12 }
 0x13f   : > { %p13284_p1 = pnand %p13282_p0, %p13279_p13 }
 0x141   : > { %13287 = shalt.err (!%p13284_p1)
}
 0x142   : > { %s13288_s21 = scalar_lea.vmem %s1259_s26, 16  ;;  %s13294_s22 = scalar_lea.vmem %s1259_s26, 32 }
 0x143   : > { %p13289_p5 = scmp.ne.s32.totalorder %s1259_s26, %s13288_s21  ;;  %p13295_p3 = scmp.lt.s32.totalorder %s1259_s26, %s1259_s26 }
 0x144   : > { %p13296_p4 = scmp.lt.s32.totalorder %s13294_s22, %s13288_s21 }
 0x145   : > { %p13290_p6 = pnand %p13289_p5, %p12780_p10 }
 0x146   : > { %p13297_p7 = por %p13296_p4, %p13295_p3 }
 0x147   : > { %p13291_p2 = pneg %p13290_p6 }
 0x149   : > { %p13298_p8 = pnand %p13297_p7, %p13291_p2 }
 0x14b   : > { %13301 = shalt.err (!%p13298_p8)
}
 0x14c   : > { %12685 = dma.hbm_to_vmem [thread:$0]  (%p12780_p10), %s14215_s20, 16, %s1259_s26, [#allocation34]  }
 0x14d   : > { %s14057_s16 = smov [#allocation36]   ;;  %s14058_s23 = smov [#allocation39]  }
 0x14e   : > { %s1282_s18 = sshll.u32 %s14057_s16, 4  ;;  %s1306_s10 = sshll.u32 %s14058_s23, 4  ;;  %s1283_s18 = int_to_ptr.vmem [resolvable:$true] %s1282_s18  ;;  %s1307_s10 = int_to_ptr.vmem [resolvable:$true] %s1306_s10 }
 0x14f   : > { %s13302_s1 = scalar_lea.hbm %s17284_s6, 16 }
 0x150   : > { %p13303_p11 = scmp.ne.s32.totalorder %s17284_s6, %s13302_s1  ;;  %p13308_p0 = scmp.lt.u32.totalorder %s13302_s1, %s17284_s6 }
 0x152   : > { %p13304_p12 = pnand %p13303_p11, %p12780_p10 }
 0x154   : > { %p13305_p13 = pneg %p13304_p12 }
 0x156   : > { %p13310_p1 = pnand %p13308_p0, %p13305_p13 }
 0x158   : > { %13313 = shalt.err (!%p13310_p1)
}
 0x159   : > { %s13314_s21 = scalar_lea.vmem %s1283_s18, 16  ;;  %s13320_s26 = scalar_lea.vmem %s1283_s18, 32 }
 0x15a   : > { %p13315_p5 = scmp.ne.s32.totalorder %s1283_s18, %s13314_s21  ;;  %p13321_p3 = scmp.lt.s32.totalorder %s1283_s18, %s1283_s18 }
 0x15b   : > { %p13322_p4 = scmp.lt.s32.totalorder %s13320_s26, %s13314_s21 }
 0x15c   : > { %p13316_p6 = pnand %p13315_p5, %p12780_p10 }
 0x15d   : > { %p13323_p7 = por %p13322_p4, %p13321_p3 }
 0x15e   : > { %p13317_p2 = pneg %p13316_p6 }
 0x160   : > { %p13324_p8 = pnand %p13323_p7, %p13317_p2 }
 0x162   : > { %13327 = shalt.err (!%p13324_p8)
}
 0x163   : > { %12689 = dma.hbm_to_vmem [thread:$0]  (%p12780_p10), %s17284_s6, 16, %s1283_s18, [#allocation37]  }
 0x164   : > { %s13328_s22 = scalar_lea.hbm %s14235_s24, 16 }
 0x165   : > { %p13329_p11 = scmp.ne.s32.totalorder %s14235_s24, %s13328_s22  ;;  %p13334_p0 = scmp.lt.u32.totalorder %s13328_s22, %s14235_s24 }
 0x167   : > { %p13330_p12 = pnand %p13329_p11, %p12780_p10 }
 0x169   : > { %p13331_p13 = pneg %p13330_p12 }
 0x16b   : > { %p13336_p1 = pnand %p13334_p0, %p13331_p13 }
 0x16d   : > { %13339 = shalt.err (!%p13336_p1)
}
 0x16e   : > { %s13340_s16 = scalar_lea.vmem %s1307_s10, 16  ;;  %s13346_s23 = scalar_lea.vmem %s1307_s10, 32 }
 0x16f   : > { %p13341_p5 = scmp.ne.s32.totalorder %s1307_s10, %s13340_s16  ;;  %p13347_p3 = scmp.lt.s32.totalorder %s1307_s10, %s1307_s10 }
 0x170   : > { %p13348_p4 = scmp.lt.s32.totalorder %s13346_s23, %s13340_s16 }
 0x171   : > { %p13342_p6 = pnand %p13341_p5, %p12780_p10 }
 0x172   : > { %p13349_p7 = por %p13348_p4, %p13347_p3 }
 0x173   : > { %p13343_p2 = pneg %p13342_p6 }
 0x175   : > { %p13350_p8 = pnand %p13349_p7, %p13343_p2 }
 0x177   : > { %13353 = shalt.err (!%p13350_p8)
}
 0x178   : > { %12693 = dma.hbm_to_vmem [thread:$0]  (%p12780_p10), %s14235_s24, 16, %s1307_s10, [#allocation40]  }
 0x179   : > { %s14059_s18 = smov [#allocation42]   ;;  %s14060_s21 = smov [#allocation45]  }
 0x17a   : > { %s1330_s1 = sshll.u32 %s14059_s18, 4  ;;  %s1354_s26 = sshll.u32 %s14060_s21, 4  ;;  %s1331_s1 = int_to_ptr.vmem [resolvable:$true] %s1330_s1  ;;  %s1355_s26 = int_to_ptr.vmem [resolvable:$true] %s1354_s26 }
 0x17b   : > { %s13354_s22 = scalar_lea.hbm %s17280_s14, 16 }
 0x17c   : > { %p13355_p11 = scmp.ne.s32.totalorder %s17280_s14, %s13354_s22  ;;  %p13360_p0 = scmp.lt.u32.totalorder %s13354_s22, %s17280_s14 }
 0x17e   : > { %p13356_p12 = pnand %p13355_p11, %p12780_p10 }
 0x180   : > { %p13357_p13 = pneg %p13356_p12 }
 0x182   : > { %p13362_p1 = pnand %p13360_p0, %p13357_p13 }
 0x184   : > { %13365 = shalt.err (!%p13362_p1)
}
 0x185   : > { %s13366_s16 = scalar_lea.vmem %s1331_s1, 16  ;;  %s13372_s10 = scalar_lea.vmem %s1331_s1, 32 }
 0x186   : > { %p13367_p5 = scmp.ne.s32.totalorder %s1331_s1, %s13366_s16  ;;  %p13373_p3 = scmp.lt.s32.totalorder %s1331_s1, %s1331_s1 }
 0x187   : > { %p13374_p4 = scmp.lt.s32.totalorder %s13372_s10, %s13366_s16 }
 0x188   : > { %p13368_p6 = pnand %p13367_p5, %p12780_p10 }
 0x189   : > { %p13375_p7 = por %p13374_p4, %p13373_p3 }
 0x18a   : > { %p13369_p2 = pneg %p13368_p6 }
 0x18c   : > { %p13376_p8 = pnand %p13375_p7, %p13369_p2 }
 0x18e   : > { %13379 = shalt.err (!%p13376_p8)
}
 0x18f   : > { %12697 = dma.hbm_to_vmem [thread:$0]  (%p12780_p10), %s17280_s14, 16, %s1331_s1, [#allocation43]  }
 0x190   : > { %s13380_s23 = scalar_lea.hbm %s17286_s3, 16 }
 0x191   : > { %p13381_p11 = scmp.ne.s32.totalorder %s17286_s3, %s13380_s23  ;;  %p13386_p0 = scmp.lt.u32.totalorder %s13380_s23, %s17286_s3 }
 0x193   : > { %p13382_p12 = pnand %p13381_p11, %p12780_p10 }
 0x195   : > { %p13383_p13 = pneg %p13382_p12 }
 0x197   : > { %p13388_p1 = pnand %p13386_p0, %p13383_p13 }
 0x199   : > { %13391 = shalt.err (!%p13388_p1)
}
 0x19a   : > { %s13392_s18 = scalar_lea.vmem %s1355_s26, 16  ;;  %s13398_s21 = scalar_lea.vmem %s1355_s26, 32 }
 0x19b   : > { %p13393_p5 = scmp.ne.s32.totalorder %s1355_s26, %s13392_s18  ;;  %p13399_p3 = scmp.lt.s32.totalorder %s1355_s26, %s1355_s26 }
 0x19c   : > { %p13400_p4 = scmp.lt.s32.totalorder %s13398_s21, %s13392_s18 }
 0x19d   : > { %p13394_p6 = pnand %p13393_p5, %p12780_p10 }
 0x19e   : > { %p13401_p7 = por %p13400_p4, %p13399_p3 }
 0x19f   : > { %p13395_p2 = pneg %p13394_p6 }
 0x1a1   : > { %p13402_p8 = pnand %p13401_p7, %p13395_p2 }
 0x1a3   : > { %13405 = shalt.err (!%p13402_p8)
}
 0x1a4   : > { %s17295_s1 = sld [smem:[#allocation101_spill]]  ;;  %s14061_s22 = smov [#allocation48]  }
 0x1a5   : > { %12701 = dma.hbm_to_vmem [thread:$0]  (%p12780_p10), %s17286_s3, 16, %s1355_s26, [#allocation46]  }
 0x1a6   : > { %s1386_s16 = sshll.u32 %s14061_s22, 4  ;;  %s1387_s16 = int_to_ptr.vmem [resolvable:$true] %s1386_s16 }
 0x1aa   : > { %s13406_s10 = scalar_lea.hbm %s17295_s1, 10240 }
 0x1ab   : > { %p13407_p11 = scmp.ne.s32.totalorder %s17295_s1, %s13406_s10  ;;  %p13412_p0 = scmp.lt.u32.totalorder %s13406_s10, %s17295_s1 }
 0x1ad   : > { %p13408_p12 = pnand %p13407_p11, %p12780_p10 }
 0x1af   : > { %p13409_p13 = pneg %p13408_p12 }
 0x1b1   : > { %p13414_p1 = pnand %p13412_p0, %p13409_p13 }
 0x1b3   : > { %13417 = shalt.err (!%p13414_p1)
}
 0x1b4   : > { %s13418_s23 = scalar_lea.vmem %s1387_s16, 10240  ;;  %p13425_p3 = scmp.lt.s32.totalorder %s1387_s16, %s1387_s16 }
 0x1b5   : > { %p13419_p5 = scmp.ne.s32.totalorder %s1387_s16, %s13418_s23  ;;  %p13426_p4 = scmp.lt.s32.totalorder %s13418_s23, %s13418_s23 }
 0x1b7   : > { %p13420_p6 = pnand %p13419_p5, %p12780_p10  ;;  %p13427_p7 = por %p13426_p4, %p13425_p3 }
 0x1b9   : > { %p13421_p2 = pneg %p13420_p6 }
 0x1bb   : > { %p13428_p8 = pnand %p13427_p7, %p13421_p2 }
 0x1bd   : > { %13431 = shalt.err (!%p13428_p8)
}
 0x1be   : > { %s17221_s26 = smov 640   ;;  %s17296_s18 = sld [smem:[#allocation75_spill]] }
 0x1bf   : > { %s17223_s21 = smov 40   ;;  %s14064_s22 = smov [#allocation3]  }
 0x1c0   : > { %12705 = dma.hbm_to_vmem [thread:$0]  (%p12780_p10), %s17295_s1, 10240, %s1387_s16, [#allocation49], %s17221_s26, %s17221_s26, %s17223_s21  }
 0x1c1   : > { %s1028_s10 = sshll.u32 %s14064_s22, 4  ;;  %s1029_s10 = int_to_ptr.vmem [resolvable:$true] %s1028_s10 }
 0x1c4   : > { %s13432_s23 = scalar_lea.hbm %s17296_s18, 256 }
 0x1c5   : > { %p13433_p11 = scmp.ne.s32.totalorder %s17296_s18, %s13432_s23  ;;  %p13438_p0 = scmp.lt.u32.totalorder %s13432_s23, %s17296_s18 }
 0x1c7   : > { %p13434_p12 = pnand %p13433_p11, %p12780_p10 }
 0x1c9   : > { %p13435_p13 = pneg %p13434_p12 }
 0x1cb   : > { %p13440_p1 = pnand %p13438_p0, %p13435_p13 }
 0x1cd   : > { %13443 = shalt.err (!%p13440_p1)
}
 0x1ce   : > { %s13444_s3 = scalar_lea.vmem %s1029_s10, 256  ;;  %p13451_p3 = scmp.lt.s32.totalorder %s1029_s10, %s1029_s10 }
 0x1cf   : > { %p13445_p5 = scmp.ne.s32.totalorder %s1029_s10, %s13444_s3  ;;  %p13452_p4 = scmp.lt.s32.totalorder %s13444_s3, %s13444_s3 }
 0x1d1   : > { %p13446_p6 = pnand %p13445_p5, %p12780_p10  ;;  %p13453_p7 = por %p13452_p4, %p13451_p3 }
 0x1d3   : > { %p13447_p2 = pneg %p13446_p6 }
 0x1d5   : > { %p13454_p8 = pnand %p13453_p7, %p13447_p2 }
 0x1d7   : > { %13457 = shalt.err (!%p13454_p8)
}
 0x1d8   : > { %s17228_s16 = smov 128   ;;  %s17297_s22 = sld [smem:[#allocation77_spill]] }
 0x1d9   : > { %s17229_s23 = smov 8   ;;  %s14067_s26 = smov [#allocation8]  }
 0x1da   : > { %12647 = dma.hbm_to_vmem [thread:$0]  (%p12780_p10), %s17296_s18, 256, %s1029_s10, [#allocation4], %s17228_s16, %s17228_s16, %s17229_s23  }
 0x1db   : > { %s1052_s21 = sshll.u32 %s14067_s26, 4  ;;  %s14068_s1 = smov [#allocation11]   ;;  %s1053_s21 = int_to_ptr.vmem [resolvable:$true] %s1052_s21 }
 0x1dc   : > { %s1076_s3 = sshll.u32 %s14068_s1, 4  ;;  %s14533_s3 = int_to_ptr.vmem [resolvable:$true] %s1076_s3 }
 0x1de   : > { %s13458_s5 = scalar_lea.hbm %s17297_s22, 256 }
 0x1df   : > { %p13459_p11 = scmp.ne.s32.totalorder %s17297_s22, %s13458_s5  ;;  %p13464_p0 = scmp.lt.u32.totalorder %s13458_s5, %s17297_s22 }
 0x1e1   : > { %p13460_p12 = pnand %p13459_p11, %p12780_p10 }
 0x1e3   : > { %p13461_p13 = pneg %p13460_p12 }
 0x1e5   : > { %p13466_p1 = pnand %p13464_p0, %p13461_p13 }
 0x1e7   : > { %13469 = shalt.err (!%p13466_p1)
}
 0x1e8   : > { %s13470_s6 = scalar_lea.vmem %s1053_s21, 256  ;;  %p13477_p3 = scmp.lt.s32.totalorder %s1053_s21, %s1053_s21 }
 0x1e9   : > { %p13471_p5 = scmp.ne.s32.totalorder %s1053_s21, %s13470_s6  ;;  %p13478_p4 = scmp.lt.s32.totalorder %s13470_s6, %s13470_s6 }
 0x1eb   : > { %p13472_p6 = pnand %p13471_p5, %p12780_p10  ;;  %p13479_p7 = por %p13478_p4, %p13477_p3 }
 0x1ed   : > { %p13473_p2 = pneg %p13472_p6 }
 0x1ef   : > { %p13480_p8 = pnand %p13479_p7, %p13473_p2 }
 0x1f1   : > { %13483 = shalt.err (!%p13480_p8)
}
 0x1f2   : > { %s17298_s5 = sld [smem:[#allocation78_spill]] }
 0x1f3   : > { %12651 = dma.hbm_to_vmem [thread:$0]  (%p12780_p10), %s17297_s22, 256, %s1053_s21, [#allocation7], %s17228_s16, %s17228_s16, %s17229_s23  }
 0x1f8   : > { %s13484_s1 = scalar_lea.hbm %s17298_s5, 256 }
 0x1f9   : > { %p13485_p11 = scmp.ne.s32.totalorder %s17298_s5, %s13484_s1  ;;  %p13490_p0 = scmp.lt.u32.totalorder %s13484_s1, %s17298_s5 }
 0x1fb   : > { %p13486_p12 = pnand %p13485_p11, %p12780_p10 }
 0x1fd   : > { %p13487_p13 = pneg %p13486_p12 }
 0x1ff   : > { %p13492_p1 = pnand %p13490_p0, %p13487_p13 }
 0x201   : > { %13495 = shalt.err (!%p13492_p1)
}
 0x202   : > { %s13496_s6 = scalar_lea.vmem %s14533_s3, 256  ;;  %p13503_p3 = scmp.lt.s32.totalorder %s14533_s3, %s14533_s3 }
 0x203   : > { %p13497_p5 = scmp.ne.s32.totalorder %s14533_s3, %s13496_s6  ;;  %p13504_p4 = scmp.lt.s32.totalorder %s13496_s6, %s13496_s6 }
 0x205   : > { %p13498_p6 = pnand %p13497_p5, %p12780_p10  ;;  %p13505_p7 = por %p13504_p4, %p13503_p3 }
 0x207   : > { %p13499_p2 = pneg %p13498_p6 }
 0x209   : > { %p13506_p8 = pnand %p13505_p7, %p13499_p2 }
 0x20b   : > { %13509 = shalt.err (!%p13506_p8)
}
 0x20c   : > { %s17299_s26 = sld [smem:[#allocation80_spill]]  ;;  %s14069_s21 = smov [#allocation14]  }
 0x20d   : > { %12655 = dma.hbm_to_vmem [thread:$0]  (%p12780_p10), %s17298_s5, 256, %s14533_s3, [#allocation10], %s17228_s16, %s17228_s16, %s17229_s23  }
 0x20e   : > { %s1100_s10 = sshll.u32 %s14069_s21, 4  ;;  %s1101_s10 = int_to_ptr.vmem [resolvable:$true] %s1100_s10 }
 0x212   : > { %s13510_s1 = scalar_lea.hbm %s17299_s26, 512 }
 0x213   : > { %p13511_p11 = scmp.ne.s32.totalorder %s17299_s26, %s13510_s1  ;;  %p13516_p0 = scmp.lt.u32.totalorder %s13510_s1, %s17299_s26 }
 0x215   : > { %p13512_p12 = pnand %p13511_p11, %p12780_p10 }
 0x217   : > { %p13513_p13 = pneg %p13512_p12 }
 0x219   : > { %p13518_p1 = pnand %p13516_p0, %p13513_p13 }
 0x21b   : > { %13521 = shalt.err (!%p13518_p1)
}
 0x21c   : > { %s13522_s6 = scalar_lea.vmem %s1101_s10, 512  ;;  %p13529_p3 = scmp.lt.s32.totalorder %s1101_s10, %s1101_s10 }
 0x21d   : > { %p13523_p5 = scmp.ne.s32.totalorder %s1101_s10, %s13522_s6  ;;  %p13530_p4 = scmp.lt.s32.totalorder %s13522_s6, %s13522_s6 }
 0x21f   : > { %p13524_p6 = pnand %p13523_p5, %p12780_p10  ;;  %p13531_p7 = por %p13530_p4, %p13529_p3 }
 0x221   : > { %p13525_p2 = pneg %p13524_p6 }
 0x223   : > { %p13532_p8 = pnand %p13531_p7, %p13525_p2 }
 0x225   : > { %13535 = shalt.err (!%p13532_p8)
}
 0x226   : > { %s14070_s3 = smov 256   ;;  %s17300_s21 = sld [smem:[#allocation81_spill]] }
 0x227   : > { %s14071_s1 = smov 16   ;;  %s14072_s16 = smov [#allocation17]  }
 0x228   : > { %12659 = dma.hbm_to_vmem [thread:$0]  (%p12780_p10), %s17299_s26, 512, %s1101_s10, [#allocation13], %s14070_s3, %s14070_s3, %s14071_s1  }
 0x229   : > { %s1124_s23 = sshll.u32 %s14072_s16, 4  ;;  %s14073_s6 = smov [#allocation20]   ;;  %s1125_s23 = int_to_ptr.vmem [resolvable:$true] %s1124_s23 }
 0x22a   : > { %s1148_s5 = sshll.u32 %s14073_s6, 4  ;;  %s1149_s5 = int_to_ptr.vmem [resolvable:$true] %s1148_s5 }
 0x22c   : > { %s13536_s8 = scalar_lea.hbm %s17300_s21, 1024 }
 0x22d   : > { %p13537_p11 = scmp.ne.s32.totalorder %s17300_s21, %s13536_s8  ;;  %p13542_p0 = scmp.lt.u32.totalorder %s13536_s8, %s17300_s21 }
 0x22f   : > { %p13538_p12 = pnand %p13537_p11, %p12780_p10 }
 0x231   : > { %p13539_p13 = pneg %p13538_p12 }
 0x233   : > { %p13544_p1 = pnand %p13542_p0, %p13539_p13 }
 0x235   : > { %13547 = shalt.err (!%p13544_p1)
}
 0x236   : > { %s13548_s12 = scalar_lea.vmem %s1125_s23, 1024  ;;  %p13555_p3 = scmp.lt.s32.totalorder %s1125_s23, %s1125_s23 }
 0x237   : > { %p13549_p5 = scmp.ne.s32.totalorder %s1125_s23, %s13548_s12  ;;  %p13556_p4 = scmp.lt.s32.totalorder %s13548_s12, %s13548_s12 }
 0x239   : > { %p13550_p6 = pnand %p13549_p5, %p12780_p10  ;;  %p13557_p7 = por %p13556_p4, %p13555_p3 }
 0x23b   : > { %p13551_p2 = pneg %p13550_p6 }
 0x23d   : > { %p13558_p8 = pnand %p13557_p7, %p13551_p2 }
 0x23f   : > { %13561 = shalt.err (!%p13558_p8)
}
 0x240   : > { %s17301_s8 = sld [smem:[#allocation82_spill]] }
 0x241   : > { %12663 = dma.hbm_to_vmem [thread:$0]  (%p12780_p10), %s17300_s21, 1024, %s1125_s23, [#allocation16], %s14070_s3, %s14070_s3, %s14071_s1  }
 0x246   : > { %s13562_s16 = scalar_lea.hbm %s17301_s8, 1024 }
 0x247   : > { %p13563_p11 = scmp.ne.s32.totalorder %s17301_s8, %s13562_s16  ;;  %p13568_p0 = scmp.lt.u32.totalorder %s13562_s16, %s17301_s8 }
 0x249   : > { %p13564_p12 = pnand %p13563_p11, %p12780_p10 }
 0x24b   : > { %p13565_p13 = pneg %p13564_p12 }
 0x24d   : > { %p13570_p1 = pnand %p13568_p0, %p13565_p13 }
 0x24f   : > { %13573 = shalt.err (!%p13570_p1)
}
 0x250   : > { %s13574_s12 = scalar_lea.vmem %s1149_s5, 1024  ;;  %p13581_p3 = scmp.lt.s32.totalorder %s1149_s5, %s1149_s5 }
 0x251   : > { %p13575_p5 = scmp.ne.s32.totalorder %s1149_s5, %s13574_s12  ;;  %p13582_p4 = scmp.lt.s32.totalorder %s13574_s12, %s13574_s12 }
 0x253   : > { %p13576_p6 = pnand %p13575_p5, %p12780_p10  ;;  %p13583_p7 = por %p13582_p4, %p13581_p3 }
 0x255   : > { %p13577_p2 = pneg %p13576_p6 }
 0x257   : > { %p13584_p8 = pnand %p13583_p7, %p13577_p2 }
 0x259   : > { %13587 = shalt.err (!%p13584_p8)
}
 0x25a   : > { %s17302_s23 = sld [smem:[#allocation84_spill]]  ;;  %s14074_s10 = smov [#allocation23]  }
 0x25b   : > { %12667 = dma.hbm_to_vmem [thread:$0]  (%p12780_p10), %s17301_s8, 1024, %s1149_s5, [#allocation19], %s14070_s3, %s14070_s3, %s14071_s1  }
 0x25c   : > { %s1172_s6 = sshll.u32 %s14074_s10, 4  ;;  %s1173_s6 = int_to_ptr.vmem [resolvable:$true] %s1172_s6 }
 0x260   : > { %s13588_s16 = scalar_lea.hbm %s17302_s23, 1536 }
 0x261   : > { %p13589_p11 = scmp.ne.s32.totalorder %s17302_s23, %s13588_s16  ;;  %p13594_p0 = scmp.lt.u32.totalorder %s13588_s16, %s17302_s23 }
 0x263   : > { %p13590_p12 = pnand %p13589_p11, %p12780_p10 }
 0x265   : > { %p13591_p13 = pneg %p13590_p12 }
 0x267   : > { %p13596_p1 = pnand %p13594_p0, %p13591_p13 }
 0x269   : > { %13599 = shalt.err (!%p13596_p1)
}
 0x26a   : > { %s13600_s12 = scalar_lea.vmem %s1173_s6, 1536  ;;  %p13607_p3 = scmp.lt.s32.totalorder %s1173_s6, %s1173_s6 }
 0x26b   : > { %p13601_p5 = scmp.ne.s32.totalorder %s1173_s6, %s13600_s12  ;;  %p13608_p4 = scmp.lt.s32.totalorder %s13600_s12, %s13600_s12 }
 0x26d   : > { %p13602_p6 = pnand %p13601_p5, %p12780_p10  ;;  %p13609_p7 = por %p13608_p4, %p13607_p3 }
 0x26f   : > { %p13603_p2 = pneg %p13602_p6 }
 0x271   : > { %p13610_p8 = pnand %p13609_p7, %p13603_p2 }
 0x273   : > { %13613 = shalt.err (!%p13610_p8)
}
 0x274   : > { %s14075_s5 = smov 384   ;;  %s17303_s3 = sld [smem:[#allocation85_spill]] }
 0x275   : > { %s14076_s1 = smov 24   ;;  %s14077_s10 = smov [#allocation26]  }
 0x276   : > { %12671 = dma.hbm_to_vmem [thread:$0]  (%p12780_p10), %s17302_s23, 1536, %s1173_s6, [#allocation22], %s14075_s5, %s14075_s5, %s14076_s1  }
 0x277   : > { %s1196_s16 = sshll.u32 %s14077_s10, 4  ;;  %s14078_s8 = smov [#allocation29]   ;;  %s1197_s16 = int_to_ptr.vmem [resolvable:$true] %s1196_s16 }
 0x278   : > { %s1220_s12 = sshll.u32 %s14078_s8, 4  ;;  %s14618_s12 = int_to_ptr.vmem [resolvable:$true] %s1220_s12 }
 0x27a   : > { %s13614_s13 = scalar_lea.hbm %s17303_s3, 3072 }
 0x27b   : > { %p13615_p11 = scmp.ne.s32.totalorder %s17303_s3, %s13614_s13  ;;  %p13620_p0 = scmp.lt.u32.totalorder %s13614_s13, %s17303_s3 }
 0x27d   : > { %p13616_p12 = pnand %p13615_p11, %p12780_p10 }
 0x27f   : > { %p13617_p13 = pneg %p13616_p12 }
 0x281   : > { %p13622_p1 = pnand %p13620_p0, %p13617_p13 }
 0x283   : > { %13625 = shalt.err (!%p13622_p1)
}
 0x284   : > { %s13626_s14 = scalar_lea.vmem %s1197_s16, 3072  ;;  %p13633_p3 = scmp.lt.s32.totalorder %s1197_s16, %s1197_s16 }
 0x285   : > { %p13627_p5 = scmp.ne.s32.totalorder %s1197_s16, %s13626_s14  ;;  %p13634_p4 = scmp.lt.s32.totalorder %s13626_s14, %s13626_s14 }
 0x287   : > { %p13628_p6 = pnand %p13627_p5, %p12780_p10  ;;  %p13635_p7 = por %p13634_p4, %p13633_p3 }
 0x289   : > { %p13629_p2 = pneg %p13628_p6 }
 0x28b   : > { %p13636_p8 = pnand %p13635_p7, %p13629_p2 }
 0x28d   : > { %13639 = shalt.err (!%p13636_p8)
}
 0x28e   : > { %s17304_s13 = sld [smem:[#allocation87_spill]] }
 0x28f   : > { %12675 = dma.hbm_to_vmem [thread:$0]  (%p12780_p10), %s17303_s3, 3072, %s1197_s16, [#allocation25], %s14075_s5, %s14075_s5, %s14076_s1  }
 0x294   : > { %s13640_s8 = scalar_lea.hbm %s17304_s13, 3072 }
 0x295   : > { %p13641_p11 = scmp.ne.s32.totalorder %s17304_s13, %s13640_s8  ;;  %p13646_p0 = scmp.lt.u32.totalorder %s13640_s8, %s17304_s13 }
 0x297   : > { %p13642_p12 = pnand %p13641_p11, %p12780_p10 }
 0x299   : > { %p13643_p13 = pneg %p13642_p12 }
 0x29b   : > { %p13648_p1 = pnand %p13646_p0, %p13643_p13 }
 0x29d   : > { %13651 = shalt.err (!%p13648_p1)
}
 0x29e   : > { %s13652_s14 = scalar_lea.vmem %s14618_s12, 3072  ;;  %p13659_p3 = scmp.lt.s32.totalorder %s14618_s12, %s14618_s12 }
 0x29f   : > { %p13653_p5 = scmp.ne.s32.totalorder %s14618_s12, %s13652_s14  ;;  %p13660_p4 = scmp.lt.s32.totalorder %s13652_s14, %s13652_s14 }
 0x2a1   : > { %p13654_p6 = pnand %p13653_p5, %p12780_p10  ;;  %p13661_p7 = por %p13660_p4, %p13659_p3 }
 0x2a3   : > { %p13655_p2 = pneg %p13654_p6 }
 0x2a5   : > { %p13662_p8 = pnand %p13661_p7, %p13655_p2 }
 0x2a7   : > { %13665 = shalt.err (!%p13662_p8)
}
 0x2a8   : > { %s17305_s6 = sld [smem:[#allocation89_spill]]  ;;  %s14079_s10 = smov [#allocation32]  }
 0x2a9   : > { %12679 = dma.hbm_to_vmem [thread:$0]  (%p12780_p10), %s17304_s13, 3072, %s14618_s12, [#allocation28], %s14075_s5, %s14075_s5, %s14076_s1  }
 0x2aa   : > { %s1244_s16 = sshll.u32 %s14079_s10, 4  ;;  %s14080_s8 = smov [#allocation35]   ;;  %s1245_s16 = int_to_ptr.vmem [resolvable:$true] %s1244_s16 }
 0x2ab   : > { %s1268_s3 = sshll.u32 %s14080_s8, 4  ;;  %s14651_s3 = int_to_ptr.vmem [resolvable:$true] %s1268_s3 }
 0x2ae   : > { %s13666_s14 = scalar_lea.hbm %s17305_s6, 3072 }
 0x2af   : > { %p13667_p11 = scmp.ne.s32.totalorder %s17305_s6, %s13666_s14  ;;  %p13672_p0 = scmp.lt.u32.totalorder %s13666_s14, %s17305_s6 }
 0x2b1   : > { %p13668_p12 = pnand %p13667_p11, %p12780_p10 }
 0x2b3   : > { %p13669_p13 = pneg %p13668_p12 }
 0x2b5   : > { %p13674_p1 = pnand %p13672_p0, %p13669_p13 }
 0x2b7   : > { %13677 = shalt.err (!%p13674_p1)
}
 0x2b8   : > { %s13678_s18 = scalar_lea.vmem %s1245_s16, 3072  ;;  %p13685_p3 = scmp.lt.s32.totalorder %s1245_s16, %s1245_s16 }
 0x2b9   : > { %p13679_p5 = scmp.ne.s32.totalorder %s1245_s16, %s13678_s18  ;;  %p13686_p4 = scmp.lt.s32.totalorder %s13678_s18, %s13678_s18 }
 0x2bb   : > { %p13680_p6 = pnand %p13679_p5, %p12780_p10  ;;  %p13687_p7 = por %p13686_p4, %p13685_p3 }
 0x2bd   : > { %p13681_p2 = pneg %p13680_p6 }
 0x2bf   : > { %p13688_p8 = pnand %p13687_p7, %p13681_p2 }
 0x2c1   : > { %13691 = shalt.err (!%p13688_p8)
}
 0x2c2   : > { %s17306_s12 = sld [smem:[#allocation90_spill]] }
 0x2c3   : > { %12683 = dma.hbm_to_vmem [thread:$0]  (%p12780_p10), %s17305_s6, 3072, %s1245_s16, [#allocation31], %s14075_s5, %s14075_s5, %s14076_s1  }
 0x2c8   : > { %s13692_s10 = scalar_lea.hbm %s17306_s12, 3072 }
 0x2c9   : > { %p13693_p11 = scmp.ne.s32.totalorder %s17306_s12, %s13692_s10  ;;  %p13698_p0 = scmp.lt.u32.totalorder %s13692_s10, %s17306_s12 }
 0x2cb   : > { %p13694_p12 = pnand %p13693_p11, %p12780_p10 }
 0x2cd   : > { %p13695_p13 = pneg %p13694_p12 }
 0x2cf   : > { %p13700_p1 = pnand %p13698_p0, %p13695_p13 }
 0x2d1   : > { %13703 = shalt.err (!%p13700_p1)
}
 0x2d2   : > { %s13704_s18 = scalar_lea.vmem %s14651_s3, 3072  ;;  %p13711_p3 = scmp.lt.s32.totalorder %s14651_s3, %s14651_s3 }
 0x2d3   : > { %p13705_p5 = scmp.ne.s32.totalorder %s14651_s3, %s13704_s18  ;;  %p13712_p4 = scmp.lt.s32.totalorder %s13704_s18, %s13704_s18 }
 0x2d5   : > { %p13706_p6 = pnand %p13705_p5, %p12780_p10  ;;  %p13713_p7 = por %p13712_p4, %p13711_p3 }
 0x2d7   : > { %p13707_p2 = pneg %p13706_p6 }
 0x2d9   : > { %p13714_p8 = pnand %p13713_p7, %p13707_p2 }
 0x2db   : > { %13717 = shalt.err (!%p13714_p8)
}
 0x2dc   : > { %s17307_s16 = sld [smem:[#allocation92_spill]]  ;;  %s14081_s8 = smov [#allocation38]  }
 0x2dd   : > { %12687 = dma.hbm_to_vmem [thread:$0]  (%p12780_p10), %s17306_s12, 3072, %s14651_s3, [#allocation34], %s14075_s5, %s14075_s5, %s14076_s1  }
 0x2de   : > { %s1292_s14 = sshll.u32 %s14081_s8, 4  ;;  %s14082_s10 = smov [#allocation41]   ;;  %s1293_s14 = int_to_ptr.vmem [resolvable:$true] %s1292_s14 }
 0x2df   : > { %s1316_s6 = sshll.u32 %s14082_s10, 4  ;;  %s14684_s6 = int_to_ptr.vmem [resolvable:$true] %s1316_s6 }
 0x2e2   : > { %s13718_s18 = scalar_lea.hbm %s17307_s16, 3072 }
 0x2e3   : > { %p13719_p11 = scmp.ne.s32.totalorder %s17307_s16, %s13718_s18  ;;  %p13724_p0 = scmp.lt.u32.totalorder %s13718_s18, %s17307_s16 }
 0x2e5   : > { %p13720_p12 = pnand %p13719_p11, %p12780_p10 }
 0x2e7   : > { %p13721_p13 = pneg %p13720_p12 }
 0x2e9   : > { %p13726_p1 = pnand %p13724_p0, %p13721_p13 }
 0x2eb   : > { %13729 = shalt.err (!%p13726_p1)
}
 0x2ec   : > { %s13730_s13 = scalar_lea.vmem %s1293_s14, 3072  ;;  %p13737_p3 = scmp.lt.s32.totalorder %s1293_s14, %s1293_s14 }
 0x2ed   : > { %p13731_p5 = scmp.ne.s32.totalorder %s1293_s14, %s13730_s13  ;;  %p13738_p4 = scmp.lt.s32.totalorder %s13730_s13, %s13730_s13 }
 0x2ef   : > { %p13732_p6 = pnand %p13731_p5, %p12780_p10  ;;  %p13739_p7 = por %p13738_p4, %p13737_p3 }
 0x2f1   : > { %p13733_p2 = pneg %p13732_p6 }
 0x2f3   : > { %p13740_p8 = pnand %p13739_p7, %p13733_p2 }
 0x2f5   : > { %13743 = shalt.err (!%p13740_p8)
}
 0x2f6   : > { %s17308_s3 = sld [smem:[#allocation93_spill]] }
 0x2f7   : > { %12691 = dma.hbm_to_vmem [thread:$0]  (%p12780_p10), %s17307_s16, 3072, %s1293_s14, [#allocation37], %s14075_s5, %s14075_s5, %s14076_s1  }
 0x2fc   : > { %s13744_s8 = scalar_lea.hbm %s17308_s3, 5120 }
 0x2fd   : > { %p13745_p11 = scmp.ne.s32.totalorder %s17308_s3, %s13744_s8  ;;  %p13750_p0 = scmp.lt.u32.totalorder %s13744_s8, %s17308_s3 }
 0x2ff   : > { %p13746_p12 = pnand %p13745_p11, %p12780_p10 }
 0x301   : > { %p13747_p13 = pneg %p13746_p12 }
 0x303   : > { %p13752_p1 = pnand %p13750_p0, %p13747_p13 }
 0x305   : > { %13755 = shalt.err (!%p13752_p1)
}
 0x306   : > { %s13756_s13 = scalar_lea.vmem %s14684_s6, 5120  ;;  %p13763_p3 = scmp.lt.s32.totalorder %s14684_s6, %s14684_s6 }
 0x307   : > { %p13757_p5 = scmp.ne.s32.totalorder %s14684_s6, %s13756_s13  ;;  %p13764_p4 = scmp.lt.s32.totalorder %s13756_s13, %s13756_s13 }
 0x309   : > { %p13758_p6 = pnand %p13757_p5, %p12780_p10  ;;  %p13765_p7 = por %p13764_p4, %p13763_p3 }
 0x30b   : > { %p13759_p2 = pneg %p13758_p6 }
 0x30d   : > { %p13766_p8 = pnand %p13765_p7, %p13759_p2 }
 0x30f   : > { %13769 = shalt.err (!%p13766_p8)
}
 0x310   : > { %s17309_s5 = smov 40   ;;  %s17310_s1 = smov 640  }
 0x311   : > { %s17311_s14 = sld [smem:[#allocation95_spill]]  ;;  %s14083_s10 = smov [#allocation44]  }
 0x312   : > { %12695 = dma.hbm_to_vmem [thread:$0]  (%p12780_p10), %s17308_s3, 5120, %s14684_s6, [#allocation40], %s17310_s1, %s17310_s1, %s17309_s5  }
 0x313   : > { %s1340_s18 = sshll.u32 %s14083_s10, 4  ;;  %s14084_s8 = smov [#allocation47]   ;;  %s1341_s18 = int_to_ptr.vmem [resolvable:$true] %s1340_s18 }
 0x314   : > { %s1370_s12 = sshll.u32 %s14084_s8, 4  ;;  %s14717_s12 = int_to_ptr.vmem [resolvable:$true] %s1370_s12 }
 0x317   : > { %s13770_s13 = scalar_lea.hbm %s17311_s14, 10240 }
 0x318   : > { %p13771_p11 = scmp.ne.s32.totalorder %s17311_s14, %s13770_s13  ;;  %p13776_p0 = scmp.lt.u32.totalorder %s13770_s13, %s17311_s14 }
 0x31a   : > { %p13772_p12 = pnand %p13771_p11, %p12780_p10 }
 0x31c   : > { %p13773_p13 = pneg %p13772_p12 }
 0x31e   : > { %p13778_p1 = pnand %p13776_p0, %p13773_p13 }
 0x320   : > { %13781 = shalt.err (!%p13778_p1)
}
 0x321   : > { %s13782_s16 = scalar_lea.vmem %s1341_s18, 10240  ;;  %p13789_p3 = scmp.lt.s32.totalorder %s1341_s18, %s1341_s18 }
 0x322   : > { %p13783_p5 = scmp.ne.s32.totalorder %s1341_s18, %s13782_s16  ;;  %p13790_p4 = scmp.lt.s32.totalorder %s13782_s16, %s13782_s16 }
 0x324   : > { %p13784_p6 = pnand %p13783_p5, %p12780_p10  ;;  %p13791_p7 = por %p13790_p4, %p13789_p3 }
 0x326   : > { %p13785_p2 = pneg %p13784_p6 }
 0x328   : > { %p13792_p8 = pnand %p13791_p7, %p13785_p2 }
 0x32a   : > { %13795 = shalt.err (!%p13792_p8)
}
 0x32b   : > { %s17312_s6 = sld [smem:[#allocation99_spill]] }
 0x32c   : > { %12699 = dma.hbm_to_vmem [thread:$0]  (%p12780_p10), %s17311_s14, 10240, %s1341_s18, [#allocation43], %s17310_s1, %s17310_s1, %s17309_s5  }
 0x331   : > { %s13796_s10 = scalar_lea.hbm %s17312_s6, 10240 }
 0x332   : > { %p13797_p11 = scmp.ne.s32.totalorder %s17312_s6, %s13796_s10  ;;  %p13802_p0 = scmp.lt.u32.totalorder %s13796_s10, %s17312_s6 }
 0x334   : > { %p13798_p12 = pnand %p13797_p11, %p12780_p10 }
 0x336   : > { %p13799_p13 = pneg %p13798_p12 }
 0x338   : > { %p13804_p1 = pnand %p13802_p0, %p13799_p13 }
 0x33a   : > { %13807 = shalt.err (!%p13804_p1)
}
 0x33b   : > { %s13808_s16 = scalar_lea.vmem %s14717_s12, 10240  ;;  %p13815_p3 = scmp.lt.s32.totalorder %s14717_s12, %s14717_s12 }
 0x33c   : > { %p13809_p5 = scmp.ne.s32.totalorder %s14717_s12, %s13808_s16  ;;  %p13816_p4 = scmp.lt.s32.totalorder %s13808_s16, %s13808_s16 }
 0x33e   : > { %p13810_p6 = pnand %p13809_p5, %p12780_p10  ;;  %p13817_p7 = por %p13816_p4, %p13815_p3 }
 0x340   : > { %p13811_p2 = pneg %p13810_p6 }
 0x342   : > { %p13818_p8 = pnand %p13817_p7, %p13811_p2 }
 0x344   : > { %13821 = shalt.err (!%p13818_p8)
}
 0x345   : > { %s17313_s18 = sld [smem:[#allocation103_spill]]  ;;  %s14085_s8 = smov [#allocation50]  }
 0x346   : > { %12703 = dma.hbm_to_vmem [thread:$0]  (%p12780_p10), %s17312_s6, 10240, %s14717_s12, [#allocation46], %s17310_s1, %s17310_s1, %s17309_s5  }
 0x347   : > { %s1402_s13 = sshll.u32 %s14085_s8, 4  ;;  %s14086_s10 = smov [#allocation51]   ;;  %s1403_s13 = int_to_ptr.vmem [resolvable:$true] %s1402_s13 }
 0x348   : > { %s1418_s3 = sshll.u32 %s14086_s10, 4  ;;  %s14750_s3 = int_to_ptr.vmem [resolvable:$true] %s1418_s3 }
 0x34b   : > { %s13822_s16 = scalar_lea.hbm %s17313_s18, 10240 }
 0x34c   : > { %p13823_p11 = scmp.ne.s32.totalorder %s17313_s18, %s13822_s16  ;;  %p13828_p0 = scmp.lt.u32.totalorder %s13822_s16, %s17313_s18 }
 0x34e   : > { %p13824_p12 = pnand %p13823_p11, %p12780_p10 }
 0x350   : > { %p13825_p13 = pneg %p13824_p12 }
 0x352   : > { %p13830_p1 = pnand %p13828_p0, %p13825_p13 }
 0x354   : > { %13833 = shalt.err (!%p13830_p1)
}
 0x355   : > { %s13834_s14 = scalar_lea.vmem %s1403_s13, 10240  ;;  %p13841_p3 = scmp.lt.s32.totalorder %s1403_s13, %s1403_s13 }
 0x356   : > { %p13835_p5 = scmp.ne.s32.totalorder %s1403_s13, %s13834_s14  ;;  %p13842_p4 = scmp.lt.s32.totalorder %s13834_s14, %s13834_s14 }
 0x358   : > { %p13836_p6 = pnand %p13835_p5, %p12780_p10  ;;  %p13843_p7 = por %p13842_p4, %p13841_p3 }
 0x35a   : > { %p13837_p2 = pneg %p13836_p6 }
 0x35c   : > { %p13844_p8 = pnand %p13843_p7, %p13837_p2 }
 0x35e   : > { %13847 = shalt.err (!%p13844_p8)
}
 0x35f   : > { %12707 = dma.hbm_to_vmem [thread:$0]  (%p12780_p10), %s17313_s18, 10240, %s1403_s13, [#allocation49], %s17310_s1, %s17310_s1, %s17309_s5  }
 0x360   : > { %s13848_s12 = scalar_lea.hbm %s14300_s9, 2048 }
 0x361   : > { %p13849_p11 = scmp.ne.s32.totalorder %s14300_s9, %s13848_s12  ;;  %p13854_p0 = scmp.lt.u32.totalorder %s13848_s12, %s14300_s9 }
 0x363   : > { %p13850_p12 = pnand %p13849_p11, %p12780_p10 }
 0x365   : > { %p13851_p13 = pneg %p13850_p12 }
 0x367   : > { %p13856_p1 = pnand %p13854_p0, %p13851_p13 }
 0x369   : > { %13859 = shalt.err (!%p13856_p1)
}
 0x36a   : > { %s13860_s14 = scalar_lea.vmem %s14750_s3, 2048  ;;  %p13867_p3 = scmp.lt.s32.totalorder %s14750_s3, %s14750_s3 }
 0x36b   : > { %p13861_p5 = scmp.ne.s32.totalorder %s14750_s3, %s13860_s14  ;;  %p13868_p4 = scmp.lt.s32.totalorder %s13860_s14, %s13860_s14 }
 0x36d   : > { %p13862_p6 = pnand %p13861_p5, %p12780_p10  ;;  %p13869_p7 = por %p13868_p4, %p13867_p3 }
 0x36f   : > { %p13863_p2 = pneg %p13862_p6 }
 0x371   : > { %p13870_p8 = pnand %p13869_p7, %p13863_p2 }
 0x373   : > { %13873 = shalt.err (!%p13870_p8)
}
 0x374   : > { %s17314_s5 = smov 8   ;;  %s17315_s1 = smov 128  }
 0x375   : > { %12709 = dma.hbm_to_vmem [thread:$0]  (%p12780_p10), %s14300_s9, 2048, %s14750_s3, [#allocation52], %s17315_s1, %s17315_s1, %s17314_s5  }
 0x376 PF: > { %1445 = sbr.rel (%p14360_p9) target bundleno = 9002 (0x232a), region = 184  ;;  %p12812_p11 = scmp.eq.s32.totalorder (!%p14360_p9), %s14333_s15, 0 }
 0x37d   : > { %13919 = dma.done.wait (%p12812_p11), [#allocation4], 256  }
 0x37e   : > { %13921 = vsyncadd (%p12812_p11), [#allocation4], 4294967040 }
 0x37f   : > { %13923 = dma.done.wait (%p12812_p11), [#allocation7], 272  }
 0x380   : > { %13925 = vsyncadd (%p12812_p11), [#allocation7], 4294967024 }
 0x381   : > { %13927 = dma.done.wait (%p12812_p11), [#allocation10], 272  }
 0x382   : > { %13929 = vsyncadd (%p12812_p11), [#allocation10], 4294967024 }
 0x383   : > { %13931 = dma.done.wait (%p12812_p11), [#allocation13], 528  }
 0x384   : > { %13933 = vsyncadd (%p12812_p11), [#allocation13], 4294966768 }
 0x385   : > { %13935 = dma.done.wait (%p12812_p11), [#allocation16], 1040  }
 0x386   : > { %13937 = vsyncadd (%p12812_p11), [#allocation16], 4294966256 }
 0x387   : > { %13939 = dma.done.wait (%p12812_p11), [#allocation19], 1040  }
 0x388   : > { %13941 = vsyncadd (%p12812_p11), [#allocation19], 4294966256 }
 0x389   : > { %13943 = dma.done.wait (%p12812_p11), [#allocation22], 1552  }
 0x38a   : > { %13945 = vsyncadd (%p12812_p11), [#allocation22], 4294965744 }
 0x38b   : > { %13947 = dma.done.wait (%p12812_p11), [#allocation25], 3088  }
 0x38c   : > { %13949 = vsyncadd (%p12812_p11), [#allocation25], 4294964208 }
 0x38d   : > { %13951 = dma.done.wait (%p12812_p11), [#allocation28], 3088  }
 0x38e   : > { %13953 = vsyncadd (%p12812_p11), [#allocation28], 4294964208 }
 0x38f   : > { %13955 = dma.done.wait (%p12812_p11), [#allocation31], 3088  }
 0x390   : > { %13957 = vsyncadd (%p12812_p11), [#allocation31], 4294964208 }
 0x391   : > { %13959 = dma.done.wait (%p12812_p11), [#allocation34], 3088  }
 0x392   : > { %13961 = vsyncadd (%p12812_p11), [#allocation34], 4294964208 }
 0x393   : > { %13963 = dma.done.wait (%p12812_p11), [#allocation37], 3088  }
 0x394   : > { %13965 = vsyncadd (%p12812_p11), [#allocation37], 4294964208 }
 0x395   : > { %13967 = dma.done.wait (%p12812_p11), [#allocation40], 5136  }
 0x396   : > { %13969 = vsyncadd (%p12812_p11), [#allocation40], 4294962160 }
 0x397   : > { %13971 = dma.done.wait (%p12812_p11), [#allocation43], 10256  }
 0x398   : > { %13973 = vsyncadd (%p12812_p11), [#allocation43], 4294957040 }
 0x399   : > { %13975 = dma.done.wait (%p12812_p11), [#allocation46], 10256  }
 0x39a   : > { %13977 = vsyncadd (%p12812_p11), [#allocation46], 4294957040 }
 0x39b   : > { %13979 = dma.done.wait (%p12812_p11), [#allocation49], 20480  }
 0x39c   : > { %13981 = vsyncadd (%p12812_p11), [#allocation49], 4294946816 }
 0x39d   : > { %13983 = dma.done.wait (%p12812_p11), [#allocation52], 2048  }
 0x39e   : > { %13985 = vsyncadd (%p12812_p11), [#allocation52], 4294965248  ;;  %s17316_s2 = sld [smem:[#allocation72_spill]]  ;;  %p1669_p9 = scmp.lt.s32.totalorder %s14333_s15, 1  ;;  %v1706_v0 = vlaneseq  ;;  %v14087_v1 = vmov 0.0|0.0   ;;  %v14088_v12 = vmov 1.0  }
 0x39f   : > { %11766 = vmatprep.subr.bf16.mxu0 %v14087_v1  ;;  %s17317_s10 = sld [smem:[#allocation73_spill]]  ;;  %s14089_s16 = smov 96   ;;  %vm17244_vm8 = vcmask 1043456  }
 0x3a0   : > { %s1670_s3 = scalar_select %p1669_p9, %s14333_s15, 1  ;;  %v14857_v2 = vshrl.u32 %v1706_v0, 7  ;;  %v14859_v3 = vand.u32 127, %v1706_v0 }
 0x3a1   : > { %s14092_s12 = smov 112   ;;  %s17327_s14 = sld [smem:[#allocation74_spill]] }
 0x3a2   : > { %s10474_s8 = sshll.u32 %s1670_s3, 8  ;;  %v14862_v4 = vadd.s32 128, %v14859_v3  ;;  %v14865_v5 = vmul.u32 2, %v14857_v2  ;;  %v1716_v22 = vadd.s32 72, %v14857_v2  ;;  %v1717_v35 = vadd.s32 80, %v14857_v2  ;;  %s14093_s5 = smov 80  }
 0x3a3   : > { %v1718_v38 = vadd.s32 88, %v14857_v2  ;;  %v1719_v39 = vadd.s32 96, %v14857_v2  ;;  %v1720_v40 = vadd.s32 104, %v14857_v2  ;;  %v1721_v41 = vadd.s32 112, %v14857_v2  ;;  %s14094_s1 = smov 64   ;;  %s17347_s3 = sld [smem:[#allocation97_spill]] }
 0x3a4   : > { %s14868_s13 = scalar_lea.vmem %s17316_s2, %s10474_s8  ;;  %v14871_v6 = vadd.s32 4294967295, %v14865_v5  ;;  %v14898_v28 = vmul.u32 2, %v1716_v22  ;;  %v14924_v43 = vmul.u32 2, %v1717_v35  ;;  %v1722_v45 = vadd.s32 120, %v14857_v2  ;;  %s14095_s2 = smov 32  }
 0x3a5   : > { %v1674_v7 = vld [vmem:[%s14868_s13] sm:$0xff]  ;;  %v1675_v8 = vld [vmem:[%s14868_s13 + $0x8] sm:$0xff]  ;;  %v1676_v9 = vld [vmem:[%s14868_s13 + $0x10] sm:$0xff]  ;;  %v14926_v44 = vmul.u32 2, %v1718_v38  ;;  %v1723_v46 = vadd.s32 128, %v14857_v2  ;;  %v14935_v50 = vmul.u32 2, %v1719_v39  ;;  %vm2014_vm2 = vcmp.eq.s32.totalorder %v14862_v4, %v14865_v5 }
 0x3a6   : > { %v11767_v10 = vpack.c.bf16 %v1675_v8, %v1674_v7  ;;  %v1677_v11 = vld [vmem:[%s14868_s13 + $0x18] sm:$0xff]  ;;  %vm1762_vm0 = vcmp.eq.s32.totalorder %v14862_v4, %v14871_v6  ;;  %v1678_v14 = vld [vmem:[%s14868_s13 + $0x20] sm:$0xff]  ;;  %v1679_v15 = vld [vmem:[%s14868_s13 + $0x28] sm:$0xff]  ;;  %v14910_v34 = vadd.s32 4294967295, %v14898_v28  ;;  %v14937_v51 = vmul.u32 2, %v1720_v40  ;;  %10214 = vmatprep.mubr.msk.f32.mxu1 %vm2014_vm2, %v14088_v12  ;;  %s17348_s8 = sld [smem:[#allocation98_spill]] }
 0x3a7   : > { %10148 = vmatprep.mubr.msk.f32.mxu0 %vm1762_vm0, %v14088_v12  ;;  %v11770_v13 = vpack.c.bf16 %v1677_v11, %v1676_v9  ;;  %v1690_v16 = vld [vmem:[%s14868_s13 + $0x80] sm:$0xff]  ;;  %v1691_v17 = vld [vmem:[%s14868_s13 + $0x88] sm:$0xff]  ;;  %v1692_v19 = vld [vmem:[%s14868_s13 + $0x90] sm:$0xff]  ;;  %v11773_v21 = vpack.c.bf16 %v1679_v15, %v1678_v14  ;;  %v14944_v54 = vadd.s32 4294967295, %v14924_v43  ;;  %v14947_v55 = vadd.s32 4294967295, %v14926_v44  ;;  %p17355_p12 = scmp.ne.s32.totalorder %s17291_s28, 0 }
 0x3a8   : > { %11768 = vmatpush1.bf16.msra.mxu0 %v11767_v10  ;;  %v14885_v18 = vpack.c.bf16 %v1691_v17, %v1690_v16  ;;  %v1693_v20 = vld [vmem:[%s14868_s13 + $0x98] sm:$0xff]  ;;  %v1680_v23 = vld [vmem:[%s14868_s13 + $0x30] sm:$0xff]  ;;  %v1694_v26 = vld [vmem:[%s14868_s13 + $0xa0] sm:$0xff]  ;;  %vm1780_vm1 = vcmp.eq.s32.totalorder %v14862_v4, %v14910_v34  ;;  %v14949_v56 = vmul.u32 2, %v1721_v41  ;;  %v14951_v57 = vmul.u32 2, %v1722_v45 }
 0x3a9   : > { %11769 = vmatprep.subr.bf16.mxu0 %v14087_v1  ;;  %v1681_v24 = vld [vmem:[%s14868_s13 + $0x38] sm:$0xff]  ;;  %v14893_v25 = vpack.c.bf16 %v1693_v20, %v1692_v19  ;;  %v1695_v27 = vld [vmem:[%s14868_s13 + $0xa8] sm:$0xff]  ;;  %v1682_v30 = vld [vmem:[%s14868_s13 + $0x40] sm:$0xff]  ;;  %v14955_v58 = vadd.s32 4294967295, %v14935_v50  ;;  %v14958_v59 = vadd.s32 4294967295, %v14937_v51  ;;  %v1743_v60 = vmul.u32 2, %v1723_v46 }
 0x3aa   : > { %11815 = vmatprep.subr.bf16.mxu1 %v14885_v18  ;;  %v11776_v29 = vpack.c.bf16 %v1681_v24, %v1680_v23  ;;  %v1683_v31 = vld [vmem:[%s14868_s13 + $0x48] sm:$0xff]  ;;  %v14904_v32 = vld [vmem:[%s17317_s10] sm:$0xf]  ;;  %v14907_v33 = vpack.c.bf16 %v1695_v27, %v1694_v26  ;;  %v1696_v36 = vld [vmem:[%s14868_s13 + $0xb0] sm:$0xff]  ;;  %v14977_v9 = vadd.s32 4294967295, %v14949_v56  ;;  %vm2032_vm10 = vcmp.eq.s32.totalorder %v14862_v4, %v14898_v28  ;;  %s17354_s10 = sld [smem:[#allocation102_spill]] }
 0x3ab   : > { %11817 = vmatpush3.bf16.msra.mxu1 %v11767_v10  ;;  %2461 = vrot.lane.b32.xlu0 %v14904_v32, %s14089_s16  ;;  %v1697_v37 = vld [vmem:[%s14868_s13 + $0xb8] sm:$0xff]  ;;  %v11779_v42 = vpack.c.bf16 %v1683_v31, %v1682_v30  ;;  %v1684_v47 = vld [vmem:[%s14868_s13 + $0x50] sm:$0xff]  ;;  %v1698_v52 = vld [vmem:[%s14868_s13 + $0xc0] sm:$0xff]  ;;  %v14980_v10 = vadd.s32 4294967295, %v14951_v57  ;;  %v14982_v11 = vadd.s32 4294967295, %v1743_v60  ;;  %vm2034_vm11 = vcmp.eq.s32.totalorder %v14862_v4, %v14924_v43 }
 0x3ac   : > { %11771 = vmatpush1.bf16.msra.mxu0 %v11770_v13  ;;  %11819 = vmatprep.subr.bf16.mxu1 %v14893_v25  ;;  %v1685_v48 = vld [vmem:[%s14868_s13 + $0x58] sm:$0xff]  ;;  %v14933_v49 = vpack.c.bf16 %v1697_v37, %v1696_v36  ;;  %v1699_v53 = vld [vmem:[%s14868_s13 + $0xc8] sm:$0xff]  ;;  %v1686_v62 = vld [vmem:[%s14868_s13 + $0x60] sm:$0xff]  ;;  %vm2036_vm12 = vcmp.eq.s32.totalorder %v14862_v4, %v14926_v44  ;;  %vm2038_vm13 = vcmp.eq.s32.totalorder %v14862_v4, %v14935_v50  ;;  %v1708_v26 = vadd.s32 8, %v14857_v2 }
 0x3ad   : > { %11772 = vmatprep.subr.bf16.mxu0 %v14087_v1  ;;  %v11782_v61 = vpack.c.bf16 %v1685_v48, %v1684_v47  ;;  %v1687_v63 = vld [vmem:[%s14868_s13 + $0x68] sm:$0xff]  ;;  %v14968_v0 = vpack.c.bf16 %v1699_v53, %v1698_v52  ;;  %v1700_v7 = vld [vmem:[%s14868_s13 + $0xd0] sm:$0xff]  ;;  %v1701_v8 = vld [vmem:[%s14868_s13 + $0xd8] sm:$0xff]  ;;  %vm2040_vm14 = vcmp.eq.s32.totalorder %v14862_v4, %v14937_v51  ;;  %vm2042_vm15 = vcmp.eq.s32.totalorder %v14862_v4, %v14949_v56 }
 0x3ae   : > { %v1688_v14 = vld [vmem:[%s14868_s13 + $0x70] sm:$0xff]  ;;  %v1689_v15 = vld [vmem:[%s14868_s13 + $0x78] sm:$0xff]  ;;  %v14992_v16 = vpack.c.bf16 %v1701_v8, %v1700_v7  ;;  %v1702_v17 = vld [vmem:[%s14868_s13 + $0xe0] sm:$0xff]  ;;  %vm2044_vm0 = vcmp.eq.s32.totalorder %v14862_v4, %v14951_v57  ;;  %v15026_v27 = vmul.u32 2, %v1708_v26  ;;  %vm2013_vm2 = vcmp.eq.s32.totalorder %v14859_v3, %v14865_v5 }
 0x3af   : > { %11821 = vmatpush3.bf16.msra.mxu1 %v11770_v13  ;;  %v11785_v13 = vpack.c.bf16 %v1687_v63, %v1686_v62  ;;  %v1703_v19 = vld [vmem:[%s14868_s13 + $0xe8] sm:$0xff]  ;;  %v11788_v20 = vpack.c.bf16 %v1689_v15, %v1688_v14  ;;  %v1704_v22 = vld [vmem:[%s14868_s13 + $0xf0] sm:$0xff]  ;;  %v1705_v23 = vld [vmem:[%s14868_s13 + $0xf8] sm:$0xff]  ;;  %v14090_v30 = vmov 0.0   ;;  %v1710_v31 = vadd.s32 24, %v14857_v2  ;;  %s17353_s13 = sld [smem:[#allocation100_spill]] }
 0x3b0   : > { %11774 = vmatpush1.bf16.msra.mxu0 %v11773_v21  ;;  %11823 = vmatprep.subr.bf16.mxu1 %v14907_v33  ;;  %v15020_v24 = vpack.c.bf16 %v1705_v23, %v1704_v22  ;;  %vm2016_vm9 = vcmp.eq.s32.totalorder %v14862_v4, %v15026_v27  ;;  %vm2015_vm7 = vcmp.eq.s32.totalorder %v14859_v3, %v15026_v27  ;;  %v1711_v35 = vadd.s32 32, %v14857_v2 }
 0x3b1   : > { %11775 = vmatprep.subr.bf16.mxu0 %v14087_v1  ;;  %v1713_v37 = vadd.s32 48, %v14857_v2  ;;  %v1714_v39 = vadd.s32 56, %v14857_v2  ;;  %v10098_v40 = vadd.s32 4294967295, %v15026_v27 }
 0x3b3   : > { %11825 = vmatpush3.bf16.msra.mxu1 %v11773_v21  ;;  %v15004_v21 = vpack.c.bf16 %v1703_v19, %v1702_v17  ;;  %v15083_v38 = vmul.u32 2, %v1713_v37  ;;  %v15095_v41 = vmul.u32 2, %v1714_v39  ;;  %vm1764_vm5 = vcmp.eq.s32.totalorder %v14862_v4, %v10098_v40 }
 0x3b4   : > { %11777 = vmatpush1.bf16.msra.mxu0 %v11776_v29  ;;  %11827 = vmatprep.subr.bf16.mxu1 %v14933_v49  ;;  %vm1763_vm4 = vcmp.eq.s32.totalorder %v14859_v3, %v10098_v40 }
 0x3b5   : > { %11778 = vmatprep.subr.bf16.mxu0 %v14087_v1 }
 0x3b7   : > { %11829 = vmatpush3.bf16.msra.mxu1 %v11776_v29  ;;  %v1709_v29 = vadd.s32 16, %v14857_v2 }
 0x3b8   : > { %11780 = vmatpush1.bf16.msra.mxu0 %v11779_v42  ;;  %11831 = vmatprep.subr.bf16.mxu1 %v14968_v0 }
 0x3b9   : > { %11781 = vmatprep.subr.bf16.mxu0 %v14087_v1 }
 0x3bb   : > { %11833 = vmatpush3.bf16.msra.mxu1 %v11779_v42  ;;  %v1715_v42 = vadd.s32 64, %v14857_v2 }
 0x3bc   : > { %11783 = vmatpush1.bf16.msra.mxu0 %v11782_v61  ;;  %11835 = vmatprep.subr.bf16.mxu1 %v14992_v16 }
 0x3bd   : > { %11784 = vmatprep.subr.bf16.mxu0 %v14087_v1 }
 0x3bf   : > { %11837 = vmatpush3.bf16.msra.mxu1 %v11782_v61 }
 0x3c0   : > { %11786 = vmatpush1.bf16.msra.mxu0 %v11785_v13  ;;  %11839 = vmatprep.subr.bf16.mxu1 %v15004_v21 }
 0x3c1   : > { %11787 = vmatprep.subr.bf16.mxu0 %v14087_v1 }
 0x3c3   : > { %11841 = vmatpush3.bf16.msra.mxu1 %v11785_v13 }
 0x3c4   : > { %11789 = vmatpush1.bf16.msra.mxu0 %v11788_v20  ;;  %11843 = vmatprep.subr.bf16.mxu1 %v15020_v24 }
 0x3c5   : > { %11790 = vmatprep.subr.bf16.mxu0 %v14087_v1 }
 0x3c7   : > { %11845 = vmatpush3.bf16.msra.mxu1 %v11788_v20 }
 0x3c8   : > { %11792 = vmatpush1.bf16.msra.mxu0 %v14885_v18  ;;  %10924 = vmatprep.subr.mxu1 %v14090_v30  ;;  %v15036_v18 = vmul.u32 2, %v1709_v29 }
 0x3c9   : > { %11793 = vmatprep.subr.bf16.mxu0 %v14087_v1 }
 0x3ca   : > { %10215 = vmatmul.mubr.msk.f32.vlgmr.msra.gmra.mrb[0].mxu1 %vm2013_vm2, %v14088_v12  ;;  %vm2018_vm6 = vcmp.eq.s32.totalorder %v14862_v4, %v15036_v18  ;;  %v10099_v45 = vadd.s32 4294967295, %v15036_v18 }
 0x3cb   : > { %10216 = vmatprep.mubr.msk.f32.mxu1 %vm2016_vm9, %v14088_v12  ;;  %10925 = vmatpush3.msk.msra.mxu1 %vm17244_vm8, %v14904_v32  ;;  %vm2017_vm9 = vcmp.eq.s32.totalorder %v14859_v3, %v15036_v18  ;;  %v15061_v32 = vmul.u32 2, %v1711_v35  ;;  %vm1761_vm8 = vcmp.eq.s32.totalorder %v14859_v3, %v14871_v6 }
 0x3cc   : > { %11795 = vmatpush1.bf16.msra.mxu0 %v14893_v25  ;;  %11870 = vmatprep.subr.bf16.mxu1 %v14087_v1  ;;  %v15050_v25 = vmul.u32 2, %v1710_v31  ;;  %vm1766_vm3 = vcmp.eq.s32.totalorder %v14862_v4, %v10099_v45 }
 0x3cd   : > { %11796 = vmatprep.subr.bf16.mxu0 %v14087_v1  ;;  %v10101_v46 = vadd.s32 4294967295, %v15061_v32 }
 0x3ce   : > { %10217 = vmatmul.mubr.msk.f32.gmra.mrb[2].mxu1 %vm2015_vm7, %v14088_v12  ;;  %vm2020_vm2 = vcmp.eq.s32.totalorder %v14862_v4, %v15050_v25  ;;  %vm2022_vm7 = vcmp.eq.s32.totalorder %v14862_v4, %v15061_v32  ;;  %v10100_v6 = vadd.s32 4294967295, %v15050_v25 }
 0x3cf   : > { %10218 = vmatprep.mubr.msk.f32.mxu1 %vm2018_vm6, %v14088_v12  ;;  %vm2019_vm6 = vcmp.eq.s32.totalorder %v14859_v3, %v15050_v25 }
 0x3d0   : > { %11798 = vmatpush1.bf16.msra.mxu0 %v14907_v33  ;;  %v1712_v33 = vadd.s32 40, %v14857_v2  ;;  %v15109_v2 = vmul.u32 2, %v1715_v42 }
 0x3d1   : > { %11799 = vmatprep.subr.bf16.mxu0 %v14087_v1 }
 0x3d2   : > { %10219 = vmatmul.mubr.msk.f32.gmra.mrb[4].mxu1 %vm2017_vm9, %v14088_v12  ;;  %v15072_v36 = vmul.u32 2, %v1712_v33  ;;  %vm2021_vm9 = vcmp.eq.s32.totalorder %v14859_v3, %v15061_v32 }
 0x3d3   : > { %10220 = vmatprep.mubr.msk.f32.mxu1 %vm2020_vm2, %v14088_v12 }
 0x3d4   : > { %11801 = vmatpush1.bf16.msra.mxu0 %v14933_v49  ;;  %vm2024_vm2 = vcmp.eq.s32.totalorder %v14862_v4, %v15072_v36  ;;  %v10102_v47 = vadd.s32 4294967295, %v15072_v36 }
 0x3d5   : > { %11802 = vmatprep.subr.bf16.mxu0 %v14087_v1 }
 0x3d6   : > { %10221 = vmatmul.mubr.msk.f32.gmra.mrb[6].mxu1 %vm2019_vm6, %v14088_v12  ;;  %vm2023_vm6 = vcmp.eq.s32.totalorder %v14859_v3, %v15072_v36 }
 0x3d7   : > { %10222 = vmatprep.mubr.msk.f32.mxu1 %vm2022_vm7, %v14088_v12  ;;  %vm2026_vm7 = vcmp.eq.s32.totalorder %v14862_v4, %v15083_v38 }
 0x3d8   : > { %11804 = vmatpush1.bf16.msra.mxu0 %v14968_v0 }
 0x3d9   : > { %11805 = vmatprep.subr.bf16.mxu0 %v14087_v1 }
 0x3da   : > { %10223 = vmatmul.mubr.msk.f32.gmra.mrb[8].mxu1 %vm2021_vm9, %v14088_v12  ;;  %vm2025_vm9 = vcmp.eq.s32.totalorder %v14859_v3, %v15083_v38 }
 0x3db   : > { %10224 = vmatprep.mubr.msk.f32.mxu1 %vm2024_vm2, %v14088_v12  ;;  %vm2028_vm2 = vcmp.eq.s32.totalorder %v14862_v4, %v15095_v41 }
 0x3dc   : > { %11807 = vmatpush1.bf16.msra.mxu0 %v14992_v16 }
 0x3dd   : > { %11808 = vmatprep.subr.bf16.mxu0 %v14087_v1 }
 0x3de   : > { %10225 = vmatmul.mubr.msk.f32.gmra.mrb[10].mxu1 %vm2023_vm6, %v14088_v12  ;;  %vm2027_vm6 = vcmp.eq.s32.totalorder %v14859_v3, %v15095_v41 }
 0x3df   : > { %10226 = vmatprep.mubr.msk.f32.mxu1 %vm2026_vm7, %v14088_v12  ;;  %vm2030_vm7 = vcmp.eq.s32.totalorder %v14862_v4, %v15109_v2 }
 0x3e0   : > { %11810 = vmatpush1.bf16.msra.mxu0 %v15004_v21 }
 0x3e1   : > { %11811 = vmatprep.subr.bf16.mxu0 %v14087_v1 }
 0x3e2   : > { %10227 = vmatmul.mubr.msk.f32.gmra.mrb[12].mxu1 %vm2025_vm9, %v14088_v12  ;;  %vm2029_vm9 = vcmp.eq.s32.totalorder %v14859_v3, %v15109_v2 }
 0x3e3   : > { %10228 = vmatprep.mubr.msk.f32.mxu1 %vm2028_vm2, %v14088_v12  ;;  %vm2031_vm2 = vcmp.eq.s32.totalorder %v14859_v3, %v14898_v28  ;;  %v10103_v28 = vadd.s32 4294967295, %v15083_v38 }
 0x3e4   : > { %11813 = vmatpush1.bf16.msra.mxu0 %v15020_v24 }
 0x3e6   : > { %10229 = vmatmul.mubr.msk.f32.gmra.mrb[14].mxu1 %vm2027_vm6, %v14088_v12  ;;  %vm1769_vm6 = vcmp.eq.s32.totalorder %v14859_v3, %v10101_v46 }
 0x3e7   : > { %10149 = vmatmul.mubr.msk.f32.vlgmr.msra.gmra.mrb[0].mxu0 %vm1761_vm8, %v14088_v12  ;;  %10230 = vmatprep.mubr.msk.f32.mxu1 %vm2030_vm7, %v14088_v12  ;;  %vm1765_vm8 = vcmp.eq.s32.totalorder %v14859_v3, %v10099_v45  ;;  %vm1772_vm7 = vcmp.eq.s32.totalorder %v14862_v4, %v10102_v47 }
 0x3e8   : > { %10150 = vmatprep.mubr.msk.f32.mxu0 %vm1764_vm5, %v14088_v12  ;;  %vm1768_vm5 = vcmp.eq.s32.totalorder %v14862_v4, %v10100_v6 }
 0x3ea   : > { %10231 = vmatmul.mubr.msk.f32.gmra.mrb[16].mxu1 %vm2029_vm9, %v14088_v12  ;;  %vm1771_vm9 = vcmp.eq.s32.totalorder %v14859_v3, %v10102_v47 }
 0x3eb   : > { %10151 = vmatmul.mubr.msk.f32.gmra.mrb[2].mxu0 %vm1763_vm4, %v14088_v12  ;;  %10232 = vmatprep.mubr.msk.f32.mxu1 %vm2032_vm10, %v14088_v12  ;;  %vm1770_vm4 = vcmp.eq.s32.totalorder %v14862_v4, %v10101_v46  ;;  %vm2033_vm10 = vcmp.eq.s32.totalorder %v14859_v3, %v14924_v43  ;;  %v10104_v43 = vadd.s32 4294967295, %v15095_v41 }
 0x3ec   : > { %10152 = vmatprep.mubr.msk.f32.mxu0 %vm1766_vm3, %v14088_v12  ;;  %vm1767_vm3 = vcmp.eq.s32.totalorder %v14859_v3, %v10100_v6 }
 0x3ee   : > { %10233 = vmatmul.mubr.msk.f32.gmra.mrb[18].mxu1 %vm2031_vm2, %v14088_v12  ;;  %vm1776_vm2 = vcmp.eq.s32.totalorder %v14862_v4, %v10104_v43 }
 0x3ef   : > { %10153 = vmatmul.mubr.msk.f32.gmra.mrb[4].mxu0 %vm1765_vm8, %v14088_v12  ;;  %10234 = vmatprep.mubr.msk.f32.mxu1 %vm2034_vm11, %v14088_v12  ;;  %vm2035_vm11 = vcmp.eq.s32.totalorder %v14859_v3, %v14926_v44  ;;  %vm1774_vm8 = vcmp.eq.s32.totalorder %v14862_v4, %v10103_v28  ;;  %v10105_v44 = vadd.s32 4294967295, %v15109_v2 }
 0x3f0   : > { %10154 = vmatprep.mubr.msk.f32.mxu0 %vm1768_vm5, %v14088_v12  ;;  %vm1773_vm5 = vcmp.eq.s32.totalorder %v14859_v3, %v10103_v28 }
 0x3f2   : > { %10235 = vmatmul.mubr.msk.f32.gmra.mrb[20].mxu1 %vm2033_vm10, %v14088_v12  ;;  %vm1777_vm10 = vcmp.eq.s32.totalorder %v14859_v3, %v10105_v44 }
 0x3f3   : > { %10155 = vmatmul.mubr.msk.f32.gmra.mrb[6].mxu0 %vm1767_vm3, %v14088_v12  ;;  %10236 = vmatprep.mubr.msk.f32.mxu1 %vm2036_vm12, %v14088_v12  ;;  %vm2037_vm12 = vcmp.eq.s32.totalorder %v14859_v3, %v14935_v50  ;;  %vm1775_vm3 = vcmp.eq.s32.totalorder %v14859_v3, %v10104_v43 }
 0x3f4   : > { %10156 = vmatprep.mubr.msk.f32.mxu0 %vm1770_vm4, %v14088_v12  ;;  %vm1778_vm4 = vcmp.eq.s32.totalorder %v14862_v4, %v10105_v44 }
 0x3f6   : > { %10237 = vmatmul.mubr.msk.f32.gmra.mrb[22].mxu1 %vm2035_vm11, %v14088_v12  ;;  %vm1783_vm11 = vcmp.eq.s32.totalorder %v14859_v3, %v14947_v55 }
 0x3f7   : > { %10157 = vmatmul.mubr.msk.f32.gmra.mrb[8].mxu0 %vm1769_vm6, %v14088_v12  ;;  %10238 = vmatprep.mubr.msk.f32.mxu1 %vm2038_vm13, %v14088_v12  ;;  %vm2039_vm13 = vcmp.eq.s32.totalorder %v14859_v3, %v14937_v51  ;;  %vm2043_vm6 = vcmp.eq.s32.totalorder %v14859_v3, %v14951_v57 }
 0x3f8   : > { %10158 = vmatprep.mubr.msk.f32.mxu0 %vm1772_vm7, %v14088_v12  ;;  %vm1781_vm7 = vcmp.eq.s32.totalorder %v14859_v3, %v14944_v54 }
 0x3fa   : > { %10239 = vmatmul.mubr.msk.f32.gmra.mrb[24].mxu1 %vm2037_vm12, %v14088_v12  ;;  %vm17321_vm12 = vcmp.eq.s32.totalorder %v14862_v4, %v14958_v59 }
 0x3fb   : > { %10159 = vmatmul.mubr.msk.f32.gmra.mrb[10].mxu0 %vm1771_vm9, %v14088_v12  ;;  %10240 = vmatprep.mubr.msk.f32.mxu1 %vm2040_vm14, %v14088_v12  ;;  %vm2041_vm14 = vcmp.eq.s32.totalorder %v14859_v3, %v14949_v56  ;;  %vm17320_vm9 = vcmp.eq.s32.totalorder %v14862_v4, %v14955_v58 }
 0x3fc   : > { %10160 = vmatprep.mubr.msk.f32.mxu0 %vm1774_vm8, %v14088_v12  ;;  %vm1785_vm8 = vcmp.eq.s32.totalorder %v14859_v3, %v14955_v58 }
 0x3fe   : > { %10241 = vmatmul.mubr.msk.f32.gmra.mrb[26].mxu1 %vm2039_vm13, %v14088_v12  ;;  %vm1789_vm13 = vcmp.eq.s32.totalorder %v14859_v3, %v14977_v9 }
 0x3ff   : > { %10161 = vmatmul.mubr.msk.f32.gmra.mrb[12].mxu0 %vm1773_vm5, %v14088_v12  ;;  %10242 = vmatprep.mubr.msk.f32.mxu1 %vm2042_vm15, %v14088_v12  ;;  %vm1779_vm15 = vcmp.eq.s32.totalorder %v14859_v3, %v14910_v34  ;;  %vm1787_vm5 = vcmp.eq.s32.totalorder %v14859_v3, %v14958_v59 }
 0x400   : > { %10162 = vmatprep.mubr.msk.f32.mxu0 %vm1776_vm2, %v14088_v12  ;;  %vm17322_vm2 = vcmp.eq.s32.totalorder %v14862_v4, %v14977_v9 }
 0x402   : > { %10243 = vmatmul.mubr.msk.f32.gmra.mrb[28].mxu1 %vm2041_vm14, %v14088_v12  ;;  %vm17324_vm14 = vcmp.eq.s32.totalorder %v14862_v4, %v14982_v11 }
 0x403   : > { %10163 = vmatmul.mubr.msk.f32.gmra.mrb[14].mxu0 %vm1775_vm3, %v14088_v12  ;;  %10244 = vmatprep.mubr.msk.f32.mxu1 %vm2044_vm0, %v14088_v12  ;;  %vm17318_vm0 = vcmp.eq.s32.totalorder %v14862_v4, %v14944_v54  ;;  %vm17323_vm3 = vcmp.eq.s32.totalorder %v14862_v4, %v14980_v10 }
 0x404   : > { %10164 = vmatprep.mubr.msk.f32.mxu0 %vm1778_vm4, %v14088_v12  ;;  %vm1791_vm4 = vcmp.eq.s32.totalorder %v14859_v3, %v14980_v10 }
 0x406   : > { %10245 = vmatmul.mubr.msk.f32.gmra.mrb[30].mxu1 %vm2043_vm6, %v14088_v12  ;;  %vm14091_vm6 = vmmov 0  }
 0x407   : > { %10165 = vmatmul.mubr.msk.f32.gmra.mrb[16].mxu0 %vm1777_vm10, %v14088_v12  ;;  %vm1793_vm10 = vcmp.eq.s32.totalorder %v14859_v3, %v14982_v11  ;;  %10926 = vmatprep.mubr.msk.f32.mxu1 %vm14091_vm6, %v14090_v30 }
 0x408   : > { %10166 = vmatprep.mubr.msk.f32.mxu0 %vm1780_vm1, %v14088_v12  ;;  %vm17319_vm1 = vcmp.eq.s32.totalorder %v14862_v4, %v14947_v55 }
 0x40b   : > { %10167 = vmatmul.mubr.msk.f32.gmra.mrb[18].mxu0 %vm1779_vm15, %v14088_v12  ;;  %vm17325_vm15 = vcmask 1043456  }
 0x40c   : > { %10168 = vmatprep.mubr.msk.f32.mxu0 %vm17318_vm0, %v14088_v12  ;;  %vm17326_vm0 = vmmov %vm17325_vm15 }
 0x40f   : > { %10169 = vmatmul.mubr.msk.f32.gmra.mrb[20].mxu0 %vm1781_vm7, %v14088_v12  ;;  %vm17245_vm7 = vcmask 31744  }
 0x410   : > { %10170 = vmatprep.mubr.msk.f32.mxu0 %vm17319_vm1, %v14088_v12  ;;  %vm2675_vm1 = vcmask 1046528  }
 0x413   : > { %10171 = vmatmul.mubr.msk.f32.gmra.mrb[22].mxu0 %vm1783_vm11, %v14088_v12 }
 0x414   : > { %10172 = vmatprep.mubr.msk.f32.mxu0 %vm17320_vm9, %v14088_v12 }
 0x417   : > { %10173 = vmatmul.mubr.msk.f32.gmra.mrb[24].mxu0 %vm1785_vm8, %v14088_v12 }
 0x418   : > { %10174 = vmatprep.mubr.msk.f32.mxu0 %vm17321_vm12, %v14088_v12 }
 0x41b   : > { %10175 = vmatmul.mubr.msk.f32.gmra.mrb[26].mxu0 %vm1787_vm5, %v14088_v12 }
 0x41c   : > { %10176 = vmatprep.mubr.msk.f32.mxu0 %vm17322_vm2, %v14088_v12 }
 0x41d   : > { %v2462_v34 = vpop.permute.xlu0 %2461 }
 0x41e   : > { %10977 = vmatprep.subr.msk.mxu0 %vm17325_vm15, %v2462_v34 }
 0x41f   : > { %10177 = vmatmul.mubr.msk.f32.gmra.mrb[28].mxu0 %vm1789_vm13, %v14088_v12 }
 0x420   : > { %10178 = vmatprep.mubr.msk.f32.mxu0 %vm17323_vm3, %v14088_v12  ;;  %10978 = vmatpush3.msk.msra.mxu0 %vm17326_vm0, %v2462_v34 }
 0x421   : > { %11846 = vmatprep.subr.bf16.mxu0 %v14087_v1 }
 0x423   : > { %10179 = vmatmul.mubr.msk.f32.gmra.mrb[30].mxu0 %vm1791_vm4, %v14088_v12 }
 0x424   : > { %10180 = vmatprep.mubr.msk.f32.mxu0 %vm17324_vm14, %v14088_v12 }
 0x427   : > { %10181 = vmatmul.mubr.msk.f32.gmra.mrb[32].mxu0 %vm1793_vm10, %v14088_v12 }
 0x49d   : > { %v10507_v48 = vpop.f32.mrb[0].mxu1 }
 0x49e   : > { %v10508_v49 = vpop.f32.mrb[1].mxu1 }
 0x49f   : > { %v10509_v4 = vadd.f32 %v10508_v49, %v10507_v48 }
 0x4a1   : > { %v10510_v50 = vpop.f32.mrb[2].mxu1  ;;  %10979 = vmatprep.mubr.msk.f32.mxu0 %vm17245_vm7, %v10509_v4 }
 0x4a2   : > { %v10511_v51 = vpop.f32.mrb[3].mxu1 }
 0x4a3   : > { %v10512_v52 = vadd.f32 %v10511_v51, %v10510_v50 }
 0x4a5   : > { %10980 = vmatmul.mubr.msk.f32.vlgmr.msra.gmra.mrb[34].mxu0 %vm17245_vm7, %v10512_v52  ;;  %v10513_v53 = vpop.f32.mrb[4].mxu1 }
 0x4a6   : > { %v10514_v54 = vpop.f32.mrb[5].mxu1 }
 0x4a7   : > { %v10515_v55 = vadd.f32 %v10514_v54, %v10513_v53 }
 0x4a9   : > { %v10516_v56 = vpop.f32.mrb[6].mxu1  ;;  %10982 = vmatprep.mubr.msk.f32.mxu0 %vm17245_vm7, %v10515_v55 }
 0x4aa   : > { %v10517_v57 = vpop.f32.mrb[7].mxu1 }
 0x4ab   : > { %v10518_v58 = vadd.f32 %v10517_v57, %v10516_v56 }
 0x4ad   : > { %10983 = vmatmul.mubr.msk.f32.gmra.mrb[36].mxu0 %vm17245_vm7, %v10518_v58  ;;  %v10519_v59 = vpop.f32.mrb[8].mxu1 }
 0x4ae   : > { %v10520_v60 = vpop.f32.mrb[9].mxu1 }
 0x4af   : > { %v10521_v61 = vadd.f32 %v10520_v60, %v10519_v59 }
 0x4b1   : > { %v10522_v62 = vpop.f32.mrb[10].mxu1  ;;  %10985 = vmatprep.mubr.msk.f32.mxu0 %vm17245_vm7, %v10521_v61 }
 0x4b2   : > { %v10523_v63 = vpop.f32.mrb[11].mxu1 }
 0x4b3   : > { %v10524_v0 = vadd.f32 %v10523_v63, %v10522_v62 }
 0x4b5   : > { %10986 = vmatmul.mubr.msk.f32.gmra.mrb[38].mxu0 %vm17245_vm7, %v10524_v0  ;;  %v10525_v7 = vpop.f32.mrb[12].mxu1 }
 0x4b6   : > { %v10526_v8 = vpop.f32.mrb[13].mxu1 }
 0x4b7   : > { %v10527_v10 = vadd.f32 %v10526_v8, %v10525_v7 }
 0x4b9   : > { %v10528_v13 = vpop.f32.mrb[14].mxu1  ;;  %10988 = vmatprep.mubr.msk.f32.mxu0 %vm17245_vm7, %v10527_v10 }
 0x4ba   : > { %v1929_v9 = vpop.f32.mrb[0].mxu0  ;;  %v10529_v14 = vpop.f32.mrb[15].mxu1 }
 0x4bb   : > { %v1931_v11 = vpop.f32.mrb[1].mxu0  ;;  %10927 = vmatmul.mubr.msk.f32.vlgmr.msra.gmra.mrb[32].mxu1 %vm17245_vm7, %v1929_v9  ;;  %v10530_v16 = vadd.f32 %v10529_v14, %v10528_v13 }
 0x4bc   : > { %10929 = vmatprep.mubr.msk.f32.mxu1 %vm14091_vm6, %v14090_v30 }
 0x4bd   : > { %10989 = vmatmul.mubr.msk.f32.gmra.mrb[40].mxu0 %vm17245_vm7, %v10530_v16  ;;  %v10531_v19 = vpop.f32.mrb[16].mxu1 }
 0x4be   : > { %v1934_v15 = vpop.f32.mrb[2].mxu0  ;;  %v10532_v20 = vpop.f32.mrb[17].mxu1 }
 0x4bf   : > { %v1936_v17 = vpop.f32.mrb[3].mxu0  ;;  %10930 = vmatmul.mubr.msk.f32.gmra.mrb[34].mxu1 %vm17245_vm7, %v1934_v15  ;;  %v10533_v22 = vadd.f32 %v10532_v20, %v10531_v19 }
 0x4c0   : > { %10932 = vmatprep.mubr.msk.f32.mxu1 %vm14091_vm6, %v14090_v30 }
 0x4c1   : > { %v10534_v24 = vpop.f32.mrb[18].mxu1  ;;  %10991 = vmatprep.mubr.msk.f32.mxu0 %vm17245_vm7, %v10533_v22 }
 0x4c2   : > { %v1939_v21 = vpop.f32.mrb[4].mxu0  ;;  %v10535_v26 = vpop.f32.mrb[19].mxu1 }
 0x4c3   : > { %v1941_v23 = vpop.f32.mrb[5].mxu0  ;;  %10933 = vmatmul.mubr.msk.f32.gmra.mrb[36].mxu1 %vm17245_vm7, %v1939_v21  ;;  %v10536_v31 = vadd.f32 %v10535_v26, %v10534_v24 }
 0x4c4   : > { %10935 = vmatprep.mubr.msk.f32.mxu1 %vm14091_vm6, %v14090_v30 }
 0x4c5   : > { %10992 = vmatmul.mubr.msk.f32.gmra.mrb[42].mxu0 %vm17245_vm7, %v10536_v31  ;;  %v10537_v33 = vpop.f32.mrb[20].mxu1 }
 0x4c6   : > { %v1944_v29 = vpop.f32.mrb[6].mxu0  ;;  %v10538_v37 = vpop.f32.mrb[21].mxu1 }
 0x4c7   : > { %v1946_v35 = vpop.f32.mrb[7].mxu0  ;;  %10936 = vmatmul.mubr.msk.f32.gmra.mrb[38].mxu1 %vm17245_vm7, %v1944_v29  ;;  %v10539_v40 = vadd.f32 %v10538_v37, %v10537_v33 }
 0x4c8   : > { %10938 = vmatprep.mubr.msk.f32.mxu1 %vm14091_vm6, %v14090_v30 }
 0x4c9   : > { %v10540_v45 = vpop.f32.mrb[22].mxu1  ;;  %10994 = vmatprep.mubr.msk.f32.mxu0 %vm17245_vm7, %v10539_v40 }
 0x4ca   : > { %v1949_v39 = vpop.f32.mrb[8].mxu0  ;;  %v10541_v6 = vpop.f32.mrb[23].mxu1 }
 0x4cb   : > { %v1951_v42 = vpop.f32.mrb[9].mxu0  ;;  %10939 = vmatmul.mubr.msk.f32.gmra.mrb[40].mxu1 %vm17245_vm7, %v1949_v39  ;;  %v10542_v47 = vadd.f32 %v10541_v6, %v10540_v45 }
 0x4cc   : > { %10941 = vmatprep.mubr.msk.f32.mxu1 %vm14091_vm6, %v14090_v30 }
 0x4cd   : > { %10995 = vmatmul.mubr.msk.f32.gmra.mrb[44].mxu0 %vm17245_vm7, %v10542_v47  ;;  %v10543_v43 = vpop.f32.mrb[24].mxu1 }
 0x4ce   : > { %v1954_v46 = vpop.f32.mrb[10].mxu0  ;;  %v10544_v44 = vpop.f32.mrb[25].mxu1 }
 0x4cf   : > { %v1956_v28 = vpop.f32.mrb[11].mxu0  ;;  %10942 = vmatmul.mubr.msk.f32.gmra.mrb[42].mxu1 %vm17245_vm7, %v1954_v46  ;;  %v10545_v48 = vadd.f32 %v10544_v44, %v10543_v43 }
 0x4d0   : > { %10944 = vmatprep.mubr.msk.f32.mxu1 %vm14091_vm6, %v14090_v30 }
 0x4d1   : > { %v10546_v4 = vpop.f32.mrb[26].mxu1  ;;  %10997 = vmatprep.mubr.msk.f32.mxu0 %vm17245_vm7, %v10545_v48 }
 0x4d2   : > { %v1959_v34 = vpop.f32.mrb[12].mxu0  ;;  %v10547_v50 = vpop.f32.mrb[27].mxu1 }
 0x4d3   : > { %v1961_v49 = vpop.f32.mrb[13].mxu0  ;;  %10945 = vmatmul.mubr.msk.f32.gmra.mrb[44].mxu1 %vm17245_vm7, %v1959_v34  ;;  %v10548_v52 = vadd.f32 %v10547_v50, %v10546_v4 }
 0x4d4   : > { %10947 = vmatprep.mubr.msk.f32.mxu1 %vm14091_vm6, %v14090_v30 }
 0x4d5   : > { %10998 = vmatmul.mubr.msk.f32.gmra.mrb[46].mxu0 %vm17245_vm7, %v10548_v52  ;;  %v10549_v54 = vpop.f32.mrb[28].mxu1 }
 0x4d6   : > { %v1964_v51 = vpop.f32.mrb[14].mxu0  ;;  %v10550_v55 = vpop.f32.mrb[29].mxu1 }
 0x4d7   : > { %v1966_v53 = vpop.f32.mrb[15].mxu0  ;;  %10948 = vmatmul.mubr.msk.f32.gmra.mrb[46].mxu1 %vm17245_vm7, %v1964_v51  ;;  %v10551_v57 = vadd.f32 %v10550_v55, %v10549_v54 }
 0x4d8   : > { %10950 = vmatprep.mubr.msk.f32.mxu1 %vm14091_vm6, %v14090_v30 }
 0x4d9   : > { %v10552_v59 = vpop.f32.mrb[30].mxu1  ;;  %11000 = vmatprep.mubr.msk.f32.mxu0 %vm17245_vm7, %v10551_v57 }
 0x4da   : > { %v1969_v56 = vpop.f32.mrb[16].mxu0  ;;  %v10553_v60 = vpop.f32.mrb[31].mxu1 }
 0x4db   : > { %v1971_v58 = vpop.f32.mrb[17].mxu0  ;;  %10951 = vmatmul.mubr.msk.f32.gmra.mrb[48].mxu1 %vm17245_vm7, %v1969_v56  ;;  %v10554_v62 = vadd.f32 %v10553_v60, %v10552_v59 }
 0x4dc   : > { %10953 = vmatprep.mubr.msk.f32.mxu1 %vm14091_vm6, %v14090_v30 }
 0x4dd   : > { %11001 = vmatmul.mubr.msk.f32.gmra.mrb[48].mxu0 %vm17245_vm7, %v10554_v62 }
 0x4de   : > { %v1974_v61 = vpop.f32.mrb[18].mxu0  ;;  %11035 = vmatprep.mubr.msk.f32.mxu0 %vm14091_vm6, %v14090_v30 }
 0x4df   : > { %v1976_v63 = vpop.f32.mrb[19].mxu0  ;;  %10954 = vmatmul.mubr.msk.f32.gmra.mrb[50].mxu1 %vm17245_vm7, %v1974_v61 }
 0x4e0   : > { %10956 = vmatprep.mubr.msk.f32.mxu1 %vm14091_vm6, %v14090_v30 }
 0x4e2   : > { %v1979_v0 = vpop.f32.mrb[20].mxu0 }
 0x4e3   : > { %v1981_v7 = vpop.f32.mrb[21].mxu0  ;;  %10957 = vmatmul.mubr.msk.f32.gmra.mrb[52].mxu1 %vm17245_vm7, %v1979_v0 }
 0x4e4   : > { %10959 = vmatprep.mubr.msk.f32.mxu1 %vm14091_vm6, %v14090_v30 }
 0x4e6   : > { %v1984_v8 = vpop.f32.mrb[22].mxu0 }
 0x4e7   : > { %v1986_v9 = vpop.f32.mrb[23].mxu0  ;;  %10960 = vmatmul.mubr.msk.f32.gmra.mrb[54].mxu1 %vm17245_vm7, %v1984_v8 }
 0x4e8   : > { %10962 = vmatprep.mubr.msk.f32.mxu1 %vm14091_vm6, %v14090_v30 }
 0x4ea   : > { %v1989_v10 = vpop.f32.mrb[24].mxu0 }
 0x4eb   : > { %v1991_v11 = vpop.f32.mrb[25].mxu0  ;;  %10963 = vmatmul.mubr.msk.f32.gmra.mrb[56].mxu1 %vm17245_vm7, %v1989_v10 }
 0x4ec   : > { %10965 = vmatprep.mubr.msk.f32.mxu1 %vm14091_vm6, %v14090_v30 }
 0x4ee   : > { %v1994_v13 = vpop.f32.mrb[26].mxu0 }
 0x4ef   : > { %v1996_v14 = vpop.f32.mrb[27].mxu0  ;;  %10966 = vmatmul.mubr.msk.f32.gmra.mrb[58].mxu1 %vm17245_vm7, %v1994_v13 }
 0x4f0   : > { %10968 = vmatprep.mubr.msk.f32.mxu1 %vm14091_vm6, %v14090_v30 }
 0x4f2   : > { %v1999_v15 = vpop.f32.mrb[28].mxu0 }
 0x4f3   : > { %v2001_v16 = vpop.f32.mrb[29].mxu0  ;;  %10969 = vmatmul.mubr.msk.f32.gmra.mrb[60].mxu1 %vm17245_vm7, %v1999_v15 }
 0x4f4   : > { %10971 = vmatprep.mubr.msk.f32.mxu1 %vm14091_vm6, %v14090_v30 }
 0x4f6   : > { %v2004_v17 = vpop.f32.mrb[30].mxu0 }
 0x4f7   : > { %v2006_v19 = vpop.f32.mrb[31].mxu0  ;;  %10972 = vmatmul.mubr.msk.f32.gmra.mrb[62].mxu1 %vm17245_vm7, %v2004_v17 }
 0x4f8   : > { %10974 = vmatprep.mubr.msk.f32.mxu1 %vm14091_vm6, %v14090_v30 }
 0x4fa   : > { %v2009_v20 = vpop.f32.mrb[32].mxu0 }
 0x4fb   : > { %v2011_v21 = vpop.f32.mrb[33].mxu0  ;;  %10975 = vmatmul.mubr.msk.f32.gmra.mrb[64].mxu1 %vm17245_vm7, %v2009_v20 }
 0x4fc   : > { %11094 = vmatprep.mubr.msk.f32.mxu1 %vm14091_vm6, %v14090_v30 }
 0x578   : > { %v15339_v22 = vpop.f32.mrb[34].mxu0 }
 0x579   : > { %v15341_v23 = vpop.f32.mrb[35].mxu0 }
 0x580   : > { %v15345_v29 = vpop.f32.mrb[36].mxu0 }
 0x581   : > { %v15349_v35 = vpop.f32.mrb[37].mxu0 }
 0x588   : > { %v15359_v47 = vpop.f32.mrb[38].mxu0 }
 0x589   : > { %v15364_v43 = vpop.f32.mrb[39].mxu0 }
 0x58e   : > { %v15343_v24 = vpop.f32.mrb[32].mxu1 }
 0x58f   : > { %v10928_v26 = vpop.f32.mrb[33].mxu1  ;;  %v2676_v33 = vrot.slane %v15343_v24, 1 }
 0x590   : > { %v15373_v52 = vpop.f32.mrb[40].mxu0 }
 0x591   : > { %v15378_v54 = vpop.f32.mrb[41].mxu0 }
 0x592   : > { %v15347_v31 = vpop.f32.mrb[34].mxu1 }
 0x593   : > { %v2677_v37 = vrot.slane %v15347_v31, 1  ;;  %v10931_v39 = vpop.f32.mrb[35].mxu1 }
 0x595   : > { %v2678_v40 = vsel %vm2675_vm1, %v2676_v33, %v2677_v37 }
 0x596   : > { %2709 = vrot.lane.b32.xlu0 %v2678_v40, %s14092_s12  ;;  %v15355_v42 = vpop.f32.mrb[36].mxu1 }
 0x597   : > { %v2679_v45 = vrot.slane %v15355_v42, 1  ;;  %v10934_v6 = vpop.f32.mrb[37].mxu1 }
 0x598   : > { %v15387_v62 = vpop.f32.mrb[42].mxu0 }
 0x599   : > { %v2680_v46 = vsel %vm2675_vm1, %v2677_v37, %v2679_v45  ;;  %v15392_v0 = vpop.f32.mrb[43].mxu0 }
 0x59a   : > { %2711 = vrot.lane.b32.xlu1 %v2680_v46, %s14092_s12  ;;  %v15362_v28 = vpop.f32.mrb[38].mxu1 }
 0x59b   : > { %v2681_v44 = vrot.slane %v15362_v28, 1  ;;  %v10937_v34 = vpop.f32.mrb[39].mxu1 }
 0x59d   : > { %v2682_v48 = vsel %vm2675_vm1, %v2679_v45, %v2681_v44 }
 0x59e   : > { %2713 = vrot.lane.b32.xlu1 %v2682_v48, %s14092_s12  ;;  %v15369_v49 = vpop.f32.mrb[40].mxu1 }
 0x59f   : > { %v2683_v4 = vrot.slane %v15369_v49, 1  ;;  %v10940_v50 = vpop.f32.mrb[41].mxu1 }
 0x5a0   : > { %v15401_v15 = vpop.f32.mrb[44].mxu0 }
 0x5a1   : > { %v2684_v51 = vsel %vm2675_vm1, %v2681_v44, %v2683_v4  ;;  %v15406_v17 = vpop.f32.mrb[45].mxu0 }
 0x5a2   : > { %2715 = vrot.lane.b32.xlu0 %v2684_v51, %s14092_s12  ;;  %v15376_v53 = vpop.f32.mrb[42].mxu1 }
 0x5a3   : > { %v2685_v55 = vrot.slane %v15376_v53, 1  ;;  %v10943_v56 = vpop.f32.mrb[43].mxu1 }
 0x5a5   : > { %v2686_v57 = vsel %vm2675_vm1, %v2683_v4, %v2685_v55 }
 0x5a6   : > { %2717 = vrot.lane.b32.xlu1 %v2686_v57, %s14092_s12  ;;  %v15383_v58 = vpop.f32.mrb[44].mxu1 }
 0x5a7   : > { %v2687_v59 = vrot.slane %v15383_v58, 1  ;;  %v10946_v60 = vpop.f32.mrb[45].mxu1 }
 0x5a8   : > { %v15415_v40 = vpop.f32.mrb[46].mxu0 }
 0x5a9   : > { %v2688_v61 = vsel %vm2675_vm1, %v2685_v55, %v2687_v59  ;;  %v15420_v6 = vpop.f32.mrb[47].mxu0 }
 0x5aa   : > { %2719 = vrot.lane.b32.xlu0 %v2688_v61, %s14092_s12  ;;  %v15390_v63 = vpop.f32.mrb[46].mxu1 }
 0x5ab   : > { %v2689_v7 = vrot.slane %v15390_v63, 1  ;;  %v10949_v8 = vpop.f32.mrb[47].mxu1 }
 0x5ad   : > { %v2690_v9 = vsel %vm2675_vm1, %v2687_v59, %v2689_v7 }
 0x5ae   : > { %2721 = vrot.lane.b32.xlu1 %v2690_v9, %s14092_s12  ;;  %v15397_v10 = vpop.f32.mrb[48].mxu1 }
 0x5af   : > { %v2691_v11 = vrot.slane %v15397_v10, 1  ;;  %v10952_v13 = vpop.f32.mrb[49].mxu1 }
 0x5b0   : > { %v15429_v55 = vpop.f32.mrb[48].mxu0 }
 0x5b1   : > { %v2692_v14 = vsel %vm2675_vm1, %v2689_v7, %v2691_v11  ;;  %v15434_v57 = vpop.f32.mrb[49].mxu0 }
 0x5b2   : > { %2723 = vrot.lane.b32.xlu0 %v2692_v14, %s14092_s12  ;;  %v15404_v16 = vpop.f32.mrb[50].mxu1 }
 0x5b3   : > { %v2693_v19 = vrot.slane %v15404_v16, 1  ;;  %v10955_v20 = vpop.f32.mrb[51].mxu1 }
 0x5b5   : > { %v2694_v21 = vsel %vm2675_vm1, %v2691_v11, %v2693_v19 }
 0x5b6   : > { %2725 = vrot.lane.b32.xlu1 %v2694_v21, %s14092_s12  ;;  %v15411_v26 = vpop.f32.mrb[52].mxu1 }
 0x5b7   : > { %v2695_v33 = vrot.slane %v15411_v26, 1  ;;  %v10958_v37 = vpop.f32.mrb[53].mxu1 }
 0x5b9   : > { %v2696_v39 = vsel %vm2675_vm1, %v2693_v19, %v2695_v33 }
 0x5ba   : > { %2727 = vrot.lane.b32.xlu0 %v2696_v39, %s14092_s12  ;;  %v15418_v45 = vpop.f32.mrb[54].mxu1 }
 0x5bb   : > { %v2697_v46 = vrot.slane %v15418_v45, 1  ;;  %v10961_v44 = vpop.f32.mrb[55].mxu1 }
 0x5bc   : > { %v15453_v44 = vld [vmem:[#allocation3 + $0x8] sm:$0xff] }
 0x5bd   : > { %v2698_v34 = vsel %vm2675_vm1, %v2695_v33, %v2697_v46 }
 0x5be   : > { %2729 = vrot.lane.b32.xlu1 %v2698_v34, %s14092_s12  ;;  %v15425_v48 = vpop.f32.mrb[56].mxu1 }
 0x5bf   : > { %v2699_v4 = vrot.slane %v15425_v48, 1  ;;  %v10964_v50 = vpop.f32.mrb[57].mxu1 }
 0x5c1   : > { %v2700_v51 = vsel %vm2675_vm1, %v2697_v46, %v2699_v4  ;;  %v15451_v46 = vld [vmem:[#allocation3] sm:$0xff] }
 0x5c2   : > { %2731 = vrot.lane.b32.xlu0 %v2700_v51, %s14092_s12  ;;  %v15432_v56 = vpop.f32.mrb[58].mxu1  ;;  %v12967_v34 = vpack.i.bf16 %v15453_v44, %v15451_v46 }
 0x5c3   : > { %v2701_v59 = vrot.slane %v15432_v56, 1  ;;  %v10967_v60 = vpop.f32.mrb[59].mxu1 }
 0x5c4   : > { %v15463_v60 = vld [vmem:[%s17327_s14] ss:$0 sm:$0xff]  ;;  %s10471_s14 = sshll.u32 %s14333_s15, 5  ;;  %s14096_s15 = smov [#allocation53]  }
 0x5c5   : > { %v2702_v61 = vsel %vm2675_vm1, %v2699_v4, %v2701_v59  ;;  %v11895_v4 = vpack.c.bf16 %v15453_v44, %v15451_v46  ;;  %v2978_v44 = vadd.s32 1, %v15061_v32 }
 0x5c6   : > { %2733 = vrot.lane.b32.xlu1 %v2702_v61, %s14092_s12  ;;  %v15439_v7 = vpop.f32.mrb[60].mxu1 }
 0x5c7   : > { %v2703_v8 = vrot.slane %v15439_v7, 1  ;;  %v10970_v9 = vpop.f32.mrb[61].mxu1 }
 0x5c9   : > { %v2704_v11 = vsel %vm2675_vm1, %v2701_v59, %v2703_v8 }
 0x5ca   : > { %2735 = vrot.lane.b32.xlu0 %v2704_v11, %s14092_s12  ;;  %v15444_v13 = vpop.f32.mrb[62].mxu1 }
 0x5cb   : > { %v2705_v14 = vrot.slane %v15444_v13, 1  ;;  %v10973_v19 = vpop.f32.mrb[63].mxu1 }
 0x5cd   : > { %v2706_v20 = vsel %vm2675_vm1, %v2703_v8, %v2705_v14 }
 0x5ce   : > { %2737 = vrot.lane.b32.xlu1 %v2706_v20, %s14092_s12  ;;  %v2457_v21 = vpop.f32.mrb[64].mxu1 }
 0x5cf   : > { %v2707_v33 = vrot.slane %v2457_v21, 1  ;;  %v10976_v37 = vpop.f32.mrb[65].mxu1 }
 0x5d1   : > { %v2708_v39 = vsel %vm2675_vm1, %v2705_v14, %v2707_v33 }
 0x5d2   : > { %2739 = vrot.lane.b32.xlu0 %v2708_v39, %s14092_s12  ;;  %12968 = vrot.lane.b32.xlu1 %v12967_v34, %s14093_s5 }
 0x608   : > { %v2710_v50 = vpop.permute.xlu0 %2709 }
 0x609   : > { %v2757_v51 = vadd.f32 %v2710_v50, %v15343_v24 }
 0x60b   : > { %v2773_v59 = vadd.f32 %v2757_v51, %v15341_v23 }
 0x60c   : > { %v2712_v61 = vpop.permute.xlu1 %2711 }
 0x60d   : > { %v2758_v8 = vadd.f32 %v2712_v61, %v15347_v31  ;;  %v2796_v9 = vadd.f32 %v15463_v60, %v2773_v59 }
 0x60f   : > { %v2774_v11 = vadd.f32 %v15339_v22, %v2758_v8  ;;  %v2812_v21 = vmax.f32 %v2796_v9, 0.0 }
 0x610   : > { %v2714_v14 = vpop.permute.xlu1 %2713 }
 0x611   : > { %v2797_v19 = vadd.f32 %v15463_v60, %v2774_v11  ;;  %v2759_v20 = vadd.f32 %v2714_v14, %v15355_v42 }
 0x613   : > { %v2813_v33 = vmax.f32 %v2797_v19, 0.0  ;;  %v2775_v24 = vadd.f32 %v2759_v20, %v15349_v35 }
 0x614   : > { %v2716_v37 = vpop.permute.xlu0 %2715 }
 0x615   : > { %v2760_v23 = vadd.f32 %v2716_v37, %v15362_v28  ;;  %v11847_v39 = vpack.c.bf16 %v2813_v33, %v2812_v21  ;;  %v2798_v34 = vadd.f32 %v15463_v60, %v2775_v24 }
 0x617   : > { %v2776_v31 = vadd.f32 %v15345_v29, %v2760_v23  ;;  %11848 = vmatpush3.bf16.msra.mxu0 %v11847_v39  ;;  %11872 = vmatpush3.bf16.msra.mxu1 %v11847_v39  ;;  %v2814_v35 = vmax.f32 %v2798_v34, 0.0 }
 0x618   : > { %v2718_v22 = vpop.permute.xlu1 %2717  ;;  %11849 = vmatprep.subr.bf16.mxu0 %v14087_v1  ;;  %11873 = vmatprep.subr.bf16.mxu1 %v14087_v1 }
 0x619   : > { %v2799_v42 = vadd.f32 %v15463_v60, %v2776_v31  ;;  %v2761_v50 = vadd.f32 %v2718_v22, %v15369_v49 }
 0x61b   : > { %v2815_v51 = vmax.f32 %v2799_v42, 0.0  ;;  %v2777_v28 = vadd.f32 %v2761_v50, %v15364_v43 }
 0x61c   : > { %v2720_v59 = vpop.permute.xlu0 %2719 }
 0x61d   : > { %v2762_v61 = vadd.f32 %v2720_v59, %v15376_v53  ;;  %v11850_v8 = vpack.c.bf16 %v2815_v51, %v2814_v35  ;;  %v2800_v29 = vadd.f32 %v15463_v60, %v2777_v28 }
 0x61f   : > { %v2778_v9 = vadd.f32 %v15359_v47, %v2762_v61  ;;  %11851 = vmatpush3.bf16.msra.mxu0 %v11850_v8  ;;  %11875 = vmatpush3.bf16.msra.mxu1 %v11850_v8  ;;  %v2816_v43 = vmax.f32 %v2800_v29, 0.0 }
 0x620   : > { %v2722_v11 = vpop.permute.xlu1 %2721  ;;  %11852 = vmatprep.subr.bf16.mxu0 %v14087_v1  ;;  %11876 = vmatprep.subr.bf16.mxu1 %v14087_v1 }
 0x621   : > { %v2801_v49 = vadd.f32 %v15463_v60, %v2778_v9  ;;  %v2763_v14 = vadd.f32 %v2722_v11, %v15383_v58 }
 0x623   : > { %v2817_v19 = vmax.f32 %v2801_v49, 0.0  ;;  %v2779_v53 = vadd.f32 %v2763_v14, %v15378_v54 }
 0x624   : > { %v2724_v20 = vpop.permute.xlu0 %2723 }
 0x625   : > { %v2764_v21 = vadd.f32 %v2724_v20, %v15390_v63  ;;  %v11853_v33 = vpack.c.bf16 %v2817_v19, %v2816_v43  ;;  %v2802_v47 = vadd.f32 %v15463_v60, %v2779_v53 }
 0x627   : > { %v2780_v24 = vadd.f32 %v15373_v52, %v2764_v21  ;;  %11854 = vmatpush3.bf16.msra.mxu0 %v11853_v33  ;;  %11878 = vmatpush3.bf16.msra.mxu1 %v11853_v33  ;;  %v2818_v54 = vmax.f32 %v2802_v47, 0.0 }
 0x628   : > { %v2726_v37 = vpop.permute.xlu1 %2725  ;;  %11855 = vmatprep.subr.bf16.mxu0 %v14087_v1  ;;  %11879 = vmatprep.subr.bf16.mxu1 %v14087_v1 }
 0x629   : > { %v2803_v58 = vadd.f32 %v15463_v60, %v2780_v24  ;;  %v2765_v23 = vadd.f32 %v2726_v37, %v15397_v10 }
 0x62b   : > { %v2819_v39 = vmax.f32 %v2803_v58, 0.0  ;;  %v2781_v63 = vadd.f32 %v2765_v23, %v15392_v0  ;;  %v2974_v58 = vadd.s32 1, %v14865_v5 }
 0x62c   : > { %v2728_v34 = vpop.permute.xlu0 %2727 }
 0x62d   : > { %v2766_v31 = vadd.f32 %v2728_v34, %v15404_v16  ;;  %v11856_v22 = vpack.c.bf16 %v2819_v39, %v2818_v54  ;;  %v2804_v52 = vadd.f32 %v15463_v60, %v2781_v63  ;;  %v15529_v54 = vadd.s32 4294967294, %v2974_v58 }
 0x62e   : > { %v2975_v39 = vadd.s32 1, %v15026_v27  ;;  %v2976_v63 = vadd.s32 1, %v15036_v18 }
 0x62f   : > { %v2782_v42 = vadd.f32 %v15387_v62, %v2766_v31  ;;  %11857 = vmatpush3.bf16.msra.mxu0 %v11856_v22  ;;  %11881 = vmatpush3.bf16.msra.mxu1 %v11856_v22  ;;  %v2820_v0 = vmax.f32 %v2804_v52, 0.0  ;;  %vm2992_vm9 = vcmp.eq.s32.totalorder %v14859_v3, %v15529_v54  ;;  %v2977_v31 = vadd.s32 1, %v15050_v25 }
 0x630   : > { %v2730_v50 = vpop.permute.xlu1 %2729  ;;  %11858 = vmatprep.subr.bf16.mxu0 %v14087_v1  ;;  %11882 = vmatprep.subr.bf16.mxu1 %v14087_v1  ;;  %v15563_v34 = vadd.s32 4294967294, %v2976_v63  ;;  %v2979_v22 = vadd.s32 1, %v15072_v36 }
 0x631   : > { %v2805_v10 = vadd.f32 %v15463_v60, %v2782_v42  ;;  %v2767_v35 = vadd.f32 %v2730_v50, %v15411_v26  ;;  %v15589_v46 = vadd.s32 4294967294, %v2977_v31  ;;  %v2980_v42 = vadd.s32 1, %v15083_v38 }
 0x632   : > { %vm2994_vm2 = vcmp.eq.s32.totalorder %v14859_v3, %v15563_v34  ;;  %v10314_v52 = vadd.s32 4294967294, %v2979_v22  ;;  %v10288_v50 = vadd.s32 4294967294, %v15083_v38  ;;  %v10289_v38 = vadd.s32 4294967294, %v15095_v41 }
 0x633   : > { %v2821_v51 = vmax.f32 %v2805_v10, 0.0  ;;  %v2783_v16 = vadd.f32 %v2767_v35, %v15406_v17  ;;  %vm2995_vm3 = vcmp.eq.s32.totalorder %v14859_v3, %v15589_v46  ;;  %v2981_v10 = vadd.s32 1, %v15095_v41 }
 0x634   : > { %v2732_v28 = vpop.permute.xlu0 %2731  ;;  %vm2997_vm15 = vcmp.eq.s32.totalorder %v14859_v3, %v10314_v52  ;;  %vm2843_vm0 = vcmp.eq.s32.totalorder %v14859_v3, %v10288_v50  ;;  %v10290_v41 = vadd.s32 4294967294, %v15109_v2  ;;  %v3632_v52 = vld [vmem:[#allocation8 + $0x8] sm:$0xff] }
 0x635   : > { %v2768_v59 = vadd.f32 %v2732_v28, %v15418_v45  ;;  %v11859_v61 = vpack.c.bf16 %v2821_v51, %v2820_v0  ;;  %v2806_v62 = vadd.f32 %v15463_v60, %v2783_v16  ;;  %v10316_v35 = vadd.s32 4294967294, %v2981_v10 }
 0x636   : > { %v2982_v0 = vadd.s32 1, %v15109_v2 }
 0x637   : > { %v2784_v8 = vadd.f32 %v15401_v15, %v2768_v59  ;;  %11860 = vmatpush3.bf16.msra.mxu0 %v11859_v61  ;;  %11884 = vmatpush3.bf16.msra.mxu1 %v11859_v61  ;;  %v2822_v17 = vmax.f32 %v2806_v62, 0.0 }
 0x638   : > { %v2734_v29 = vpop.permute.xlu1 %2733  ;;  %11861 = vmatprep.subr.bf16.mxu0 %v14087_v1  ;;  %11885 = vmatprep.subr.bf16.mxu1 %v14087_v1  ;;  %v10317_v61 = vadd.s32 4294967294, %v2982_v0 }
 0x639   : > { %v2807_v26 = vadd.f32 %v15463_v60, %v2784_v8  ;;  %v2769_v9 = vadd.f32 %v2734_v29, %v15425_v48 }
 0x63b   : > { %v2823_v11 = vmax.f32 %v2807_v26, 0.0  ;;  %v2785_v45 = vadd.f32 %v2769_v9, %v15420_v6 }
 0x63c   : > { %v2736_v49 = vpop.permute.xlu0 %2735 }
 0x63d   : > { %v2770_v14 = vadd.f32 %v2736_v49, %v15432_v56  ;;  %v11862_v43 = vpack.c.bf16 %v2823_v11, %v2822_v17  ;;  %v2808_v15 = vadd.f32 %v15463_v60, %v2785_v45 }
 0x63f   : > { %v2786_v19 = vadd.f32 %v15415_v40, %v2770_v14  ;;  %11863 = vmatpush3.bf16.msra.mxu0 %v11862_v43  ;;  %11887 = vmatpush3.bf16.msra.mxu1 %v11862_v43  ;;  %v2824_v6 = vmax.f32 %v2808_v15, 0.0 }
 0x640   : > { %v2738_v53 = vpop.permute.xlu1 %2737  ;;  %11864 = vmatprep.subr.bf16.mxu0 %v14087_v1  ;;  %11888 = vmatprep.subr.bf16.mxu1 %v14087_v1 }
 0x641   : > { %v2809_v48 = vadd.f32 %v15463_v60, %v2786_v19  ;;  %v2771_v20 = vadd.f32 %v2738_v53, %v15439_v7 }
 0x643   : > { %v2825_v21 = vmax.f32 %v2809_v48, 0.0  ;;  %v2787_v56 = vadd.f32 %v2771_v20, %v15434_v57  ;;  %v15527_v57 = vadd.s32 4294967294, %v14865_v5  ;;  %v15539_v5 = vadd.s32 4294967294, %v2975_v39 }
 0x644   : > { %v2740_v33 = vpop.permute.xlu0 %2739  ;;  %v12969_v51 = vpop.permute.xlu1 %12968 }
 0x645   : > { %v2772_v47 = vadd.f32 %v2740_v33, %v15444_v13  ;;  %v11865_v24 = vpack.c.bf16 %v2825_v21, %v2824_v6  ;;  %v2810_v40 = vadd.f32 %v15463_v60, %v2787_v56  ;;  %vm2837_vm11 = vcmp.eq.s32.totalorder %v14859_v3, %v15527_v57 }
 0x646   : > { %vm2993_vm12 = vcmp.eq.s32.totalorder %v14859_v3, %v15539_v5  ;;  %v12971_v16 = vunpack.i.h.bf16 %v12969_v51  ;;  %v12970_v28 = vunpack.i.l.bf16 %v12969_v51  ;;  %v16337_v5 = vsel %vm2994_vm2, 1.0, %v14090_v30 }
 0x647   : > { %v2788_v37 = vadd.f32 %v15429_v55, %v2772_v47  ;;  %11866 = vmatpush3.bf16.msra.mxu0 %v11865_v24  ;;  %11890 = vmatpush3.bf16.msra.mxu1 %v11865_v24  ;;  %v2826_v23 = vmax.f32 %v2810_v40, 0.0  ;;  %v16314_v54 = vsel %vm2993_vm12, 1.0, %v14090_v30 }
 0x648   : > { %11867 = vmatprep.subr.bf16.mxu0 %v14087_v1  ;;  %11891 = vmatprep.subr.bf16.mxu1 %v14087_v1  ;;  %v11898_v59 = vpack.c.bf16 %v12971_v16, %v12970_v28 }
 0x649   : > { %v2811_v7 = vadd.f32 %v15463_v60, %v2788_v37  ;;  %v15537_v60 = vadd.s32 4294967294, %v15026_v27  ;;  %v15553_v27 = vadd.s32 4294967294, %v15036_v18  ;;  %v15587_v18 = vadd.s32 4294967294, %v15050_v25 }
 0x64a   : > { %v15611_v25 = vadd.s32 4294967294, %v2978_v44 }
 0x64b   : > { %v2827_v13 = vmax.f32 %v2811_v7, 0.0  ;;  %vm2838_vm8 = vcmp.eq.s32.totalorder %v14859_v3, %v15537_v60  ;;  %vm2839_vm5 = vcmp.eq.s32.totalorder %v14859_v3, %v15553_v27  ;;  %vm2840_vm13 = vcmp.eq.s32.totalorder %v14859_v3, %v15587_v18 }
 0x64c   : > { %vm17246_vm14 = vcmp.eq.s32.totalorder %v14859_v3, %v15611_v25  ;;  %v16308_v57 = vsel %vm2838_vm8, 1.0, %v14090_v30  ;;  %v16331_v60 = vsel %vm2839_vm5, 1.0, %v14090_v30  ;;  %v10294_v34 = vsel %vm2840_vm13, 1.0, %v14090_v30 }
 0x64d   : > { %v11868_v55 = vpack.c.bf16 %v2827_v13, %v2826_v23 }
 0x64f   : > { %11869 = vmatpush3.bf16.msra.mxu0 %v11868_v55  ;;  %11893 = vmatpush3.bf16.msra.mxu1 %v11868_v55 }
 0x650   : > { %11894 = vmatprep.subr.bf16.mxu0 %v14087_v1  ;;  %11897 = vmatprep.subr.bf16.mxu1 %v14087_v1 }
 0x652   : > { %11036 = vmatmul.mubr.msk.f32.vlgmr.msra.gmra.mrb[50].mxu0 %vm2837_vm11, %v14088_v12  ;;  %11095 = vmatmul.mubr.msk.f32.vlgmr.msra.gmra.mrb[66].mxu1 %vm2992_vm9, %v14088_v12 }
 0x653   : > { %11038 = vmatprep.mubr.msk.f32.mxu0 %vm14091_vm6, %v14090_v30  ;;  %11097 = vmatprep.mubr.msk.f32.mxu1 %vm14091_vm6, %v14090_v30 }
 0x654   : > { %11896 = vmatpush3.bf16.msra.mxu0 %v11895_v4  ;;  %v15601_v4 = vadd.s32 4294967294, %v15061_v32  ;;  %v10287_v32 = vadd.s32 4294967294, %v15072_v36  ;;  %v10315_v36 = vadd.s32 4294967294, %v2980_v42  ;;  %11899 = vmatpush3.bf16.msra.mxu1 %v11898_v59 }
 0x655   : > { %11900 = vmatprep.subr.bf16.mxu0 %v14087_v1  ;;  %11903 = vmatprep.subr.bf16.mxu1 %v14087_v1 }
 0x656   : > { %11039 = vmatmul.mubr.msk.f32.gmra.mrb[52].mxu0 %vm2838_vm8, %v14088_v12  ;;  %11098 = vmatmul.mubr.msk.f32.gmra.mrb[68].mxu1 %vm2993_vm12, %v14088_v12  ;;  %vm2841_vm4 = vcmp.eq.s32.totalorder %v14859_v3, %v15601_v4  ;;  %vm2842_vm10 = vcmp.eq.s32.totalorder %v14859_v3, %v10287_v32  ;;  %vm2998_vm7 = vcmp.eq.s32.totalorder %v14859_v3, %v10315_v36  ;;  %v3631_v32 = vld [vmem:[#allocation8] sm:$0xff]  ;;  %vm17332_vm8 = vcmask 254976  }
 0x657   : > { %11041 = vmatprep.mubr.msk.f32.mxu0 %vm14091_vm6, %v14090_v30  ;;  %11100 = vmatprep.mubr.msk.f32.mxu1 %vm14091_vm6, %v14090_v30  ;;  %v11901_v42 = vpack.c.bf16 %v3632_v52, %v3631_v32  ;;  %v10295_v18 = vsel %vm2841_vm4, 1.0, %v14090_v30  ;;  %vm17333_vm12 = vmmov %vm17332_vm8 }
 0x65a   : > { %11042 = vmatmul.mubr.msk.f32.gmra.mrb[54].mxu0 %vm2839_vm5, %v14088_v12  ;;  %11101 = vmatmul.mubr.msk.f32.gmra.mrb[70].mxu1 %vm2994_vm2, %v14088_v12 }
 0x65b   : > { %11044 = vmatprep.mubr.msk.f32.mxu0 %vm14091_vm6, %v14090_v30  ;;  %11103 = vmatprep.mubr.msk.f32.mxu1 %vm14091_vm6, %v14090_v30 }
 0x65e   : > { %11045 = vmatmul.mubr.msk.f32.gmra.mrb[56].mxu0 %vm2840_vm13, %v14088_v12  ;;  %11104 = vmatmul.mubr.msk.f32.gmra.mrb[72].mxu1 %vm2995_vm3, %v14088_v12 }
 0x65f   : > { %11047 = vmatprep.mubr.msk.f32.mxu0 %vm14091_vm6, %v14090_v30  ;;  %11106 = vmatprep.mubr.msk.f32.mxu1 %vm14091_vm6, %v14090_v30 }
 0x662   : > { %11048 = vmatmul.mubr.msk.f32.gmra.mrb[58].mxu0 %vm2841_vm4, %v14088_v12  ;;  %11107 = vmatmul.mubr.msk.f32.gmra.mrb[74].mxu1 %vm17246_vm14, %v14088_v12  ;;  %vm5896_vm4 = vcmask 517120  }
 0x663   : > { %11050 = vmatprep.mubr.msk.f32.mxu0 %vm14091_vm6, %v14090_v30  ;;  %11109 = vmatprep.mubr.msk.f32.mxu1 %vm14091_vm6, %v14090_v30 }
 0x666   : > { %11051 = vmatmul.mubr.msk.f32.gmra.mrb[60].mxu0 %vm2842_vm10, %v14088_v12  ;;  %11110 = vmatmul.mubr.msk.f32.gmra.mrb[76].mxu1 %vm2997_vm15, %v14088_v12  ;;  %vm2844_vm10 = vcmp.eq.s32.totalorder %v14859_v3, %v10289_v38  ;;  %vm2999_vm15 = vcmp.eq.s32.totalorder %v14859_v3, %v10316_v35 }
 0x667   : > { %11053 = vmatprep.mubr.msk.f32.mxu0 %vm14091_vm6, %v14090_v30  ;;  %11112 = vmatprep.mubr.msk.f32.mxu1 %vm14091_vm6, %v14090_v30 }
 0x66a   : > { %11054 = vmatmul.mubr.msk.f32.gmra.mrb[62].mxu0 %vm2843_vm0, %v14088_v12  ;;  %11113 = vmatmul.mubr.msk.f32.gmra.mrb[78].mxu1 %vm2998_vm7, %v14088_v12  ;;  %vm2845_vm7 = vcmp.eq.s32.totalorder %v14859_v3, %v10290_v41  ;;  %vm3000_vm0 = vcmp.eq.s32.totalorder %v14859_v3, %v10317_v61 }
 0x66b   : > { %11056 = vmatprep.mubr.msk.f32.mxu0 %vm14091_vm6, %v14090_v30  ;;  %11115 = vmatprep.mubr.msk.f32.mxu1 %vm14091_vm6, %v14090_v30 }
 0x66e   : > { %11057 = vmatmul.mubr.msk.f32.gmra.mrb[64].mxu0 %vm2844_vm10, %v14088_v12  ;;  %11116 = vmatmul.mubr.msk.f32.gmra.mrb[80].mxu1 %vm2999_vm15, %v14088_v12  ;;  %vm3131_vm10 = vcmask 130048   ;;  %vm3611_vm15 = vcmask 123904  }
 0x66f   : > { %11059 = vmatprep.mubr.msk.f32.mxu0 %vm14091_vm6, %v14090_v30  ;;  %11118 = vmatprep.mubr.msk.f32.mxu1 %vm14091_vm6, %v14090_v30  ;;  %3612 = vst.msk [vmem:[#allocation2] sm:$0x3] %vm3611_vm15, %v14090_v30  ;;  %3613 = vst.msk [vmem:[#allocation2 + $0x42] sm:$0x3] %vm3611_vm15, %v14090_v30 }
 0x672   : > { %11060 = vmatmul.mubr.msk.f32.gmra.mrb[66].mxu0 %vm2845_vm7, %v14088_v12  ;;  %11119 = vmatmul.mubr.msk.f32.gmra.mrb[82].mxu1 %vm3000_vm0, %v14088_v12  ;;  %vm3472_vm7 = vcmask 1045504   ;;  %vm3877_vm0 = vcmask 1044480  }
 0x673   : > { %11125 = vmatprep.mubr.msk.f32.mxu0 %vm14091_vm6, %v14090_v30  ;;  %11156 = vmatprep.mubr.msk.f32.mxu1 %vm14091_vm6, %v14090_v30 }
 0x725   : > { %v2930_v2 = vpop.f32.mrb[50].mxu0  ;;  %v3085_v62 = vpop.f32.mrb[66].mxu1 }
 0x726   : > { %v11037_v8 = vpop.f32.mrb[51].mxu0  ;;  %11126 = vmatmul.mubr.msk.f32.vlgmr.msra.gmra.mrb[68].mxu0 %vm3131_vm10, %v2930_v2  ;;  %11157 = vmatmul.mubr.msk.f32.vlgmr.msra.gmra.mrb[84].mxu1 %vm3131_vm10, %v3085_v62  ;;  %v11096_v29 = vpop.f32.mrb[67].mxu1 }
 0x727   : > { %11128 = vmatprep.mubr.msk.f32.mxu0 %vm14091_vm6, %v14090_v30  ;;  %11159 = vmatprep.mubr.msk.f32.mxu1 %vm14091_vm6, %v14090_v30 }
 0x728   : > { %11902 = vmatpush3.bf16.msra.mxu0 %v11901_v42 }
 0x729   : > { %v2935_v12 = vpop.f32.mrb[52].mxu0  ;;  %v3090_v26 = vpop.f32.mrb[68].mxu1  ;;  %11906 = vmatprep.subr.bf16.mxu0 %v14087_v1 }
 0x72a   : > { %v11040_v9 = vpop.f32.mrb[53].mxu0  ;;  %11129 = vmatmul.mubr.msk.f32.gmra.mrb[70].mxu0 %vm3131_vm10, %v2935_v12  ;;  %11160 = vmatmul.mubr.msk.f32.gmra.mrb[86].mxu1 %vm3131_vm10, %v3090_v26  ;;  %v11099_v17 = vpop.f32.mrb[69].mxu1 }
 0x72b   : > { %11131 = vmatprep.mubr.msk.f32.mxu0 %vm14091_vm6, %v14090_v30  ;;  %11162 = vmatprep.mubr.msk.f32.mxu1 %vm14091_vm6, %v14090_v30 }
 0x72d   : > { %v2940_v11 = vpop.f32.mrb[54].mxu0  ;;  %v3095_v45 = vpop.f32.mrb[70].mxu1 }
 0x72e   : > { %11132 = vmatmul.mubr.msk.f32.gmra.mrb[72].mxu0 %vm3131_vm10, %v2940_v11  ;;  %11163 = vmatmul.mubr.msk.f32.gmra.mrb[88].mxu1 %vm3131_vm10, %v3095_v45  ;;  %v11043_v49 = vpop.f32.mrb[55].mxu0  ;;  %v11102_v14 = vpop.f32.mrb[71].mxu1 }
 0x72f   : > { %11134 = vmatprep.mubr.msk.f32.mxu0 %vm14091_vm6, %v14090_v30  ;;  %11165 = vmatprep.mubr.msk.f32.mxu1 %vm14091_vm6, %v14090_v30 }
 0x731   : > { %v2945_v43 = vpop.f32.mrb[56].mxu0  ;;  %v3100_v15 = vpop.f32.mrb[72].mxu1 }
 0x732   : > { %11135 = vmatmul.mubr.msk.f32.gmra.mrb[74].mxu0 %vm3131_vm10, %v2945_v43  ;;  %11166 = vmatmul.mubr.msk.f32.gmra.mrb[90].mxu1 %vm3131_vm10, %v3100_v15  ;;  %v11046_v19 = vpop.f32.mrb[57].mxu0  ;;  %v11105_v53 = vpop.f32.mrb[73].mxu1 }
 0x733   : > { %11137 = vmatprep.mubr.msk.f32.mxu0 %vm14091_vm6, %v14090_v30  ;;  %11168 = vmatprep.mubr.msk.f32.mxu1 %vm14091_vm6, %v14090_v30 }
 0x735   : > { %v2950_v48 = vpop.f32.mrb[58].mxu0  ;;  %v3105_v20 = vpop.f32.mrb[74].mxu1 }
 0x736   : > { %11138 = vmatmul.mubr.msk.f32.gmra.mrb[76].mxu0 %vm3131_vm10, %v2950_v48  ;;  %11169 = vmatmul.mubr.msk.f32.gmra.mrb[92].mxu1 %vm3131_vm10, %v3105_v20  ;;  %v11049_v6 = vpop.f32.mrb[59].mxu0  ;;  %v11108_v21 = vpop.f32.mrb[75].mxu1 }
 0x737   : > { %11140 = vmatprep.mubr.msk.f32.mxu0 %vm14091_vm6, %v14090_v30  ;;  %11171 = vmatprep.mubr.msk.f32.mxu1 %vm14091_vm6, %v14090_v30 }
 0x739   : > { %v2955_v56 = vpop.f32.mrb[60].mxu0  ;;  %v3110_v33 = vpop.f32.mrb[76].mxu1 }
 0x73a   : > { %11141 = vmatmul.mubr.msk.f32.gmra.mrb[78].mxu0 %vm3131_vm10, %v2955_v56  ;;  %v11052_v47 = vpop.f32.mrb[61].mxu0  ;;  %11172 = vmatmul.mubr.msk.f32.gmra.mrb[94].mxu1 %vm3131_vm10, %v3110_v33  ;;  %v11111_v24 = vpop.f32.mrb[77].mxu1 }
 0x73b   : > { %11143 = vmatprep.mubr.msk.f32.mxu0 %vm14091_vm6, %v14090_v30  ;;  %11174 = vmatprep.mubr.msk.f32.mxu1 %vm14091_vm6, %v14090_v30 }
 0x73d   : > { %v2960_v40 = vpop.f32.mrb[62].mxu0  ;;  %v3115_v37 = vpop.f32.mrb[78].mxu1 }
 0x73e   : > { %11144 = vmatmul.mubr.msk.f32.gmra.mrb[80].mxu0 %vm3131_vm10, %v2960_v40  ;;  %v11055_v58 = vpop.f32.mrb[63].mxu0  ;;  %11175 = vmatmul.mubr.msk.f32.gmra.mrb[96].mxu1 %vm3131_vm10, %v3115_v37  ;;  %v11114_v7 = vpop.f32.mrb[79].mxu1 }
 0x73f   : > { %11146 = vmatprep.mubr.msk.f32.mxu0 %vm14091_vm6, %v14090_v30  ;;  %11177 = vmatprep.mubr.msk.f32.mxu1 %vm14091_vm6, %v14090_v30 }
 0x741   : > { %v2965_v23 = vpop.f32.mrb[64].mxu0  ;;  %v3120_v13 = vpop.f32.mrb[80].mxu1 }
 0x742   : > { %11147 = vmatmul.mubr.msk.f32.gmra.mrb[82].mxu0 %vm3131_vm10, %v2965_v23  ;;  %v11058_v39 = vpop.f32.mrb[65].mxu0  ;;  %11178 = vmatmul.mubr.msk.f32.gmra.mrb[98].mxu1 %vm3131_vm10, %v3120_v13  ;;  %v11117_v55 = vpop.f32.mrb[81].mxu1 }
 0x743   : > { %11149 = vmatprep.mubr.msk.f32.mxu0 %vm14091_vm6, %v14090_v30  ;;  %11180 = vmatprep.mubr.msk.f32.mxu1 %vm14091_vm6, %v14090_v30 }
 0x745   : > { %v2970_v63 = vpop.f32.mrb[66].mxu0  ;;  %v3125_v31 = vpop.f32.mrb[82].mxu1 }
 0x746   : > { %11150 = vmatmul.mubr.msk.f32.gmra.mrb[84].mxu0 %vm3131_vm10, %v2970_v63  ;;  %11181 = vmatmul.mubr.msk.f32.gmra.mrb[100].mxu1 %vm3131_vm10, %v3125_v31  ;;  %v11061_v44 = vpop.f32.mrb[67].mxu0  ;;  %v11120_v22 = vpop.f32.mrb[83].mxu1 }
 0x747   : > { %11187 = vmatprep.mubr.msk.f32.mxu0 %vm14091_vm6, %v14090_v30  ;;  %11218 = vmatprep.mubr.msk.f32.mxu1 %vm14091_vm6, %v14090_v30 }
 0x7f9   : > { %v15737_v50 = vpop.f32.mrb[68].mxu0  ;;  %v15739_v36 = vpop.f32.mrb[84].mxu1 }
 0x7fa   : > { %v11127_v10 = vpop.f32.mrb[69].mxu0  ;;  %v11158_v38 = vpop.f32.mrb[85].mxu1  ;;  %v3539_v35 = vrot.slane %v15739_v36, 1  ;;  %v3423_v0 = vrot.slane %v15737_v50, 1  ;;  %v3473_v28 = vrot.slane %v15737_v50, 2 }
 0x7fd   : > { %v15747_v51 = vpop.f32.mrb[70].mxu0  ;;  %v15749_v16 = vpop.f32.mrb[86].mxu1 }
 0x7fe   : > { %v3424_v59 = vrot.slane %v15747_v51, 1  ;;  %v3474_v41 = vrot.slane %v15747_v51, 2  ;;  %v3540_v61 = vrot.slane %v15749_v16, 1  ;;  %v11130_v2 = vpop.f32.mrb[71].mxu0  ;;  %v11161_v62 = vpop.f32.mrb[87].mxu1 }
 0x800   : > { %v3475_v8 = vsel %vm3472_vm7, %v3473_v28, %v3474_v41  ;;  %v3425_v29 = vsel %vm2675_vm1, %v3423_v0, %v3424_v59  ;;  %v3541_v12 = vsel %vm2675_vm1, %v3539_v35, %v3540_v61 }
 0x801   : > { %v15758_v26 = vpop.f32.mrb[88].mxu1  ;;  %3490 = vrot.lane.b32.xlu1 %v3475_v8, %s14089_s16  ;;  %3440 = vrot.lane.b32.xlu0 %v3425_v29, %s14092_s12  ;;  %v15762_v9 = vpop.f32.mrb[72].mxu0 }
 0x802   : > { %v3542_v17 = vrot.slane %v15758_v26, 1  ;;  %v3426_v11 = vrot.slane %v15762_v9, 1  ;;  %v3476_v45 = vrot.slane %v15762_v9, 2  ;;  %v11133_v49 = vpop.f32.mrb[73].mxu0  ;;  %v11164_v14 = vpop.f32.mrb[89].mxu1 }
 0x804   : > { %v3477_v43 = vsel %vm3472_vm7, %v3474_v41, %v3476_v45  ;;  %v3543_v15 = vsel %vm2675_vm1, %v3540_v61, %v3542_v17  ;;  %v3427_v19 = vsel %vm2675_vm1, %v3424_v59, %v3426_v11 }
 0x805   : > { %3556 = vrot.lane.b32.xlu0 %v3541_v12, %s14092_s12  ;;  %3492 = vrot.lane.b32.xlu1 %v3477_v43, %s14089_s16  ;;  %v15772_v53 = vpop.f32.mrb[74].mxu0  ;;  %v15774_v48 = vpop.f32.mrb[90].mxu1 }
 0x806   : > { %v3428_v20 = vrot.slane %v15772_v53, 1  ;;  %v3478_v6 = vrot.slane %v15772_v53, 2  ;;  %v3544_v21 = vrot.slane %v15774_v48, 1  ;;  %v11136_v56 = vpop.f32.mrb[75].mxu0  ;;  %v11167_v33 = vpop.f32.mrb[91].mxu1 }
 0x808   : > { %v3479_v47 = vsel %vm3472_vm7, %v3476_v45, %v3478_v6  ;;  %v3429_v24 = vsel %vm2675_vm1, %v3426_v11, %v3428_v20  ;;  %v3545_v40 = vsel %vm2675_vm1, %v3542_v17, %v3544_v21 }
 0x809   : > { %3558 = vrot.lane.b32.xlu1 %v3543_v15, %s14092_s12  ;;  %3442 = vrot.lane.b32.xlu0 %v3427_v19, %s14092_s12  ;;  %v15784_v37 = vpop.f32.mrb[76].mxu0  ;;  %v15786_v58 = vpop.f32.mrb[92].mxu1 }
 0x80a   : > { %v3430_v7 = vrot.slane %v15784_v37, 1  ;;  %v3480_v23 = vrot.slane %v15784_v37, 2  ;;  %v3546_v13 = vrot.slane %v15786_v58, 1  ;;  %v11139_v39 = vpop.f32.mrb[77].mxu0  ;;  %v11170_v55 = vpop.f32.mrb[93].mxu1 }
 0x80c   : > { %v3481_v63 = vsel %vm3472_vm7, %v3478_v6, %v3480_v23  ;;  %v3547_v31 = vsel %vm2675_vm1, %v3544_v21, %v3546_v13  ;;  %v3431_v44 = vsel %vm2675_vm1, %v3428_v20, %v3430_v7 }
 0x80d   : > { %3494 = vrot.lane.b32.xlu0 %v3479_v47, %s14089_s16  ;;  %3444 = vrot.lane.b32.xlu1 %v3429_v24, %s14092_s12  ;;  %v15796_v22 = vpop.f32.mrb[78].mxu0  ;;  %v15798_v32 = vpop.f32.mrb[94].mxu1 }
 0x80e   : > { %v3432_v52 = vrot.slane %v15796_v22, 1  ;;  %v3482_v42 = vrot.slane %v15796_v22, 2  ;;  %v11142_v10 = vpop.f32.mrb[79].mxu0  ;;  %v3548_v38 = vrot.slane %v15798_v32, 1  ;;  %v11173_v35 = vpop.f32.mrb[95].mxu1 }
 0x810   : > { %v3483_v0 = vsel %vm3472_vm7, %v3480_v23, %v3482_v42  ;;  %v3433_v28 = vsel %vm2675_vm1, %v3430_v7, %v3432_v52  ;;  %v3549_v59 = vsel %vm2675_vm1, %v3546_v13, %v3548_v38 }
 0x811   : > { %3560 = vrot.lane.b32.xlu0 %v3545_v40, %s14092_s12  ;;  %3496 = vrot.lane.b32.xlu1 %v3481_v63, %s14089_s16  ;;  %v15808_v41 = vpop.f32.mrb[80].mxu0  ;;  %v15810_v61 = vpop.f32.mrb[96].mxu1 }
 0x812   : > { %v3434_v2 = vrot.slane %v15808_v41, 1  ;;  %v3484_v62 = vrot.slane %v15808_v41, 2  ;;  %v11145_v8 = vpop.f32.mrb[81].mxu0  ;;  %v3550_v29 = vrot.slane %v15810_v61, 1  ;;  %v11176_v12 = vpop.f32.mrb[97].mxu1 }
 0x814   : > { %v3485_v17 = vsel %vm3472_vm7, %v3482_v42, %v3484_v62  ;;  %v3435_v11 = vsel %vm2675_vm1, %v3432_v52, %v3434_v2  ;;  %v3551_v45 = vsel %vm2675_vm1, %v3548_v38, %v3550_v29 }
 0x815   : > { %3562 = vrot.lane.b32.xlu1 %v3547_v31, %s14092_s12  ;;  %3446 = vrot.lane.b32.xlu0 %v3431_v44, %s14092_s12  ;;  %v15820_v49 = vpop.f32.mrb[82].mxu0  ;;  %v15822_v14 = vpop.f32.mrb[98].mxu1 }
 0x816   : > { %v3436_v43 = vrot.slane %v15820_v49, 1  ;;  %v3486_v15 = vrot.slane %v15820_v49, 2  ;;  %v11148_v19 = vpop.f32.mrb[83].mxu0  ;;  %v3552_v20 = vrot.slane %v15822_v14, 1  ;;  %v11179_v6 = vpop.f32.mrb[99].mxu1 }
 0x818   : > { %v3437_v21 = vsel %vm2675_vm1, %v3434_v2, %v3436_v43  ;;  %v3487_v56 = vsel %vm3472_vm7, %v3484_v62, %v3486_v15  ;;  %v3553_v33 = vsel %vm2675_vm1, %v3550_v29, %v3552_v20 }
 0x819   : > { %3498 = vrot.lane.b32.xlu0 %v3483_v0, %s14089_s16  ;;  %3448 = vrot.lane.b32.xlu1 %v3433_v28, %s14092_s12  ;;  %v3265_v47 = vpop.f32.mrb[84].mxu0  ;;  %v3410_v24 = vpop.f32.mrb[100].mxu1  ;;  %v15847_v28 = vld [vmem:[#allocation6] ss:$0 sm:$0xff] }
 0x81a   : > { %v3438_v40 = vrot.slane %v3265_v47, 1  ;;  %v3488_v7 = vrot.slane %v3265_v47, 2  ;;  %v3554_v23 = vrot.slane %v3410_v24, 1  ;;  %v11151_v13 = vpop.f32.mrb[85].mxu0  ;;  %v11182_v39 = vpop.f32.mrb[101].mxu1 }
 0x81c   : > { %v3439_v55 = vsel %vm2675_vm1, %v3436_v43, %v3438_v40  ;;  %v3489_v63 = vsel %vm3472_vm7, %v3486_v15, %v3488_v7  ;;  %v3555_v31 = vsel %vm2675_vm1, %v3552_v20, %v3554_v23 }
 0x81d   : > { %3564 = vrot.lane.b32.xlu0 %v3549_v59, %s14092_s12  ;;  %3500 = vrot.lane.b32.xlu1 %v3485_v17, %s14089_s16 }
 0x821   : > { %3450 = vrot.lane.b32.xlu0 %v3435_v11, %s14092_s12  ;;  %3452 = vrot.lane.b32.xlu1 %v3437_v21, %s14092_s12 }
 0x825   : > { %3502 = vrot.lane.b32.xlu0 %v3487_v56, %s14089_s16  ;;  %3566 = vrot.lane.b32.xlu1 %v3551_v45, %s14092_s12 }
 0x829   : > { %3454 = vrot.lane.b32.xlu0 %v3439_v55, %s14092_s12  ;;  %3504 = vrot.lane.b32.xlu1 %v3489_v63, %s14089_s16 }
 0x82d   : > { %3568 = vrot.lane.b32.xlu0 %v3553_v33, %s14092_s12  ;;  %3570 = vrot.lane.b32.xlu1 %v3555_v31, %s14092_s12 }
 0x873   : > { %v3491_v44 = vpop.permute.xlu1 %3490  ;;  %v3441_v52 = vpop.permute.xlu0 %3440 }
 0x874   : > { %v3464_v42 = vadd.f32 %v3441_v52, %v15737_v50 }
 0x876   : > { %v3514_v10 = vadd.f32 %v3491_v44, %v3464_v42 }
 0x877   : > { %v3557_v38 = vpop.permute.xlu0 %3556  ;;  %v3493_v35 = vpop.permute.xlu1 %3492 }
 0x878   : > { %v3522_v0 = vadd.f32 %v3514_v10, %v15739_v36 }
 0x87a   : > { %v3580_v59 = vadd.f32 %v3557_v38, %v3522_v0 }
 0x87b   : > { %v3559_v2 = vpop.permute.xlu1 %3558  ;;  %v3443_v62 = vpop.permute.xlu0 %3442 }
 0x87c   : > { %v15850_v8 = vadd.f32 %v15847_v28, %v3580_v59  ;;  %v3465_v29 = vadd.f32 %v3443_v62, %v15747_v51 }
 0x87e   : > { %v3603_v12 = vmax.f32 %v15850_v8, 0.0  ;;  %v3515_v17 = vadd.f32 %v3493_v35, %v3465_v29 }
 0x87f   : > { %v3495_v11 = vpop.permute.xlu0 %3494  ;;  %v3445_v50 = vpop.permute.xlu1 %3444 }
 0x880   : > { %3614 = vst.msk [vmem:[#allocation2 + $0x2] sm:$0xff] %vm3131_vm10, %v3603_v12  ;;  %v3523_v36 = vadd.f32 %v3515_v17, %v15749_v16  ;;  %v3466_v45 = vadd.f32 %v3445_v50, %v15762_v9 }
 0x882   : > { %v3581_v43 = vadd.f32 %v3559_v2, %v3523_v36  ;;  %v3516_v15 = vadd.f32 %v3495_v11, %v3466_v45 }
 0x883   : > { %v3561_v19 = vpop.permute.xlu0 %3560  ;;  %v3497_v20 = vpop.permute.xlu1 %3496 }
 0x884   : > { %v15860_v6 = vadd.f32 %v15847_v28, %v3581_v43  ;;  %v3524_v51 = vadd.f32 %v3516_v15, %v15758_v26 }
 0x886   : > { %v3604_v21 = vmax.f32 %v15860_v6, 0.0  ;;  %v3582_v56 = vadd.f32 %v3561_v19, %v3524_v51 }
 0x887   : > { %v3622_v33 = vld [vmem:[#allocation2] sm:$0xff]  ;;  %v3563_v47 = vpop.permute.xlu1 %3562  ;;  %v3447_v24 = vpop.permute.xlu0 %3446 }
 0x888   : > { %3999 = vst.msk [vmem:[#allocation2] sm:$0x3] %vm3611_vm15, %v14090_v30  ;;  %v15870_v16 = vadd.f32 %v15847_v28, %v3582_v56  ;;  %v3467_v9 = vadd.f32 %v3447_v24, %v15772_v53  ;;  %11188 = vmatmul.mubr.msk.f32.vlgmr.msra.gmra.mrb[86].mxu0 %vm3131_vm10, %v3622_v33 }
 0x889   : > { %3615 = vst.msk [vmem:[#allocation2 + $0xa] sm:$0xff] %vm3131_vm10, %v3604_v21  ;;  %11190 = vmatprep.mubr.msk.f32.mxu0 %vm14091_vm6, %v14090_v30 }
 0x88a   : > { %v3605_v26 = vmax.f32 %v15870_v16, 0.0  ;;  %v3517_v40 = vadd.f32 %v3497_v20, %v3467_v9 }
 0x88b   : > { %v3499_v7 = vpop.permute.xlu0 %3498  ;;  %v3449_v23 = vpop.permute.xlu1 %3448 }
 0x88c   : > { %3616 = vst.msk [vmem:[#allocation2 + $0x12] sm:$0xff] %vm3131_vm10, %v3605_v26  ;;  %v3525_v13 = vadd.f32 %v3517_v40, %v15774_v48  ;;  %v3468_v39 = vadd.f32 %v3449_v23, %v15784_v37 }
 0x88e   : > { %v3583_v55 = vadd.f32 %v3563_v47, %v3525_v13  ;;  %v3518_v53 = vadd.f32 %v3499_v7, %v3468_v39  ;;  %v4018_v39 = vld [vmem:[#allocation11] sm:$0xff] }
 0x88f   : > { %v3565_v31 = vpop.permute.xlu0 %3564  ;;  %v3501_v44 = vpop.permute.xlu1 %3500 }
 0x890   : > { %v3623_v63 = vld [vmem:[#allocation2 + $0x8] sm:$0xff]  ;;  %v15883_v52 = vadd.f32 %v15847_v28, %v3583_v55  ;;  %v3526_v42 = vadd.f32 %v3518_v53, %v15786_v58  ;;  %v4019_v55 = vld [vmem:[#allocation11 + $0x8] sm:$0xff] }
 0x891   : > { %11191 = vmatmul.mubr.msk.f32.gmra.mrb[88].mxu0 %vm3131_vm10, %v3623_v63  ;;  %v11904_v63 = vpack.c.bf16 %v4019_v55, %v4018_v39 }
 0x892   : > { %11193 = vmatprep.mubr.msk.f32.mxu0 %vm14091_vm6, %v14090_v30  ;;  %v3606_v10 = vmax.f32 %v15883_v52, 0.0  ;;  %v3584_v48 = vadd.f32 %v3565_v31, %v3526_v42 }
 0x893   : > { %v3451_v38 = vpop.permute.xlu0 %3450  ;;  %v3453_v37 = vpop.permute.xlu1 %3452  ;;  %v3624_v35 = vld [vmem:[#allocation2 + $0x10] sm:$0xff]  ;;  %11905 = vmatpush3.bf16.msra.mxu1 %v11904_v63 }
 0x894   : > { %3617 = vst.msk [vmem:[#allocation2 + $0x1a] sm:$0xff] %vm3131_vm10, %v3606_v10  ;;  %v15894_v0 = vadd.f32 %v15847_v28, %v3584_v48  ;;  %v3469_v58 = vadd.f32 %v3451_v38, %v15796_v22  ;;  %v3470_v62 = vadd.f32 %v3453_v37, %v15808_v41  ;;  %11918 = vmatprep.subr.bf16.mxu1 %v14087_v1 }
 0x895   : > { %11194 = vmatmul.mubr.msk.f32.gmra.mrb[90].mxu0 %vm3131_vm10, %v3624_v35 }
 0x896   : > { %11196 = vmatprep.mubr.msk.f32.mxu0 %vm14091_vm6, %v14090_v30  ;;  %v3607_v59 = vmax.f32 %v15894_v0, 0.0  ;;  %v3519_v2 = vadd.f32 %v3501_v44, %v3469_v58 }
 0x897   : > { %v3503_v29 = vpop.permute.xlu0 %3502  ;;  %v3567_v17 = vpop.permute.xlu1 %3566 }
 0x898   : > { %3618 = vst.msk [vmem:[#allocation2 + $0x22] sm:$0xff] %vm3131_vm10, %v3607_v59  ;;  %v3520_v11 = vadd.f32 %v3503_v29, %v3470_v62  ;;  %v3527_v50 = vadd.f32 %v3519_v2, %v15798_v32 }
 0x89a   : > { %v3585_v22 = vadd.f32 %v3567_v17, %v3527_v50  ;;  %v3528_v36 = vadd.f32 %v3520_v11, %v15810_v61 }
 0x89b   : > { %v3455_v45 = vpop.permute.xlu0 %3454  ;;  %v3625_v43 = vld [vmem:[#allocation2 + $0x18] sm:$0xff]  ;;  %v3505_v15 = vpop.permute.xlu1 %3504 }
 0x89c   : > { %v15908_v19 = vadd.f32 %v15847_v28, %v3585_v22  ;;  %v3471_v41 = vadd.f32 %v3455_v45, %v15820_v49  ;;  %11197 = vmatmul.mubr.msk.f32.gmra.mrb[92].mxu0 %vm3131_vm10, %v3625_v43 }
 0x89d   : > { %11199 = vmatprep.mubr.msk.f32.mxu0 %vm14091_vm6, %v14090_v30 }
 0x89e   : > { %v3608_v20 = vmax.f32 %v15908_v19, 0.0  ;;  %v3521_v51 = vadd.f32 %v3505_v15, %v3471_v41 }
 0x89f   : > { %v3569_v32 = vpop.permute.xlu0 %3568  ;;  %v3626_v56 = vld [vmem:[#allocation2 + $0x20] sm:$0xff]  ;;  %v3571_v33 = vpop.permute.xlu1 %3570 }
 0x8a0   : > { %3619 = vst.msk [vmem:[#allocation2 + $0x2a] sm:$0xff] %vm3131_vm10, %v3608_v20  ;;  %v3586_v61 = vadd.f32 %v3569_v32, %v3528_v36  ;;  %11200 = vmatmul.mubr.msk.f32.gmra.mrb[94].mxu0 %vm3131_vm10, %v3626_v56  ;;  %v3529_v49 = vadd.f32 %v3521_v51, %v15822_v14 }
 0x8a1   : > { %11202 = vmatprep.mubr.msk.f32.mxu0 %vm14091_vm6, %v14090_v30 }
 0x8a2   : > { %v15923_v47 = vadd.f32 %v15847_v28, %v3586_v61  ;;  %v3587_v24 = vadd.f32 %v3571_v33, %v3529_v49 }
 0x8a4   : > { %v3609_v9 = vmax.f32 %v15923_v47, 0.0  ;;  %v15927_v40 = vadd.f32 %v15847_v28, %v3587_v24  ;;  %v16292_v47 = vsel %vm2992_vm9, 1.0, %v14090_v30  ;;  %vm17331_vm9 = vcmp.eq.s32.totalorder %v14859_v3, %v15611_v25 }
 0x8a5   : > { %v10322_v46 = vsel %vm17331_vm9, 1.0, %v14090_v30 }
 0x8a6   : > { %3620 = vst.msk [vmem:[#allocation2 + $0x32] sm:$0xff] %vm3131_vm10, %v3609_v9  ;;  %v3610_v7 = vmax.f32 %v15927_v40, 0.0 }
 0x8a7   : > { %v3627_v23 = vld [vmem:[#allocation2 + $0x28] sm:$0xff] }
 0x8a8   : > { %3621 = vst.msk [vmem:[#allocation2 + $0x3a] sm:$0xff] %vm3131_vm10, %v3610_v7  ;;  %11203 = vmatmul.mubr.msk.f32.gmra.mrb[96].mxu0 %vm3131_vm10, %v3627_v23 }
 0x8a9   : > { %11205 = vmatprep.mubr.msk.f32.mxu0 %vm14091_vm6, %v14090_v30 }
 0x8ad   : > { %v3628_v14 = vld [vmem:[#allocation2 + $0x30] sm:$0xff] }
 0x8ae   : > { %11206 = vmatmul.mubr.msk.f32.gmra.mrb[98].mxu0 %vm3131_vm10, %v3628_v14 }
 0x8af   : > { %11208 = vmatprep.mubr.msk.f32.mxu0 %vm14091_vm6, %v14090_v30  ;;  %v3630_v28 = vld [vmem:[#allocation2 + $0x40] sm:$0xf]  ;;  %v3629_v13 = vld [vmem:[#allocation2 + $0x38] sm:$0xff] }
 0x8b0   : > { %4000 = vst.msk [vmem:[#allocation2 + $0x42] sm:$0x3] %vm3611_vm15, %v14090_v30  ;;  %vm17328_vm15 = vcmask 1043456  }
 0x8b1   : > { %vm17329_vm14 = vmmov %vm17328_vm15 }
 0x8b2   : > { %11209 = vmatmul.mubr.msk.f32.gmra.mrb[100].mxu0 %vm3131_vm10, %v3629_v13  ;;  %vm17334_vm5 = vmmov %vm17328_vm15 }
 0x8b3   : > { %11211 = vmatprep.mubr.msk.f32.mxu0 %vm14091_vm6, %v14090_v30  ;;  %vm17335_vm2 = vmmov %vm17334_vm5 }
 0x8b4   : > { %vm17336_vm13 = vmmov %vm17335_vm2 }
 0x8b5   : > { %vm17339_vm9 = vmmov %vm17335_vm2 }
 0x8b6   : > { %11212 = vmatmul.mubr.msk.f32.gmra.mrb[102].mxu0 %vm3131_vm10, %v3630_v28 }
 0x8b7   : > { %11261 = vmatprep.mubr.msk.f32.mxu0 %vm14091_vm6, %v14090_v30 }
 0x95b   : > { %v15950_v53 = vpop.f32.mrb[86].mxu0 }
 0x95c   : > { %v11189_v31 = vpop.f32.mrb[87].mxu0  ;;  %v3828_v42 = vrot.slane %v15950_v53, 2  ;;  %v3779_v48 = vrot.slane %v15950_v53, 1  ;;  %v3878_v38 = vrot.slane %v15950_v53, 3  ;;  %v3927_v37 = vrot.slane %v15950_v53, 4 }
 0x964   : > { %v15953_v44 = vpop.f32.mrb[88].mxu0 }
 0x965   : > { %v11192_v35 = vpop.f32.mrb[89].mxu0  ;;  %v3829_v58 = vrot.slane %v15953_v44, 2  ;;  %v3780_v2 = vrot.slane %v15953_v44, 1  ;;  %v3879_v62 = vrot.slane %v15953_v44, 3  ;;  %v3928_v29 = vrot.slane %v15953_v44, 4 }
 0x967   : > { %v3830_v17 = vsel %vm3472_vm7, %v3828_v42, %v3829_v58  ;;  %v3781_v11 = vsel %vm2675_vm1, %v3779_v48, %v3780_v2  ;;  %v3880_v50 = vsel %vm3877_vm0, %v3878_v38, %v3879_v62  ;;  %v3929_v22 = vsel %vm17328_vm15, %v3927_v37, %v3928_v29 }
 0x968   : > { %3845 = vrot.lane.b32.xlu1 %v3830_v17, %s14089_s16  ;;  %3796 = vrot.lane.b32.xlu0 %v3781_v11, %s14092_s12  ;;  %v15969_v36 = vpop.f32.mrb[90].mxu0 }
 0x969   : > { %v11195_v45 = vpop.f32.mrb[91].mxu0  ;;  %v3782_v43 = vrot.slane %v15969_v36, 1  ;;  %v3831_v15 = vrot.slane %v15969_v36, 2  ;;  %v3881_v41 = vrot.slane %v15969_v36, 3  ;;  %v3930_v51 = vrot.slane %v15969_v36, 4 }
 0x96b   : > { %v3783_v32 = vsel %vm2675_vm1, %v3780_v2, %v3782_v43  ;;  %v3832_v56 = vsel %vm3472_vm7, %v3829_v58, %v3831_v15  ;;  %v3882_v33 = vsel %vm3877_vm0, %v3879_v62, %v3881_v41  ;;  %v3931_v61 = vsel %vm17328_vm15, %v3928_v29, %v3930_v51 }
 0x96c   : > { %3895 = vrot.lane.b32.xlu1 %v3880_v50, %s14093_s5  ;;  %3798 = vrot.lane.b32.xlu0 %v3783_v32, %s14092_s12 }
 0x96f   : > { %v15983_v49 = vpop.f32.mrb[92].mxu0 }
 0x970   : > { %3944 = vrot.lane.b32.xlu1 %v3929_v22, %s14094_s1  ;;  %3847 = vrot.lane.b32.xlu0 %v3832_v56, %s14089_s16  ;;  %v11198_v24 = vpop.f32.mrb[93].mxu0  ;;  %v3784_v23 = vrot.slane %v15983_v49, 1  ;;  %v3833_v14 = vrot.slane %v15983_v49, 2  ;;  %v3883_v28 = vrot.slane %v15983_v49, 3  ;;  %v3932_v13 = vrot.slane %v15983_v49, 4 }
 0x972   : > { %v3785_v39 = vsel %vm2675_vm1, %v3782_v43, %v3784_v23  ;;  %v3834_v55 = vsel %vm3472_vm7, %v3831_v15, %v3833_v14  ;;  %v3884_v63 = vsel %vm3877_vm0, %v3881_v41, %v3883_v28  ;;  %v3933_v31 = vsel %vm17328_vm15, %v3930_v51, %v3932_v13 }
 0x973   : > { %v15995_v42 = vpop.f32.mrb[94].mxu0 }
 0x974   : > { %3897 = vrot.lane.b32.xlu1 %v3882_v33, %s14093_s5  ;;  %3800 = vrot.lane.b32.xlu0 %v3785_v39, %s14092_s12  ;;  %v11201_v48 = vpop.f32.mrb[95].mxu0  ;;  %v3786_v38 = vrot.slane %v15995_v42, 1  ;;  %v3835_v37 = vrot.slane %v15995_v42, 2  ;;  %v3885_v35 = vrot.slane %v15995_v42, 3  ;;  %v3934_v58 = vrot.slane %v15995_v42, 4 }
 0x976   : > { %v3787_v2 = vsel %vm2675_vm1, %v3784_v23, %v3786_v38  ;;  %v3836_v62 = vsel %vm3472_vm7, %v3833_v14, %v3835_v37  ;;  %v3886_v29 = vsel %vm3877_vm0, %v3883_v28, %v3885_v35  ;;  %v3935_v17 = vsel %vm17328_vm15, %v3932_v13, %v3934_v58 }
 0x978   : > { %3946 = vrot.lane.b32.xlu1 %v3931_v61, %s14094_s1  ;;  %3849 = vrot.lane.b32.xlu0 %v3834_v55, %s14089_s16 }
 0x97b   : > { %v16009_v11 = vpop.f32.mrb[96].mxu0 }
 0x97c   : > { %3899 = vrot.lane.b32.xlu1 %v3884_v63, %s14093_s5  ;;  %3802 = vrot.lane.b32.xlu0 %v3787_v2, %s14092_s12  ;;  %v11204_v50 = vpop.f32.mrb[97].mxu0  ;;  %v3788_v22 = vrot.slane %v16009_v11, 1  ;;  %v3837_v45 = vrot.slane %v16009_v11, 2  ;;  %v3887_v43 = vrot.slane %v16009_v11, 3  ;;  %v3936_v15 = vrot.slane %v16009_v11, 4 }
 0x97e   : > { %v3789_v41 = vsel %vm2675_vm1, %v3786_v38, %v3788_v22  ;;  %v3838_v51 = vsel %vm3472_vm7, %v3835_v37, %v3837_v45  ;;  %v3888_v32 = vsel %vm3877_vm0, %v3885_v35, %v3887_v43  ;;  %v3937_v56 = vsel %vm17328_vm15, %v3934_v58, %v3936_v15 }
 0x980   : > { %3948 = vrot.lane.b32.xlu1 %v3933_v31, %s14094_s1  ;;  %3851 = vrot.lane.b32.xlu0 %v3836_v62, %s14089_s16 }
 0x981   : > { %v16021_v33 = vpop.f32.mrb[98].mxu0 }
 0x982   : > { %v11207_v61 = vpop.f32.mrb[99].mxu0  ;;  %v3790_v24 = vrot.slane %v16021_v33, 1  ;;  %v3839_v23 = vrot.slane %v16021_v33, 2  ;;  %v3889_v14 = vrot.slane %v16021_v33, 3  ;;  %v3938_v28 = vrot.slane %v16021_v33, 4 }
 0x984   : > { %3901 = vrot.lane.b32.xlu1 %v3886_v29, %s14093_s5  ;;  %3804 = vrot.lane.b32.xlu0 %v3789_v41, %s14092_s12  ;;  %v3791_v13 = vsel %vm2675_vm1, %v3788_v22, %v3790_v24  ;;  %v3840_v39 = vsel %vm3472_vm7, %v3837_v45, %v3839_v23  ;;  %v3890_v55 = vsel %vm3877_vm0, %v3887_v43, %v3889_v14 }
 0x985   : > { %v3939_v63 = vsel %vm17328_vm15, %v3936_v15, %v3938_v28  ;;  %v16033_v31 = vpop.f32.mrb[100].mxu0 }
 0x986   : > { %v11210_v48 = vpop.f32.mrb[101].mxu0  ;;  %v3792_v38 = vrot.slane %v16033_v31, 1  ;;  %v3841_v37 = vrot.slane %v16033_v31, 2  ;;  %v3891_v35 = vrot.slane %v16033_v31, 3  ;;  %v3940_v58 = vrot.slane %v16033_v31, 4 }
 0x988   : > { %3950 = vrot.lane.b32.xlu1 %v3935_v17, %s14094_s1  ;;  %3853 = vrot.lane.b32.xlu0 %v3838_v51, %s14089_s16  ;;  %v3793_v2 = vsel %vm2675_vm1, %v3790_v24, %v3792_v38  ;;  %v3842_v62 = vsel %vm3472_vm7, %v3839_v23, %v3841_v37  ;;  %v3892_v29 = vsel %vm3877_vm0, %v3889_v14, %v3891_v35 }
 0x989   : > { %v3941_v50 = vsel %vm17328_vm15, %v3938_v28, %v3940_v58  ;;  %v3766_v22 = vpop.f32.mrb[102].mxu0 }
 0x98a   : > { %v3794_v45 = vrot.slane %v3766_v22, 1  ;;  %v3843_v43 = vrot.slane %v3766_v22, 2  ;;  %v3893_v15 = vrot.slane %v3766_v22, 3  ;;  %v3942_v41 = vrot.slane %v3766_v22, 4  ;;  %v11213_v61 = vpop.f32.mrb[103].mxu0 }
 0x98c   : > { %3903 = vrot.lane.b32.xlu1 %v3888_v32, %s14093_s5  ;;  %3806 = vrot.lane.b32.xlu0 %v3791_v13, %s14092_s12  ;;  %v3795_v17 = vsel %vm2675_vm1, %v3792_v38, %v3794_v45  ;;  %v3844_v51 = vsel %vm3472_vm7, %v3841_v37, %v3843_v43  ;;  %v3943_v24 = vsel %vm17329_vm14, %v3940_v58, %v3942_v41  ;;  %vm17247_vm14 = vcmask 254976  }
 0x98d   : > { %v3894_v23 = vsel %vm3877_vm0, %v3891_v35, %v3893_v15 }
 0x990   : > { %3952 = vrot.lane.b32.xlu1 %v3937_v56, %s14094_s1  ;;  %3855 = vrot.lane.b32.xlu0 %v3840_v39, %s14089_s16 }
 0x994   : > { %3905 = vrot.lane.b32.xlu1 %v3890_v55, %s14093_s5  ;;  %3808 = vrot.lane.b32.xlu0 %v3793_v2, %s14092_s12 }
 0x998   : > { %3954 = vrot.lane.b32.xlu1 %v3939_v63, %s14094_s1  ;;  %3857 = vrot.lane.b32.xlu0 %v3842_v62, %s14089_s16  ;;  %v16064_v63 = vld [vmem:[#allocation9] ss:$0 sm:$0xff] }
 0x99c   : > { %3907 = vrot.lane.b32.xlu1 %v3892_v29, %s14093_s5  ;;  %3810 = vrot.lane.b32.xlu0 %v3795_v17, %s14092_s12 }
 0x9a0   : > { %3956 = vrot.lane.b32.xlu1 %v3941_v50, %s14094_s1  ;;  %3859 = vrot.lane.b32.xlu0 %v3844_v51, %s14089_s16 }
 0x9a4   : > { %3958 = vrot.lane.b32.xlu1 %v3943_v24, %s14094_s1  ;;  %3909 = vrot.lane.b32.xlu0 %v3894_v23, %s14093_s5 }
 0x9da   : > { %v3846_v32 = vpop.permute.xlu1 %3845  ;;  %v3797_v56 = vpop.permute.xlu0 %3796 }
 0x9db   : > { %v3820_v14 = vadd.f32 %v3797_v56, %v15950_v53 }
 0x9dd   : > { %v3869_v28 = vadd.f32 %v3846_v32, %v3820_v14 }
 0x9de   : > { %v3896_v13 = vpop.permute.xlu1 %3895  ;;  %v3799_v39 = vpop.permute.xlu0 %3798 }
 0x9df   : > { %v3919_v55 = vadd.f32 %v3896_v13, %v3869_v28  ;;  %v3821_v35 = vadd.f32 %v3799_v39, %v15953_v44 }
 0x9e2   : > { %v3945_v48 = vpop.permute.xlu1 %3944  ;;  %v3848_v38 = vpop.permute.xlu0 %3847 }
 0x9e3   : > { %v3968_v37 = vadd.f32 %v3945_v48, %v3919_v55  ;;  %v3870_v50 = vadd.f32 %v3848_v38, %v3821_v35 }
 0x9e5   : > { %v3983_v58 = vadd.f32 %v16064_v63, %v3968_v37 }
 0x9e6   : > { %v3898_v2 = vpop.permute.xlu1 %3897  ;;  %v3801_v62 = vpop.permute.xlu0 %3800 }
 0x9e7   : > { %v3991_v29 = vmax.f32 %v3983_v58, 0.0  ;;  %v3920_v53 = vadd.f32 %v3898_v2, %v3870_v50  ;;  %v3822_v15 = vadd.f32 %v3801_v62, %v15969_v36 }
 0x9e9   : > { %4001 = vst.msk [vmem:[#allocation2 + $0x2] sm:$0xff] %vm3131_vm10, %v3991_v29 }
 0x9ea   : > { %v3947_v22 = vpop.permute.xlu1 %3946  ;;  %v3850_v45 = vpop.permute.xlu0 %3849 }
 0x9eb   : > { %v3969_v43 = vadd.f32 %v3947_v22, %v3920_v53  ;;  %v3871_v51 = vadd.f32 %v3850_v45, %v3822_v15 }
 0x9ed   : > { %v3984_v41 = vadd.f32 %v16064_v63, %v3969_v43 }
 0x9ee   : > { %v3900_v61 = vpop.permute.xlu1 %3899  ;;  %v3803_v17 = vpop.permute.xlu0 %3802 }
 0x9ef   : > { %v3992_v44 = vmax.f32 %v3984_v41, 0.0  ;;  %v3921_v23 = vadd.f32 %v3900_v61, %v3871_v51  ;;  %v3823_v14 = vadd.f32 %v3803_v17, %v15983_v49 }
 0x9f0   : > { %v4009_v24 = vld [vmem:[#allocation2] sm:$0xff] }
 0x9f1   : > { %4002 = vst.msk [vmem:[#allocation2 + $0xa] sm:$0xff] %vm3131_vm10, %v3992_v44  ;;  %11219 = vmatmul.mubr.msk.f32.vlgmr.msra.gmra.mrb[102].mxu1 %vm3131_vm10, %v4009_v24 }
 0x9f2   : > { %4942 = vst.msk [vmem:[#allocation2] sm:$0x3] %vm17247_vm14, %v14090_v30  ;;  %v3949_v32 = vpop.permute.xlu1 %3948  ;;  %v3852_v56 = vpop.permute.xlu0 %3851  ;;  %11221 = vmatprep.mubr.msk.f32.mxu1 %vm14091_vm6, %v14090_v30 }
 0x9f3   : > { %v3970_v36 = vadd.f32 %v3949_v32, %v3921_v23  ;;  %v3872_v48 = vadd.f32 %v3852_v56, %v3823_v14 }
 0x9f5   : > { %v3985_v28 = vadd.f32 %v16064_v63, %v3970_v36 }
 0x9f6   : > { %v3902_v13 = vpop.permute.xlu1 %3901  ;;  %v3805_v39 = vpop.permute.xlu0 %3804 }
 0x9f7   : > { %v3993_v55 = vmax.f32 %v3985_v28, 0.0  ;;  %v3922_v37 = vadd.f32 %v3902_v13, %v3872_v48  ;;  %v3824_v49 = vadd.f32 %v3805_v39, %v15995_v42 }
 0x9f8   : > { %v4010_v38 = vld [vmem:[#allocation2 + $0x8] sm:$0xff] }
 0x9f9   : > { %4003 = vst.msk [vmem:[#allocation2 + $0x12] sm:$0xff] %vm3131_vm10, %v3993_v55  ;;  %11222 = vmatmul.mubr.msk.f32.gmra.mrb[104].mxu1 %vm3131_vm10, %v4010_v38 }
 0x9fa   : > { %v3951_v35 = vpop.permute.xlu1 %3950  ;;  %v3854_v58 = vpop.permute.xlu0 %3853  ;;  %11224 = vmatprep.mubr.msk.f32.mxu1 %vm14091_vm6, %v14090_v30 }
 0x9fb   : > { %v3971_v2 = vadd.f32 %v3951_v35, %v3922_v37  ;;  %v3873_v22 = vadd.f32 %v3854_v58, %v3824_v49 }
 0x9fd   : > { %v3986_v62 = vadd.f32 %v16064_v63, %v3971_v2 }
 0x9fe   : > { %v3904_v29 = vpop.permute.xlu1 %3903  ;;  %v3807_v50 = vpop.permute.xlu0 %3806 }
 0x9ff   : > { %v3994_v53 = vmax.f32 %v3986_v62, 0.0  ;;  %v3923_v43 = vadd.f32 %v3904_v29, %v3873_v22  ;;  %v3825_v42 = vadd.f32 %v3807_v50, %v16009_v11 }
 0xa00   : > { %v4011_v45 = vld [vmem:[#allocation2 + $0x10] sm:$0xff] }
 0xa01   : > { %4004 = vst.msk [vmem:[#allocation2 + $0x1a] sm:$0xff] %vm3131_vm10, %v3994_v53  ;;  %11225 = vmatmul.mubr.msk.f32.gmra.mrb[106].mxu1 %vm3131_vm10, %v4011_v45 }
 0xa02   : > { %v3953_v15 = vpop.permute.xlu1 %3952  ;;  %v3856_v41 = vpop.permute.xlu0 %3855  ;;  %11227 = vmatprep.mubr.msk.f32.mxu1 %vm14091_vm6, %v14090_v30 }
 0xa03   : > { %v3972_v61 = vadd.f32 %v3953_v15, %v3923_v43  ;;  %v3874_v23 = vadd.f32 %v3856_v41, %v3825_v42 }
 0xa05   : > { %v3987_v17 = vadd.f32 %v16064_v63, %v3972_v61 }
 0xa06   : > { %v3906_v44 = vpop.permute.xlu1 %3905  ;;  %v3809_v51 = vpop.permute.xlu0 %3808 }
 0xa07   : > { %v3995_v24 = vmax.f32 %v3987_v17, 0.0  ;;  %v3924_v56 = vadd.f32 %v3906_v44, %v3874_v23  ;;  %v3826_v11 = vadd.f32 %v3809_v51, %v16021_v33 }
 0xa08   : > { %v4012_v32 = vld [vmem:[#allocation2 + $0x18] sm:$0xff] }
 0xa09   : > { %4005 = vst.msk [vmem:[#allocation2 + $0x22] sm:$0xff] %vm3131_vm10, %v3995_v24  ;;  %11228 = vmatmul.mubr.msk.f32.gmra.mrb[108].mxu1 %vm3131_vm10, %v4012_v32 }
 0xa0a   : > { %v3955_v36 = vpop.permute.xlu1 %3954  ;;  %v3858_v14 = vpop.permute.xlu0 %3857  ;;  %11230 = vmatprep.mubr.msk.f32.mxu1 %vm14091_vm6, %v14090_v30 }
 0xa0b   : > { %v3973_v28 = vadd.f32 %v3955_v36, %v3924_v56  ;;  %v3875_v38 = vadd.f32 %v3858_v14, %v3826_v11 }
 0xa0d   : > { %v3988_v13 = vadd.f32 %v16064_v63, %v3973_v28 }
 0xa0e   : > { %v3908_v39 = vpop.permute.xlu1 %3907  ;;  %v3811_v55 = vpop.permute.xlu0 %3810 }
 0xa0f   : > { %v3996_v48 = vmax.f32 %v3988_v13, 0.0  ;;  %v3925_v35 = vadd.f32 %v3908_v39, %v3875_v38  ;;  %v3827_v33 = vadd.f32 %v3811_v55, %v16033_v31 }
 0xa10   : > { %v4013_v37 = vld [vmem:[#allocation2 + $0x20] sm:$0xff] }
 0xa11   : > { %4006 = vst.msk [vmem:[#allocation2 + $0x2a] sm:$0xff] %vm3131_vm10, %v3996_v48  ;;  %11231 = vmatmul.mubr.msk.f32.gmra.mrb[110].mxu1 %vm3131_vm10, %v4013_v37 }
 0xa12   : > { %4943 = vst.msk [vmem:[#allocation2 + $0x22] sm:$0x3] %vm17247_vm14, %v14090_v30  ;;  %v3957_v58 = vpop.permute.xlu1 %3956  ;;  %v3860_v2 = vpop.permute.xlu0 %3859  ;;  %11233 = vmatprep.mubr.msk.f32.mxu1 %vm14091_vm6, %v14090_v30  ;;  %vm17330_vm14 = vmmov %vm17328_vm15 }
 0xa13   : > { %v3974_v49 = vadd.f32 %v3957_v58, %v3925_v35  ;;  %v3876_v29 = vadd.f32 %v3860_v2, %v3827_v33 }
 0xa15   : > { %v3989_v62 = vadd.f32 %v16064_v63, %v3974_v49 }
 0xa16   : > { %v3910_v50 = vpop.permute.xlu0 %3909  ;;  %v3959_v45 = vpop.permute.xlu1 %3958 }
 0xa17   : > { %v3997_v53 = vmax.f32 %v3989_v62, 0.0  ;;  %v3926_v22 = vadd.f32 %v3910_v50, %v3876_v29 }
 0xa18   : > { %v4014_v43 = vld [vmem:[#allocation2 + $0x28] sm:$0xff] }
 0xa19   : > { %4007 = vst.msk [vmem:[#allocation2 + $0x32] sm:$0xff] %vm3131_vm10, %v3997_v53  ;;  %v3975_v15 = vadd.f32 %v3959_v45, %v3926_v22  ;;  %11234 = vmatmul.mubr.msk.f32.gmra.mrb[112].mxu1 %vm3131_vm10, %v4014_v43 }
 0xa1a   : > { %11236 = vmatprep.mubr.msk.f32.mxu1 %vm14091_vm6, %v14090_v30 }
 0xa1b   : > { %v3990_v41 = vadd.f32 %v16064_v63, %v3975_v15 }
 0xa1d   : > { %v3998_v31 = vmax.f32 %v3990_v41, 0.0 }
 0xa1f   : > { %4008 = vst.msk [vmem:[#allocation2 + $0x3a] sm:$0xff] %vm3131_vm10, %v3998_v31 }
 0xa20   : > { %v4015_v61 = vld [vmem:[#allocation2 + $0x30] sm:$0xff] }
 0xa21   : > { %11237 = vmatmul.mubr.msk.f32.gmra.mrb[114].mxu1 %vm3131_vm10, %v4015_v61 }
 0xa22   : > { %11239 = vmatprep.mubr.msk.f32.mxu1 %vm14091_vm6, %v14090_v30 }
 0xa26   : > { %v4016_v42 = vld [vmem:[#allocation2 + $0x38] sm:$0xff]  ;;  %v4017_v17 = vld [vmem:[#allocation2 + $0x40] sm:$0xf] }
 0xa27   : > { %11240 = vmatmul.mubr.msk.f32.gmra.mrb[116].mxu1 %vm3131_vm10, %v4016_v42 }
 0xa28   : > { %11242 = vmatprep.mubr.msk.f32.mxu1 %vm14091_vm6, %v14090_v30 }
 0xa2b   : > { %11243 = vmatmul.mubr.msk.f32.gmra.mrb[118].mxu1 %vm3131_vm10, %v4017_v17 }
 0xa2c   : > { %11292 = vmatprep.mubr.msk.f32.mxu1 %vm14091_vm6, %v14090_v30 }
 0xac4   : > { %v16120_v63 = vpop.f32.mrb[102].mxu1 }
 0xac5   : > { %v11220_v44 = vpop.f32.mrb[103].mxu1  ;;  %v4166_v24 = vrot.slane %v16120_v63, 1  ;;  %v4215_v23 = vrot.slane %v16120_v63, 2  ;;  %v4264_v32 = vrot.slane %v16120_v63, 3  ;;  %v4313_v56 = vrot.slane %v16120_v63, 4 }
 0xacc   : > { %v16122_v51 = vpop.f32.mrb[104].mxu1 }
 0xacd   : > { %v11223_v36 = vpop.f32.mrb[105].mxu1  ;;  %v4167_v14 = vrot.slane %v16122_v51, 1  ;;  %v4216_v28 = vrot.slane %v16122_v51, 2  ;;  %v4265_v11 = vrot.slane %v16122_v51, 3  ;;  %v4314_v13 = vrot.slane %v16122_v51, 4 }
 0xacf   : > { %v4168_v39 = vsel %vm2675_vm1, %v4166_v24, %v4167_v14  ;;  %v4217_v55 = vsel %vm3472_vm7, %v4215_v23, %v4216_v28  ;;  %v4266_v48 = vsel %vm3877_vm0, %v4264_v32, %v4265_v11  ;;  %v4315_v38 = vsel %vm17328_vm15, %v4313_v56, %v4314_v13 }
 0xad0   : > { %4183 = vrot.lane.b32.xlu0 %v4168_v39, %s14092_s12 }
 0xad4   : > { %v16137_v37 = vpop.f32.mrb[106].mxu1  ;;  %4232 = vrot.lane.b32.xlu0 %v4217_v55, %s14089_s16 }
 0xad5   : > { %v11226_v35 = vpop.f32.mrb[107].mxu1  ;;  %v4169_v58 = vrot.slane %v16137_v37, 1  ;;  %v4218_v2 = vrot.slane %v16137_v37, 2  ;;  %v4267_v33 = vrot.slane %v16137_v37, 3  ;;  %v4316_v49 = vrot.slane %v16137_v37, 4 }
 0xad7   : > { %v4170_v62 = vsel %vm2675_vm1, %v4167_v14, %v4169_v58  ;;  %v4219_v29 = vsel %vm3472_vm7, %v4216_v28, %v4218_v2  ;;  %v4268_v50 = vsel %vm3877_vm0, %v4265_v11, %v4267_v33  ;;  %v4317_v53 = vsel %vm17328_vm15, %v4314_v13, %v4316_v49 }
 0xad8   : > { %4185 = vrot.lane.b32.xlu1 %v4170_v62, %s14092_s12  ;;  %4281 = vrot.lane.b32.xlu0 %v4266_v48, %s14093_s5 }
 0xadc   : > { %v16150_v22 = vpop.f32.mrb[108].mxu1  ;;  %4234 = vrot.lane.b32.xlu1 %v4219_v29, %s14089_s16  ;;  %4330 = vrot.lane.b32.xlu0 %v4315_v38, %s14094_s1 }
 0xadd   : > { %v11229_v45 = vpop.f32.mrb[109].mxu1  ;;  %v4171_v43 = vrot.slane %v16150_v22, 1  ;;  %v4220_v15 = vrot.slane %v16150_v22, 2  ;;  %v4269_v41 = vrot.slane %v16150_v22, 3  ;;  %v4318_v31 = vrot.slane %v16150_v22, 4 }
 0xadf   : > { %v4172_v61 = vsel %vm2675_vm1, %v4169_v58, %v4171_v43  ;;  %v4221_v42 = vsel %vm3472_vm7, %v4218_v2, %v4220_v15  ;;  %v4270_v17 = vsel %vm3877_vm0, %v4267_v33, %v4269_v41  ;;  %v4319_v44 = vsel %vm17328_vm15, %v4316_v49, %v4318_v31 }
 0xae0   : > { %4283 = vrot.lane.b32.xlu1 %v4268_v50, %s14093_s5  ;;  %4187 = vrot.lane.b32.xlu0 %v4172_v61, %s14092_s12 }
 0xae4   : > { %v16164_v24 = vpop.f32.mrb[110].mxu1  ;;  %4332 = vrot.lane.b32.xlu1 %v4317_v53, %s14094_s1  ;;  %4236 = vrot.lane.b32.xlu0 %v4221_v42, %s14089_s16 }
 0xae5   : > { %v11232_v23 = vpop.f32.mrb[111].mxu1  ;;  %v4173_v32 = vrot.slane %v16164_v24, 1  ;;  %v4222_v56 = vrot.slane %v16164_v24, 2  ;;  %v4271_v36 = vrot.slane %v16164_v24, 3  ;;  %v4320_v14 = vrot.slane %v16164_v24, 4 }
 0xae7   : > { %v4174_v28 = vsel %vm2675_vm1, %v4171_v43, %v4173_v32  ;;  %v4223_v11 = vsel %vm3472_vm7, %v4220_v15, %v4222_v56  ;;  %v4272_v13 = vsel %vm3877_vm0, %v4269_v41, %v4271_v36  ;;  %v4321_v39 = vsel %vm17328_vm15, %v4318_v31, %v4320_v14 }
 0xae8   : > { %4189 = vrot.lane.b32.xlu1 %v4174_v28, %s14092_s12  ;;  %4285 = vrot.lane.b32.xlu0 %v4270_v17, %s14093_s5 }
 0xaec   : > { %v16178_v55 = vpop.f32.mrb[112].mxu1  ;;  %4238 = vrot.lane.b32.xlu1 %v4223_v11, %s14089_s16  ;;  %4334 = vrot.lane.b32.xlu0 %v4319_v44, %s14094_s1 }
 0xaed   : > { %v11235_v48 = vpop.f32.mrb[113].mxu1  ;;  %v4175_v38 = vrot.slane %v16178_v55, 1  ;;  %v4224_v35 = vrot.slane %v16178_v55, 2  ;;  %v4273_v58 = vrot.slane %v16178_v55, 3  ;;  %v4322_v2 = vrot.slane %v16178_v55, 4 }
 0xaef   : > { %v4176_v33 = vsel %vm2675_vm1, %v4173_v32, %v4175_v38  ;;  %v4225_v49 = vsel %vm3472_vm7, %v4222_v56, %v4224_v35  ;;  %v4274_v62 = vsel %vm3877_vm0, %v4271_v36, %v4273_v58  ;;  %v4323_v29 = vsel %vm17328_vm15, %v4320_v14, %v4322_v2 }
 0xaf0   : > { %4287 = vrot.lane.b32.xlu1 %v4272_v13, %s14093_s5  ;;  %4191 = vrot.lane.b32.xlu0 %v4176_v33, %s14092_s12 }
 0xaf4   : > { %v16192_v50 = vpop.f32.mrb[114].mxu1  ;;  %4336 = vrot.lane.b32.xlu1 %v4321_v39, %s14094_s1  ;;  %4240 = vrot.lane.b32.xlu0 %v4225_v49, %s14089_s16 }
 0xaf5   : > { %v11238_v53 = vpop.f32.mrb[115].mxu1  ;;  %v4177_v45 = vrot.slane %v16192_v50, 1  ;;  %v4226_v43 = vrot.slane %v16192_v50, 2  ;;  %v4275_v15 = vrot.slane %v16192_v50, 3  ;;  %v4324_v41 = vrot.slane %v16192_v50, 4 }
 0xaf7   : > { %v4178_v31 = vsel %vm2675_vm1, %v4175_v38, %v4177_v45  ;;  %v4227_v61 = vsel %vm3472_vm7, %v4224_v35, %v4226_v43  ;;  %v4276_v42 = vsel %vm3877_vm0, %v4273_v58, %v4275_v15  ;;  %v4325_v17 = vsel %vm17328_vm15, %v4322_v2, %v4324_v41 }
 0xaf8   : > { %4193 = vrot.lane.b32.xlu1 %v4178_v31, %s14092_s12  ;;  %4289 = vrot.lane.b32.xlu0 %v4274_v62, %s14093_s5  ;;  %v4714_v31 = vld [vmem:[#allocation14 + $0x18] sm:$0xff] }
 0xafa   : > { %v16206_v44 = vpop.f32.mrb[116].mxu1 }
 0xafb   : > { %v11241_v23 = vpop.f32.mrb[117].mxu1  ;;  %v4179_v32 = vrot.slane %v16206_v44, 1  ;;  %v4228_v56 = vrot.slane %v16206_v44, 2  ;;  %v4277_v36 = vrot.slane %v16206_v44, 3  ;;  %v4326_v14 = vrot.slane %v16206_v44, 4 }
 0xafc   : > { %4242 = vrot.lane.b32.xlu1 %v4227_v61, %s14089_s16  ;;  %4338 = vrot.lane.b32.xlu0 %v4323_v29, %s14094_s1 }
 0xafd   : > { %v4180_v28 = vsel %vm2675_vm1, %v4177_v45, %v4179_v32  ;;  %v4229_v11 = vsel %vm3472_vm7, %v4226_v43, %v4228_v56  ;;  %v4278_v13 = vsel %vm3877_vm0, %v4275_v15, %v4277_v36  ;;  %v4327_v39 = vsel %vm17328_vm15, %v4324_v41, %v4326_v14  ;;  %v16232_v45 = vld [vmem:[#allocation14] sm:$0xff]  ;;  %v4712_v43 = vld [vmem:[#allocation14 + $0x8] sm:$0xff]  ;;  %v16234_v15 = vld [vmem:[#allocation14 + $0x10] sm:$0xff] }
 0xafe   : > { %v4153_v48 = vpop.f32.mrb[118].mxu1  ;;  %v12972_v41 = vpack.i.bf16 %v4712_v43, %v16232_v45  ;;  %v11931_v61 = vpack.c.bf16 %v16234_v15, %v16232_v45  ;;  %vm17338_vm15 = vmmov %vm17335_vm2 }
 0xaff   : > { %v4181_v38 = vrot.slane %v4153_v48, 1  ;;  %v4230_v35 = vrot.slane %v4153_v48, 2  ;;  %v4279_v58 = vrot.slane %v4153_v48, 3  ;;  %v4328_v2 = vrot.slane %v4153_v48, 4  ;;  %v11244_v33 = vpop.f32.mrb[119].mxu1 }
 0xb00   : > { %4291 = vrot.lane.b32.xlu1 %v4276_v42, %s14093_s5  ;;  %4195 = vrot.lane.b32.xlu0 %v4180_v28, %s14092_s12  ;;  %v12977_v42 = vpack.i.bf16 %v4714_v31, %v16234_v15 }
 0xb01   : > { %v4182_v49 = vsel %vm2675_vm1, %v4179_v32, %v4181_v38  ;;  %v4231_v62 = vsel %vm3472_vm7, %v4228_v56, %v4230_v35  ;;  %v4280_v29 = vsel %vm3877_vm0, %v4277_v36, %v4279_v58  ;;  %v4329_v53 = vsel %vm17330_vm14, %v4326_v14, %v4328_v2  ;;  %v16244_v38 = vld [vmem:[#allocation12] ss:$0 sm:$0xff] }
 0xb02   : > { %vm4393_vm14 = vcmask 523264  }
 0xb04   : > { %4340 = vrot.lane.b32.xlu1 %v4325_v17, %s14094_s1  ;;  %4244 = vrot.lane.b32.xlu0 %v4229_v11, %s14089_s16 }
 0xb08   : > { %4293 = vrot.lane.b32.xlu0 %v4278_v13, %s14093_s5  ;;  %4197 = vrot.lane.b32.xlu1 %v4182_v49, %s14092_s12 }
 0xb0c   : > { %4342 = vrot.lane.b32.xlu0 %v4327_v39, %s14094_s1  ;;  %4246 = vrot.lane.b32.xlu1 %v4231_v62, %s14089_s16 }
 0xb10   : > { %4295 = vrot.lane.b32.xlu1 %v4280_v29, %s14093_s5  ;;  %12973 = vrot.lane.b32.xlu0 %v12972_v41, %s14095_s2 }
 0xb14   : > { %4344 = vrot.lane.b32.xlu1 %v4329_v53, %s14094_s1 }
 0xb18   : > { %12978 = vrot.lane.b32.xlu1 %v12977_v42, %s14095_s2 }
 0xb42   : > { %v4184_v17 = vpop.permute.xlu0 %4183 }
 0xb43   : > { %v4207_v36 = vadd.f32 %v4184_v17, %v16120_v63 }
 0xb46   : > { %v4233_v23 = vpop.permute.xlu0 %4232 }
 0xb47   : > { %v4256_v14 = vadd.f32 %v4233_v23, %v4207_v36 }
 0xb4a   : > { %v4186_v32 = vpop.permute.xlu1 %4185  ;;  %v4282_v56 = vpop.permute.xlu0 %4281 }
 0xb4b   : > { %v4305_v13 = vadd.f32 %v4282_v56, %v4256_v14  ;;  %v4208_v39 = vadd.f32 %v4186_v32, %v16122_v51 }
 0xb4e   : > { %v4235_v28 = vpop.permute.xlu1 %4234  ;;  %v4331_v11 = vpop.permute.xlu0 %4330 }
 0xb4f   : > { %v4354_v48 = vadd.f32 %v4331_v11, %v4305_v13  ;;  %v4257_v2 = vadd.f32 %v4235_v28, %v4208_v39 }
 0xb51   : > { %v4369_v33 = vadd.f32 %v16244_v38, %v4354_v48 }
 0xb52   : > { %v4284_v35 = vpop.permute.xlu1 %4283  ;;  %v4188_v58 = vpop.permute.xlu0 %4187 }
 0xb53   : > { %v4306_v49 = vadd.f32 %v4284_v35, %v4257_v2  ;;  %v4377_v63 = vadd.f32 %v4369_v33, %v3603_v12  ;;  %v4209_v51 = vadd.f32 %v4188_v58, %v16137_v37 }
 0xb55   : > { %v4385_v17 = vmax.f32 %v4377_v63, 0.0 }
 0xb56   : > { %v4333_v62 = vpop.permute.xlu1 %4332  ;;  %v4237_v29 = vpop.permute.xlu0 %4236 }
 0xb57   : > { %v4355_v53 = vadd.f32 %v4333_v62, %v4306_v49  ;;  %v4258_v32 = vadd.f32 %v4237_v29, %v4209_v51 }
 0xb59   : > { %v4370_v43 = vadd.f32 %v16244_v38, %v4355_v53 }
 0xb5a   : > { %v4190_v41 = vpop.permute.xlu1 %4189  ;;  %v4286_v31 = vpop.permute.xlu0 %4285 }
 0xb5b   : > { %v4378_v42 = vadd.f32 %v4370_v43, %v3604_v21  ;;  %v4307_v28 = vadd.f32 %v4286_v31, %v4258_v32  ;;  %v4210_v11 = vadd.f32 %v4190_v41, %v16150_v22 }
 0xb5d   : > { %v4386_v23 = vmax.f32 %v4378_v42, 0.0 }
 0xb5e   : > { %v4239_v56 = vpop.permute.xlu1 %4238  ;;  %v4335_v36 = vpop.permute.xlu0 %4334 }
 0xb5f   : > { %v11907_v14 = vpack.c.bf16 %v4386_v23, %v4385_v17  ;;  %v4356_v8 = vadd.f32 %v4335_v36, %v4307_v28  ;;  %v4259_v6 = vadd.f32 %v4239_v56, %v4210_v11 }
 0xb61   : > { %11908 = vmatpush3.bf16.msra.mxu0 %v11907_v14  ;;  %11920 = vmatpush3.bf16.msra.mxu1 %v11907_v14  ;;  %v4371_v21 = vadd.f32 %v16244_v38, %v4356_v8 }
 0xb62   : > { %v4288_v12 = vpop.permute.xlu1 %4287  ;;  %v4192_v13 = vpop.permute.xlu0 %4191  ;;  %11909 = vmatprep.subr.bf16.mxu0 %v14087_v1  ;;  %11921 = vmatprep.subr.bf16.mxu1 %v14087_v1 }
 0xb63   : > { %v4308_v37 = vadd.f32 %v4288_v12, %v4259_v6  ;;  %v4379_v58 = vadd.f32 %v4371_v21, %v3605_v26  ;;  %v4211_v49 = vadd.f32 %v4192_v13, %v16164_v24 }
 0xb65   : > { %v4387_v29 = vmax.f32 %v4379_v58, 0.0 }
 0xb66   : > { %v4337_v39 = vpop.permute.xlu1 %4336  ;;  %v4241_v48 = vpop.permute.xlu0 %4240 }
 0xb67   : > { %v4357_v35 = vadd.f32 %v4337_v39, %v4308_v37  ;;  %v4260_v63 = vadd.f32 %v4241_v48, %v4211_v49 }
 0xb69   : > { %v4372_v22 = vadd.f32 %v16244_v38, %v4357_v35 }
 0xb6a   : > { %v4194_v2 = vpop.permute.xlu1 %4193  ;;  %v4290_v33 = vpop.permute.xlu0 %4289 }
 0xb6b   : > { %v4380_v62 = vadd.f32 %v4372_v22, %v3606_v10  ;;  %v4309_v51 = vadd.f32 %v4290_v33, %v4260_v63  ;;  %v4212_v42 = vadd.f32 %v4194_v2, %v16178_v55 }
 0xb6d   : > { %v4388_v53 = vmax.f32 %v4380_v62, 0.0 }
 0xb6e   : > { %v4243_v43 = vpop.permute.xlu1 %4242  ;;  %v4339_v41 = vpop.permute.xlu0 %4338 }
 0xb6f   : > { %v11910_v31 = vpack.c.bf16 %v4388_v53, %v4387_v29  ;;  %v4358_v16 = vadd.f32 %v4339_v41, %v4309_v51  ;;  %v4261_v52 = vadd.f32 %v4243_v43, %v4212_v42  ;;  %v16286_v53 = vsel %vm2837_vm11, 1.0, %v14090_v30 }
 0xb70   : > { %vm4727_vm11 = vcmask 261120  }
 0xb71   : > { %11911 = vmatpush3.bf16.msra.mxu0 %v11910_v31  ;;  %11923 = vmatpush3.bf16.msra.mxu1 %v11910_v31  ;;  %v4373_v10 = vadd.f32 %v16244_v38, %v4358_v16 }
 0xb72   : > { %v4292_v26 = vpop.permute.xlu1 %4291  ;;  %v4196_v17 = vpop.permute.xlu0 %4195  ;;  %11912 = vmatprep.subr.bf16.mxu0 %v14087_v1  ;;  %11924 = vmatprep.subr.bf16.mxu1 %v14087_v1 }
 0xb73   : > { %v4310_v24 = vadd.f32 %v4292_v26, %v4261_v52  ;;  %v4381_v36 = vadd.f32 %v4373_v10, %v3607_v59  ;;  %v4213_v11 = vadd.f32 %v4196_v17, %v16192_v50 }
 0xb75   : > { %v4389_v12 = vmax.f32 %v4381_v36, 0.0 }
 0xb76   : > { %v4341_v23 = vpop.permute.xlu1 %4340  ;;  %v4245_v32 = vpop.permute.xlu0 %4244 }
 0xb77   : > { %v4359_v56 = vadd.f32 %v4341_v23, %v4310_v24  ;;  %v4262_v6 = vadd.f32 %v4245_v32, %v4213_v11 }
 0xb79   : > { %v4374_v55 = vadd.f32 %v16244_v38, %v4359_v56 }
 0xb7a   : > { %v4198_v14 = vpop.permute.xlu1 %4197  ;;  %v4294_v28 = vpop.permute.xlu0 %4293 }
 0xb7b   : > { %v4382_v8 = vadd.f32 %v4374_v55, %v3608_v20  ;;  %v4311_v48 = vadd.f32 %v4294_v28, %v4262_v6  ;;  %v4214_v35 = vadd.f32 %v4198_v14, %v16206_v44 }
 0xb7d   : > { %v4390_v13 = vmax.f32 %v4382_v8, 0.0 }
 0xb7e   : > { %v4247_v21 = vpop.permute.xlu1 %4246  ;;  %v4343_v37 = vpop.permute.xlu0 %4342 }
 0xb7f   : > { %v11913_v39 = vpack.c.bf16 %v4390_v13, %v4389_v12  ;;  %v4360_v0 = vadd.f32 %v4343_v37, %v4311_v48  ;;  %v4263_v50 = vadd.f32 %v4247_v21, %v4214_v35  ;;  %v4954_v35 = vld [vmem:[#allocation17 + $0x8] sm:$0xff] }
 0xb81   : > { %11914 = vmatpush3.bf16.msra.mxu0 %v11913_v39  ;;  %11926 = vmatpush3.bf16.msra.mxu1 %v11913_v39  ;;  %v4375_v19 = vadd.f32 %v16244_v38, %v4360_v0  ;;  %v4956_v0 = vld [vmem:[#allocation17 + $0x18] sm:$0xff] }
 0xb82   : > { %v4296_v59 = vpop.permute.xlu1 %4295  ;;  %11915 = vmatprep.subr.bf16.mxu0 %v14087_v1  ;;  %11927 = vmatprep.subr.bf16.mxu1 %v14087_v1 }
 0xb83   : > { %v4312_v20 = vadd.f32 %v4296_v59, %v4263_v50  ;;  %v4383_v2 = vadd.f32 %v4375_v19, %v3609_v9  ;;  %v12974_v9 = vpop.permute.xlu0 %12973 }
 0xb84   : > { %v12975_v45 = vunpack.i.l.bf16 %v12974_v9 }
 0xb85   : > { %v4391_v49 = vmax.f32 %v4383_v2, 0.0  ;;  %v4953_v2 = vld [vmem:[#allocation17] sm:$0xff] }
 0xb86   : > { %v4345_v58 = vpop.permute.xlu1 %4344 }
 0xb87   : > { %v4361_v22 = vadd.f32 %v4345_v58, %v4312_v20 }
 0xb89   : > { %v4376_v33 = vadd.f32 %v16244_v38, %v4361_v22  ;;  %v10321_v38 = vsel %vm2995_vm3, 1.0, %v14090_v30  ;;  %v11936_v22 = vpack.c.bf16 %v4956_v0, %v4954_v35  ;;  %vm17337_vm3 = vmmov %vm17335_vm2 }
 0xb8a   : > { %v12979_v40 = vpop.permute.xlu1 %12978 }
 0xb8b   : > { %v4384_v44 = vadd.f32 %v4376_v33, %v3610_v7  ;;  %v12976_v7 = vunpack.i.h.bf16 %v12974_v9  ;;  %v12981_v15 = vunpack.i.h.bf16 %v12979_v40  ;;  %v4955_v33 = vld [vmem:[#allocation17 + $0x10] sm:$0xff] }
 0xb8d   : > { %v4392_v62 = vmax.f32 %v4384_v44, 0.0  ;;  %v4728_v27 = vsel %vm4727_vm11, %v12975_v45, %v12976_v7  ;;  %v4958_v7 = vld [vmem:[#allocation17 + $0x28] sm:$0xff]  ;;  %v4960_v45 = vld [vmem:[#allocation17 + $0x38] sm:$0xff] }
 0xb8f   : > { %v11916_v29 = vpack.c.bf16 %v4392_v62, %v4391_v49 }
 0xb91   : > { %11917 = vmatpush3.bf16.msra.mxu0 %v11916_v29  ;;  %11929 = vmatpush3.bf16.msra.mxu1 %v11916_v29  ;;  %v11938_v29 = vpack.c.bf16 %v4955_v33, %v4953_v2 }
 0xb92   : > { %11930 = vmatprep.subr.bf16.mxu0 %v14087_v1  ;;  %11933 = vmatprep.subr.bf16.mxu1 %v14087_v1 }
 0xb94   : > { %11262 = vmatmul.mubr.msk.f32.vlgmr.msra.gmra.mrb[104].mxu0 %vm4393_vm14, %v16286_v53  ;;  %11293 = vmatmul.mubr.msk.f32.vlgmr.msra.gmra.mrb[120].mxu1 %vm4393_vm14, %v16292_v47 }
 0xb95   : > { %11264 = vmatprep.mubr.msk.f32.mxu0 %vm14091_vm6, %v14090_v30  ;;  %11295 = vmatprep.mubr.msk.f32.mxu1 %vm14091_vm6, %v14090_v30 }
 0xb96   : > { %11932 = vmatpush3.bf16.msra.mxu0 %v11931_v61  ;;  %v12980_v61 = vunpack.i.l.bf16 %v12979_v40 }
 0xb97   : > { %11937 = vmatprep.subr.bf16.mxu0 %v11936_v22 }
 0xb98   : > { %11265 = vmatmul.mubr.msk.f32.gmra.mrb[106].mxu0 %vm4393_vm14, %v16308_v57  ;;  %11296 = vmatmul.mubr.msk.f32.gmra.mrb[122].mxu1 %vm4393_vm14, %v16314_v54  ;;  %v4729_v63 = vsel %vm4727_vm11, %v12980_v61, %v12981_v15 }
 0xb99   : > { %11267 = vmatprep.mubr.msk.f32.mxu0 %vm14091_vm6, %v14090_v30  ;;  %11298 = vmatprep.mubr.msk.f32.mxu1 %vm14091_vm6, %v14090_v30  ;;  %v11934_v43 = vpack.c.bf16 %v4729_v63, %v4728_v27  ;;  %v11940_v63 = vpack.c.bf16 %v4960_v45, %v4958_v7 }
 0xb9b   : > { %11935 = vmatpush3.bf16.msra.mxu1 %v11934_v43  ;;  %v4957_v43 = vld [vmem:[#allocation17 + $0x20] sm:$0xff] }
 0xb9c   : > { %11268 = vmatmul.mubr.msk.f32.gmra.mrb[108].mxu0 %vm4393_vm14, %v16331_v60  ;;  %11299 = vmatmul.mubr.msk.f32.gmra.mrb[124].mxu1 %vm4393_vm14, %v16337_v5 }
 0xb9d   : > { %11270 = vmatprep.mubr.msk.f32.mxu0 %vm14091_vm6, %v14090_v30  ;;  %11301 = vmatprep.mubr.msk.f32.mxu1 %vm14091_vm6, %v14090_v30 }
 0xba0   : > { %11271 = vmatmul.mubr.msk.f32.gmra.mrb[110].mxu0 %vm4393_vm14, %v10294_v34  ;;  %11302 = vmatmul.mubr.msk.f32.gmra.mrb[126].mxu1 %vm4393_vm14, %v10321_v38 }
 0xba1   : > { %11273 = vmatprep.mubr.msk.f32.mxu0 %vm14091_vm6, %v14090_v30  ;;  %11304 = vmatprep.mubr.msk.f32.mxu1 %vm14091_vm6, %v14090_v30 }
 0xba4   : > { %11274 = vmatmul.mubr.msk.f32.gmra.mrb[112].mxu0 %vm4393_vm14, %v10295_v18  ;;  %11305 = vmatmul.mubr.msk.f32.gmra.mrb[128].mxu1 %vm4393_vm14, %v10322_v46  ;;  %v4959_v18 = vld [vmem:[#allocation17 + $0x30] sm:$0xff] }
 0xba5   : > { %11311 = vmatprep.mubr.msk.f32.mxu0 %vm14091_vm6, %v14090_v30  ;;  %11330 = vmatprep.mubr.msk.f32.mxu1 %vm14091_vm6, %v14090_v30 }
 0xc67   : > { %v4475_v4 = vpop.f32.mrb[104].mxu0  ;;  %v4580_v41 = vpop.f32.mrb[120].mxu1 }
 0xc68   : > { %v11263_v31 = vpop.f32.mrb[105].mxu0  ;;  %11312 = vmatmul.mubr.msk.f32.vlgmr.msra.gmra.mrb[114].mxu0 %vm3131_vm10, %v4475_v4  ;;  %11331 = vmatmul.mubr.msk.f32.vlgmr.msra.gmra.mrb[130].mxu1 %vm3131_vm10, %v4580_v41  ;;  %v11294_v3 = vpop.f32.mrb[121].mxu1 }
 0xc69   : > { %11314 = vmatprep.mubr.msk.f32.mxu0 %vm14091_vm6, %v14090_v30  ;;  %11333 = vmatprep.mubr.msk.f32.mxu1 %vm14091_vm6, %v14090_v30  ;;  %v11942_v31 = vpack.c.bf16 %v4959_v18, %v4957_v43 }
 0xc6a   : > { %11939 = vmatpush1.bf16.msra.mxu0 %v11938_v29 }
 0xc6b   : > { %v4480_v25 = vpop.f32.mrb[106].mxu0  ;;  %v4585_v51 = vpop.f32.mrb[122].mxu1  ;;  %11941 = vmatprep.subr.bf16.mxu0 %v11940_v63 }
 0xc6c   : > { %v11266_v42 = vpop.f32.mrb[107].mxu0  ;;  %11315 = vmatmul.mubr.msk.f32.gmra.mrb[116].mxu0 %vm3131_vm10, %v4480_v25  ;;  %11334 = vmatmul.mubr.msk.f32.gmra.mrb[132].mxu1 %vm3131_vm10, %v4585_v51  ;;  %v11297_v16 = vpop.f32.mrb[123].mxu1 }
 0xc6d   : > { %11317 = vmatprep.mubr.msk.f32.mxu0 %vm14091_vm6, %v14090_v30  ;;  %11336 = vmatprep.mubr.msk.f32.mxu1 %vm14091_vm6, %v14090_v30 }
 0xc6e   : > { %11943 = vmatpush1.bf16.msra.mxu0 %v11942_v31 }
 0xc6f   : > { %v4485_v26 = vpop.f32.mrb[108].mxu0  ;;  %v4590_v17 = vpop.f32.mrb[124].mxu1  ;;  %11952 = vmatprep.subr.bf16.mxu0 %v14087_v1 }
 0xc70   : > { %11318 = vmatmul.mubr.msk.f32.gmra.mrb[118].mxu0 %vm3131_vm10, %v4485_v26  ;;  %11337 = vmatmul.mubr.msk.f32.gmra.mrb[134].mxu1 %vm3131_vm10, %v4590_v17  ;;  %v11269_v52 = vpop.f32.mrb[109].mxu0  ;;  %v11300_v10 = vpop.f32.mrb[125].mxu1 }
 0xc71   : > { %11320 = vmatprep.mubr.msk.f32.mxu0 %vm14091_vm6, %v14090_v30  ;;  %11339 = vmatprep.mubr.msk.f32.mxu1 %vm14091_vm6, %v14090_v30 }
 0xc73   : > { %v4490_v24 = vpop.f32.mrb[110].mxu0  ;;  %v4595_v23 = vpop.f32.mrb[126].mxu1 }
 0xc74   : > { %11321 = vmatmul.mubr.msk.f32.gmra.mrb[120].mxu0 %vm3131_vm10, %v4490_v24  ;;  %v11272_v32 = vpop.f32.mrb[111].mxu0  ;;  %11340 = vmatmul.mubr.msk.f32.gmra.mrb[136].mxu1 %vm3131_vm10, %v4595_v23  ;;  %v11303_v56 = vpop.f32.mrb[127].mxu1 }
 0xc75   : > { %11323 = vmatprep.mubr.msk.f32.mxu0 %vm14091_vm6, %v14090_v30  ;;  %11342 = vmatprep.mubr.msk.f32.mxu1 %vm14091_vm6, %v14090_v30 }
 0xc77   : > { %v4495_v36 = vpop.f32.mrb[112].mxu0  ;;  %v4600_v55 = vpop.f32.mrb[128].mxu1 }
 0xc78   : > { %11324 = vmatmul.mubr.msk.f32.gmra.mrb[122].mxu0 %vm3131_vm10, %v4495_v36  ;;  %v11275_v14 = vpop.f32.mrb[113].mxu0  ;;  %11343 = vmatmul.mubr.msk.f32.gmra.mrb[138].mxu1 %vm3131_vm10, %v4600_v55  ;;  %v11306_v28 = vpop.f32.mrb[129].mxu1 }
 0xc79   : > { %5040 = vmatprep.mubr.f32.mxu0 %v14090_v30  ;;  %5286 = vmatprep.mubr.f32.mxu1 %v14090_v30 }
 0xd3b   : > { %v16405_v11 = vpop.f32.mrb[114].mxu0  ;;  %v16407_v8 = vpop.f32.mrb[130].mxu1 }
 0xd3c   : > { %v11313_v12 = vpop.f32.mrb[115].mxu0  ;;  %v11332_v13 = vpop.f32.mrb[131].mxu1  ;;  %v4901_v6 = vrot.slane %v16407_v8, 1  ;;  %v4842_v21 = vrot.slane %v16405_v11, 1  ;;  %v4867_v37 = vrot.slane %v16405_v11, 2 }
 0xd3f   : > { %v16412_v39 = vpop.f32.mrb[116].mxu0  ;;  %v16414_v48 = vpop.f32.mrb[132].mxu1 }
 0xd40   : > { %v4843_v59 = vrot.slane %v16412_v39, 1  ;;  %v4868_v50 = vrot.slane %v16412_v39, 2  ;;  %v4902_v19 = vrot.slane %v16414_v48, 1  ;;  %v11316_v20 = vpop.f32.mrb[117].mxu0  ;;  %v11335_v58 = vpop.f32.mrb[133].mxu1 }
 0xd41   : > { %v10395_v20 = vld [vmem:[#allocation15] ss:$0 sm:$0xff] }
 0xd42   : > { %v4869_v44 = vsel %vm3472_vm7, %v4867_v37, %v4868_v50  ;;  %v4844_v49 = vsel %vm2675_vm1, %v4842_v21, %v4843_v59  ;;  %v4903_v62 = vsel %vm2675_vm1, %v4901_v6, %v4902_v19 }
 0xd43   : > { %v16422_v9 = vpop.f32.mrb[134].mxu1  ;;  %4876 = vrot.lane.b32.xlu1 %v4869_v44, %s14094_s1  ;;  %4851 = vrot.lane.b32.xlu0 %v4844_v49, %s14089_s16  ;;  %v16426_v40 = vpop.f32.mrb[118].mxu0 }
 0xd44   : > { %v4904_v15 = vrot.slane %v16422_v9, 1  ;;  %v4845_v61 = vrot.slane %v16426_v40, 1  ;;  %v4870_v27 = vrot.slane %v16426_v40, 2  ;;  %v11319_v34 = vpop.f32.mrb[119].mxu0  ;;  %v11338_v38 = vpop.f32.mrb[135].mxu1 }
 0xd46   : > { %v4871_v46 = vsel %vm3472_vm7, %v4868_v50, %v4870_v27  ;;  %v4846_v4 = vsel %vm2675_vm1, %v4843_v59, %v4845_v61  ;;  %v4905_v41 = vsel %vm2675_vm1, %v4902_v19, %v4904_v15 }
 0xd47   : > { %4910 = vrot.lane.b32.xlu0 %v4903_v62, %s14089_s16  ;;  %4878 = vrot.lane.b32.xlu1 %v4871_v46, %s14094_s1  ;;  %v4702_v3 = vpop.f32.mrb[120].mxu0  ;;  %v4828_v25 = vpop.f32.mrb[136].mxu1 }
 0xd48   : > { %v4847_v51 = vrot.slane %v4702_v3, 1  ;;  %v4872_v42 = vrot.slane %v4702_v3, 2  ;;  %v11322_v16 = vpop.f32.mrb[121].mxu0  ;;  %v4906_v26 = vrot.slane %v4828_v25, 1  ;;  %v11341_v17 = vpop.f32.mrb[137].mxu1 }
 0xd4a   : > { %v4848_v52 = vsel %vm2675_vm1, %v4845_v61, %v4847_v51  ;;  %v4873_v10 = vsel %vm3472_vm7, %v4870_v27, %v4872_v42  ;;  %v4907_v24 = vsel %vm2675_vm1, %v4904_v15, %v4906_v26 }
 0xd4b   : > { %4853 = vrot.lane.b32.xlu0 %v4846_v4, %s14089_s16  ;;  %4855 = vrot.lane.b32.xlu1 %v4848_v52, %s14089_s16  ;;  %v4707_v23 = vpop.f32.mrb[122].mxu0  ;;  %v4833_v32 = vpop.f32.mrb[138].mxu1 }
 0xd4c   : > { %v4849_v56 = vrot.slane %v4707_v23, 1  ;;  %v4874_v36 = vrot.slane %v4707_v23, 2  ;;  %v11325_v55 = vpop.f32.mrb[123].mxu0  ;;  %v4908_v14 = vrot.slane %v4833_v32, 1  ;;  %v11344_v28 = vpop.f32.mrb[139].mxu1 }
 0xd4e   : > { %v4875_v12 = vsel %vm3472_vm7, %v4872_v42, %v4874_v36  ;;  %v4850_v13 = vsel %vm2675_vm1, %v4847_v51, %v4849_v56  ;;  %v4909_v6 = vsel %vm2675_vm1, %v4906_v26, %v4908_v14  ;;  %v5200_v56 = vld [vmem:[#allocation20 + $0x8] sm:$0xff]  ;;  %v5202_v36 = vld [vmem:[#allocation20 + $0x18] sm:$0xff] }
 0xd4f   : > { %4880 = vrot.lane.b32.xlu0 %v4873_v10, %s14094_s1  ;;  %4912 = vrot.lane.b32.xlu1 %v4905_v41, %s14089_s16 }
 0xd53   : > { %4882 = vrot.lane.b32.xlu1 %v4875_v12, %s14094_s1  ;;  %4857 = vrot.lane.b32.xlu0 %v4850_v13, %s14089_s16  ;;  %v11944_v13 = vpack.c.bf16 %v5202_v36, %v5200_v56 }
 0xd55   : > { %11945 = vmatprep.subr.bf16.mxu1 %v11944_v13 }
 0xd57   : > { %4916 = vrot.lane.b32.xlu1 %v4909_v6, %s14089_s16  ;;  %4914 = vrot.lane.b32.xlu0 %v4907_v24, %s14089_s16  ;;  %v5199_v6 = vld [vmem:[#allocation20] sm:$0xff] }
 0xdb5   : > { %v4877_v21 = vpop.permute.xlu1 %4876  ;;  %v4852_v37 = vpop.permute.xlu0 %4851 }
 0xdb6   : > { %v4863_v35 = vadd.f32 %v4852_v37, %v16405_v11 }
 0xdb8   : > { %v4888_v0 = vadd.f32 %v4877_v21, %v4863_v35  ;;  %v5201_v21 = vld [vmem:[#allocation20 + $0x10] sm:$0xff] }
 0xdb9   : > { %v4911_v59 = vpop.permute.xlu0 %4910  ;;  %v4879_v50 = vpop.permute.xlu1 %4878 }
 0xdba   : > { %v4892_v19 = vadd.f32 %v4888_v0, %v16407_v8  ;;  %v11946_v0 = vpack.c.bf16 %v5201_v21, %v5199_v6 }
 0xdbc   : > { %v4922_v58 = vadd.f32 %v4911_v59, %v4892_v19  ;;  %11947 = vmatpush1.bf16.msra.mxu1 %v11946_v0 }
 0xdbd   : > { %v4854_v22 = vpop.permute.xlu0 %4853  ;;  %v4856_v2 = vpop.permute.xlu1 %4855 }
 0xdbe   : > { %v16453_v33 = vadd.f32 %v10395_v20, %v4922_v58  ;;  %v4864_v44 = vadd.f32 %v4854_v22, %v16412_v39  ;;  %v4865_v29 = vadd.f32 %v4856_v2, %v16426_v40  ;;  %v5204_v58 = vld [vmem:[#allocation20 + $0x28] sm:$0xff]  ;;  %v5206_v22 = vld [vmem:[#allocation20 + $0x38] sm:$0xff] }
 0xdbf   : > { %v11948_v2 = vpack.c.bf16 %v5206_v22, %v5204_v58 }
 0xdc0   : > { %v4937_v49 = vmax.f32 %v16453_v33, 0.0  ;;  %v4889_v62 = vadd.f32 %v4879_v50, %v4864_v44  ;;  %v5203_v44 = vld [vmem:[#allocation20 + $0x20] sm:$0xff] }
 0xdc1   : > { %v4881_v7 = vpop.permute.xlu0 %4880  ;;  %v4913_v11 = vpop.permute.xlu1 %4912  ;;  %11949 = vmatprep.subr.bf16.mxu1 %v11948_v2 }
 0xdc2   : > { %4944 = vst.msk [vmem:[#allocation2 + $0x2] sm:$0xff] %vm4727_vm11, %v4937_v49  ;;  %v4890_v8 = vadd.f32 %v4881_v7, %v4865_v29  ;;  %v4893_v45 = vadd.f32 %v4889_v62, %v16414_v48  ;;  %v5205_v62 = vld [vmem:[#allocation20 + $0x30] sm:$0xff] }
 0xdc3   : > { %v11950_v7 = vpack.c.bf16 %v5205_v62, %v5203_v44 }
 0xdc4   : > { %v4923_v15 = vadd.f32 %v4913_v11, %v4893_v45  ;;  %v4894_v61 = vadd.f32 %v4890_v8, %v16422_v9 }
 0xdc5   : > { %v4883_v27 = vpop.permute.xlu1 %4882  ;;  %v4858_v34 = vpop.permute.xlu0 %4857  ;;  %11951 = vmatpush1.bf16.msra.mxu1 %v11950_v7 }
 0xdc6   : > { %v16463_v39 = vadd.f32 %v10395_v20, %v4923_v15  ;;  %v4866_v38 = vadd.f32 %v4858_v34, %v4702_v3  ;;  %11958 = vmatprep.subr.bf16.mxu1 %v14087_v1 }
 0xdc8   : > { %v4938_v63 = vmax.f32 %v16463_v39, 0.0  ;;  %v4891_v40 = vadd.f32 %v4883_v27, %v4866_v38 }
 0xdc9   : > { %v4948_v43 = vld [vmem:[#allocation2] sm:$0xff]  ;;  %v4915_v18 = vpop.permute.xlu0 %4914  ;;  %v4917_v9 = vpop.permute.xlu1 %4916 }
 0xdca   : > { %5188 = vst.msk [vmem:[#allocation2] sm:$0x3] %vm17332_vm8, %v14090_v30  ;;  %v4895_v48 = vadd.f32 %v4891_v40, %v4828_v25  ;;  %v4924_v46 = vadd.f32 %v4915_v18, %v4894_v61  ;;  %10396 = vmatmul.mubr.msk.f32.vlgmr.msra.gmra.mrb[124].mxu0 %vm4727_vm11, %v4948_v43  ;;  %vm17340_vm8 = vmmov %vm17335_vm2 }
 0xdcb   : > { %4945 = vst.msk [vmem:[#allocation2 + $0xa] sm:$0xff] %vm4727_vm11, %v4938_v63  ;;  %5046 = vmatprep.mubr.f32.mxu0 %v14090_v30 }
 0xdcc   : > { %v4925_v4 = vadd.f32 %v4917_v9, %v4895_v48  ;;  %v16473_v41 = vadd.f32 %v10395_v20, %v4924_v46 }
 0xdce   : > { %v16475_v31 = vadd.f32 %v10395_v20, %v4925_v4  ;;  %v4939_v3 = vmax.f32 %v16473_v41, 0.0 }
 0xdd0   : > { %v4940_v51 = vmax.f32 %v16475_v31, 0.0  ;;  %4946 = vst.msk [vmem:[#allocation2 + $0x12] sm:$0xff] %vm4727_vm11, %v4939_v3 }
 0xdd2   : > { %v4949_v25 = vld [vmem:[#allocation2 + $0x8] sm:$0xff]  ;;  %4947 = vst.msk [vmem:[#allocation2 + $0x1a] sm:$0xff] %vm4727_vm11, %v4940_v51 }
 0xdd3   : > { %10397 = vmatmul.mubr.msk.f32.gmra.mrb[126].mxu0 %vm4727_vm11, %v4949_v25 }
 0xdd4   : > { %5052 = vmatprep.mubr.f32.mxu0 %v14090_v30 }
 0xdd7   : > { %v4950_v42 = vld [vmem:[#allocation2 + $0x10] sm:$0xff] }
 0xdd8   : > { %10398 = vmatmul.mubr.msk.f32.gmra.mrb[128].mxu0 %vm4727_vm11, %v4950_v42 }
 0xdd9   : > { %5058 = vmatprep.mubr.f32.mxu0 %v14090_v30  ;;  %v4952_v16 = vld [vmem:[#allocation2 + $0x20] sm:$0xf]  ;;  %v4951_v26 = vld [vmem:[#allocation2 + $0x18] sm:$0xff] }
 0xdda   : > { %5189 = vst.msk [vmem:[#allocation2 + $0x22] sm:$0x3] %vm17333_vm12, %v14090_v30  ;;  %vm17341_vm12 = vmmov %vm17335_vm2 }
 0xddc   : > { %10399 = vmatmul.mubr.msk.f32.gmra.mrb[130].mxu0 %vm4727_vm11, %v4951_v26 }
 0xddd   : > { %5064 = vmatprep.mubr.f32.mxu0 %v14090_v30 }
 0xde0   : > { %10400 = vmatmul.mubr.msk.f32.gmra.mrb[132].mxu0 %vm4727_vm11, %v4952_v16 }
 0xde1   : > { %11353 = vmatprep.mubr.msk.f32.mxu0 %vm14091_vm6, %v14090_v30 }
 0xe9d   : > { %v16496_v17 = vpop.f32.mrb[124].mxu0 }
 0xe9e   : > { %v5044_v52 = vpop.f32.mrb[125].mxu0  ;;  %v5076_v10 = vrot.slane %v16496_v17, 1  ;;  %v5101_v24 = vrot.slane %v16496_v17, 2  ;;  %v5126_v23 = vrot.slane %v16496_v17, 3 }
 0xe9f   : > { %v5156_v37 = vrot.slane %v5044_v52, 4 }
 0xea6   : > { %v16501_v32 = vpop.f32.mrb[126].mxu0 }
 0xea7   : > { %v5077_v55 = vrot.slane %v16501_v32, 1  ;;  %v5102_v14 = vrot.slane %v16501_v32, 2  ;;  %v5127_v28 = vrot.slane %v16501_v32, 3  ;;  %v5050_v12 = vpop.f32.mrb[127].mxu0 }
 0xea8   : > { %v5157_v35 = vrot.slane %v5050_v12, 4 }
 0xea9   : > { %v5103_v59 = vsel %vm3472_vm7, %v5101_v24, %v5102_v14  ;;  %v5078_v50 = vsel %vm2675_vm1, %v5076_v10, %v5077_v55  ;;  %v5128_v19 = vsel %vm3877_vm0, %v5126_v23, %v5127_v28 }
 0xeaa   : > { %5110 = vrot.lane.b32.xlu1 %v5103_v59, %s14094_s1  ;;  %5085 = vrot.lane.b32.xlu0 %v5078_v50, %s14089_s16  ;;  %v5158_v20 = vsel %vm17334_vm5, %v5156_v37, %v5157_v35  ;;  %v10401_v59 = vld [vmem:[#allocation18] ss:$0 sm:$0xff]  ;;  %vm17343_vm5 = vmmov %vm17335_vm2 }
 0xeab   : > { %v5054_v29 = vpop.f32.mrb[128].mxu0 }
 0xeac   : > { %v5079_v11 = vrot.slane %v5054_v29, 1  ;;  %v5104_v8 = vrot.slane %v5054_v29, 2  ;;  %v5129_v45 = vrot.slane %v5054_v29, 3  ;;  %v5056_v15 = vpop.f32.mrb[129].mxu0 }
 0xead   : > { %v5159_v61 = vrot.slane %v5056_v15, 4 }
 0xeae   : > { %5135 = vrot.lane.b32.xlu1 %v5128_v19, %s14095_s2  ;;  %v5080_v27 = vsel %vm2675_vm1, %v5077_v55, %v5079_v11  ;;  %v5105_v34 = vsel %vm3472_vm7, %v5102_v14, %v5104_v8  ;;  %v5130_v38 = vsel %vm3877_vm0, %v5127_v28, %v5129_v45 }
 0xeaf   : > { %5087 = vrot.lane.b32.xlu0 %v5080_v27, %s14089_s16  ;;  %v5060_v40 = vpop.f32.mrb[130].mxu0  ;;  %v5160_v43 = vsel %vm17335_vm2, %v5157_v35, %v5159_v61 }
 0xeb0   : > { %v5081_v18 = vrot.slane %v5060_v40, 1  ;;  %v5106_v48 = vrot.slane %v5060_v40, 2  ;;  %v5131_v46 = vrot.slane %v5060_v40, 3  ;;  %v5062_v9 = vpop.f32.mrb[131].mxu0 }
 0xeb1   : > { %v5161_v4 = vrot.slane %v5062_v9, 4 }
 0xeb2   : > { %v5082_v25 = vsel %vm2675_vm1, %v5079_v11, %v5081_v18  ;;  %v5107_v42 = vsel %vm3472_vm7, %v5104_v8, %v5106_v48  ;;  %v5132_v16 = vsel %vm3877_vm0, %v5129_v45, %v5131_v46 }
 0xeb3   : > { %5112 = vrot.lane.b32.xlu0 %v5105_v34, %s14094_s1  ;;  %5089 = vrot.lane.b32.xlu1 %v5082_v25, %s14089_s16  ;;  %v5066_v26 = vpop.f32.mrb[132].mxu0  ;;  %v5162_v52 = vsel %vm17336_vm13, %v5159_v61, %v5161_v4  ;;  %vm17344_vm13 = vmmov %vm17335_vm2 }
 0xeb4   : > { %v5083_v10 = vrot.slane %v5066_v26, 1  ;;  %v5108_v24 = vrot.slane %v5066_v26, 2  ;;  %v5133_v23 = vrot.slane %v5066_v26, 3  ;;  %v5068_v56 = vpop.f32.mrb[133].mxu0 }
 0xeb5   : > { %v5163_v36 = vrot.slane %v5068_v56, 4 }
 0xeb6   : > { %v5084_v55 = vsel %vm2675_vm1, %v5081_v18, %v5083_v10  ;;  %v5134_v14 = vsel %vm3877_vm0, %v5131_v46, %v5133_v23  ;;  %v5109_v28 = vsel %vm3472_vm7, %v5106_v48, %v5108_v24 }
 0xeb7   : > { %v5164_v12 = vsel %vm17337_vm3, %v5161_v4, %v5163_v36  ;;  %5137 = vrot.lane.b32.xlu0 %v5130_v38, %s14095_s2  ;;  %5114 = vrot.lane.b32.xlu1 %v5107_v42, %s14094_s1  ;;  %vm17346_vm3 = vmmov %vm17335_vm2 }
 0xebb   : > { %5139 = vrot.lane.b32.xlu1 %v5132_v16, %s14095_s2  ;;  %5091 = vrot.lane.b32.xlu0 %v5084_v55, %s14089_s16 }
 0xebf   : > { %5141 = vrot.lane.b32.xlu1 %v5134_v14, %s14095_s2  ;;  %5116 = vrot.lane.b32.xlu0 %v5109_v28, %s14094_s1 }
 0xf1c   : > { %v5111_v13 = vpop.permute.xlu1 %5110  ;;  %v5086_v6 = vpop.permute.xlu0 %5085 }
 0xf1d   : > { %v5097_v21 = vadd.f32 %v5086_v6, %v16496_v17 }
 0xf1f   : > { %v5122_v37 = vadd.f32 %v5111_v13, %v5097_v21 }
 0xf20   : > { %v5136_v35 = vpop.permute.xlu1 %5135 }
 0xf21   : > { %v5147_v0 = vadd.f32 %v5136_v35, %v5122_v37  ;;  %v5088_v50 = vpop.permute.xlu0 %5087 }
 0xf22   : > { %v5098_v62 = vadd.f32 %v5088_v50, %v16501_v32 }
 0xf23   : > { %v5169_v19 = vadd.f32 %v5158_v20, %v5147_v0 }
 0xf25   : > { %v5180_v58 = vadd.f32 %v10401_v59, %v5169_v19  ;;  %v5113_v22 = vpop.permute.xlu0 %5112  ;;  %v5090_v2 = vpop.permute.xlu1 %5089 }
 0xf26   : > { %v5123_v7 = vadd.f32 %v5113_v22, %v5098_v62  ;;  %v5099_v45 = vadd.f32 %v5090_v2, %v5054_v29 }
 0xf27   : > { %v5184_v44 = vmax.f32 %v5180_v58, 0.0 }
 0xf29   : > { %5190 = vst.msk [vmem:[#allocation2 + $0x2] sm:$0xff] %vm4727_vm11, %v5184_v44  ;;  %v5138_v11 = vpop.permute.xlu0 %5137  ;;  %v5115_v8 = vpop.permute.xlu1 %5114 }
 0xf2a   : > { %v5148_v15 = vadd.f32 %v5138_v11, %v5123_v7  ;;  %v5124_v61 = vadd.f32 %v5115_v8, %v5099_v45 }
 0xf2c   : > { %v5170_v17 = vadd.f32 %v5160_v43, %v5148_v15 }
 0xf2d   : > { %v5140_v27 = vpop.permute.xlu1 %5139  ;;  %v5092_v34 = vpop.permute.xlu0 %5091 }
 0xf2e   : > { %v5181_v38 = vadd.f32 %v10401_v59, %v5170_v17  ;;  %v5149_v20 = vadd.f32 %v5140_v27, %v5124_v61  ;;  %v5100_v9 = vadd.f32 %v5092_v34, %v5060_v40 }
 0xf30   : > { %v5194_v18 = vld [vmem:[#allocation2] sm:$0xff]  ;;  %v5185_v48 = vmax.f32 %v5181_v38, 0.0  ;;  %v5171_v46 = vadd.f32 %v5162_v52, %v5149_v20 }
 0xf31   : > { %10402 = vmatmul.mubr.msk.f32.vlgmr.msra.gmra.mrb[140].mxu1 %vm4727_vm11, %v5194_v18  ;;  %5897 = vst.msk [vmem:[#allocation2] sm:$0x3] %vm5896_vm4, %v14090_v30  ;;  %v5117_v32 = vpop.permute.xlu0 %5116  ;;  %v5142_v4 = vpop.permute.xlu1 %5141 }
 0xf32   : > { %5292 = vmatprep.mubr.f32.mxu1 %v14090_v30  ;;  %5191 = vst.msk [vmem:[#allocation2 + $0xa] sm:$0xff] %vm4727_vm11, %v5185_v48  ;;  %v5182_v29 = vadd.f32 %v10401_v59, %v5171_v46  ;;  %v5125_v43 = vadd.f32 %v5117_v32, %v5100_v9 }
 0xf34   : > { %v5186_v25 = vmax.f32 %v5182_v29, 0.0  ;;  %v5150_v42 = vadd.f32 %v5142_v4, %v5125_v43 }
 0xf36   : > { %5192 = vst.msk [vmem:[#allocation2 + $0x12] sm:$0xff] %vm4727_vm11, %v5186_v25  ;;  %v5172_v16 = vadd.f32 %v5164_v12, %v5150_v42 }
 0xf38   : > { %v5183_v26 = vadd.f32 %v10401_v59, %v5172_v16 }
 0xf39   : > { %v5195_v40 = vld [vmem:[#allocation2 + $0x8] sm:$0xff] }
 0xf3a   : > { %v5187_v52 = vmax.f32 %v5183_v26, 0.0  ;;  %10403 = vmatmul.mubr.msk.f32.gmra.mrb[142].mxu1 %vm4727_vm11, %v5195_v40 }
 0xf3b   : > { %5298 = vmatprep.mubr.f32.mxu1 %v14090_v30 }
 0xf3c   : > { %5193 = vst.msk [vmem:[#allocation2 + $0x1a] sm:$0xff] %vm4727_vm11, %v5187_v52 }
 0xf3d   : > { %v5196_v10 = vld [vmem:[#allocation2 + $0x10] sm:$0xff] }
 0xf3e   : > { %10404 = vmatmul.mubr.msk.f32.gmra.mrb[144].mxu1 %vm4727_vm11, %v5196_v10  ;;  %5898 = vst.msk [vmem:[#allocation2 + $0x12] sm:$0x3] %vm5896_vm4, %v14090_v30 }
 0xf3f   : > { %5304 = vmatprep.mubr.f32.mxu1 %v14090_v30 }
 0xf43   : > { %v5197_v24 = vld [vmem:[#allocation2 + $0x18] sm:$0xff]  ;;  %v5198_v23 = vld [vmem:[#allocation2 + $0x20] sm:$0xf] }
 0xf44   : > { %10405 = vmatmul.mubr.msk.f32.gmra.mrb[146].mxu1 %vm4727_vm11, %v5197_v24  ;;  %v16612_v24 = vld [vmem:[#allocation23 + $0x8] sm:$0xff] }
 0xf45   : > { %5310 = vmatprep.mubr.f32.mxu1 %v14090_v30 }
 0xf48   : > { %10406 = vmatmul.mubr.msk.f32.gmra.mrb[148].mxu1 %vm4727_vm11, %v5198_v23  ;;  %v5711_v23 = vld [vmem:[#allocation23 + $0x10] sm:$0xff] }
 0xf49   : > { %11370 = vmatprep.mubr.msk.f32.mxu1 %vm14091_vm6, %v14090_v30 }
0x1004   : > { %v16556_v56 = vpop.f32.mrb[140].mxu1 }
0x1005   : > { %v5290_v36 = vpop.f32.mrb[141].mxu1  ;;  %v5322_v55 = vrot.slane %v16556_v56, 1  ;;  %v5347_v14 = vrot.slane %v16556_v56, 2  ;;  %v5372_v12 = vrot.slane %v16556_v56, 3 }
0x1006   : > { %v5402_v35 = vrot.slane %v5290_v36, 4  ;;  %v16614_v36 = vld [vmem:[#allocation23 + $0x20] sm:$0xff] }
0x100d   : > { %v16560_v28 = vpop.f32.mrb[142].mxu1 }
0x100e   : > { %v5323_v13 = vrot.slane %v16560_v28, 1  ;;  %v5348_v6 = vrot.slane %v16560_v28, 2  ;;  %v5373_v21 = vrot.slane %v16560_v28, 3  ;;  %v5296_v37 = vpop.f32.mrb[143].mxu1 }
0x100f   : > { %v5403_v0 = vrot.slane %v5296_v37, 4  ;;  %v16622_v37 = vld [vmem:[#allocation23 + $0x50] sm:$0xff] }
0x1010   : > { %v5324_v59 = vsel %vm2675_vm1, %v5322_v55, %v5323_v13  ;;  %v5349_v50 = vsel %vm3472_vm7, %v5347_v14, %v5348_v6  ;;  %v5374_v19 = vsel %vm3877_vm0, %v5372_v12, %v5373_v21  ;;  %v12982_v55 = vpack.i.bf16 %v5711_v23, %v16612_v24  ;;  %v5713_v14 = vld [vmem:[#allocation23 + $0x28] sm:$0xff]  ;;  %v16617_v12 = vld [vmem:[#allocation23 + $0x38] sm:$0xff] }
0x1011   : > { %v16569_v58 = vpop.f32.mrb[144].mxu1  ;;  %5331 = vrot.lane.b32.xlu0 %v5324_v59, %s14089_s16  ;;  %v16573_v22 = vsel %vm17338_vm15, %v5402_v35, %v5403_v0  ;;  %v5717_v35 = vld [vmem:[#allocation23 + $0x58] sm:$0xff]  ;;  %v11968_v59 = vpack.c.bf16 %v16622_v37, %v16617_v12 }
0x1012   : > { %v5325_v2 = vrot.slane %v16569_v58, 1  ;;  %v5350_v44 = vrot.slane %v16569_v58, 2  ;;  %v5375_v62 = vrot.slane %v16569_v58, 3  ;;  %v5302_v7 = vpop.f32.mrb[145].mxu1 }
0x1013   : > { %v5405_v11 = vrot.slane %v5302_v7, 4 }
0x1014   : > { %v5326_v8 = vsel %vm2675_vm1, %v5323_v13, %v5325_v2  ;;  %v5351_v45 = vsel %vm3472_vm7, %v5348_v6, %v5350_v44  ;;  %v5376_v15 = vsel %vm3877_vm0, %v5373_v21, %v5375_v62  ;;  %v5715_v13 = vld [vmem:[#allocation23 + $0x40] sm:$0xff]  ;;  %v11964_v6 = vpack.c.bf16 %v16614_v36, %v16612_v24 }
0x1015   : > { %5333 = vrot.lane.b32.xlu1 %v5326_v8, %s14089_s16  ;;  %5356 = vrot.lane.b32.xlu0 %v5349_v50, %s14094_s1  ;;  %v16584_v17 = vsel %vm17339_vm9, %v5403_v0, %v5405_v11  ;;  %v12987_v21 = vpack.i.bf16 %v5713_v14, %v16614_v36  ;;  %v12992_v0 = vpack.i.bf16 %v5715_v13, %v16617_v12 }
0x1016   : > { %v12997_v50 = vpack.i.bf16 %v5717_v35, %v16622_v37 }
0x1017   : > { %v16586_v61 = vpop.f32.mrb[146].mxu1 }
0x1018   : > { %v5327_v27 = vrot.slane %v16586_v61, 1  ;;  %v5352_v34 = vrot.slane %v16586_v61, 2  ;;  %v5377_v38 = vrot.slane %v16586_v61, 3  ;;  %v5308_v20 = vpop.f32.mrb[147].mxu1 }
0x1019   : > { %v5407_v18 = vrot.slane %v5308_v20, 4  ;;  %5358 = vrot.lane.b32.xlu1 %v5351_v45, %s14094_s1  ;;  %5381 = vrot.lane.b32.xlu0 %v5374_v19, %s14095_s2 }
0x101a   : > { %v5328_v48 = vsel %vm2675_vm1, %v5325_v2, %v5327_v27  ;;  %v5353_v46 = vsel %vm3472_vm7, %v5350_v44, %v5352_v34  ;;  %v5378_v9 = vsel %vm3877_vm0, %v5375_v62, %v5377_v38 }
0x101b   : > { %v5312_v32 = vpop.f32.mrb[148].mxu1  ;;  %v16597_v29 = vsel %vm17340_vm8, %v5405_v11, %v5407_v18 }
0x101c   : > { %v5329_v43 = vrot.slane %v5312_v32, 1  ;;  %v5354_v4 = vrot.slane %v5312_v32, 2  ;;  %v5379_v25 = vrot.slane %v5312_v32, 3  ;;  %v5314_v42 = vpop.f32.mrb[149].mxu1 }
0x101d   : > { %v5409_v16 = vrot.slane %v5314_v42, 4  ;;  %5383 = vrot.lane.b32.xlu1 %v5376_v15, %s14095_s2  ;;  %5335 = vrot.lane.b32.xlu0 %v5328_v48, %s14089_s16 }
0x101e   : > { %v5330_v26 = vsel %vm2675_vm1, %v5327_v27, %v5329_v43  ;;  %v5355_v40 = vsel %vm3472_vm7, %v5352_v34, %v5354_v4  ;;  %v5380_v52 = vsel %vm3877_vm0, %v5377_v38, %v5379_v25  ;;  %v10407_v27 = vld [vmem:[#allocation21] ss:$0 sm:$0xff] }
0x101f   : > { %v16605_v10 = vsel %vm17341_vm12, %v5407_v18, %v5409_v16 }
0x1021   : > { %5360 = vrot.lane.b32.xlu0 %v5353_v46, %s14094_s1  ;;  %5337 = vrot.lane.b32.xlu1 %v5330_v26, %s14089_s16  ;;  %s1666_s16 = sand.u32 1, %s13996_s7  }
0x1022   : > { %s10094_s12 = sshll.u32 %s1666_s16, 1 }
0x1023   : > { %s1668_s5 = scalar_lea.vmem [#allocation53], %s10094_s12 }
0x1025   : > { %5385 = vrot.lane.b32.xlu0 %v5378_v9, %s14095_s2  ;;  %5362 = vrot.lane.b32.xlu1 %v5355_v40, %s14094_s1 }
0x1029   : > { %5387 = vrot.lane.b32.xlu1 %v5380_v52, %s14095_s2  ;;  %12983 = vrot.lane.b32.xlu0 %v12982_v55, %s14094_s1  ;;  %s17157_s2 = scalar_lea.hbm %s14310_s4, %s10471_s14 }
0x102d   : > { %12988 = vrot.lane.b32.xlu1 %v12987_v21, %s14094_s1  ;;  %12993 = vrot.lane.b32.xlu0 %v12992_v0, %s14094_s1  ;;  %v5610_v0 = vld [vmem:[#allocation23] sm:$0xff] }
0x1031   : > { %12998 = vrot.lane.b32.xlu1 %v12997_v50, %s14094_s1  ;;  %v5612_v50 = vld [vmem:[#allocation23 + $0x18] sm:$0xff] }
0x1032   : > { %v11966_v41 = vpack.c.bf16 %v5612_v50, %v5610_v0 }
0x1083   : > { %v5332_v19 = vpop.permute.xlu0 %5331 }
0x1084   : > { %v5343_v62 = vadd.f32 %v5332_v19, %v16556_v56 }
0x1087   : > { %v5334_v2 = vpop.permute.xlu1 %5333  ;;  %v5357_v44 = vpop.permute.xlu0 %5356 }
0x1088   : > { %v5368_v7 = vadd.f32 %v5357_v44, %v5343_v62  ;;  %v5344_v45 = vadd.f32 %v5334_v2, %v16560_v28 }
0x108b   : > { %v5359_v11 = vpop.permute.xlu1 %5358  ;;  %v5382_v8 = vpop.permute.xlu0 %5381 }
0x108c   : > { %v5393_v15 = vadd.f32 %v5382_v8, %v5368_v7  ;;  %v5369_v34 = vadd.f32 %v5359_v11, %v5344_v45 }
0x108e   : > { %v5415_v38 = vadd.f32 %v16573_v22, %v5393_v15 }
0x108f   : > { %v5384_v20 = vpop.permute.xlu1 %5383  ;;  %v5336_v18 = vpop.permute.xlu0 %5335 }
0x1090   : > { %v5426_v48 = vadd.f32 %v10407_v27, %v5415_v38  ;;  %v5394_v46 = vadd.f32 %v5384_v20, %v5369_v34  ;;  %v5345_v25 = vadd.f32 %v5336_v18, %v16569_v58 }
0x1092   : > { %v5416_v9 = vadd.f32 %v16584_v17, %v5394_v46  ;;  %v5430_v56 = vadd.f32 %v5426_v48, %v4937_v49 }
0x1093   : > { %v5361_v32 = vpop.permute.xlu0 %5360  ;;  %v5338_v43 = vpop.permute.xlu1 %5337 }
0x1094   : > { %v5427_v4 = vadd.f32 %v10407_v27, %v5416_v9  ;;  %v5370_v42 = vadd.f32 %v5361_v32, %v5345_v25  ;;  %v5434_v26 = vmax.f32 %v5430_v56, 0.0  ;;  %v5346_v52 = vadd.f32 %v5338_v43, %v16586_v61  ;;  %v5905_v25 = vld [vmem:[#allocation26 + $0x8] sm:$0xff] }
0x1096   : > { %v5431_v28 = vadd.f32 %v5427_v4, %v4938_v63 }
0x1097   : > { %v5386_v16 = vpop.permute.xlu0 %5385  ;;  %v5363_v22 = vpop.permute.xlu1 %5362 }
0x1098   : > { %v5435_v40 = vmax.f32 %v5431_v28, 0.0  ;;  %v5395_v23 = vadd.f32 %v5386_v16, %v5370_v42  ;;  %v5371_v55 = vadd.f32 %v5363_v22, %v5346_v52  ;;  %v5908_v28 = vld [vmem:[#allocation26 + $0x20] sm:$0xff]  ;;  %v5907_v22 = vld [vmem:[#allocation26 + $0x18] sm:$0xff]  ;;  %v5909_v52 = vld [vmem:[#allocation26 + $0x28] sm:$0xff] }
0x1099   : > { %v11978_v42 = vpack.c.bf16 %v5908_v28, %v5905_v25  ;;  %v5904_v16 = vld [vmem:[#allocation26] sm:$0xff]  ;;  %v5927_v25 = vld [vmem:[#allocation26 + $0xb8] sm:$0xff] }
0x109a   : > { %v5417_v17 = vadd.f32 %v16597_v29, %v5395_v23  ;;  %v11953_v14 = vpack.c.bf16 %v5435_v40, %v5434_v26  ;;  %v11980_v26 = vpack.c.bf16 %v5907_v22, %v5904_v16  ;;  %v5906_v40 = vld [vmem:[#allocation26 + $0x10] sm:$0xff] }
0x109b   : > { %v5388_v33 = vpop.permute.xlu1 %5387  ;;  %v12984_v19 = vpop.permute.xlu0 %12983  ;;  %v11995_v23 = vpack.c.bf16 %v5909_v52, %v5906_v40 }
0x109c   : > { %v5428_v49 = vadd.f32 %v10407_v27, %v5417_v17  ;;  %v5396_v13 = vadd.f32 %v5388_v33, %v5371_v55  ;;  %11954 = vmatpush3.bf16.msra.mxu0 %v11953_v14  ;;  %11960 = vmatpush3.bf16.msra.mxu1 %v11953_v14  ;;  %v12986_v2 = vunpack.i.h.bf16 %v12984_v19  ;;  %v12985_v44 = vunpack.i.l.bf16 %v12984_v19  ;;  %v5911_v14 = vld [vmem:[#allocation26 + $0x38] sm:$0xff]  ;;  %v5914_v33 = vld [vmem:[#allocation26 + $0x50] sm:$0xff] }
0x109d   : > { %11955 = vmatprep.subr.bf16.mxu0 %v14087_v1  ;;  %11961 = vmatprep.subr.bf16.mxu1 %v14087_v1 }
0x109e   : > { %v5418_v39 = vadd.f32 %v16605_v10, %v5396_v13  ;;  %v5432_v63 = vadd.f32 %v5428_v49, %v4939_v3  ;;  %v5616_v10 = vld [vmem:[#allocation23 + $0x48] sm:$0xff]  ;;  %v5742_v7 = vsel %vm4393_vm14, %v12985_v44, %v12986_v2 }
0x109f   : > { %v12989_v62 = vpop.permute.xlu1 %12988  ;;  %v12994_v36 = vpop.permute.xlu0 %12993  ;;  %v5917_v44 = vld [vmem:[#allocation26 + $0x68] sm:$0xff] }
0x10a0   : > { %v5429_v58 = vadd.f32 %v10407_v27, %v5418_v39  ;;  %v5436_v29 = vmax.f32 %v5432_v63, 0.0  ;;  %v12991_v31 = vunpack.i.h.bf16 %v12989_v62  ;;  %v12990_v3 = vunpack.i.l.bf16 %v12989_v62  ;;  %v5910_v63 = vld [vmem:[#allocation26 + $0x30] sm:$0xff]  ;;  %v5920_v62 = vld [vmem:[#allocation26 + $0x80] sm:$0xff] }
0x10a1   : > { %v12996_v11 = vunpack.i.h.bf16 %v12994_v36  ;;  %v12995_v8 = vunpack.i.l.bf16 %v12994_v36  ;;  %v11982_v39 = vpack.c.bf16 %v5914_v33, %v5911_v14 }
0x10a2   : > { %v5433_v61 = vadd.f32 %v5429_v58, %v4940_v51  ;;  %v5614_v51 = vld [vmem:[#allocation23 + $0x30] sm:$0xff]  ;;  %v5743_v24 = vsel %vm4393_vm14, %v12990_v3, %v12991_v31 }
0x10a3   : > { %v12999_v45 = vpop.permute.xlu1 %12998  ;;  %v11970_v15 = vpack.c.bf16 %v5616_v10, %v5614_v51  ;;  %v5744_v38 = vsel %vm4393_vm14, %v12995_v8, %v12996_v11  ;;  %v5913_v58 = vld [vmem:[#allocation26 + $0x48] sm:$0xff]  ;;  %v11986_v10 = vpack.c.bf16 %v5920_v62, %v5917_v44  ;;  %v5918_v8 = vld [vmem:[#allocation26 + $0x70] sm:$0xff] }
0x10a4   : > { %v5437_v21 = vmax.f32 %v5433_v61, 0.0  ;;  %v13001_v27 = vunpack.i.h.bf16 %v12999_v45  ;;  %v13000_v34 = vunpack.i.l.bf16 %v12999_v45  ;;  %v11984_v61 = vpack.c.bf16 %v5913_v58, %v5910_v63  ;;  %v5921_v45 = vld [vmem:[#allocation26 + $0x88] sm:$0xff] }
0x10a5   : > { %v6175_v44 = vld [vmem:[#allocation29 + $0x20] sm:$0xff] }
0x10a6   : > { %v11956_v35 = vpack.c.bf16 %v5437_v21, %v5436_v29  ;;  %v5745_v20 = vsel %vm4393_vm14, %v13000_v34, %v13001_v27  ;;  %v5912_v29 = vld [vmem:[#allocation26 + $0x40] sm:$0xff]  ;;  %v5915_v21 = vld [vmem:[#allocation26 + $0x58] sm:$0xff]  ;;  %v12001_v34 = vpack.c.bf16 %v5921_v45, %v5918_v8 }
0x10a7   : > { %v11976_v18 = vpack.c.bf16 %v5745_v20, %v5744_v38  ;;  %v11998_v0 = vpack.c.bf16 %v5915_v21, %v5912_v29 }
0x10a8   : > { %11957 = vmatpush3.bf16.msra.mxu0 %v11956_v35  ;;  %11963 = vmatpush3.bf16.msra.mxu1 %v11956_v35 }
0x10a9   : > { %11965 = vmatprep.subr.bf16.mxu0 %v11964_v6  ;;  %11972 = vmatprep.subr.bf16.mxu1 %v14087_v1  ;;  %v11973_v6 = vpack.c.bf16 %v5743_v24, %v5742_v7  ;;  %v5916_v7 = vld [vmem:[#allocation26 + $0x60] sm:$0xff]  ;;  %v5919_v24 = vld [vmem:[#allocation26 + $0x78] sm:$0xff] }
0x10aa   : > { %v11988_v11 = vpack.c.bf16 %v5919_v24, %v5916_v7 }
0x10ab   : > { %11354 = vmatmul.mubr.msk.f32.vlgmr.msra.gmra.mrb[134].mxu0 %vm4727_vm11, %v16286_v53  ;;  %11371 = vmatmul.mubr.msk.f32.vlgmr.msra.gmra.mrb[150].mxu1 %vm4727_vm11, %v16292_v47 }
0x10ac   : > { %11356 = vmatprep.mubr.msk.f32.mxu0 %vm14091_vm6, %v14090_v30  ;;  %11373 = vmatprep.mubr.msk.f32.mxu1 %vm14091_vm6, %v14090_v30 }
0x10ad   : > { %11967 = vmatpush1.bf16.msra.mxu0 %v11966_v41  ;;  %11974 = vmatpush3.bf16.msra.mxu1 %v11973_v6 }
0x10ae   : > { %11969 = vmatprep.subr.bf16.mxu0 %v11968_v59  ;;  %11975 = vmatprep.subr.bf16.mxu1 %v14087_v1 }
0x10af   : > { %11357 = vmatmul.mubr.msk.f32.gmra.mrb[136].mxu0 %vm4727_vm11, %v16308_v57  ;;  %11374 = vmatmul.mubr.msk.f32.gmra.mrb[152].mxu1 %vm4727_vm11, %v16314_v54 }
0x10b0   : > { %11359 = vmatprep.mubr.msk.f32.mxu0 %vm14091_vm6, %v14090_v30  ;;  %11376 = vmatprep.mubr.msk.f32.mxu1 %vm14091_vm6, %v14090_v30 }
0x10b1   : > { %11971 = vmatpush1.bf16.msra.mxu0 %v11970_v15  ;;  %11977 = vmatpush3.bf16.msra.mxu1 %v11976_v18 }
0x10b2   : > { %11994 = vmatprep.subr.bf16.mxu1 %v14087_v1  ;;  %11979 = vmatprep.subr.bf16.mxu0 %v11978_v42 }
0x10b3   : > { %11360 = vmatmul.mubr.msk.f32.gmra.mrb[138].mxu0 %vm4727_vm11, %v16331_v60  ;;  %11377 = vmatmul.mubr.msk.f32.gmra.mrb[154].mxu1 %vm4727_vm11, %v16337_v5 }
0x10b4   : > { %5691 = vmatprep.mubr.f32.mxu0 %v14090_v30  ;;  %11387 = vmatprep.mubr.msk.f32.mxu1 %vm14091_vm6, %v14090_v30 }
0x117e   : > { %v5510_v12 = vpop.f32.mrb[134].mxu0  ;;  %v5596_v37 = vpop.f32.mrb[150].mxu1 }
0x117f   : > { %v11355_v59 = vpop.f32.mrb[135].mxu0  ;;  %10414 = vmatmul.mubr.msk.f32.vlgmr.msra.gmra.mrb[140].mxu0 %vm4727_vm11, %v5510_v12  ;;  %11388 = vmatmul.mubr.msk.f32.vlgmr.msra.gmra.mrb[156].mxu1 %vm4727_vm11, %v5596_v37  ;;  %v11372_v48 = vpop.f32.mrb[151].mxu1  ;;  %v5923_v12 = vld [vmem:[#allocation26 + $0x98] sm:$0xff]  ;;  %v5926_v37 = vld [vmem:[#allocation26 + $0xb0] sm:$0xff] }
0x1180   : > { %5697 = vmatprep.mubr.f32.mxu0 %v14090_v30  ;;  %11390 = vmatprep.mubr.msk.f32.mxu1 %vm14091_vm6, %v14090_v30 }
0x1181   : > { %11981 = vmatpush1.bf16.msra.mxu0 %v11980_v26  ;;  %11996 = vmatpush3.bf16.msra.mxu1 %v11995_v23 }
0x1182   : > { %v5515_v60 = vpop.f32.mrb[136].mxu0  ;;  %v5601_v5 = vpop.f32.mrb[152].mxu1  ;;  %11997 = vmatprep.subr.bf16.mxu1 %v14087_v1  ;;  %11983 = vmatprep.subr.bf16.mxu0 %v11982_v39 }
0x1183   : > { %v11358_v46 = vpop.f32.mrb[137].mxu0  ;;  %10415 = vmatmul.mubr.msk.f32.gmra.mrb[142].mxu0 %vm4727_vm11, %v5515_v60  ;;  %11391 = vmatmul.mubr.msk.f32.gmra.mrb[158].mxu1 %vm4727_vm11, %v5601_v5  ;;  %v11375_v9 = vpop.f32.mrb[153].mxu1 }
0x1184   : > { %5703 = vmatprep.mubr.f32.mxu0 %v14090_v30  ;;  %11393 = vmatprep.mubr.msk.f32.mxu1 %vm14091_vm6, %v14090_v30  ;;  %v11990_v46 = vpack.c.bf16 %v5926_v37, %v5923_v12  ;;  %v5922_v9 = vld [vmem:[#allocation26 + $0x90] sm:$0xff] }
0x1185   : > { %11985 = vmatpush1.bf16.msra.mxu0 %v11984_v61  ;;  %11999 = vmatpush3.bf16.msra.mxu1 %v11998_v0 }
0x1186   : > { %v5520_v32 = vpop.f32.mrb[138].mxu0  ;;  %v5606_v43 = vpop.f32.mrb[154].mxu1  ;;  %12000 = vmatprep.subr.bf16.mxu1 %v14087_v1  ;;  %11987 = vmatprep.subr.bf16.mxu0 %v11986_v10  ;;  %v6176_v10 = vld [vmem:[#allocation29 + $0x28] sm:$0xff] }
0x1187   : > { %v11361_v56 = vpop.f32.mrb[139].mxu0  ;;  %10416 = vmatmul.mubr.msk.f32.gmra.mrb[144].mxu0 %vm4727_vm11, %v5520_v32  ;;  %11394 = vmatmul.mubr.msk.f32.gmra.mrb[160].mxu1 %vm4727_vm11, %v5606_v43  ;;  %v11378_v4 = vpop.f32.mrb[155].mxu1  ;;  %v5925_v32 = vld [vmem:[#allocation26 + $0xa8] sm:$0xff]  ;;  %vm17342_vm11 = vmmov %vm17335_vm2 }
0x1188   : > { %6001 = vmatprep.mubr.f32.mxu0 %v14090_v30  ;;  %11412 = vmatprep.mubr.msk.f32.mxu1 %vm14091_vm6, %v14090_v30  ;;  %v11992_v56 = vpack.c.bf16 %v5925_v32, %v5922_v9  ;;  %v5924_v4 = vld [vmem:[#allocation26 + $0xa0] sm:$0xff] }
0x1189   : > { %11989 = vmatpush1.bf16.msra.mxu0 %v11988_v11  ;;  %12002 = vmatpush3.bf16.msra.mxu1 %v12001_v34  ;;  %v12004_v16 = vpack.c.bf16 %v5927_v25, %v5924_v4  ;;  %v6181_v11 = vld [vmem:[#allocation29 + $0x50] sm:$0xff]  ;;  %v6180_v34 = vld [vmem:[#allocation29 + $0x48] sm:$0xff]  ;;  %v6187_v9 = vld [vmem:[#allocation29 + $0x80] sm:$0xff] }
0x118a   : > { %12003 = vmatprep.subr.bf16.mxu1 %v14087_v1  ;;  %11991 = vmatprep.subr.bf16.mxu0 %v11990_v46  ;;  %v6184_v46 = vld [vmem:[#allocation29 + $0x68] sm:$0xff] }
0x118b   : > { %v12014_v25 = vpack.c.bf16 %v6187_v9, %v6184_v46 }
0x118d   : > { %11993 = vmatpush1.bf16.msra.mxu0 %v11992_v56  ;;  %12005 = vmatpush3.bf16.msra.mxu1 %v12004_v16 }
0x118e   : > { %12022 = vmatprep.subr.bf16.mxu1 %v14087_v1 }
0x1252   : > { %v16701_v17 = vpop.f32.mrb[140].mxu0  ;;  %v16703_v55 = vpop.f32.mrb[156].mxu1 }
0x1253   : > { %v5695_v49 = vpop.f32.mrb[141].mxu0  ;;  %v11389_v13 = vpop.f32.mrb[157].mxu1  ;;  %v5872_v35 = vrot.slane %v16703_v55, 1  ;;  %v5842_v50 = vrot.slane %v16701_v17, 1 }
0x1254   : > { %v5858_v36 = vrot.slane %v5695_v49, 2  ;;  %v10420_v49 = vld [vmem:[#allocation24] ss:$0 sm:$0xff] }
0x1256   : > { %v5699_v19 = vpop.f32.mrb[142].mxu0  ;;  %v16708_v2 = vpop.f32.mrb[158].mxu1 }
0x1257   : > { %v5843_v41 = vrot.slane %v5699_v19, 1  ;;  %v5701_v31 = vpop.f32.mrb[143].mxu0  ;;  %v5873_v3 = vrot.slane %v16708_v2, 1  ;;  %v11392_v51 = vpop.f32.mrb[159].mxu1 }
0x1258   : > { %v5859_v6 = vrot.slane %v5701_v31, 2  ;;  %v6174_v31 = vld [vmem:[#allocation29 + $0x18] sm:$0xff] }
0x1259   : > { %v5844_v15 = vsel %vm2675_vm1, %v5842_v50, %v5843_v41  ;;  %v5874_v27 = vsel %vm2675_vm1, %v5872_v35, %v5873_v3 }
0x125a   : > { %5847 = vrot.lane.b32.xlu0 %v5844_v15, %s14094_s1  ;;  %v5705_v38 = vpop.f32.mrb[144].mxu0  ;;  %v5835_v20 = vpop.f32.mrb[160].mxu1  ;;  %v5860_v18 = vsel %vm3472_vm7, %v5858_v36, %v5859_v6 }
0x125b   : > { %v5845_v59 = vrot.slane %v5705_v38, 1  ;;  %v5707_v48 = vpop.f32.mrb[145].mxu0  ;;  %v5875_v60 = vrot.slane %v5835_v20, 1  ;;  %v11395_v5 = vpop.f32.mrb[161].mxu1  ;;  %v6179_v20 = vld [vmem:[#allocation29 + $0x40] sm:$0xff] }
0x125c   : > { %v5861_v43 = vrot.slane %v5707_v48, 2 }
0x125d   : > { %v5846_v28 = vsel %vm2675_vm1, %v5843_v41, %v5845_v59  ;;  %v5876_v42 = vsel %vm2675_vm1, %v5873_v3, %v5875_v60  ;;  %v6171_v41 = vld [vmem:[#allocation29] sm:$0xff]  ;;  %v6173_v3 = vld [vmem:[#allocation29 + $0x10] sm:$0xff] }
0x125e   : > { %5877 = vrot.lane.b32.xlu0 %v5874_v27, %s14094_s1  ;;  %5849 = vrot.lane.b32.xlu1 %v5846_v28, %s14094_s1  ;;  %v5862_v22 = vsel %vm3472_vm7, %v5859_v6, %v5861_v43  ;;  %v12008_v51 = vpack.c.bf16 %v6174_v31, %v6171_v41  ;;  %v12023_v7 = vpack.c.bf16 %v6176_v10, %v6173_v3  ;;  %v6178_v6 = vld [vmem:[#allocation29 + $0x38] sm:$0xff]  ;;  %v6177_v27 = vld [vmem:[#allocation29 + $0x30] sm:$0xff]  ;;  %v6183_v28 = vld [vmem:[#allocation29 + $0x60] sm:$0xff] }
0x125f   : > { %v12010_v15 = vpack.c.bf16 %v6181_v11, %v6178_v6  ;;  %v12012_v38 = vpack.c.bf16 %v6180_v34, %v6177_v27  ;;  %v6192_v41 = vld [vmem:[#allocation29 + $0xa8] sm:$0xff]  ;;  %v6191_v10 = vld [vmem:[#allocation29 + $0xa0] sm:$0xff] }
0x1262   : > { %5879 = vrot.lane.b32.xlu1 %v5876_v42, %s14094_s1  ;;  %v6186_v42 = vld [vmem:[#allocation29 + $0x78] sm:$0xff] }
0x12cc   : > { %v5848_v26 = vpop.permute.xlu0 %5847 }
0x12cd   : > { %v5853_v40 = vadd.f32 %v5848_v26, %v16701_v17 }
0x12cf   : > { %v5865_v52 = vadd.f32 %v5860_v18, %v5853_v40  ;;  %v6182_v18 = vld [vmem:[#allocation29 + $0x58] sm:$0xff]  ;;  %v12016_v40 = vpack.c.bf16 %v6186_v42, %v6183_v28 }
0x12d0   : > { %v5850_v23 = vpop.permute.xlu1 %5849  ;;  %v5878_v13 = vpop.permute.xlu0 %5877  ;;  %v12026_v37 = vpack.c.bf16 %v6182_v18, %v6179_v20 }
0x12d1   : > { %v5867_v14 = vadd.f32 %v5865_v52, %v16703_v55  ;;  %v5854_v33 = vadd.f32 %v5850_v23, %v5699_v19  ;;  %v6185_v52 = vld [vmem:[#allocation29 + $0x70] sm:$0xff]  ;;  %v6188_v23 = vld [vmem:[#allocation29 + $0x88] sm:$0xff] }
0x12d3   : > { %v5883_v39 = vadd.f32 %v5878_v13, %v5867_v14  ;;  %v5866_v63 = vadd.f32 %v5862_v22, %v5854_v33 }
0x12d4   : > { %v5880_v29 = vpop.permute.xlu1 %5879 }
0x12d5   : > { %v16726_v58 = vadd.f32 %v10420_v49, %v5883_v39  ;;  %v5868_v61 = vadd.f32 %v5866_v63, %v16708_v2  ;;  %v6172_v2 = vld [vmem:[#allocation29 + $0x8] sm:$0xff] }
0x12d6   : > { %v12006_v62 = vpack.c.bf16 %v6175_v44, %v6172_v2 }
0x12d7   : > { %v5894_v21 = vmax.f32 %v16726_v58, 0.0  ;;  %v5884_v35 = vadd.f32 %v5880_v29, %v5868_v61  ;;  %v6190_v29 = vld [vmem:[#allocation29 + $0x98] sm:$0xff]  ;;  %v6591_v58 = vld [vmem:[#allocation32] sm:$0xff] }
0x12d8   : > { %12007 = vmatprep.subr.bf16.mxu0 %v12006_v62  ;;  %v6189_v62 = vld [vmem:[#allocation29 + $0x90] sm:$0xff] }
0x12d9   : > { %5899 = vst.msk [vmem:[#allocation2 + $0x2] sm:$0xff] %vm4393_vm14, %v5894_v21  ;;  %v16733_v17 = vadd.f32 %v10420_v49, %v5884_v35  ;;  %v12029_v49 = vpack.c.bf16 %v6188_v23, %v6185_v52  ;;  %v6193_v35 = vld [vmem:[#allocation29 + $0xb0] sm:$0xff] }
0x12da   : > { %v12018_v44 = vpack.c.bf16 %v6193_v35, %v6190_v29 }
0x12db   : > { %v5895_v55 = vmax.f32 %v16733_v17, 0.0 }
0x12dd   : > { %5900 = vst.msk [vmem:[#allocation2 + $0xa] sm:$0xff] %vm4393_vm14, %v5895_v55 }
0x12e0   : > { %v5901_v0 = vld [vmem:[#allocation2] sm:$0xff] }
0x12e1   : > { %10421 = vmatmul.mubr.msk.f32.vlgmr.msra.gmra.mrb[146].mxu0 %vm4393_vm14, %v5901_v0  ;;  %6164 = vst.msk [vmem:[#allocation2] sm:$0x3] %vm5896_vm4, %v14090_v30  ;;  %11413 = vmatmul.mubr.msk.f32.vlgmr.msra.gmra.mrb[162].mxu1 %vm4393_vm14, %v5901_v0 }
0x12e2   : > { %6007 = vmatprep.mubr.f32.mxu0 %v14090_v30  ;;  %11415 = vmatprep.mubr.msk.f32.mxu1 %vm14091_vm6, %v14090_v30 }
0x12e3   : > { %12009 = vmatpush1.bf16.msra.mxu0 %v12008_v51  ;;  %12024 = vmatpush3.bf16.msra.mxu1 %v12023_v7  ;;  %v12020_v51 = vpack.c.bf16 %v6192_v41, %v6189_v62  ;;  %v6194_v7 = vld [vmem:[#allocation29 + $0xb8] sm:$0xff] }
0x12e4   : > { %v5902_v50 = vld [vmem:[#allocation2 + $0x8] sm:$0xff]  ;;  %v5903_v19 = vld [vmem:[#allocation2 + $0x10] sm:$0xf]  ;;  %12025 = vmatprep.subr.bf16.mxu1 %v14087_v1  ;;  %12011 = vmatprep.subr.bf16.mxu0 %v12010_v15  ;;  %v12032_v11 = vpack.c.bf16 %v6194_v7, %v6191_v10 }
0x12e5   : > { %10422 = vmatmul.mubr.msk.f32.gmra.mrb[148].mxu0 %vm4393_vm14, %v5902_v50  ;;  %11416 = vmatmul.mubr.msk.f32.gmra.mrb[164].mxu1 %vm4393_vm14, %v5902_v50  ;;  %6165 = vst.msk [vmem:[#allocation2 + $0x12] sm:$0x3] %vm5896_vm4, %v14090_v30 }
0x12e6   : > { %6013 = vmatprep.mubr.f32.mxu0 %v14090_v30  ;;  %11418 = vmatprep.mubr.msk.f32.mxu1 %vm14091_vm6, %v14090_v30 }
0x12e7   : > { %12013 = vmatpush1.bf16.msra.mxu0 %v12012_v38  ;;  %12027 = vmatpush3.bf16.msra.mxu1 %v12026_v37  ;;  %v10427_v37 = vld [vmem:[#allocation27] ss:$0 sm:$0xff] }
0x12e8   : > { %12028 = vmatprep.subr.bf16.mxu1 %v14087_v1  ;;  %12015 = vmatprep.subr.bf16.mxu0 %v12014_v25 }
0x12e9   : > { %10423 = vmatmul.mubr.msk.f32.gmra.mrb[150].mxu0 %vm4393_vm14, %v5903_v19  ;;  %11419 = vmatmul.mubr.msk.f32.gmra.mrb[166].mxu1 %vm4393_vm14, %v5903_v19 }
0x12ea   : > { %6268 = vmatprep.mubr.f32.mxu0 %v14090_v30  ;;  %11437 = vmatprep.mubr.msk.f32.mxu1 %vm14091_vm6, %v14090_v30 }
0x12eb   : > { %12017 = vmatpush1.bf16.msra.mxu0 %v12016_v40  ;;  %12030 = vmatpush3.bf16.msra.mxu1 %v12029_v49 }
0x12ec   : > { %12031 = vmatprep.subr.bf16.mxu1 %v14087_v1  ;;  %12019 = vmatprep.subr.bf16.mxu0 %v12018_v44 }
0x12ef   : > { %12021 = vmatpush1.bf16.msra.mxu0 %v12020_v51  ;;  %12033 = vmatpush3.bf16.msra.mxu1 %v12032_v11 }
0x13b4   : > { %v16758_v24 = vpop.f32.mrb[146].mxu0  ;;  %v6086_v36 = vpop.f32.mrb[162].mxu1 }
0x13b5   : > { %v6005_v8 = vpop.f32.mrb[147].mxu0  ;;  %v11414_v45 = vpop.f32.mrb[163].mxu1  ;;  %v6103_v12 = vrot.slane %v16758_v24, 1  ;;  %v6144_v59 = vrot.slane %v6086_v36, 4 }
0x13b6   : > { %v6119_v48 = vrot.slane %v6005_v8, 2  ;;  %v6128_v16 = vrot.slane %v6005_v8, 3 }
0x13b8   : > { %v16762_v60 = vpop.f32.mrb[148].mxu0  ;;  %v6091_v5 = vpop.f32.mrb[164].mxu1 }
0x13b9   : > { %v6104_v32 = vrot.slane %v16762_v60, 1  ;;  %v6145_v43 = vrot.slane %v6091_v5, 4  ;;  %v6011_v56 = vpop.f32.mrb[149].mxu0  ;;  %v11417_v4 = vpop.f32.mrb[165].mxu1 }
0x13ba   : > { %v6120_v22 = vrot.slane %v6011_v56, 2  ;;  %v6129_v26 = vrot.slane %v6011_v56, 3 }
0x13bb   : > { %v6105_v14 = vsel %vm2675_vm1, %v6103_v12, %v6104_v32  ;;  %v6146_v33 = vsel %vm17342_vm11, %v6144_v59, %v6145_v43 }
0x13bc   : > { %v6096_v13 = vpop.f32.mrb[166].mxu1  ;;  %6108 = vrot.lane.b32.xlu0 %v6105_v14, %s14094_s1  ;;  %v6015_v39 = vpop.f32.mrb[150].mxu0  ;;  %v6130_v63 = vsel %vm3877_vm0, %v6128_v16, %v6129_v26  ;;  %v6121_v61 = vsel %vm3472_vm7, %v6119_v48, %v6120_v22 }
0x13bd   : > { %v6147_v0 = vrot.slane %v6096_v13, 4  ;;  %v6106_v50 = vrot.slane %v6015_v39, 1  ;;  %v6017_v19 = vpop.f32.mrb[151].mxu0  ;;  %v11420_v2 = vpop.f32.mrb[167].mxu1 }
0x13be   : > { %v6122_v31 = vrot.slane %v6017_v19, 2  ;;  %v6131_v3 = vrot.slane %v6017_v19, 3 }
0x13bf   : > { %v6107_v36 = vsel %vm2675_vm1, %v6104_v32, %v6106_v50  ;;  %v6148_v6 = vsel %vm17343_vm5, %v6145_v43, %v6147_v0 }
0x13c0   : > { %6133 = vrot.lane.b32.xlu0 %v6130_v63, %s14094_s1  ;;  %6110 = vrot.lane.b32.xlu1 %v6107_v36, %s14094_s1  ;;  %v6132_v8 = vsel %vm3877_vm0, %v6129_v26, %v6131_v3  ;;  %v6123_v45 = vsel %vm3472_vm7, %v6120_v22, %v6122_v31 }
0x13c4   : > { %6135 = vrot.lane.b32.xlu1 %v6132_v8, %s14094_s1  ;;  %v16823_v8 = vld [vmem:[#allocation32 + $0x8] sm:$0xff] }
0x142e   : > { %v6109_v15 = vpop.permute.xlu0 %6108 }
0x142f   : > { %v6114_v27 = vadd.f32 %v6109_v15, %v16758_v24  ;;  %v16825_v15 = vld [vmem:[#allocation32 + $0x20] sm:$0xff] }
0x1431   : > { %v6126_v34 = vadd.f32 %v6121_v61, %v6114_v27 }
0x1432   : > { %v6134_v38 = vpop.permute.xlu0 %6133  ;;  %v6111_v20 = vpop.permute.xlu1 %6110 }
0x1433   : > { %v6139_v18 = vadd.f32 %v6134_v38, %v6126_v34  ;;  %v6115_v12 = vadd.f32 %v6111_v20, %v16762_v60  ;;  %v6693_v34 = vld [vmem:[#allocation32 + $0x28] sm:$0xff]  ;;  %v16828_v38 = vld [vmem:[#allocation32 + $0x38] sm:$0xff]  ;;  %v6695_v20 = vld [vmem:[#allocation32 + $0x40] sm:$0xff] }
0x1435   : > { %v6151_v59 = vadd.f32 %v6146_v33, %v6139_v18  ;;  %v6127_v48 = vadd.f32 %v6123_v45, %v6115_v12  ;;  %v6691_v45 = vld [vmem:[#allocation32 + $0x10] sm:$0xff]  ;;  %v12042_v18 = vpack.c.bf16 %v16825_v15, %v16823_v8  ;;  %v13007_v12 = vpack.i.bf16 %v6693_v34, %v16825_v15 }
0x1436   : > { %v6136_v5 = vpop.permute.xlu1 %6135  ;;  %v13002_v27 = vpack.i.bf16 %v6691_v45, %v16823_v8  ;;  %v6601_v8 = vld [vmem:[#allocation32 + $0x78] sm:$0xff] }
0x1437   : > { %v6160_v46 = vadd.f32 %v10427_v37, %v6151_v59  ;;  %v6140_v9 = vadd.f32 %v6136_v5, %v6127_v48  ;;  %v6697_v59 = vld [vmem:[#allocation32 + $0x58] sm:$0xff]  ;;  %v13012_v48 = vpack.i.bf16 %v6695_v20, %v16828_v38 }
0x1439   : > { %v6162_v32 = vmax.f32 %v6160_v46, 0.0  ;;  %v6152_v43 = vadd.f32 %v6148_v6, %v6140_v9  ;;  %v16841_v9 = vld [vmem:[#allocation32 + $0x68] sm:$0xff] }
0x143b   : > { %6166 = vst.msk [vmem:[#allocation2 + $0x2] sm:$0xff] %vm4393_vm14, %v6162_v32  ;;  %v6161_v56 = vadd.f32 %v10427_v37, %v6152_v43  ;;  %v16833_v37 = vld [vmem:[#allocation32 + $0x50] sm:$0xff]  ;;  %v16843_v43 = vld [vmem:[#allocation32 + $0x80] sm:$0xff] }
0x143c   : > { %v12046_v5 = vpack.c.bf16 %v16833_v37, %v16828_v38  ;;  %v13017_v46 = vpack.i.bf16 %v6697_v59, %v16833_v37  ;;  %v6699_v32 = vld [vmem:[#allocation32 + $0x70] sm:$0xff] }
0x143d   : > { %v6163_v4 = vmax.f32 %v6161_v56, 0.0  ;;  %v6701_v56 = vld [vmem:[#allocation32 + $0x88] sm:$0xff] }
0x143f   : > { %6167 = vst.msk [vmem:[#allocation2 + $0xa] sm:$0xff] %vm4393_vm14, %v6163_v4  ;;  %v12050_v4 = vpack.c.bf16 %v16843_v43, %v16841_v9 }
0x1442   : > { %v6168_v24 = vld [vmem:[#allocation2] sm:$0xff] }
0x1443   : > { %10428 = vmatmul.mubr.msk.f32.vlgmr.msra.gmra.mrb[152].mxu0 %vm4393_vm14, %v6168_v24  ;;  %6886 = vst.msk [vmem:[#allocation2] sm:$0x3] %vm5896_vm4, %v14090_v30  ;;  %11438 = vmatmul.mubr.msk.f32.vlgmr.msra.gmra.mrb[168].mxu1 %vm4393_vm14, %v6168_v24  ;;  %v13022_v24 = vpack.i.bf16 %v6699_v32, %v16841_v9 }
0x1444   : > { %6274 = vmatprep.mubr.f32.mxu0 %v14090_v30  ;;  %11440 = vmatprep.mubr.msk.f32.mxu1 %vm14091_vm6, %v14090_v30 }
0x1446   : > { %v6169_v60 = vld [vmem:[#allocation2 + $0x8] sm:$0xff]  ;;  %v6170_v25 = vld [vmem:[#allocation2 + $0x10] sm:$0xf] }
0x1447   : > { %10429 = vmatmul.mubr.msk.f32.gmra.mrb[154].mxu0 %vm4393_vm14, %v6169_v60  ;;  %6887 = vst.msk [vmem:[#allocation2 + $0xa] sm:$0x3] %vm5896_vm4, %v14090_v30  ;;  %11441 = vmatmul.mubr.msk.f32.gmra.mrb[170].mxu1 %vm4393_vm14, %v6169_v60  ;;  %v13027_v60 = vpack.i.bf16 %v6701_v56, %v16843_v43 }
0x1448   : > { %6280 = vmatprep.mubr.f32.mxu0 %v14090_v30  ;;  %11443 = vmatprep.mubr.msk.f32.mxu1 %vm14091_vm6, %v14090_v30 }
0x144b   : > { %10430 = vmatmul.mubr.msk.f32.gmra.mrb[156].mxu0 %vm4393_vm14, %v6170_v25  ;;  %11444 = vmatmul.mubr.msk.f32.gmra.mrb[172].mxu1 %vm4393_vm14, %v6170_v25  ;;  %v16851_v25 = vld [vmem:[#allocation32 + $0x98] sm:$0xff] }
0x144c   : > { %11450 = vmatprep.mubr.msk.f32.mxu0 %vm3131_vm10, %v16286_v53  ;;  %11457 = vmatprep.mubr.msk.f32.mxu1 %vm3131_vm10, %v16292_v47 }
0x1516   : > { %v16803_v28 = vpop.f32.mrb[152].mxu0  ;;  %v6353_v42 = vpop.f32.mrb[168].mxu1 }
0x1517   : > { %v6272_v16 = vpop.f32.mrb[153].mxu0  ;;  %v11439_v22 = vpop.f32.mrb[169].mxu1  ;;  %v6370_v52 = vrot.slane %v16803_v28, 1  ;;  %v6411_v23 = vrot.slane %v6353_v42, 4  ;;  %v6703_v42 = vld [vmem:[#allocation32 + $0xa0] sm:$0xff] }
0x1518   : > { %v6386_v39 = vrot.slane %v6272_v16, 2  ;;  %v6395_v63 = vrot.slane %v6272_v16, 3  ;;  %v16853_v16 = vld [vmem:[#allocation32 + $0xb0] sm:$0xff]  ;;  %v6705_v22 = vld [vmem:[#allocation32 + $0xb8] sm:$0xff] }
0x151a   : > { %v16805_v26 = vpop.f32.mrb[154].mxu0  ;;  %v6358_v40 = vpop.f32.mrb[170].mxu1 }
0x151b   : > { %v6371_v14 = vrot.slane %v16805_v26, 1  ;;  %v6412_v33 = vrot.slane %v6358_v40, 4  ;;  %v6278_v49 = vpop.f32.mrb[155].mxu0  ;;  %v11442_v13 = vpop.f32.mrb[171].mxu1  ;;  %v12054_v40 = vpack.c.bf16 %v16853_v16, %v16851_v25 }
0x151c   : > { %v6387_v61 = vrot.slane %v6278_v49, 2  ;;  %v6396_v29 = vrot.slane %v6278_v49, 3 }
0x151d   : > { %v6372_v35 = vsel %vm2675_vm1, %v6370_v52, %v6371_v14  ;;  %v16811_v0 = vsel %vm17335_vm2, %v6411_v23, %v6412_v33  ;;  %v13032_v52 = vpack.i.bf16 %v6703_v42, %v16851_v25  ;;  %v13037_v23 = vpack.i.bf16 %v6705_v22, %v16853_v16 }
0x151e   : > { %v6363_v50 = vpop.f32.mrb[172].mxu1  ;;  %6375 = vrot.lane.b32.xlu0 %v6372_v35, %s14094_s1  ;;  %v6282_v19 = vpop.f32.mrb[156].mxu0  ;;  %v6397_v2 = vsel %vm3877_vm0, %v6395_v63, %v6396_v29  ;;  %v6388_v44 = vsel %vm3472_vm7, %v6386_v39, %v6387_v61 }
0x151f   : > { %v6414_v62 = vrot.slane %v6363_v50, 4  ;;  %v6373_v41 = vrot.slane %v6282_v19, 1  ;;  %v6284_v31 = vpop.f32.mrb[157].mxu0  ;;  %v11445_v3 = vpop.f32.mrb[173].mxu1 }
0x1520   : > { %v6389_v51 = vrot.slane %v6284_v31, 2  ;;  %v6398_v10 = vrot.slane %v6284_v31, 3 }
0x1521   : > { %v6374_v7 = vsel %vm2675_vm1, %v6371_v14, %v6373_v41  ;;  %v6415_v36 = vsel %vm17344_vm13, %v6412_v33, %v6414_v62 }
0x1522   : > { %6400 = vrot.lane.b32.xlu0 %v6397_v2, %s14094_s1  ;;  %6377 = vrot.lane.b32.xlu1 %v6374_v7, %s14094_s1  ;;  %v6399_v6 = vsel %vm3877_vm0, %v6396_v29, %v6398_v10  ;;  %v6390_v11 = vsel %vm3472_vm7, %v6387_v61, %v6389_v51  ;;  %v10434_v29 = vld [vmem:[#allocation30] ss:$0 sm:$0xff] }
0x1526   : > { %6402 = vrot.lane.b32.xlu1 %v6399_v6, %s14094_s1  ;;  %13003 = vrot.lane.b32.xlu0 %v13002_v27, %s14094_s1 }
0x152a   : > { %13008 = vrot.lane.b32.xlu1 %v13007_v12, %s14094_s1  ;;  %13013 = vrot.lane.b32.xlu0 %v13012_v48, %s14094_s1 }
0x152e   : > { %13018 = vrot.lane.b32.xlu1 %v13017_v46, %s14094_s1  ;;  %13023 = vrot.lane.b32.xlu0 %v13022_v24, %s14094_s1  ;;  %v6595_v24 = vld [vmem:[#allocation32 + $0x30] sm:$0xff] }
0x1532   : > { %13028 = vrot.lane.b32.xlu1 %v13027_v60, %s14094_s1  ;;  %13033 = vrot.lane.b32.xlu0 %v13032_v52, %s14094_s1  ;;  %v6597_v60 = vld [vmem:[#allocation32 + $0x48] sm:$0xff]  ;;  %v6599_v52 = vld [vmem:[#allocation32 + $0x60] sm:$0xff] }
0x1533   : > { %v12048_v22 = vpack.c.bf16 %v6597_v60, %v6595_v24  ;;  %v12052_v15 = vpack.c.bf16 %v6601_v8, %v6599_v52  ;;  %v6903_v52 = vld [vmem:[#allocation35 + $0x60] sm:$0xff]  ;;  %v6906_v8 = vld [vmem:[#allocation35 + $0x78] sm:$0xff] }
0x1536   : > { %13038 = vrot.lane.b32.xlu1 %v13037_v23, %s14094_s1 }
0x1590   : > { %v6376_v14 = vpop.permute.xlu0 %6375 }
0x1591   : > { %v6381_v33 = vadd.f32 %v6376_v14, %v16803_v28 }
0x1593   : > { %v6393_v49 = vadd.f32 %v6388_v44, %v6381_v33 }
0x1594   : > { %v6401_v13 = vpop.permute.xlu0 %6400  ;;  %v6378_v39 = vpop.permute.xlu1 %6377 }
0x1595   : > { %v6406_v63 = vadd.f32 %v6401_v13, %v6393_v49  ;;  %v6382_v61 = vadd.f32 %v6378_v39, %v16805_v26 }
0x1597   : > { %v6418_v35 = vadd.f32 %v16811_v0, %v6406_v63  ;;  %v6394_v50 = vadd.f32 %v6390_v11, %v6382_v61 }
0x1598   : > { %v6403_v19 = vpop.permute.xlu1 %6402  ;;  %v13004_v51 = vpop.permute.xlu0 %13003 }
0x1599   : > { %v6427_v2 = vadd.f32 %v10434_v29, %v6418_v35  ;;  %v6407_v62 = vadd.f32 %v6403_v19, %v6394_v50  ;;  %v13006_v44 = vunpack.i.h.bf16 %v13004_v51  ;;  %v13005_v10 = vunpack.i.l.bf16 %v13004_v51  ;;  %v6896_v51 = vld [vmem:[#allocation35 + $0x28] sm:$0xff] }
0x159b   : > { %v6419_v41 = vadd.f32 %v6415_v36, %v6407_v62  ;;  %v6429_v31 = vadd.f32 %v6427_v2, %v5894_v21  ;;  %v6754_v11 = vsel %vm4393_vm14, %v13005_v10, %v13006_v44  ;;  %v6593_v21 = vld [vmem:[#allocation32 + $0x18] sm:$0xff]  ;;  %v6892_v62 = vld [vmem:[#allocation35 + $0x8] sm:$0xff]  ;;  %v6891_v44 = vld [vmem:[#allocation35] sm:$0xff] }
0x159c   : > { %v13009_v7 = vpop.permute.xlu1 %13008  ;;  %v13014_v27 = vpop.permute.xlu0 %13013  ;;  %v12044_v32 = vpack.c.bf16 %v6593_v21, %v6591_v58  ;;  %v6894_v10 = vld [vmem:[#allocation35 + $0x18] sm:$0xff]  ;;  %v6899_v58 = vld [vmem:[#allocation35 + $0x40] sm:$0xff] }
0x159d   : > { %v6428_v3 = vadd.f32 %v10434_v29, %v6419_v41  ;;  %v13011_v26 = vunpack.i.h.bf16 %v13009_v7  ;;  %v13010_v6 = vunpack.i.l.bf16 %v13009_v7  ;;  %v6431_v45 = vmax.f32 %v6429_v31, 0.0  ;;  %v6895_v41 = vld [vmem:[#allocation35 + $0x20] sm:$0xff] }
0x159e   : > { %v13016_v20 = vunpack.i.h.bf16 %v13014_v27  ;;  %v13015_v12 = vunpack.i.l.bf16 %v13014_v27  ;;  %v12074_v31 = vpack.c.bf16 %v6895_v41, %v6892_v62  ;;  %v12076_v7 = vpack.c.bf16 %v6894_v10, %v6891_v44  ;;  %v7120_v44 = vld [vmem:[#allocation38 + $0x18] sm:$0xff]  ;;  %v7119_v10 = vld [vmem:[#allocation38 + $0x10] sm:$0xff] }
0x159f   : > { %v6430_v28 = vadd.f32 %v6428_v3, %v5895_v55  ;;  %v6755_v36 = vsel %vm4393_vm14, %v13010_v6, %v13011_v26  ;;  %v6893_v3 = vld [vmem:[#allocation35 + $0x10] sm:$0xff]  ;;  %v6898_v6 = vld [vmem:[#allocation35 + $0x38] sm:$0xff] }
0x15a0   : > { %v13019_v59 = vpop.permute.xlu1 %13018  ;;  %v12058_v17 = vpack.c.bf16 %v6755_v36, %v6754_v11  ;;  %v6756_v46 = vsel %vm4393_vm14, %v13015_v12, %v13016_v20  ;;  %v13024_v38 = vpop.permute.xlu0 %13023  ;;  %v6897_v36 = vld [vmem:[#allocation35 + $0x30] sm:$0xff] }
0x15a1   : > { %v6432_v0 = vmax.f32 %v6430_v28, 0.0  ;;  %v13021_v55 = vunpack.i.h.bf16 %v13019_v59  ;;  %v13020_v48 = vunpack.i.l.bf16 %v13019_v59  ;;  %v13025_v23 = vunpack.i.l.bf16 %v13024_v38  ;;  %v6902_v59 = vld [vmem:[#allocation35 + $0x58] sm:$0xff] }
0x15a2   : > { %v12090_v28 = vpack.c.bf16 %v6896_v51, %v6893_v3  ;;  %v7121_v3 = vld [vmem:[#allocation38 + $0x20] sm:$0xff] }
0x15a3   : > { %v12034_v34 = vpack.c.bf16 %v6432_v0, %v6431_v45  ;;  %v6757_v56 = vsel %vm4393_vm14, %v13020_v48, %v13021_v55  ;;  %v6901_v45 = vld [vmem:[#allocation35 + $0x50] sm:$0xff]  ;;  %v12094_v55 = vpack.c.bf16 %v6902_v59, %v6899_v58 }
0x15a4   : > { %v12062_v42 = vpack.c.bf16 %v6757_v56, %v6756_v46  ;;  %v13029_v37 = vpop.permute.xlu1 %13028  ;;  %v13034_v43 = vpop.permute.xlu0 %13033  ;;  %v12078_v27 = vpack.c.bf16 %v6901_v45, %v6898_v6  ;;  %v6904_v46 = vld [vmem:[#allocation35 + $0x68] sm:$0xff]  ;;  %v7123_v58 = vld [vmem:[#allocation38 + $0x30] sm:$0xff] }
0x15a5   : > { %12035 = vmatprep.subr.bf16.mxu0 %v12034_v34  ;;  %12039 = vmatprep.subr.bf16.mxu1 %v12034_v34  ;;  %v13031_v14 = vunpack.i.h.bf16 %v13029_v37  ;;  %v13030_v33 = vunpack.i.l.bf16 %v13029_v37  ;;  %v13036_v39 = vunpack.i.h.bf16 %v13034_v43  ;;  %v13035_v63 = vunpack.i.l.bf16 %v13034_v43  ;;  %v6912_v43 = vld [vmem:[#allocation35 + $0xa8] sm:$0xff] }
0x15a6   : > { %12037 = vmatpush3.bf16.msra.mxu0 %v12034_v34  ;;  %12041 = vmatpush3.bf16.msra.mxu1 %v12034_v34  ;;  %v6900_v34 = vld [vmem:[#allocation35 + $0x48] sm:$0xff] }
0x15a7   : > { %12043 = vmatprep.subr.bf16.mxu0 %v12042_v18  ;;  %12059 = vmatprep.subr.bf16.mxu1 %v12058_v17  ;;  %v6759_v9 = vsel %vm4393_vm14, %v13030_v33, %v13031_v14  ;;  %v6760_v25 = vsel %vm4393_vm14, %v13035_v63, %v13036_v39  ;;  %v12080_v12 = vpack.c.bf16 %v6900_v34, %v6897_v36  ;;  %v6913_v14 = vld [vmem:[#allocation35 + $0xb0] sm:$0xff] }
0x15a8   : > { %v6909_v33 = vld [vmem:[#allocation35 + $0x90] sm:$0xff] }
0x15a9   : > { %11451 = vmatmul.mubr.msk.f32.vlgmr.msra.gmra.mrb[158].mxu0 %vm3131_vm10, %v16308_v57  ;;  %11458 = vmatmul.mubr.msk.f32.vlgmr.msra.gmra.mrb[174].mxu1 %vm3131_vm10, %v16314_v54  ;;  %v6603_v57 = vld [vmem:[#allocation32 + $0x90] sm:$0xff]  ;;  %v6605_v54 = vld [vmem:[#allocation32 + $0xa8] sm:$0xff]  ;;  %v12088_v39 = vpack.c.bf16 %v6912_v43, %v6909_v33  ;;  %vm17345_vm10 = vmmov %vm17335_vm2 }
0x15aa   : > { %12045 = vmatpush1.bf16.msra.mxu0 %v12044_v32  ;;  %12061 = vmatpush3.bf16.msra.mxu1 %v12058_v17  ;;  %v12056_v18 = vpack.c.bf16 %v6605_v54, %v6603_v57  ;;  %v6907_v32 = vld [vmem:[#allocation35 + $0x80] sm:$0xff]  ;;  %v7139_v43 = vld [vmem:[#allocation38 + $0xb0] sm:$0xff] }
0x15ab   : > { %12047 = vmatprep.subr.bf16.mxu0 %v12046_v5  ;;  %12063 = vmatprep.subr.bf16.mxu1 %v12062_v42  ;;  %v13026_v5 = vunpack.i.h.bf16 %v13024_v38  ;;  %v6908_v38 = vld [vmem:[#allocation35 + $0x88] sm:$0xff] }
0x15ac   : > { %6677 = vmatprep.mubr.f32.mxu0 %v14090_v30 }
0x15ad   : > { %v6758_v49 = vsel %vm4393_vm14, %v13025_v23, %v13026_v5  ;;  %v6910_v23 = vld [vmem:[#allocation35 + $0x98] sm:$0xff] }
0x15ae   : > { %12049 = vmatpush1.bf16.msra.mxu0 %v12048_v22  ;;  %12065 = vmatpush3.bf16.msra.mxu1 %v12062_v42  ;;  %v12066_v13 = vpack.c.bf16 %v6759_v9, %v6758_v49  ;;  %v12082_v22 = vpack.c.bf16 %v6907_v32, %v6904_v46  ;;  %v12086_v9 = vpack.c.bf16 %v6913_v14, %v6910_v23  ;;  %v7134_v14 = vld [vmem:[#allocation38 + $0x88] sm:$0xff] }
0x15af   : > { %12051 = vmatprep.subr.bf16.mxu0 %v12050_v4  ;;  %v13039_v4 = vpop.permute.xlu1 %13038 }
0x15b0   : > { %v13041_v61 = vunpack.i.h.bf16 %v13039_v4  ;;  %v13040_v29 = vunpack.i.l.bf16 %v13039_v4  ;;  %12067 = vmatprep.subr.bf16.mxu1 %v12066_v13  ;;  %v6911_v4 = vld [vmem:[#allocation35 + $0xa0] sm:$0xff] }
0x15b2   : > { %12053 = vmatpush1.bf16.msra.mxu0 %v12052_v15  ;;  %12069 = vmatpush3.bf16.msra.mxu1 %v12066_v13  ;;  %v6761_v16 = vsel %vm4393_vm14, %v13040_v29, %v13041_v61  ;;  %v6905_v15 = vld [vmem:[#allocation35 + $0x70] sm:$0xff]  ;;  %v6914_v13 = vld [vmem:[#allocation35 + $0xb8] sm:$0xff] }
0x15b3   : > { %12055 = vmatprep.subr.bf16.mxu0 %v12054_v40  ;;  %v12070_v40 = vpack.c.bf16 %v6761_v16, %v6760_v25  ;;  %v12098_v5 = vpack.c.bf16 %v6908_v38, %v6905_v15  ;;  %v12102_v63 = vpack.c.bf16 %v6914_v13, %v6911_v4  ;;  %v7135_v4 = vld [vmem:[#allocation38 + $0x90] sm:$0xff] }
0x15b5   : > { %12071 = vmatprep.subr.bf16.mxu1 %v12070_v40 }
0x15b6   : > { %12057 = vmatpush1.bf16.msra.mxu0 %v12056_v18  ;;  %12073 = vmatpush3.bf16.msra.mxu1 %v12070_v40  ;;  %v12084_v18 = vpack.c.bf16 %v6906_v8, %v6903_v52  ;;  %v10443_v40 = vld [vmem:[#allocation33] ss:$0 sm:$0xff] }
0x15b7   : > { %12075 = vmatprep.subr.bf16.mxu0 %v12074_v31  ;;  %12091 = vmatprep.subr.bf16.mxu1 %v12090_v28  ;;  %v7118_v31 = vld [vmem:[#allocation38 + $0x8] sm:$0xff] }
0x15b8   : > { %v12106_v51 = vpack.c.bf16 %v7121_v3, %v7118_v31  ;;  %v10448_v3 = vld [vmem:[#allocation36] ss:$0 sm:$0xff] }
0x167c   : > { %v11452_v35 = vpop.f32.mrb[158].mxu0  ;;  %v11459_v50 = vpop.f32.mrb[174].mxu1 }
0x167d   : > { %v6503_v19 = vpop.f32.mrb[159].mxu0  ;;  %v6582_v2 = vpop.f32.mrb[175].mxu1 }
0x167e   : > { %10439 = vmatmul.mubr.msk.f32.vlgmr.msra.gmra.mrb[160].mxu0 %vm4393_vm14, %v6503_v19  ;;  %11476 = vmatprep.mubr.msk.f32.mxu1 %vm4393_vm14, %v6582_v2 }
0x167f   : > { %6683 = vmatprep.mubr.f32.mxu0 %v14090_v30  ;;  %11477 = vmatmul.mubr.msk.f32.vlgmr.msra.gmra.mrb[176].mxu1 %vm4393_vm14, %v11459_v50 }
0x1680   : > { %12077 = vmatpush1.bf16.msra.mxu0 %v12076_v7  ;;  %12093 = vmatpush3.bf16.msra.mxu1 %v12090_v28  ;;  %v7117_v28 = vld [vmem:[#allocation38] sm:$0xff] }
0x1681   : > { %12079 = vmatprep.subr.bf16.mxu0 %v12078_v27  ;;  %12095 = vmatprep.subr.bf16.mxu1 %v12094_v55  ;;  %v12108_v7 = vpack.c.bf16 %v7120_v44, %v7117_v28 }
0x1682   : > { %10440 = vmatmul.mubr.msk.f32.gmra.mrb[162].mxu0 %vm4393_vm14, %v11452_v35 }
0x1683   : > { %6985 = vmatprep.mubr.f32.mxu0 %v14090_v30 }
0x1684   : > { %12081 = vmatpush1.bf16.msra.mxu0 %v12080_v12  ;;  %12097 = vmatpush3.bf16.msra.mxu1 %v12094_v55  ;;  %v7128_v55 = vld [vmem:[#allocation38 + $0x58] sm:$0xff] }
0x1685   : > { %12083 = vmatprep.subr.bf16.mxu0 %v12082_v22  ;;  %12099 = vmatprep.subr.bf16.mxu1 %v12098_v5 }
0x1688   : > { %12085 = vmatpush1.bf16.msra.mxu0 %v12084_v18  ;;  %12101 = vmatpush3.bf16.msra.mxu1 %v12098_v5  ;;  %v7131_v18 = vld [vmem:[#allocation38 + $0x70] sm:$0xff] }
0x1689   : > { %12087 = vmatprep.subr.bf16.mxu0 %v12086_v9  ;;  %12103 = vmatprep.subr.bf16.mxu1 %v12102_v63  ;;  %v7136_v9 = vld [vmem:[#allocation38 + $0x98] sm:$0xff] }
0x168c   : > { %12089 = vmatpush1.bf16.msra.mxu0 %v12088_v39  ;;  %12105 = vmatpush3.bf16.msra.mxu1 %v12102_v63  ;;  %v12118_v63 = vpack.c.bf16 %v7139_v43, %v7136_v9 }
0x168d   : > { %12107 = vmatprep.subr.bf16.mxu0 %v12106_v51 }
0x1751   : > { %v6679_v26 = vpop.f32.mrb[160].mxu0 }
0x1752   : > { %v6681_v0 = vpop.f32.mrb[161].mxu0  ;;  %v11478_v11 = vpop.f32.mrb[176].mxu1  ;;  %v6853_v56 = vrot.slane %v6679_v26, 1 }
0x1753   : > { %v6871_v21 = vrot.slane %v11478_v11, 1  ;;  %v6842_v20 = vpop.f32.mrb[177].mxu1  ;;  %v6862_v57 = vrot.slane %v6681_v0, 2  ;;  %v7124_v0 = vld [vmem:[#allocation38 + $0x38] sm:$0xff]  ;;  %v7127_v11 = vld [vmem:[#allocation38 + $0x50] sm:$0xff] }
0x1754   : > { %v6870_v17 = vrot.slane %v6842_v20, 1  ;;  %v12110_v34 = vpack.c.bf16 %v7127_v11, %v7124_v0 }
0x1755   : > { %v6685_v48 = vpop.f32.mrb[162].mxu0 }
0x1756   : > { %v6854_v24 = vrot.slane %v6685_v48, 1  ;;  %v6687_v60 = vpop.f32.mrb[163].mxu0  ;;  %v6872_v42 = vsel %vm2675_vm1, %v6870_v17, %v6871_v21  ;;  %v7126_v21 = vld [vmem:[#allocation38 + $0x48] sm:$0xff] }
0x1757   : > { %v6863_v54 = vrot.slane %v6687_v60, 2  ;;  %6873 = vrot.lane.b32.xlu1 %v6872_v42, %s14094_s1  ;;  %v12112_v17 = vpack.c.bf16 %v7126_v21, %v7123_v58  ;;  %v7133_v60 = vld [vmem:[#allocation38 + $0x80] sm:$0xff] }
0x1758   : > { %v6855_v37 = vsel %vm2675_vm1, %v6853_v56, %v6854_v24  ;;  %v7130_v24 = vld [vmem:[#allocation38 + $0x68] sm:$0xff] }
0x1759   : > { %6856 = vrot.lane.b32.xlu0 %v6855_v37, %s14094_s1  ;;  %v6864_v49 = vsel %vm3472_vm7, %v6862_v57, %v6863_v54  ;;  %v12114_v15 = vpack.c.bf16 %v7133_v60, %v7130_v24  ;;  %v7129_v57 = vld [vmem:[#allocation38 + $0x60] sm:$0xff]  ;;  %v7132_v54 = vld [vmem:[#allocation38 + $0x78] sm:$0xff] }
0x175a   : > { %v12116_v23 = vpack.c.bf16 %v7132_v54, %v7129_v57  ;;  %v7485_v57 = vld [vmem:[#allocation41 + $0x8] sm:$0xff]  ;;  %v7488_v54 = vld [vmem:[#allocation41 + $0x30] sm:$0xff] }
0x175b   : > { %v12138_v9 = vpack.c.bf16 %v7488_v54, %v7485_v57 }
0x17c9   : > { %v6874_v35 = vpop.permute.xlu1 %6873 }
0x17cb   : > { %v6857_v61 = vpop.permute.xlu0 %6856 }
0x17cc   : > { %v6859_v29 = vadd.f32 %v6857_v61, %v6679_v26  ;;  %v7122_v26 = vld [vmem:[#allocation38 + $0x28] sm:$0xff] }
0x17cd   : > { %v12122_v6 = vpack.c.bf16 %v7122_v26, %v7119_v10  ;;  %v7138_v61 = vld [vmem:[#allocation38 + $0xa8] sm:$0xff] }
0x17ce   : > { %v6866_v25 = vadd.f32 %v6864_v49, %v6859_v29  ;;  %v12130_v49 = vpack.c.bf16 %v7134_v14, %v7131_v18  ;;  %v7137_v29 = vld [vmem:[#allocation38 + $0xa0] sm:$0xff] }
0x17cf   : > { %12123 = vmatprep.subr.bf16.mxu1 %v12122_v6  ;;  %v7484_v18 = vld [vmem:[#allocation41] sm:$0xff]  ;;  %v7491_v14 = vld [vmem:[#allocation41 + $0x58] sm:$0xff] }
0x17d0   : > { %v6867_v16 = vadd.f32 %v6866_v25, %v6842_v20  ;;  %v7125_v20 = vld [vmem:[#allocation38 + $0x40] sm:$0xff]  ;;  %v7140_v25 = vld [vmem:[#allocation38 + $0xb8] sm:$0xff] }
0x17d1   : > { %v12126_v46 = vpack.c.bf16 %v7128_v55, %v7125_v20 }
0x17d2   : > { %v6876_v50 = vadd.f32 %v6874_v35, %v6867_v16  ;;  %v12120_v16 = vpack.c.bf16 %v7138_v61, %v7135_v4  ;;  %v7490_v4 = vld [vmem:[#allocation41 + $0x50] sm:$0xff]  ;;  %v7492_v61 = vld [vmem:[#allocation41 + $0x60] sm:$0xff] }
0x17d4   : > { %v16906_v19 = vadd.f32 %v10443_v40, %v6876_v50  ;;  %v12134_v40 = vpack.c.bf16 %v7140_v25, %v7137_v29  ;;  %v7495_v29 = vld [vmem:[#allocation41 + $0x88] sm:$0xff] }
0x17d6   : > { %v6885_v2 = vmax.f32 %v16906_v19, 0.0  ;;  %v7497_v19 = vld [vmem:[#allocation41 + $0xa8] sm:$0xff] }
0x17d8   : > { %6888 = vst.msk [vmem:[#allocation2 + $0x2] sm:$0xff] %vm4393_vm14, %v6885_v2 }
0x17df   : > { %v6889_v62 = vld [vmem:[#allocation2] sm:$0xff]  ;;  %v6890_v41 = vld [vmem:[#allocation2 + $0x8] sm:$0xf] }
0x17e0   : > { %10444 = vmatmul.mubr.msk.f32.vlgmr.msra.gmra.mrb[164].mxu0 %vm4393_vm14, %v6889_v62  ;;  %7112 = vst.msk [vmem:[#allocation2] sm:$0x3] %vm5896_vm4, %v14090_v30  ;;  %11495 = vmatprep.mubr.msk.f32.mxu1 %vm4393_vm14, %v6889_v62  ;;  %7113 = vst.msk [vmem:[#allocation2 + $0xa] sm:$0x3] %vm5896_vm4, %v14090_v30 }
0x17e1   : > { %11496 = vmatmul.mubr.msk.f32.vlgmr.msra.gmra.mrb[178].mxu1 %vm4393_vm14, %v6890_v41  ;;  %6991 = vmatprep.mubr.f32.mxu0 %v14090_v30 }
0x17e2   : > { %12109 = vmatpush1.bf16.msra.mxu0 %v12108_v7  ;;  %12125 = vmatpush3.bf16.msra.mxu1 %v12122_v6 }
0x17e3   : > { %12111 = vmatprep.subr.bf16.mxu0 %v12110_v34  ;;  %12127 = vmatprep.subr.bf16.mxu1 %v12126_v46 }
0x17e4   : > { %10445 = vmatmul.mubr.msk.f32.gmra.mrb[166].mxu0 %vm4393_vm14, %v6890_v41 }
0x17e5   : > { %7211 = vmatprep.mubr.f32.mxu0 %v14090_v30 }
0x17e6   : > { %12113 = vmatpush1.bf16.msra.mxu0 %v12112_v17  ;;  %12129 = vmatpush3.bf16.msra.mxu1 %v12126_v46 }
0x17e7   : > { %12115 = vmatprep.subr.bf16.mxu0 %v12114_v15  ;;  %12131 = vmatprep.subr.bf16.mxu1 %v12130_v49 }
0x17ea   : > { %12117 = vmatpush1.bf16.msra.mxu0 %v12116_v23  ;;  %12133 = vmatpush3.bf16.msra.mxu1 %v12130_v49  ;;  %v7489_v23 = vld [vmem:[#allocation41 + $0x38] sm:$0xff] }
0x17eb   : > { %12119 = vmatprep.subr.bf16.mxu0 %v12118_v63  ;;  %12135 = vmatprep.subr.bf16.mxu1 %v12134_v40  ;;  %v7493_v63 = vld [vmem:[#allocation41 + $0x78] sm:$0xff] }
0x17ec   : > { %v12144_v25 = vpack.c.bf16 %v7493_v63, %v7490_v4  ;;  %v7776_v4 = vld [vmem:[#allocation44 + $0x40] sm:$0xff]  ;;  %v7770_v63 = vld [vmem:[#allocation44 + $0x10] sm:$0xff] }
0x17ee   : > { %12121 = vmatpush1.bf16.msra.mxu0 %v12120_v16  ;;  %12137 = vmatpush3.bf16.msra.mxu1 %v12134_v40  ;;  %v7496_v16 = vld [vmem:[#allocation41 + $0xa0] sm:$0xff]  ;;  %v12158_v40 = vpack.c.bf16 %v7495_v29, %v7492_v61 }
0x17ef   : > { %11522 = vmatprep.subr.mxu0 %v14090_v30  ;;  %11517 = vmatprep.subr.mxu1 %v14090_v30  ;;  %v7775_v61 = vld [vmem:[#allocation44 + $0x38] sm:$0xff] }
0x17f0   : > { %v12216_v29 = vpack.c.bf16 %v7775_v61, %v7770_v63  ;;  %v7825_v61 = vld [vmem:[#allocation44 + $0x1c8] sm:$0xff] }
0x18b3   : > { %v16922_v45 = vpop.f32.mrb[164].mxu0 }
0x18b4   : > { %v6989_v27 = vpop.f32.mrb[165].mxu0  ;;  %v11497_v36 = vpop.f32.mrb[178].mxu1  ;;  %v7075_v32 = vrot.slane %v16922_v45, 1 }
0x18b5   : > { %v7099_v12 = vrot.slane %v11497_v36, 4  ;;  %v7064_v59 = vpop.f32.mrb[179].mxu1  ;;  %v7084_v42 = vrot.slane %v6989_v27, 2  ;;  %v7089_v38 = vrot.slane %v6989_v27, 3 }
0x18b6   : > { %v7098_v48 = vrot.slane %v7064_v59, 4 }
0x18b7   : > { %v6993_v56 = vpop.f32.mrb[166].mxu0 }
0x18b8   : > { %v7076_v22 = vrot.slane %v6993_v56, 1  ;;  %v6995_v52 = vpop.f32.mrb[167].mxu0  ;;  %v7100_v8 = vsel %vm17345_vm10, %v7098_v48, %v7099_v12 }
0x18b9   : > { %v7085_v37 = vrot.slane %v6995_v52, 2  ;;  %v7090_v5 = vrot.slane %v6995_v52, 3  ;;  %v10453_v52 = vld [vmem:[#allocation39] ss:$0 sm:$0xff] }
0x18ba   : > { %v7077_v33 = vsel %vm2675_vm1, %v7075_v32, %v7076_v22 }
0x18bb   : > { %7078 = vrot.lane.b32.xlu0 %v7077_v33, %s14094_s1  ;;  %v7091_v13 = vsel %vm3877_vm0, %v7089_v38, %v7090_v5  ;;  %v7086_v39 = vsel %vm3472_vm7, %v7084_v42, %v7085_v37  ;;  %v7487_v37 = vld [vmem:[#allocation41 + $0x28] sm:$0xff]  ;;  %v7486_v5 = vld [vmem:[#allocation41 + $0x10] sm:$0xff]  ;;  %v7494_v33 = vld [vmem:[#allocation41 + $0x80] sm:$0xff] }
0x18bc   : > { %7092 = vrot.lane.b32.xlu1 %v7091_v13, %s14094_s1  ;;  %v12140_v43 = vpack.c.bf16 %v7487_v37, %v7484_v18  ;;  %v12155_v13 = vpack.c.bf16 %v7489_v23, %v7486_v5  ;;  %v7662_v37 = vld [vmem:[#allocation41 + $0xe0] sm:$0xff]  ;;  %v7665_v5 = vld [vmem:[#allocation41 + $0x110] sm:$0xff]  ;;  %v7667_v23 = vld [vmem:[#allocation41 + $0x138] sm:$0xff] }
0x192d   : > { %v7079_v35 = vpop.permute.xlu0 %7078 }
0x192e   : > { %v7081_v50 = vadd.f32 %v7079_v35, %v16922_v45  ;;  %v7093_v41 = vpop.permute.xlu1 %7092 }
0x1930   : > { %v7088_v62 = vadd.f32 %v7086_v39, %v7081_v50  ;;  %v12142_v39 = vpack.c.bf16 %v7494_v33, %v7491_v14  ;;  %v7499_v50 = vld [vmem:[#allocation41 + $0xc8] sm:$0xff]  ;;  %v12178_v33 = vpack.c.bf16 %v7667_v23, %v7665_v5  ;;  %v7819_v23 = vld [vmem:[#allocation44 + $0x198] sm:$0xff] }
0x1932   : > { %v7095_v31 = vadd.f32 %v7093_v41, %v7088_v62  ;;  %v7498_v62 = vld [vmem:[#allocation41 + $0xb0] sm:$0xff]  ;;  %v7501_v41 = vld [vmem:[#allocation41 + $0xd8] sm:$0xff] }
0x1934   : > { %v7102_v51 = vadd.f32 %v7100_v8, %v7095_v31  ;;  %v7503_v31 = vld [vmem:[#allocation41 + $0xf8] sm:$0xff] }
0x1936   : > { %v7110_v28 = vadd.f32 %v10448_v3, %v7102_v51  ;;  %v7506_v3 = vld [vmem:[#allocation41 + $0x120] sm:$0xff]  ;;  %v12148_v51 = vpack.c.bf16 %v7499_v50, %v7496_v16  ;;  %v7778_v16 = vld [vmem:[#allocation44 + $0x50] sm:$0xff] }
0x1938   : > { %v7111_v44 = vmax.f32 %v7110_v28, 0.0  ;;  %v12161_v28 = vpack.c.bf16 %v7501_v41, %v7498_v62  ;;  %v7786_v62 = vld [vmem:[#allocation44 + $0x90] sm:$0xff]  ;;  %v7780_v41 = vld [vmem:[#allocation44 + $0x60] sm:$0xff] }
0x193a   : > { %7114 = vst.msk [vmem:[#allocation2 + $0x2] sm:$0xff] %vm4393_vm14, %v7111_v44  ;;  %v12150_v44 = vpack.c.bf16 %v7506_v3, %v7503_v31  ;;  %v7785_v31 = vld [vmem:[#allocation44 + $0x88] sm:$0xff] }
0x1941   : > { %v7115_v10 = vld [vmem:[#allocation2] sm:$0xff]  ;;  %v7116_v7 = vld [vmem:[#allocation2 + $0x8] sm:$0xf] }
0x1942   : > { %10449 = vmatmul.mubr.msk.f32.vlgmr.msra.gmra.mrb[168].mxu0 %vm4393_vm14, %v7115_v10  ;;  %7764 = vst [vmem:[#allocation2] sm:$0x3] %v14090_v30  ;;  %7765 = vst [vmem:[#allocation2 + $0x6] sm:$0x3] %v14090_v30  ;;  %11514 = vmatprep.mubr.msk.f32.mxu1 %vm4393_vm14, %v7115_v10  ;;  %v7502_v10 = vld [vmem:[#allocation41 + $0xf0] sm:$0xff] }
0x1943   : > { %11515 = vmatmul.mubr.msk.f32.vlgmr.msra.gmra.mrb[180].mxu1 %vm4393_vm14, %v7116_v7  ;;  %7217 = vmatprep.mubr.f32.mxu0 %v14090_v30 }
0x1944   : > { %11519 = vmatprep.mubr.msk.f32.mxu1 %vm14091_vm6, %v14090_v30 }
0x1946   : > { %10450 = vmatmul.mubr.msk.f32.gmra.mrb[170].mxu0 %vm4393_vm14, %v7116_v7  ;;  %v7505_v7 = vld [vmem:[#allocation41 + $0x118] sm:$0xff] }
0x1947   : > { %11524 = vmatprep.mubr.msk.f32.mxu0 %vm14091_vm6, %v14090_v30 }
0x1a15   : > { %v7213_v26 = vpop.f32.mrb[168].mxu0 }
0x1a16   : > { %v7215_v6 = vpop.f32.mrb[169].mxu0  ;;  %v11516_v45 = vpop.f32.mrb[180].mxu1  ;;  %v7301_v34 = vrot.slane %v7213_v26, 1 }
0x1a17   : > { %v7325_v0 = vrot.slane %v11516_v45, 4  ;;  %v7290_v11 = vpop.f32.mrb[181].mxu1  ;;  %v7310_v12 = vrot.slane %v7215_v6, 2  ;;  %v7315_v59 = vrot.slane %v7215_v6, 3  ;;  %v7504_v6 = vld [vmem:[#allocation41 + $0x100] sm:$0xff]  ;;  %v7507_v45 = vld [vmem:[#allocation41 + $0x128] sm:$0xff] }
0x1a18   : > { %v7324_v27 = vrot.slane %v7290_v11, 4  ;;  %v7655_v11 = vld [vmem:[#allocation41 + $0x48] sm:$0xff] }
0x1a19   : > { %v7219_v36 = vpop.f32.mrb[170].mxu0 }
0x1a1a   : > { %v7302_v58 = vrot.slane %v7219_v36, 1  ;;  %v7221_v21 = vpop.f32.mrb[171].mxu0  ;;  %v7326_v20 = vsel %vm17346_vm3, %v7324_v27, %v7325_v0  ;;  %v7653_v0 = vld [vmem:[#allocation41 + $0x20] sm:$0xff]  ;;  %v12164_v27 = vpack.c.bf16 %v7507_v45, %v7504_v6 }
0x1a1b   : > { %v7311_v17 = vrot.slane %v7221_v21, 2  ;;  %v7316_v55 = vrot.slane %v7221_v21, 3  ;;  %v12166_v36 = vpack.c.bf16 %v7655_v11, %v7653_v0  ;;  %v7791_v6 = vld [vmem:[#allocation44 + $0xb8] sm:$0xff]  ;;  %v7796_v45 = vld [vmem:[#allocation44 + $0xe0] sm:$0xff] }
0x1a1c   : > { %v7303_v48 = vsel %vm2675_vm1, %v7301_v34, %v7302_v58  ;;  %vm7339_vm1 = vcmask 64512   ;;  %v7769_v34 = vld [vmem:[#allocation44 + $0x8] sm:$0xff]  ;;  %v7774_v58 = vld [vmem:[#allocation44 + $0x30] sm:$0xff]  ;;  %v12222_v11 = vpack.c.bf16 %v7796_v45, %v7791_v6 }
0x1a1d   : > { %7304 = vrot.lane.b32.xlu0 %v7303_v48, %s14094_s1  ;;  %v7317_v46 = vsel %vm3877_vm0, %v7315_v59, %v7316_v55  ;;  %v7312_v32 = vsel %vm3472_vm7, %v7310_v12, %v7311_v17  ;;  %v12182_v21 = vpack.c.bf16 %v7774_v58, %v7769_v34  ;;  %v7654_v12 = vld [vmem:[#allocation41 + $0x40] sm:$0xff]  ;;  %v7657_v59 = vld [vmem:[#allocation41 + $0x70] sm:$0xff]  ;;  %v7659_v17 = vld [vmem:[#allocation41 + $0x98] sm:$0xff]  ;;  %vm17350_vm0 = vcmask 31744  }
0x1a1e   : > { %7318 = vrot.lane.b32.xlu1 %v7317_v46, %s14094_s1  ;;  %v7768_v55 = vld [vmem:[#allocation44] sm:$0xff]  ;;  %v7773_v48 = vld [vmem:[#allocation44 + $0x28] sm:$0xff]  ;;  %v7799_v34 = vld [vmem:[#allocation44 + $0xf8] sm:$0xff]  ;;  %s9619_s1 = sshll.u32 %s1668_s5, 4  ;;  %s17159_s1 = int_to_ptr.vmem [resolvable:$true] %s9619_s1 }
0x1a1f   : > { %v7841_v6 = vld [vmem:[#allocation44 + $0x248] sm:$0xff]  ;;  %v7846_v45 = vld [vmem:[#allocation44 + $0x270] sm:$0xff]  ;;  %vm17349_vm7 = vmmov %vm17335_vm2 }
0x1a20   : > { %vm17352_vm4 = vmmov %vm17350_vm0 }
0x1a8f   : > { %v7305_v56 = vpop.permute.xlu0 %7304 }
0x1a90   : > { %v7307_v24 = vadd.f32 %v7305_v56, %v7213_v26  ;;  %v7319_v42 = vpop.permute.xlu1 %7318  ;;  %v12152_v26 = vpack.c.bf16 %v7505_v7, %v7502_v10  ;;  %v7656_v56 = vld [vmem:[#allocation41 + $0x68] sm:$0xff] }
0x1a91   : > { %v7788_v10 = vld [vmem:[#allocation44 + $0xa0] sm:$0xff] }
0x1a92   : > { %v7314_v60 = vadd.f32 %v7312_v32, %v7307_v24  ;;  %v12170_v32 = vpack.c.bf16 %v7659_v17, %v7657_v59  ;;  %v7658_v24 = vld [vmem:[#allocation41 + $0x90] sm:$0xff] }
0x1a93   : > { %v12172_v54 = vpack.c.bf16 %v7658_v24, %v7656_v56  ;;  %v7801_v17 = vld [vmem:[#allocation44 + $0x108] sm:$0xff] }
0x1a94   : > { %v7321_v22 = vadd.f32 %v7319_v42, %v7314_v60  ;;  %v12184_v60 = vpack.c.bf16 %v7773_v48, %v7768_v55  ;;  %v7806_v55 = vld [vmem:[#allocation44 + $0x130] sm:$0xff]  ;;  %v7800_v48 = vld [vmem:[#allocation44 + $0x100] sm:$0xff]  ;;  %v7805_v56 = vld [vmem:[#allocation44 + $0x128] sm:$0xff] }
0x1a95   : > { %v12228_v24 = vpack.c.bf16 %v7805_v56, %v7800_v48 }
0x1a96   : > { %v7328_v8 = vadd.f32 %v7326_v20, %v7321_v22  ;;  %v7652_v20 = vld [vmem:[#allocation41 + $0x18] sm:$0xff]  ;;  %v7661_v22 = vld [vmem:[#allocation41 + $0xc0] sm:$0xff] }
0x1a97   : > { %v12168_v46 = vpack.c.bf16 %v7654_v12, %v7652_v20  ;;  %v7798_v20 = vld [vmem:[#allocation44 + $0xf0] sm:$0xff]  ;;  %v7803_v12 = vld [vmem:[#allocation44 + $0x118] sm:$0xff] }
0x1a98   : > { %v7336_v15 = vadd.f32 %v10453_v52, %v7328_v8  ;;  %v7663_v52 = vld [vmem:[#allocation41 + $0xe8] sm:$0xff] }
0x1a99   : > { %v12174_v18 = vpack.c.bf16 %v7663_v52, %v7661_v22  ;;  %v7808_v52 = vld [vmem:[#allocation44 + $0x140] sm:$0xff] }
0x1a9a   : > { %v7337_v38 = vadd.f32 %v7336_v15, %v6885_v2  ;;  %v7500_v2 = vld [vmem:[#allocation41 + $0xd0] sm:$0xff] }
0x1a9b   : > { %v12146_v35 = vpack.c.bf16 %v7500_v2, %v7497_v19  ;;  %v7779_v19 = vld [vmem:[#allocation44 + $0x58] sm:$0xff]  ;;  %v7784_v2 = vld [vmem:[#allocation44 + $0x80] sm:$0xff] }
0x1a9c   : > { %v7338_v49 = vmax.f32 %v7337_v38, 0.0  ;;  %v7660_v38 = vld [vmem:[#allocation41 + $0xb8] sm:$0xff] }
0x1a9d   : > { %v12176_v14 = vpack.c.bf16 %v7662_v37, %v7660_v38  ;;  %v7815_v38 = vld [vmem:[#allocation44 + $0x178] sm:$0xff] }
0x1a9e   : > { %11518 = vmatpush3.msra.mxu1 %v7338_v49  ;;  %11523 = vmatpush3.msra.mxu0 %v7338_v49  ;;  %v7664_v49 = vld [vmem:[#allocation41 + $0x108] sm:$0xff] }
0x1a9f   : > { %11520 = vmatmul.mubr.msk.f32.vlgmr.msra.gmra.mrb[182].mxu1 %vm7339_vm1, %v16286_v53  ;;  %11525 = vmatmul.mubr.msk.f32.vlgmr.msra.gmra.mrb[172].mxu0 %vm7339_vm1, %v16292_v47 }
0x1aa0   : > { %12139 = vmatprep.subr.bf16.mxu1 %v12138_v9  ;;  %12154 = vmatprep.subr.bf16.mxu0 %v14087_v1  ;;  %v7666_v9 = vld [vmem:[#allocation41 + $0x130] sm:$0xff] }
0x1aa1   : > { %12141 = vmatpush1.bf16.msra.mxu1 %v12140_v43  ;;  %12156 = vmatpush3.bf16.msra.mxu0 %v12155_v13  ;;  %v7771_v43 = vld [vmem:[#allocation44 + $0x18] sm:$0xff]  ;;  %v12180_v13 = vpack.c.bf16 %v7666_v9, %v7664_v49  ;;  %v7818_v49 = vld [vmem:[#allocation44 + $0x190] sm:$0xff] }
0x1aa2   : > { %12143 = vmatprep.subr.bf16.mxu1 %v12142_v39  ;;  %12157 = vmatprep.subr.bf16.mxu0 %v14087_v1  ;;  %v12214_v39 = vpack.c.bf16 %v7776_v4, %v7771_v43  ;;  %v7823_v9 = vld [vmem:[#allocation44 + $0x1b8] sm:$0xff]  ;;  %v7821_v43 = vld [vmem:[#allocation44 + $0x1a8] sm:$0xff] }
0x1aa3   : > { %7575 = vmatprep.mubr.f32.mxu1 %v14090_v30  ;;  %11543 = vmatprep.mubr.msk.f32.mxu0 %vm14091_vm6, %v14090_v30  ;;  %v12204_v4 = vpack.c.bf16 %v7823_v9, %v7818_v49  ;;  %v7807_v49 = vld [vmem:[#allocation44 + $0x138] sm:$0xff] }
0x1aa5   : > { %12145 = vmatpush1.bf16.msra.mxu1 %v12144_v25  ;;  %12159 = vmatpush3.bf16.msra.mxu0 %v12158_v40  ;;  %v12186_v25 = vpack.c.bf16 %v7784_v2, %v7779_v19  ;;  %v7783_v40 = vld [vmem:[#allocation44 + $0x78] sm:$0xff]  ;;  %v7829_v19 = vld [vmem:[#allocation44 + $0x1e8] sm:$0xff]  ;;  %v7834_v2 = vld [vmem:[#allocation44 + $0x210] sm:$0xff] }
0x1aa6   : > { %12147 = vmatprep.subr.bf16.mxu1 %v12146_v35  ;;  %12160 = vmatprep.subr.bf16.mxu0 %v14087_v1  ;;  %v7781_v35 = vld [vmem:[#allocation44 + $0x68] sm:$0xff]  ;;  %v12188_v50 = vpack.c.bf16 %v7783_v40, %v7778_v16  ;;  %v7828_v16 = vld [vmem:[#allocation44 + $0x1e0] sm:$0xff] }
0x1aa7   : > { %v12218_v3 = vpack.c.bf16 %v7786_v62, %v7781_v35  ;;  %v7833_v40 = vld [vmem:[#allocation44 + $0x208] sm:$0xff]  ;;  %v7831_v35 = vld [vmem:[#allocation44 + $0x1f8] sm:$0xff]  ;;  %v7836_v62 = vld [vmem:[#allocation44 + $0x220] sm:$0xff] }
0x1aa9   : > { %12149 = vmatpush1.bf16.msra.mxu1 %v12148_v51  ;;  %12162 = vmatpush3.bf16.msra.mxu0 %v12161_v28  ;;  %v12220_v51 = vpack.c.bf16 %v7785_v31, %v7780_v41  ;;  %v7789_v28 = vld [vmem:[#allocation44 + $0xa8] sm:$0xff]  ;;  %v7830_v41 = vld [vmem:[#allocation44 + $0x1f0] sm:$0xff]  ;;  %v7835_v31 = vld [vmem:[#allocation44 + $0x218] sm:$0xff] }
0x1aaa   : > { %12151 = vmatprep.subr.bf16.mxu1 %v12150_v44  ;;  %12163 = vmatprep.subr.bf16.mxu0 %v14087_v1  ;;  %v7794_v44 = vld [vmem:[#allocation44 + $0xd0] sm:$0xff] }
0x1aab   : > { %v12190_v7 = vpack.c.bf16 %v7794_v44, %v7789_v28  ;;  %v7839_v28 = vld [vmem:[#allocation44 + $0x238] sm:$0xff]  ;;  %v7844_v44 = vld [vmem:[#allocation44 + $0x260] sm:$0xff] }
0x1aad   : > { %12153 = vmatpush1.bf16.msra.mxu1 %v12152_v26  ;;  %12165 = vmatpush3.bf16.msra.mxu0 %v12164_v27  ;;  %v7793_v26 = vld [vmem:[#allocation44 + $0xc8] sm:$0xff]  ;;  %v7790_v27 = vld [vmem:[#allocation44 + $0xb0] sm:$0xff] }
0x1aae   : > { %12167 = vmatprep.subr.bf16.mxu1 %v12166_v36  ;;  %12183 = vmatprep.subr.bf16.mxu0 %v12182_v21  ;;  %v12192_v0 = vpack.c.bf16 %v7793_v26, %v7788_v10  ;;  %v7795_v36 = vld [vmem:[#allocation44 + $0xd8] sm:$0xff]  ;;  %v7804_v21 = vld [vmem:[#allocation44 + $0x120] sm:$0xff]  ;;  %v7838_v10 = vld [vmem:[#allocation44 + $0x230] sm:$0xff] }
0x1aaf   : > { %v12224_v58 = vpack.c.bf16 %v7795_v36, %v7790_v27  ;;  %v12194_v59 = vpack.c.bf16 %v7804_v21, %v7799_v34  ;;  %v7843_v26 = vld [vmem:[#allocation44 + $0x258] sm:$0xff]  ;;  %v7840_v27 = vld [vmem:[#allocation44 + $0x240] sm:$0xff]  ;;  %v7845_v36 = vld [vmem:[#allocation44 + $0x268] sm:$0xff] }
0x1ab0   : > { %v12244_v34 = vpack.c.bf16 %v7845_v36, %v7840_v27 }
0x1b72   : > { %v7408_v42 = vpop.f32.mrb[182].mxu1  ;;  %v7480_v8 = vpop.f32.mrb[172].mxu0 }
0x1b73   : > { %10456 = vmatmul.mubr.msk.f32.vlgmr.msra.gmra.mrb[184].mxu1 %vm4393_vm14, %v7408_v42  ;;  %v11521_v15 = vpop.f32.mrb[183].mxu1  ;;  %11544 = vmatmul.mubr.msk.f32.vlgmr.msra.gmra.mrb[174].mxu0 %vm4393_vm14, %v7408_v42  ;;  %v11526_v57 = vpop.f32.mrb[173].mxu0  ;;  %v7814_v42 = vld [vmem:[#allocation44 + $0x170] sm:$0xff] }
0x1b74   : > { %12169 = vmatpush1.bf16.msra.mxu1 %v12168_v46  ;;  %7735 = vmatprep.mubr.f32.mxu1 %v14090_v30  ;;  %v12196_v46 = vpack.c.bf16 %v7803_v12, %v7798_v20  ;;  %v7811_v15 = vld [vmem:[#allocation44 + $0x158] sm:$0xff] }
0x1b75   : > { %12171 = vmatprep.subr.bf16.mxu1 %v12170_v32  ;;  %12185 = vmatpush1.bf16.msra.mxu0 %v12184_v60  ;;  %v12226_v32 = vpack.c.bf16 %v7806_v55, %v7801_v17  ;;  %v7809_v60 = vld [vmem:[#allocation44 + $0x148] sm:$0xff] }
0x1b76   : > { %7912 = vmatprep.mubr.f32.mxu0 %v14090_v30  ;;  %12187 = vmatprep.subr.bf16.mxu0 %v12186_v25  ;;  %v12198_v22 = vpack.c.bf16 %v7814_v42, %v7809_v60  ;;  %v12206_v25 = vpack.c.bf16 %v7834_v2, %v7829_v19  ;;  %v10459_v60 = vld [vmem:[#allocation42] ss:$0 sm:$0xff]  ;;  %v7837_v19 = vld [vmem:[#allocation44 + $0x228] sm:$0xff] }
0x1b78   : > { %12173 = vmatpush1.bf16.msra.mxu1 %v12172_v54  ;;  %v7816_v54 = vld [vmem:[#allocation44 + $0x180] sm:$0xff] }
0x1b79   : > { %12175 = vmatprep.subr.bf16.mxu1 %v12174_v18  ;;  %12189 = vmatpush1.bf16.msra.mxu0 %v12188_v50  ;;  %v7810_v18 = vld [vmem:[#allocation44 + $0x150] sm:$0xff]  ;;  %v12230_v37 = vpack.c.bf16 %v7816_v54, %v7811_v15  ;;  %v12208_v50 = vpack.c.bf16 %v7833_v40, %v7828_v16  ;;  %v7777_v15 = vld [vmem:[#allocation44 + $0x48] sm:$0xff]  ;;  %v7847_v16 = vld [vmem:[#allocation44 + $0x278] sm:$0xff] }
0x1b7a   : > { %12191 = vmatprep.subr.bf16.mxu0 %v12190_v7  ;;  %v12232_v5 = vpack.c.bf16 %v7815_v38, %v7810_v18  ;;  %v12210_v7 = vpack.c.bf16 %v7844_v44, %v7839_v28  ;;  %v7782_v54 = vld [vmem:[#allocation44 + $0x70] sm:$0xff]  ;;  %v7787_v18 = vld [vmem:[#allocation44 + $0x98] sm:$0xff] }
0x1b7c   : > { %12177 = vmatpush1.bf16.msra.mxu1 %v12176_v14  ;;  %v7824_v14 = vld [vmem:[#allocation44 + $0x1c0] sm:$0xff] }
0x1b7d   : > { %12179 = vmatprep.subr.bf16.mxu1 %v12178_v33  ;;  %12193 = vmatpush1.bf16.msra.mxu0 %v12192_v0  ;;  %v12202_v33 = vpack.c.bf16 %v7824_v14, %v7819_v23  ;;  %v12212_v0 = vpack.c.bf16 %v7843_v26, %v7838_v10  ;;  %v7797_v23 = vld [vmem:[#allocation44 + $0xe8] sm:$0xff]  ;;  %v8091_v10 = vld [vmem:[%s17347_s3 + $0x10] sm:$0xff] }
0x1b7e   : > { %12195 = vmatprep.subr.bf16.mxu0 %v12194_v59  ;;  %v8100_v26 = vld [vmem:[%s17347_s3 + $0x58] sm:$0xff] }
0x1b80   : > { %12181 = vmatpush1.bf16.msra.mxu1 %v12180_v13  ;;  %v7826_v13 = vld [vmem:[#allocation44 + $0x1d0] sm:$0xff] }
0x1b81   : > { %12215 = vmatprep.subr.bf16.mxu1 %v12214_v39  ;;  %12197 = vmatpush1.bf16.msra.mxu0 %v12196_v46  ;;  %v7820_v39 = vld [vmem:[#allocation44 + $0x1a0] sm:$0xff]  ;;  %v12234_v63 = vpack.c.bf16 %v7826_v13, %v7821_v43 }
0x1b82   : > { %12199 = vmatprep.subr.bf16.mxu0 %v12198_v22  ;;  %v7812_v43 = vld [vmem:[#allocation44 + $0x160] sm:$0xff] }
0x1b83   : > { %10458 = vmatmul.mubr.msk.f32.vlgmr.msra.gmra.mrb[186].mxu1 %vm4393_vm14, %v7480_v8  ;;  %v7813_v8 = vld [vmem:[#allocation44 + $0x168] sm:$0xff]  ;;  %vm17351_vm14 = vmmov %vm17335_vm2 }
0x1b84   : > { %12217 = vmatpush1.bf16.msra.mxu1 %v12216_v29  ;;  %7983 = vmatprep.mubr.f32.mxu1 %v14090_v30  ;;  %v12200_v57 = vpack.c.bf16 %v7813_v8, %v7808_v52  ;;  %v12236_v29 = vpack.c.bf16 %v7825_v61, %v7820_v39  ;;  %v7772_v8 = vld [vmem:[#allocation44 + $0x20] sm:$0xff]  ;;  %v7822_v39 = vld [vmem:[#allocation44 + $0x1b0] sm:$0xff] }
0x1b85   : > { %12219 = vmatprep.subr.bf16.mxu1 %v12218_v3  ;;  %v12238_v3 = vpack.c.bf16 %v7836_v62, %v7831_v35  ;;  %v8090_v35 = vld [vmem:[%s17347_s3 + $0x8] sm:$0xff]  ;;  %v8089_v62 = vld [vmem:[%s17347_s3] sm:$0xff] }
0x1b86   : > { %12201 = vmatpush1.bf16.msra.mxu0 %v12200_v57  ;;  %v12247_v57 = vpack.c.bf16 %v7777_v15, %v7772_v8 }
0x1b87   : > { %12203 = vmatprep.subr.bf16.mxu0 %v12202_v33  ;;  %v7802_v33 = vld [vmem:[#allocation44 + $0x110] sm:$0xff] }
0x1b88   : > { %12221 = vmatpush1.bf16.msra.mxu1 %v12220_v51  ;;  %v12240_v51 = vpack.c.bf16 %v7835_v31, %v7830_v41  ;;  %v12256_v9 = vpack.c.bf16 %v7807_v49, %v7802_v33  ;;  %v8094_v31 = vld [vmem:[%s17347_s3 + $0x28] sm:$0xff]  ;;  %v8121_v49 = vld [vmem:[%s17347_s3 + $0x100] sm:$0xff] }
0x1b89   : > { %12223 = vmatprep.subr.bf16.mxu1 %v12222_v11  ;;  %v12242_v11 = vpack.c.bf16 %v7846_v45, %v7841_v6  ;;  %v12272_v28 = vpack.c.bf16 %v8094_v31, %v8089_v62  ;;  %v8105_v45 = vld [vmem:[%s17347_s3 + $0x80] sm:$0xff]  ;;  %v8140_v62 = vld [vmem:[%s17347_s3 + $0x198] sm:$0xff] }
0x1b8a   : > { %12205 = vmatpush1.bf16.msra.mxu0 %v12204_v4  ;;  %v7817_v4 = vld [vmem:[#allocation44 + $0x188] sm:$0xff]  ;;  %v12274_v27 = vpack.c.bf16 %v8105_v45, %v8100_v26 }
0x1b8b   : > { %12207 = vmatprep.subr.bf16.mxu0 %v12206_v25  ;;  %v12259_v13 = vpack.c.bf16 %v7817_v4, %v7812_v43  ;;  %v7842_v25 = vld [vmem:[#allocation44 + $0x250] sm:$0xff] }
0x1b8c   : > { %12225 = vmatpush1.bf16.msra.mxu1 %v12224_v58  ;;  %v12268_v40 = vpack.c.bf16 %v7847_v16, %v7842_v25  ;;  %v8137_v25 = vld [vmem:[%s17347_s3 + $0x180] sm:$0xff]  ;;  %v8131_v16 = vld [vmem:[%s17347_s3 + $0x150] sm:$0xff] }
0x1b8d   : > { %12227 = vmatprep.subr.bf16.mxu1 %v12226_v32 }
0x1b8e   : > { %12209 = vmatpush1.bf16.msra.mxu0 %v12208_v50  ;;  %v8095_v50 = vld [vmem:[%s17347_s3 + $0x30] sm:$0xff] }
0x1b8f   : > { %12211 = vmatprep.subr.bf16.mxu0 %v12210_v7  ;;  %v12270_v41 = vpack.c.bf16 %v8095_v50, %v8090_v35  ;;  %v8096_v7 = vld [vmem:[%s17347_s3 + $0x38] sm:$0xff] }
0x1b90   : > { %12229 = vmatpush1.bf16.msra.mxu1 %v12228_v24  ;;  %v12304_v6 = vpack.c.bf16 %v8096_v7, %v8091_v10  ;;  %v8147_v10 = vld [vmem:[%s17347_s3 + $0x1d0] sm:$0xff]  ;;  %v8141_v7 = vld [vmem:[%s17347_s3 + $0x1a0] sm:$0xff] }
0x1b91   : > { %12231 = vmatprep.subr.bf16.mxu1 %v12230_v37  ;;  %v12250_v37 = vpack.c.bf16 %v7787_v18, %v7782_v54  ;;  %v8125_v54 = vld [vmem:[%s17347_s3 + $0x120] sm:$0xff]  ;;  %v8119_v18 = vld [vmem:[%s17347_s3 + $0xf0] sm:$0xff] }
0x1b92   : > { %12213 = vmatpush1.bf16.msra.mxu0 %v12212_v0  ;;  %v8099_v0 = vld [vmem:[%s17347_s3 + $0x50] sm:$0xff] }
0x1b93   : > { %12246 = vmatprep.subr.bf16.mxu0 %v14087_v1 }
0x1b94   : > { %12233 = vmatpush1.bf16.msra.mxu1 %v12232_v5  ;;  %v7792_v5 = vld [vmem:[#allocation44 + $0xc0] sm:$0xff] }
0x1b95   : > { %12235 = vmatprep.subr.bf16.mxu1 %v12234_v63  ;;  %v12253_v14 = vpack.c.bf16 %v7797_v23, %v7792_v5  ;;  %v7827_v63 = vld [vmem:[#allocation44 + $0x1d8] sm:$0xff]  ;;  %v8124_v5 = vld [vmem:[%s17347_s3 + $0x118] sm:$0xff] }
0x1b96   : > { %v12262_v61 = vpack.c.bf16 %v7827_v63, %v7822_v39  ;;  %v8122_v23 = vld [vmem:[%s17347_s3 + $0x108] sm:$0xff]  ;;  %v12284_v43 = vpack.c.bf16 %v8124_v5, %v8119_v18  ;;  %v8135_v39 = vld [vmem:[%s17347_s3 + $0x170] sm:$0xff] }
0x1b98   : > { %12237 = vmatpush1.bf16.msra.mxu1 %v12236_v29  ;;  %v7832_v29 = vld [vmem:[#allocation44 + $0x200] sm:$0xff] }
0x1b99   : > { %12239 = vmatprep.subr.bf16.mxu1 %v12238_v3  ;;  %v12265_v2 = vpack.c.bf16 %v7837_v19, %v7832_v29  ;;  %v8092_v3 = vld [vmem:[%s17347_s3 + $0x18] sm:$0xff]  ;;  %v8134_v29 = vld [vmem:[%s17347_s3 + $0x168] sm:$0xff] }
0x1b9a   : > { %v8132_v19 = vld [vmem:[%s17347_s3 + $0x158] sm:$0xff] }
0x1b9b   : > { %v12318_v35 = vpack.c.bf16 %v8137_v25, %v8132_v19  ;;  %v8093_v25 = vld [vmem:[%s17347_s3 + $0x20] sm:$0xff] }
0x1b9c   : > { %12241 = vmatpush1.bf16.msra.mxu1 %v12240_v51  ;;  %v8097_v51 = vld [vmem:[%s17347_s3 + $0x40] sm:$0xff] }
0x1b9d   : > { %12243 = vmatprep.subr.bf16.mxu1 %v12242_v11  ;;  %v12302_v44 = vpack.c.bf16 %v8097_v51, %v8092_v3  ;;  %v8104_v11 = vld [vmem:[%s17347_s3 + $0x78] sm:$0xff]  ;;  %v8139_v3 = vld [vmem:[%s17347_s3 + $0x190] sm:$0xff] }
0x1b9e   : > { %v12276_v36 = vpack.c.bf16 %v8104_v11, %v8099_v0  ;;  %v8144_v51 = vld [vmem:[%s17347_s3 + $0x1b8] sm:$0xff]  ;;  %v8150_v0 = vld [vmem:[%s17347_s3 + $0x1e8] sm:$0xff]  ;;  %v8155_v11 = vld [vmem:[%s17347_s3 + $0x210] sm:$0xff] }
0x1ba0   : > { %12245 = vmatpush1.bf16.msra.mxu1 %v12244_v34  ;;  %v8102_v34 = vld [vmem:[%s17347_s3 + $0x68] sm:$0xff] }
0x1ba1   : > { %12271 = vmatprep.subr.bf16.mxu1 %v12270_v41  ;;  %v8145_v41 = vld [vmem:[%s17347_s3 + $0x1c0] sm:$0xff] }
0x1ba2   : > { %v12290_v31 = vpack.c.bf16 %v8145_v41, %v8140_v62 }
0x1c46   : > { %v7577_v58 = vpop.f32.mrb[184].mxu1  ;;  %v7648_v21 = vpop.f32.mrb[174].mxu0 }
0x1c47   : > { %v7579_v20 = vpop.f32.mrb[185].mxu1  ;;  %v11545_v12 = vpop.f32.mrb[175].mxu0  ;;  %v7747_v55 = vrot.slane %v7648_v21, 2  ;;  %v8101_v21 = vld [vmem:[%s17347_s3 + $0x60] sm:$0xff] }
0x1c48   : > { %v7743_v59 = vrot.slane %v7579_v20, 1  ;;  %v8106_v12 = vld [vmem:[%s17347_s3 + $0x88] sm:$0xff] }
0x1c4a   : > { %v7745_v17 = vadd.f32 %v7743_v59, %v7577_v58  ;;  %v8107_v58 = vld [vmem:[%s17347_s3 + $0x90] sm:$0xff]  ;;  %v8110_v59 = vld [vmem:[%s17347_s3 + $0xa8] sm:$0xff] }
0x1c4b   : > { %v12306_v20 = vpack.c.bf16 %v8107_v58, %v8102_v34  ;;  %v8154_v34 = vld [vmem:[%s17347_s3 + $0x208] sm:$0xff]  ;;  %v8152_v58 = vld [vmem:[%s17347_s3 + $0x1f8] sm:$0xff] }
0x1c4c   : > { %v7749_v48 = vadd.f32 %v7747_v55, %v7745_v17  ;;  %v8115_v17 = vld [vmem:[%s17347_s3 + $0xd0] sm:$0xff]  ;;  %v12308_v55 = vpack.c.bf16 %v8106_v12, %v8101_v21 }
0x1c4d   : > { %v8151_v12 = vld [vmem:[%s17347_s3 + $0x1f0] sm:$0xff] }
0x1c56   : > { %v7737_v46 = vpop.f32.mrb[186].mxu1 }
0x1c57   : > { %v7750_v32 = vadd.f32 %v7749_v48, %v7737_v46  ;;  %v7739_v56 = vpop.f32.mrb[187].mxu1  ;;  %v12278_v48 = vpack.c.bf16 %v8115_v17, %v8110_v59  ;;  %v8109_v46 = vld [vmem:[%s17347_s3 + $0xa0] sm:$0xff]  ;;  %v8156_v59 = vld [vmem:[%s17347_s3 + $0x218] sm:$0xff] }
0x1c58   : > { %v7752_v24 = vrot.slane %v7739_v56, 1  ;;  %v8112_v56 = vld [vmem:[%s17347_s3 + $0xb8] sm:$0xff] }
0x1c5a   : > { %v7754_v42 = vadd.f32 %v7752_v24, %v7750_v32  ;;  %v8114_v32 = vld [vmem:[%s17347_s3 + $0xc8] sm:$0xff]  ;;  %v8117_v24 = vld [vmem:[%s17347_s3 + $0xe0] sm:$0xff] }
0x1c5b   : > { %v12280_v8 = vpack.c.bf16 %v8114_v32, %v8109_v46  ;;  %v12310_v15 = vpack.c.bf16 %v8117_v24, %v8112_v56  ;;  %v8165_v46 = vld [vmem:[%s17347_s3 + $0x260] sm:$0xff]  ;;  %v8159_v32 = vld [vmem:[%s17347_s3 + $0x230] sm:$0xff]  ;;  %v8164_v24 = vld [vmem:[%s17347_s3 + $0x258] sm:$0xff] }
0x1c5c   : > { %v16970_v22 = vadd.f32 %v10459_v60, %v7754_v42  ;;  %v8111_v60 = vld [vmem:[%s17347_s3 + $0xb0] sm:$0xff]  ;;  %v8116_v42 = vld [vmem:[%s17347_s3 + $0xd8] sm:$0xff] }
0x1c5e   : > { %v7763_v52 = vmax.f32 %v16970_v22, 0.0 }
0x1c60   : > { %7766 = vst [vmem:[#allocation2 + $0x2] sm:$0xf] %v7763_v52 }
0x1c67   : > { %v7767_v38 = vld [vmem:[#allocation2] sm:$0xff] }
0x1c68   : > { %7913 = vmatmul.mubr.f32.vlgmr.msra.gmra.mrb[176].mxu0 %v7767_v38  ;;  %8085 = vst [vmem:[#allocation2] sm:$0x3] %v14090_v30  ;;  %8086 = vst [vmem:[#allocation2 + $0x6] sm:$0x3] %v14090_v30  ;;  %7984 = vmatmul.mubr.f32.vlgmr.msra.gmra.mrb[188].mxu1 %v7767_v38 }
0x1c69   : > { %12248 = vmatpush3.bf16.msra.mxu0 %v12247_v57  ;;  %11578 = vmatprep.mubr.msk.f32.mxu0 %vm14091_vm6, %v14090_v30  ;;  %v8120_v57 = vld [vmem:[%s17347_s3 + $0xf8] sm:$0xff] }
0x1c6a   : > { %12249 = vmatprep.subr.bf16.mxu0 %v14087_v1  ;;  %8233 = vmatprep.mubr.f32.mxu1 %v14090_v30 }
0x1c6b   : > { %12273 = vmatpush1.bf16.msra.mxu1 %v12272_v28  ;;  %v8142_v28 = vld [vmem:[%s17347_s3 + $0x1a8] sm:$0xff] }
0x1c6c   : > { %12275 = vmatprep.subr.bf16.mxu1 %v12274_v27  ;;  %v12322_v26 = vpack.c.bf16 %v8147_v10, %v8142_v28  ;;  %v12294_v27 = vpack.c.bf16 %v8155_v11, %v8150_v0  ;;  %v8123_v28 = vld [vmem:[%s17347_s3 + $0x110] sm:$0xff]  ;;  %v8148_v0 = vld [vmem:[%s17347_s3 + $0x1d8] sm:$0xff] }
0x1c6d   : > { %12251 = vmatpush3.bf16.msra.mxu0 %v12250_v37  ;;  %v12282_v37 = vpack.c.bf16 %v8125_v54, %v8120_v57  ;;  %v8161_v57 = vld [vmem:[%s17347_s3 + $0x240] sm:$0xff]  ;;  %v8166_v54 = vld [vmem:[%s17347_s3 + $0x268] sm:$0xff] }
0x1c6e   : > { %12252 = vmatprep.subr.bf16.mxu0 %v14087_v1  ;;  %v12332_v18 = vpack.c.bf16 %v8166_v54, %v8161_v57  ;;  %v8583_v57 = vld [vmem:[#allocation47 + $0x178] sm:$0xff] }
0x1c6f   : > { %12277 = vmatpush1.bf16.msra.mxu1 %v12276_v36  ;;  %v8149_v36 = vld [vmem:[%s17347_s3 + $0x1e0] sm:$0xff] }
0x1c70   : > { %12279 = vmatprep.subr.bf16.mxu1 %v12278_v48  ;;  %v12296_v21 = vpack.c.bf16 %v8154_v34, %v8149_v36  ;;  %v8160_v48 = vld [vmem:[%s17347_s3 + $0x238] sm:$0xff]  ;;  %v8158_v36 = vld [vmem:[%s17347_s3 + $0x228] sm:$0xff] }
0x1c71   : > { %12254 = vmatpush3.bf16.msra.mxu0 %v12253_v14  ;;  %v8127_v14 = vld [vmem:[%s17347_s3 + $0x130] sm:$0xff]  ;;  %v12298_v56 = vpack.c.bf16 %v8165_v46, %v8160_v48  ;;  %v8565_v48 = vld [vmem:[#allocation47 + $0x88] sm:$0xff] }
0x1c72   : > { %12255 = vmatprep.subr.bf16.mxu0 %v14087_v1  ;;  %v12314_v33 = vpack.c.bf16 %v8127_v14, %v8122_v23 }
0x1c73   : > { %12281 = vmatpush1.bf16.msra.mxu1 %v12280_v8  ;;  %v12300_v8 = vpack.c.bf16 %v8164_v24, %v8159_v32  ;;  %v8568_v32 = vld [vmem:[#allocation47 + $0xb0] sm:$0xff] }
0x1c74   : > { %12283 = vmatprep.subr.bf16.mxu1 %v12282_v37 }
0x1c75   : > { %12257 = vmatpush3.bf16.msra.mxu0 %v12256_v9  ;;  %v8126_v9 = vld [vmem:[%s17347_s3 + $0x128] sm:$0xff] }
0x1c76   : > { %12258 = vmatprep.subr.bf16.mxu0 %v14087_v1  ;;  %v12316_v4 = vpack.c.bf16 %v8126_v9, %v8121_v49 }
0x1c77   : > { %12285 = vmatpush1.bf16.msra.mxu1 %v12284_v43 }
0x1c79   : > { %12260 = vmatpush3.bf16.msra.mxu0 %v12259_v13  ;;  %v8130_v13 = vld [vmem:[%s17347_s3 + $0x148] sm:$0xff] }
0x1c7a   : > { %12261 = vmatprep.subr.bf16.mxu0 %v14087_v1  ;;  %v12286_v63 = vpack.c.bf16 %v8135_v39, %v8130_v13 }
0x1c7c   : > { %12287 = vmatprep.subr.bf16.mxu1 %v12286_v63 }
0x1c7d   : > { %12263 = vmatpush3.bf16.msra.mxu0 %v12262_v61  ;;  %v8129_v61 = vld [vmem:[%s17347_s3 + $0x140] sm:$0xff] }
0x1c7e   : > { %12264 = vmatprep.subr.bf16.mxu0 %v14087_v1 }
0x1c81   : > { %12266 = vmatpush3.bf16.msra.mxu0 %v12265_v2  ;;  %v12288_v2 = vpack.c.bf16 %v8134_v29, %v8129_v61  ;;  %v10460_v61 = vld [vmem:[#allocation45] ss:$0 sm:$0xff] }
0x1c82   : > { %12267 = vmatprep.subr.bf16.mxu0 %v14087_v1 }
0x1c83   : > { %12289 = vmatpush1.bf16.msra.mxu1 %v12288_v2 }
0x1c84   : > { %12291 = vmatprep.subr.bf16.mxu1 %v12290_v31  ;;  %v8113_v31 = vld [vmem:[%s17347_s3 + $0xc0] sm:$0xff] }
0x1c85   : > { %12269 = vmatpush3.bf16.msra.mxu0 %v12268_v40  ;;  %v8136_v40 = vld [vmem:[%s17347_s3 + $0x178] sm:$0xff] }
0x1c86   : > { %12303 = vmatprep.subr.bf16.mxu0 %v12302_v44  ;;  %v12320_v50 = vpack.c.bf16 %v8136_v40, %v8131_v16  ;;  %v12292_v44 = vpack.c.bf16 %v8144_v51, %v8139_v3  ;;  %v8098_v16 = vld [vmem:[%s17347_s3 + $0x48] sm:$0xff] }
0x1c87   : > { %v12335_v40 = vpack.c.bf16 %v8098_v16, %v8093_v25  ;;  %v8118_v3 = vld [vmem:[%s17347_s3 + $0xe8] sm:$0xff] }
0x1c88   : > { %11579 = vmatmul.mubr.f32.vlgmr.msra.gmra.mrb[178].mxu0 %v7767_v38  ;;  %v12312_v38 = vpack.c.bf16 %v8116_v42, %v8111_v60  ;;  %12293 = vmatpush1.bf16.msra.mxu1 %v12292_v44  ;;  %v8162_v60 = vld [vmem:[%s17347_s3 + $0x248] sm:$0xff]  ;;  %v8167_v42 = vld [vmem:[%s17347_s3 + $0x270] sm:$0xff]  ;;  %v12341_v51 = vpack.c.bf16 %v8118_v3, %v8113_v31  ;;  %v8128_v44 = vld [vmem:[%s17347_s3 + $0x138] sm:$0xff] }
0x1c89   : > { %8304 = vmatprep.mubr.f32.mxu0 %v14090_v30  ;;  %12305 = vmatpush1.bf16.msra.mxu0 %v12304_v6  ;;  %v8146_v6 = vld [vmem:[%s17347_s3 + $0x1c8] sm:$0xff]  ;;  %v12344_v10 = vpack.c.bf16 %v8128_v44, %v8123_v28  ;;  %v8557_v31 = vld [vmem:[#allocation47 + $0x28] sm:$0xff] }
0x1c8a   : > { %12307 = vmatprep.subr.bf16.mxu0 %v12306_v20  ;;  %v12324_v45 = vpack.c.bf16 %v8146_v6, %v8141_v7  ;;  %v8157_v20 = vld [vmem:[%s17347_s3 + $0x220] sm:$0xff]  ;;  %12295 = vmatprep.subr.bf16.mxu1 %v12294_v27  ;;  %v8561_v3 = vld [vmem:[#allocation47 + $0x58] sm:$0xff] }
0x1c8b   : > { %v12326_v17 = vpack.c.bf16 %v8157_v20, %v8152_v58  ;;  %v8133_v7 = vld [vmem:[%s17347_s3 + $0x160] sm:$0xff]  ;;  %v8163_v58 = vld [vmem:[%s17347_s3 + $0x250] sm:$0xff] }
0x1c8c   : > { %12297 = vmatpush1.bf16.msra.mxu1 %v12296_v21  ;;  %v8153_v27 = vld [vmem:[%s17347_s3 + $0x200] sm:$0xff]  ;;  %v8168_v21 = vld [vmem:[%s17347_s3 + $0x278] sm:$0xff]  ;;  %v8563_v44 = vld [vmem:[#allocation47 + $0x78] sm:$0xff] }
0x1c8d   : > { %12309 = vmatpush1.bf16.msra.mxu0 %v12308_v55  ;;  %v12328_v55 = vpack.c.bf16 %v8156_v59, %v8151_v12  ;;  %12299 = vmatprep.subr.bf16.mxu1 %v12298_v56  ;;  %v12353_v34 = vpack.c.bf16 %v8158_v36, %v8153_v27  ;;  %v12356_v20 = vpack.c.bf16 %v8168_v21, %v8163_v58  ;;  %v8556_v12 = vld [vmem:[#allocation47 + $0x10] sm:$0xff]  ;;  %v8559_v59 = vld [vmem:[#allocation47 + $0x38] sm:$0xff]  ;;  %v8579_v21 = vld [vmem:[#allocation47 + $0x148] sm:$0xff] }
0x1c8e   : > { %12311 = vmatprep.subr.bf16.mxu0 %v12310_v15  ;;  %v12330_v15 = vpack.c.bf16 %v8167_v42, %v8162_v60  ;;  %v8571_v56 = vld [vmem:[#allocation47 + $0xd8] sm:$0xff]  ;;  %v8574_v60 = vld [vmem:[#allocation47 + $0x100] sm:$0xff]  ;;  %v8577_v42 = vld [vmem:[#allocation47 + $0x128] sm:$0xff] }
0x1c8f   : > { %v12397_v24 = vpack.c.bf16 %v8571_v56, %v8568_v32  ;;  %v8560_v28 = vld [vmem:[#allocation47 + $0x50] sm:$0xff]  ;;  %v8575_v58 = vld [vmem:[#allocation47 + $0x118] sm:$0xff] }
0x1c90   : > { %12301 = vmatpush1.bf16.msra.mxu1 %v12300_v8  ;;  %v12400_v8 = vpack.c.bf16 %v8577_v42, %v8574_v60  ;;  %v8584_v56 = vld [vmem:[#allocation47 + $0x190] sm:$0xff]  ;;  %v8591_v60 = vld [vmem:[#allocation47 + $0x1e8] sm:$0xff] }
0x1c91   : > { %12313 = vmatpush1.bf16.msra.mxu0 %v12312_v38  ;;  %12334 = vmatprep.subr.bf16.mxu1 %v14087_v1  ;;  %v8594_v42 = vld [vmem:[#allocation47 + $0x210] sm:$0xff] }
0x1c92   : > { %12315 = vmatprep.subr.bf16.mxu0 %v12314_v33 }
0x1c95   : > { %12317 = vmatpush1.bf16.msra.mxu0 %v12316_v4 }
0x1c96   : > { %12319 = vmatprep.subr.bf16.mxu0 %v12318_v35  ;;  %v8103_v35 = vld [vmem:[%s17347_s3 + $0x70] sm:$0xff] }
0x1c99   : > { %12321 = vmatpush1.bf16.msra.mxu0 %v12320_v50  ;;  %v8108_v50 = vld [vmem:[%s17347_s3 + $0x98] sm:$0xff] }
0x1c9a   : > { %12323 = vmatprep.subr.bf16.mxu0 %v12322_v26  ;;  %v12338_v41 = vpack.c.bf16 %v8108_v50, %v8103_v35  ;;  %v8138_v26 = vld [vmem:[%s17347_s3 + $0x188] sm:$0xff] }
0x1c9b   : > { %v12347_v6 = vpack.c.bf16 %v8138_v26, %v8133_v7  ;;  %v8558_v35 = vld [vmem:[#allocation47 + $0x30] sm:$0xff]  ;;  %v12364_v26 = vpack.c.bf16 %v8563_v44, %v8560_v28  ;;  %v8751_v28 = vld [vmem:[#allocation47 + $0xb8] sm:$0xff]  ;;  %v8753_v44 = vld [vmem:[#allocation47 + $0xe0] sm:$0xff] }
0x1c9c   : > { %v8570_v7 = vld [vmem:[#allocation47 + $0xd0] sm:$0xff] }
0x1c9d   : > { %12325 = vmatpush1.bf16.msra.mxu0 %v12324_v45  ;;  %v8143_v45 = vld [vmem:[%s17347_s3 + $0x1b0] sm:$0xff] }
0x1c9e   : > { %12327 = vmatprep.subr.bf16.mxu0 %v12326_v17  ;;  %v12350_v11 = vpack.c.bf16 %v8148_v0, %v8143_v45  ;;  %v12391_v17 = vpack.c.bf16 %v8559_v59, %v8556_v12  ;;  %v8569_v45 = vld [vmem:[#allocation47 + $0xc8] sm:$0xff]  ;;  %v8573_v0 = vld [vmem:[#allocation47 + $0xf8] sm:$0xff]  ;;  %v8578_v59 = vld [vmem:[#allocation47 + $0x140] sm:$0xff] }
0x1ca1   : > { %12329 = vmatpush1.bf16.msra.mxu0 %v12328_v55  ;;  %v8562_v55 = vld [vmem:[#allocation47 + $0x60] sm:$0xff] }
0x1ca2   : > { %12331 = vmatprep.subr.bf16.mxu0 %v12330_v15  ;;  %v12394_v46 = vpack.c.bf16 %v8565_v48, %v8562_v55  ;;  %v8580_v15 = vld [vmem:[#allocation47 + $0x150] sm:$0xff]  ;;  %v8585_v55 = vld [vmem:[#allocation47 + $0x198] sm:$0xff]  ;;  %v8588_v48 = vld [vmem:[#allocation47 + $0x1c0] sm:$0xff] }
0x1ca3   : > { %v12403_v54 = vpack.c.bf16 %v8583_v57, %v8580_v15  ;;  %v12378_v32 = vpack.c.bf16 %v8588_v48, %v8585_v55  ;;  %v12382_v15 = vpack.c.bf16 %v8594_v42, %v8591_v60  ;;  %v8590_v57 = vld [vmem:[#allocation47 + $0x1e0] sm:$0xff]  ;;  %v8763_v55 = vld [vmem:[#allocation47 + $0x1a8] sm:$0xff]  ;;  %v8765_v48 = vld [vmem:[#allocation47 + $0x1d0] sm:$0xff] }
0x1ca4   : > { %v8767_v60 = vld [vmem:[#allocation47 + $0x1f8] sm:$0xff]  ;;  %v8769_v42 = vld [vmem:[#allocation47 + $0x220] sm:$0xff] }
0x1ca5   : > { %12333 = vmatpush1.bf16.msra.mxu0 %v12332_v18  ;;  %v8586_v18 = vld [vmem:[#allocation47 + $0x1a0] sm:$0xff] }
0x1ca6   : > { %11616 = vmatprep.subr.mxu0 %v14090_v30 }
0x1d3b   : > { %v7914_v38 = vpop.f32.mrb[176].mxu0  ;;  %v7985_v37 = vpop.f32.mrb[188].mxu1 }
0x1d3c   : > { %v7916_v5 = vpop.f32.mrb[177].mxu0  ;;  %v7987_v23 = vpop.f32.mrb[189].mxu1  ;;  %v8065_v33 = vrot.slane %v7985_v37, 2 }
0x1d3d   : > { %v8061_v14 = vrot.slane %v7916_v5, 1  ;;  %v8069_v43 = vrot.slane %v7987_v23, 3 }
0x1d3f   : > { %v8063_v49 = vadd.f32 %v8061_v14, %v7914_v38  ;;  %v8589_v38 = vld [vmem:[#allocation47 + $0x1c8] sm:$0xff] }
0x1d40   : > { %v12406_v37 = vpack.c.bf16 %v8589_v38, %v8586_v18  ;;  %v8597_v18 = vld [vmem:[#allocation47 + $0x238] sm:$0xff]  ;;  %v8600_v38 = vld [vmem:[#allocation47 + $0x260] sm:$0xff] }
0x1d41   : > { %v8067_v9 = vadd.f32 %v8065_v33, %v8063_v49 }
0x1d43   : > { %v8071_v4 = vadd.f32 %v8069_v43, %v8067_v9 }
0x1d5b   : > { %v8056_v13 = vpop.f32.mrb[178].mxu0 }
0x1d5c   : > { %v8073_v39 = vrot.slane %v8056_v13, 4  ;;  %v11580_v63 = vpop.f32.mrb[179].mxu0 }
0x1d5e   : > { %v8075_v29 = vadd.f32 %v8073_v39, %v8071_v4 }
0x1d60   : > { %v8083_v19 = vadd.f32 %v10460_v61, %v8075_v29 }
0x1d62   : > { %v8084_v2 = vmax.f32 %v8083_v19, 0.0  ;;  %v10461_v19 = vld [vmem:[%s17348_s8] ss:$0 sm:$0xff]  ;;  %s9606_s8 = scalar_lea.sflag [#allocation5], %s1666_s16 }
0x1d64   : > { %8087 = vst [vmem:[#allocation2 + $0x2] sm:$0xf] %v8084_v2 }
0x1d6b   : > { %v8088_v62 = vld [vmem:[#allocation2] sm:$0xff] }
0x1d6c   : > { %8234 = vmatmul.mubr.f32.vlgmr.msra.gmra.mrb[190].mxu1 %v8088_v62  ;;  %8868 = vst [vmem:[#allocation2] sm:$0x3] %v14090_v30  ;;  %8869 = vst [vmem:[#allocation2 + $0x4] sm:$0x3] %v14090_v30  ;;  %8305 = vmatmul.mubr.f32.vlgmr.msra.gmra.mrb[180].mxu0 %v8088_v62 }
0x1d6d   : > { %12336 = vmatpush3.bf16.msra.mxu1 %v12335_v40  ;;  %11613 = vmatprep.mubr.msk.f32.mxu1 %vm14091_vm6, %v14090_v30  ;;  %v8555_v40 = vld [vmem:[#allocation47 + $0x8] sm:$0xff] }
0x1d6e   : > { %12337 = vmatprep.subr.bf16.mxu1 %v14087_v1  ;;  %11618 = vmatprep.mubr.msk.f32.mxu0 %vm14091_vm6, %v14090_v30 }
0x1d71   : > { %12339 = vmatpush3.bf16.msra.mxu1 %v12338_v41  ;;  %v8554_v41 = vld [vmem:[#allocation47] sm:$0xff] }
0x1d72   : > { %12340 = vmatprep.subr.bf16.mxu1 %v14087_v1  ;;  %v12360_v22 = vpack.c.bf16 %v8557_v31, %v8554_v41  ;;  %v8752_v31 = vld [vmem:[#allocation47 + $0xc0] sm:$0xff] }
0x1d75   : > { %12342 = vmatpush3.bf16.msra.mxu1 %v12341_v51  ;;  %v8564_v51 = vld [vmem:[#allocation47 + $0x80] sm:$0xff] }
0x1d76   : > { %12343 = vmatprep.subr.bf16.mxu1 %v14087_v1 }
0x1d79   : > { %12345 = vmatpush3.bf16.msra.mxu1 %v12344_v10  ;;  %v8567_v10 = vld [vmem:[#allocation47 + $0xa8] sm:$0xff] }
0x1d7a   : > { %12346 = vmatprep.subr.bf16.mxu1 %v14087_v1 }
0x1d7d   : > { %12348 = vmatpush3.bf16.msra.mxu1 %v12347_v6  ;;  %v8566_v6 = vld [vmem:[#allocation47 + $0xa0] sm:$0xff] }
0x1d7e   : > { %12349 = vmatprep.subr.bf16.mxu1 %v14087_v1  ;;  %v12368_v27 = vpack.c.bf16 %v8569_v45, %v8566_v6  ;;  %v12424_v6 = vpack.c.bf16 %v8753_v44, %v8751_v28  ;;  %v8892_v28 = vld [vmem:[#allocation48 + $0xa0] sm:$0xff]  ;;  %v8897_v44 = vld [vmem:[#allocation48 + $0xc8] sm:$0xff] }
0x1d81   : > { %12351 = vmatpush3.bf16.msra.mxu1 %v12350_v11  ;;  %v8576_v11 = vld [vmem:[#allocation47 + $0x120] sm:$0xff] }
0x1d82   : > { %12352 = vmatprep.subr.bf16.mxu1 %v14087_v1  ;;  %v12370_v36 = vpack.c.bf16 %v8576_v11, %v8573_v0  ;;  %v8755_v0 = vld [vmem:[#allocation47 + $0x108] sm:$0xff]  ;;  %v8757_v11 = vld [vmem:[#allocation47 + $0x130] sm:$0xff] }
0x1d85   : > { %12354 = vmatpush3.bf16.msra.mxu1 %v12353_v34  ;;  %v8572_v34 = vld [vmem:[#allocation47 + $0xf0] sm:$0xff] }
0x1d86   : > { %12355 = vmatprep.subr.bf16.mxu1 %v14087_v1 }
0x1d89   : > { %12357 = vmatpush3.bf16.msra.mxu1 %v12356_v20  ;;  %v8582_v20 = vld [vmem:[#allocation47 + $0x170] sm:$0xff] }
0x1d8a   : > { %12390 = vmatprep.subr.bf16.mxu1 %v14087_v1  ;;  %v12374_v12 = vpack.c.bf16 %v8582_v20, %v8579_v21  ;;  %v8759_v21 = vld [vmem:[#allocation47 + $0x158] sm:$0xff]  ;;  %v8761_v20 = vld [vmem:[#allocation47 + $0x180] sm:$0xff] }
0x1d8c   : > { %11614 = vmatmul.mubr.f32.vlgmr.msra.gmra.mrb[192].mxu1 %v8088_v62  ;;  %v12358_v62 = vpack.c.bf16 %v8558_v35, %v8555_v40 }
0x1d8d   : > { %11658 = vmatprep.mubr.msk.f32.mxu1 %vm14091_vm6, %v14090_v30  ;;  %12392 = vmatpush3.bf16.msra.mxu1 %v12391_v17  ;;  %v8581_v17 = vld [vmem:[#allocation47 + $0x168] sm:$0xff] }
0x1d8e   : > { %12393 = vmatprep.subr.bf16.mxu1 %v14087_v1 }
0x1d91   : > { %12395 = vmatpush3.bf16.msra.mxu1 %v12394_v46  ;;  %v12376_v46 = vpack.c.bf16 %v8581_v17, %v8578_v59  ;;  %v12432_v59 = vpack.c.bf16 %v8761_v20, %v8759_v21  ;;  %v8905_v21 = vld [vmem:[#allocation48 + $0x108] sm:$0xff]  ;;  %v8910_v20 = vld [vmem:[#allocation48 + $0x130] sm:$0xff] }
0x1d92   : > { %12396 = vmatprep.subr.bf16.mxu1 %v14087_v1 }
0x1d95   : > { %12398 = vmatpush3.bf16.msra.mxu1 %v12397_v24  ;;  %v8587_v24 = vld [vmem:[#allocation47 + $0x1b8] sm:$0xff] }
0x1d96   : > { %12399 = vmatprep.subr.bf16.mxu1 %v14087_v1 }
0x1d99   : > { %12401 = vmatpush3.bf16.msra.mxu1 %v12400_v8  ;;  %v12380_v8 = vpack.c.bf16 %v8587_v24, %v8584_v56  ;;  %v12436_v56 = vpack.c.bf16 %v8765_v48, %v8763_v55  ;;  %v8913_v48 = vld [vmem:[#allocation48 + $0x148] sm:$0xff] }
0x1d9a   : > { %12402 = vmatprep.subr.bf16.mxu1 %v14087_v1 }
0x1d9d   : > { %12404 = vmatpush3.bf16.msra.mxu1 %v12403_v54  ;;  %v8593_v54 = vld [vmem:[#allocation47 + $0x208] sm:$0xff] }
0x1d9e   : > { %12405 = vmatprep.subr.bf16.mxu1 %v14087_v1 }
0x1da1   : > { %12407 = vmatpush3.bf16.msra.mxu1 %v12406_v37  ;;  %v12384_v37 = vpack.c.bf16 %v8593_v54, %v8590_v57  ;;  %v12440_v57 = vpack.c.bf16 %v8769_v42, %v8767_v60  ;;  %v8915_v60 = vld [vmem:[#allocation48 + $0x158] sm:$0xff] }
0x1da2   : > { %12408 = vmatprep.subr.bf16.mxu1 %v14087_v1 }
0x1e3f   : > { %v8235_v5 = vpop.f32.mrb[190].mxu1  ;;  %v8306_v23 = vpop.f32.mrb[180].mxu0 }
0x1e40   : > { %v8237_v14 = vpop.f32.mrb[191].mxu1  ;;  %v8308_v33 = vpop.f32.mrb[181].mxu0  ;;  %v8386_v9 = vrot.slane %v8306_v23, 2  ;;  %v8596_v23 = vld [vmem:[#allocation47 + $0x230] sm:$0xff] }
0x1e41   : > { %v8382_v49 = vrot.slane %v8237_v14, 1  ;;  %v8390_v13 = vrot.slane %v8308_v33, 3  ;;  %v8599_v14 = vld [vmem:[#allocation47 + $0x258] sm:$0xff] }
0x1e42   : > { %v12388_v33 = vpack.c.bf16 %v8599_v14, %v8596_v23  ;;  %v8878_v23 = vld [vmem:[#allocation48 + $0x30] sm:$0xff]  ;;  %v8872_v14 = vld [vmem:[#allocation48] sm:$0xff] }
0x1e43   : > { %v8384_v43 = vadd.f32 %v8382_v49, %v8235_v5  ;;  %v12386_v5 = vpack.c.bf16 %v8600_v38, %v8597_v18  ;;  %v8592_v49 = vld [vmem:[#allocation47 + $0x1f0] sm:$0xff]  ;;  %v8771_v18 = vld [vmem:[#allocation47 + $0x248] sm:$0xff] }
0x1e44   : > { %v8773_v38 = vld [vmem:[#allocation47 + $0x270] sm:$0xff] }
0x1e45   : > { %v8388_v4 = vadd.f32 %v8386_v9, %v8384_v43  ;;  %v8595_v9 = vld [vmem:[#allocation47 + $0x218] sm:$0xff] }
0x1e46   : > { %v12409_v43 = vpack.c.bf16 %v8595_v9, %v8592_v49  ;;  %v8877_v49 = vld [vmem:[#allocation48 + $0x28] sm:$0xff]  ;;  %v8875_v9 = vld [vmem:[#allocation48 + $0x18] sm:$0xff] }
0x1e47   : > { %v8392_v39 = vadd.f32 %v8390_v13, %v8388_v4  ;;  %v8598_v4 = vld [vmem:[#allocation47 + $0x240] sm:$0xff]  ;;  %v8601_v13 = vld [vmem:[#allocation47 + $0x268] sm:$0xff] }
0x1e48   : > { %12410 = vmatpush3.bf16.msra.mxu1 %v12409_v43  ;;  %v8880_v43 = vld [vmem:[#allocation48 + $0x40] sm:$0xff] }
0x1e49   : > { %12411 = vmatprep.subr.bf16.mxu1 %v14087_v1 }
0x1e5f   : > { %v8377_v63 = vpop.f32.mrb[192].mxu1 }
0x1e60   : > { %v8394_v61 = vrot.slane %v8377_v63, 4  ;;  %v11615_v29 = vpop.f32.mrb[193].mxu1  ;;  %v8746_v63 = vld [vmem:[#allocation47 + $0x48] sm:$0xff] }
0x1e62   : > { %v8396_v2 = vadd.f32 %v8394_v61, %v8392_v39  ;;  %v8744_v39 = vld [vmem:[#allocation47 + $0x20] sm:$0xff]  ;;  %v12412_v61 = vpack.c.bf16 %v8601_v13, %v8598_v4  ;;  %v12448_v4 = vpack.c.bf16 %v8877_v49, %v8872_v14  ;;  %v12478_v13 = vpack.c.bf16 %v8880_v43, %v8875_v9  ;;  %v8927_v14 = vld [vmem:[#allocation48 + $0x1b8] sm:$0xff]  ;;  %v8930_v9 = vld [vmem:[#allocation48 + $0x1d0] sm:$0xff] }
0x1e63   : > { %v12414_v29 = vpack.c.bf16 %v8746_v63, %v8744_v39  ;;  %v8874_v39 = vld [vmem:[#allocation48 + $0x10] sm:$0xff]  ;;  %v8879_v63 = vld [vmem:[#allocation48 + $0x38] sm:$0xff]  ;;  %v8924_v43 = vld [vmem:[#allocation48 + $0x1a0] sm:$0xff] }
0x1e64   : > { %v8404_v25 = vadd.f32 %v10461_v19, %v8396_v2  ;;  %12413 = vmatpush3.bf16.msra.mxu1 %v12412_v61  ;;  %v8743_v19 = vld [vmem:[#allocation47 + $0x18] sm:$0xff]  ;;  %v8745_v2 = vld [vmem:[#allocation47 + $0x40] sm:$0xff] }
0x1e65   : > { %v12416_v40 = vpack.c.bf16 %v8745_v2, %v8743_v19  ;;  %v8883_v61 = vld [vmem:[#allocation48 + $0x58] sm:$0xff]  ;;  %v8888_v19 = vld [vmem:[#allocation48 + $0x80] sm:$0xff]  ;;  %v8882_v2 = vld [vmem:[#allocation48 + $0x50] sm:$0xff] }
0x1e66   : > { %v8405_v16 = vadd.f32 %v8404_v25, %v7763_v52  ;;  %v12362_v52 = vpack.c.bf16 %v8564_v51, %v8561_v3  ;;  %v8748_v25 = vld [vmem:[#allocation47 + $0x70] sm:$0xff]  ;;  %v8754_v3 = vld [vmem:[#allocation47 + $0xe8] sm:$0xff] }
0x1e68   : > { %v8406_v50 = vmax.f32 %v8405_v16, 0.0  ;;  %v8750_v16 = vld [vmem:[#allocation47 + $0x98] sm:$0xff] }
0x1e69   : > { %v12418_v35 = vpack.c.bf16 %v8750_v16, %v8748_v25  ;;  %v8887_v25 = vld [vmem:[#allocation48 + $0x78] sm:$0xff]  ;;  %v12450_v16 = vpack.c.bf16 %v8888_v19, %v8883_v61  ;;  %v8938_v61 = vld [vmem:[#allocation48 + $0x210] sm:$0xff]  ;;  %v8932_v19 = vld [vmem:[#allocation48 + $0x1e0] sm:$0xff] }
0x1e6a   : > { %11617 = vmatpush3.msk.msra.mxu0 %vm17349_vm7, %v8406_v50 }
0x1e6b   : > { %11619 = vmatmul.mubr.msk.f32.vlgmr.msra.gmra.mrb[182].mxu0 %vm17350_vm0, %v16286_v53  ;;  %11621 = vmatprep.subr.mxu0 %v14090_v30  ;;  %v12366_v53 = vpack.c.bf16 %v8570_v7, %v8567_v10  ;;  %v8756_v10 = vld [vmem:[#allocation47 + $0x110] sm:$0xff]  ;;  %v8758_v7 = vld [vmem:[#allocation47 + $0x138] sm:$0xff] }
0x1e6c   : > { %11622 = vmatpush3.msk.msra.mxu0 %vm17351_vm14, %v8406_v50  ;;  %11623 = vmatprep.mubr.msk.f32.mxu0 %vm14091_vm6, %v14090_v30  ;;  %v8747_v50 = vld [vmem:[#allocation47 + $0x68] sm:$0xff]  ;;  %v12426_v45 = vpack.c.bf16 %v8758_v7, %v8756_v10  ;;  %v8895_v10 = vld [vmem:[#allocation48 + $0xb8] sm:$0xff]  ;;  %v8900_v7 = vld [vmem:[#allocation48 + $0xe0] sm:$0xff] }
0x1e6d   : > { %12359 = vmatprep.subr.bf16.mxu0 %v12358_v62  ;;  %v8749_v62 = vld [vmem:[#allocation47 + $0x90] sm:$0xff] }
0x1e6f   : > { %11624 = vmatmul.mubr.msk.f32.vlgmr.msra.gmra.mrb[184].mxu0 %vm17352_vm4, %v16292_v47  ;;  %v12372_v47 = vpack.c.bf16 %v8575_v58, %v8572_v34  ;;  %v12428_v34 = vpack.c.bf16 %v8757_v11, %v8755_v0  ;;  %v8903_v0 = vld [vmem:[#allocation48 + $0xf8] sm:$0xff]  ;;  %v8908_v11 = vld [vmem:[#allocation48 + $0x120] sm:$0xff] }
0x1e70   : > { %12361 = vmatpush1.bf16.msra.mxu0 %v12360_v22  ;;  %8666 = vmatprep.mubr.f32.mxu0 %v14090_v30  ;;  %v12420_v22 = vpack.c.bf16 %v8749_v62, %v8747_v50  ;;  %v8890_v50 = vld [vmem:[#allocation48 + $0x90] sm:$0xff]  ;;  %v8884_v62 = vld [vmem:[#allocation48 + $0x60] sm:$0xff] }
0x1e71   : > { %12363 = vmatprep.subr.bf16.mxu0 %v12362_v52  ;;  %v12422_v52 = vpack.c.bf16 %v8754_v3, %v8752_v31  ;;  %v8889_v31 = vld [vmem:[#allocation48 + $0x88] sm:$0xff] }
0x1e72   : > { %v8893_v3 = vld [vmem:[#allocation48 + $0xa8] sm:$0xff] }
0x1e74   : > { %12365 = vmatpush1.bf16.msra.mxu0 %v12364_v26 }
0x1e75   : > { %12367 = vmatprep.subr.bf16.mxu0 %v12366_v53 }
0x1e78   : > { %12369 = vmatpush1.bf16.msra.mxu0 %v12368_v27  ;;  %v8760_v27 = vld [vmem:[#allocation47 + $0x160] sm:$0xff] }
0x1e79   : > { %12371 = vmatprep.subr.bf16.mxu0 %v12370_v36  ;;  %v8762_v36 = vld [vmem:[#allocation47 + $0x188] sm:$0xff] }
0x1e7a   : > { %v12430_v58 = vpack.c.bf16 %v8762_v36, %v8760_v27  ;;  %v8902_v27 = vld [vmem:[#allocation48 + $0xf0] sm:$0xff] }
0x1e7c   : > { %12373 = vmatpush1.bf16.msra.mxu0 %v12372_v47  ;;  %v8764_v47 = vld [vmem:[#allocation47 + $0x1b0] sm:$0xff] }
0x1e7d   : > { %12375 = vmatprep.subr.bf16.mxu0 %v12374_v12  ;;  %v8766_v12 = vld [vmem:[#allocation47 + $0x1d8] sm:$0xff] }
0x1e7e   : > { %v12434_v17 = vpack.c.bf16 %v8766_v12, %v8764_v47  ;;  %v12490_v47 = vpack.c.bf16 %v8910_v20, %v8905_v21  ;;  %v8904_v12 = vld [vmem:[#allocation48 + $0x100] sm:$0xff] }
0x1e80   : > { %12377 = vmatpush1.bf16.msra.mxu0 %v12376_v46  ;;  %v8768_v46 = vld [vmem:[#allocation47 + $0x200] sm:$0xff] }
0x1e81   : > { %12379 = vmatprep.subr.bf16.mxu0 %v12378_v32  ;;  %v8770_v32 = vld [vmem:[#allocation47 + $0x228] sm:$0xff] }
0x1e82   : > { %v12438_v24 = vpack.c.bf16 %v8770_v32, %v8768_v46  ;;  %v8918_v46 = vld [vmem:[#allocation48 + $0x170] sm:$0xff] }
0x1e83   : > { %v12462_v32 = vpack.c.bf16 %v8918_v46, %v8913_v48 }
0x1e84   : > { %12381 = vmatpush1.bf16.msra.mxu0 %v12380_v8  ;;  %v8772_v8 = vld [vmem:[#allocation47 + $0x250] sm:$0xff] }
0x1e85   : > { %12383 = vmatprep.subr.bf16.mxu0 %v12382_v15  ;;  %v8774_v15 = vld [vmem:[#allocation47 + $0x278] sm:$0xff] }
0x1e86   : > { %v12442_v54 = vpack.c.bf16 %v8774_v15, %v8772_v8  ;;  %v8920_v8 = vld [vmem:[#allocation48 + $0x180] sm:$0xff]  ;;  %v8914_v15 = vld [vmem:[#allocation48 + $0x150] sm:$0xff] }
0x1e88   : > { %12385 = vmatpush1.bf16.msra.mxu0 %v12384_v37  ;;  %v12444_v37 = vpack.c.bf16 %v8773_v38, %v8771_v18  ;;  %v8923_v38 = vld [vmem:[#allocation48 + $0x198] sm:$0xff] }
0x1e89   : > { %12387 = vmatprep.subr.bf16.mxu0 %v12386_v5  ;;  %v8873_v5 = vld [vmem:[#allocation48 + $0x8] sm:$0xff] }
0x1e8c   : > { %12389 = vmatpush1.bf16.msra.mxu0 %v12388_v33  ;;  %v12446_v33 = vpack.c.bf16 %v8878_v23, %v8873_v5  ;;  %v8922_v23 = vld [vmem:[#allocation48 + $0x190] sm:$0xff] }
0x1e8d   : > { %12415 = vmatprep.subr.bf16.mxu0 %v12414_v29  ;;  %v12480_v29 = vpack.c.bf16 %v8879_v63, %v8874_v39  ;;  %v12468_v49 = vpack.c.bf16 %v8927_v14, %v8922_v23  ;;  %v8933_v63 = vld [vmem:[#allocation48 + $0x1e8] sm:$0xff]  ;;  %v8916_v23 = vld [vmem:[#allocation48 + $0x160] sm:$0xff] }
0x1e8e   : > { %12447 = vmatprep.subr.bf16.mxu1 %v12446_v33  ;;  %v8925_v33 = vld [vmem:[#allocation48 + $0x1a8] sm:$0xff] }
0x1e8f   : > { %v8921_v14 = vld [vmem:[#allocation48 + $0x188] sm:$0xff] }
0x1f3e   : > { %v8478_v41 = vpop.f32.mrb[182].mxu0 }
0x1f3f   : > { %8667 = vmatmul.mubr.f32.vlgmr.msra.gmra.mrb[186].mxu0 %v8478_v41  ;;  %v11620_v51 = vpop.f32.mrb[183].mxu0  ;;  %11659 = vmatmul.mubr.f32.vlgmr.msra.gmra.mrb[194].mxu1 %v8478_v41 }
0x1f40   : > { %12417 = vmatpush1.bf16.msra.mxu0 %v12416_v40  ;;  %8839 = vmatprep.mubr.f32.mxu0 %v14090_v30  ;;  %v12452_v40 = vpack.c.bf16 %v8887_v25, %v8882_v2  ;;  %v8898_v51 = vld [vmem:[#allocation48 + $0xd0] sm:$0xff]  ;;  %v8937_v2 = vld [vmem:[#allocation48 + $0x208] sm:$0xff]  ;;  %v8935_v25 = vld [vmem:[#allocation48 + $0x1f8] sm:$0xff] }
0x1f41   : > { %12419 = vmatprep.subr.bf16.mxu0 %v12418_v35  ;;  %9016 = vmatprep.mubr.f32.mxu1 %v14090_v30  ;;  %v8885_v35 = vld [vmem:[#allocation48 + $0x68] sm:$0xff] }
0x1f42   : > { %v8550_v26 = vpop.f32.mrb[184].mxu0  ;;  %12449 = vmatpush1.bf16.msra.mxu1 %v12448_v4  ;;  %v12482_v41 = vpack.c.bf16 %v8890_v50, %v8885_v35  ;;  %v12498_v4 = vpack.c.bf16 %v8930_v9, %v8925_v33  ;;  %v8934_v35 = vld [vmem:[#allocation48 + $0x1f0] sm:$0xff]  ;;  %v8939_v50 = vld [vmem:[#allocation48 + $0x218] sm:$0xff]  ;;  %v12523_v33 = vpack.c.bf16 %v8921_v14, %v8916_v23  ;;  %v9234_v23 = vld [vmem:[#allocation50 + $0x148] sm:$0xff] }
0x1f43   : > { %v11625_v53 = vpop.f32.mrb[185].mxu0  ;;  %12451 = vmatprep.subr.bf16.mxu1 %v12450_v16  ;;  %v12472_v16 = vpack.c.bf16 %v8937_v2, %v8932_v19  ;;  %v8931_v9 = vld [vmem:[#allocation48 + $0x1d8] sm:$0xff]  ;;  %v9194_v19 = vld [vmem:[#allocation50 + $0x8] sm:$0xff]  ;;  %v9199_v2 = vld [vmem:[#allocation50 + $0x30] sm:$0xff] }
0x1f44   : > { %12421 = vmatpush1.bf16.msra.mxu0 %v12420_v22  ;;  %v12484_v22 = vpack.c.bf16 %v8889_v31, %v8884_v62  ;;  %v8899_v53 = vld [vmem:[#allocation48 + $0xd8] sm:$0xff]  ;;  %v9239_v14 = vld [vmem:[#allocation50 + $0x170] sm:$0xff] }
0x1f45   : > { %12423 = vmatprep.subr.bf16.mxu0 %v12422_v52  ;;  %v12454_v52 = vpack.c.bf16 %v8898_v51, %v8893_v3  ;;  %v8943_v31 = vld [vmem:[#allocation48 + $0x238] sm:$0xff]  ;;  %v8948_v3 = vld [vmem:[#allocation48 + $0x260] sm:$0xff]  ;;  %v8942_v51 = vld [vmem:[#allocation48 + $0x230] sm:$0xff] }
0x1f46   : > { %12453 = vmatpush1.bf16.msra.mxu1 %v12452_v40  ;;  %v8940_v40 = vld [vmem:[#allocation48 + $0x220] sm:$0xff] }
0x1f47   : > { %12455 = vmatprep.subr.bf16.mxu1 %v12454_v52  ;;  %v12502_v62 = vpack.c.bf16 %v8940_v40, %v8935_v25  ;;  %v8947_v52 = vld [vmem:[#allocation48 + $0x258] sm:$0xff]  ;;  %v9193_v25 = vld [vmem:[#allocation50] sm:$0xff]  ;;  %v9198_v40 = vld [vmem:[#allocation50 + $0x28] sm:$0xff] }
0x1f48   : > { %12425 = vmatpush1.bf16.msra.mxu0 %v12424_v6  ;;  %v12456_v6 = vpack.c.bf16 %v8897_v44, %v8892_v28  ;;  %v8945_v28 = vld [vmem:[#allocation48 + $0x248] sm:$0xff]  ;;  %v8950_v44 = vld [vmem:[#allocation48 + $0x270] sm:$0xff] }
0x1f49   : > { %12427 = vmatprep.subr.bf16.mxu0 %v12426_v45  ;;  %v12486_v45 = vpack.c.bf16 %v8900_v7, %v8895_v10  ;;  %v12476_v10 = vpack.c.bf16 %v8947_v52, %v8942_v51  ;;  %v12506_v7 = vpack.c.bf16 %v8950_v44, %v8945_v28  ;;  %v9204_v51 = vld [vmem:[#allocation50 + $0x58] sm:$0xff]  ;;  %v9209_v52 = vld [vmem:[#allocation50 + $0x80] sm:$0xff]  ;;  %v9203_v28 = vld [vmem:[#allocation50 + $0x50] sm:$0xff] }
0x1f4a   : > { %12457 = vmatpush1.bf16.msra.mxu1 %v12456_v6  ;;  %v9208_v44 = vld [vmem:[#allocation50 + $0x78] sm:$0xff] }
0x1f4c   : > { %12429 = vmatpush1.bf16.msra.mxu0 %v12428_v34  ;;  %v12458_v34 = vpack.c.bf16 %v8908_v11, %v8903_v0 }
0x1f4d   : > { %12431 = vmatprep.subr.bf16.mxu0 %v12430_v58  ;;  %v8907_v58 = vld [vmem:[#allocation48 + $0x118] sm:$0xff] }
0x1f4e   : > { %12459 = vmatprep.subr.bf16.mxu1 %v12458_v34 }
0x1f50   : > { %12433 = vmatpush1.bf16.msra.mxu0 %v12432_v59  ;;  %v8909_v59 = vld [vmem:[#allocation48 + $0x128] sm:$0xff] }
0x1f51   : > { %12435 = vmatprep.subr.bf16.mxu0 %v12434_v17  ;;  %v12460_v17 = vpack.c.bf16 %v8907_v58, %v8902_v27  ;;  %v12492_v55 = vpack.c.bf16 %v8909_v59, %v8904_v12 }
0x1f53   : > { %12461 = vmatpush1.bf16.msra.mxu1 %v12460_v17  ;;  %v10466_v17 = vld [vmem:[%s17353_s13] ss:$0 sm:$0xff]  ;;  %s13874_s13 = scalar_lea.vmem %s17159_s1, 32 }
0x1f54   : > { %12437 = vmatpush1.bf16.msra.mxu0 %v12436_v56  ;;  %v8912_v56 = vld [vmem:[#allocation48 + $0x140] sm:$0xff]  ;;  %12463 = vmatprep.subr.bf16.mxu1 %v12462_v32  ;;  %p13875_p10 = scmp.ne.s32.totalorder %s17159_s1, %s13874_s13 }
0x1f55   : > { %12439 = vmatprep.subr.bf16.mxu0 %v12438_v24  ;;  %v8917_v24 = vld [vmem:[#allocation48 + $0x168] sm:$0xff]  ;;  %v8876_v32 = vld [vmem:[#allocation48 + $0x20] sm:$0xff] }
0x1f56   : > { %v12464_v42 = vpack.c.bf16 %v8917_v24, %v8912_v56  ;;  %v8881_v56 = vld [vmem:[#allocation48 + $0x48] sm:$0xff]  ;;  %p13876_p13 = pnand %p13875_p10, %p17355_p12 }
0x1f57   : > { %v12511_v24 = vpack.c.bf16 %v8881_v56, %v8876_v32  ;;  %v9224_v32 = vld [vmem:[#allocation50 + $0xf8] sm:$0xff]  ;;  %v9229_v56 = vld [vmem:[#allocation50 + $0x120] sm:$0xff] }
0x1f58   : > { %12441 = vmatpush1.bf16.msra.mxu0 %v12440_v57  ;;  %v8919_v57 = vld [vmem:[#allocation48 + $0x178] sm:$0xff]  ;;  %12465 = vmatpush1.bf16.msra.mxu1 %v12464_v42  ;;  %p13877_p0 = pneg %p13876_p13 }
0x1f59   : > { %12443 = vmatprep.subr.bf16.mxu0 %v12442_v54  ;;  %v12494_v54 = vpack.c.bf16 %v8920_v8, %v8915_v60  ;;  %v12496_v18 = vpack.c.bf16 %v8919_v57, %v8914_v15  ;;  %v8886_v60 = vld [vmem:[#allocation48 + $0x70] sm:$0xff]  ;;  %v8891_v42 = vld [vmem:[#allocation48 + $0x98] sm:$0xff]  ;;  %v8896_v57 = vld [vmem:[#allocation48 + $0xc0] sm:$0xff] }
0x1f5a   : > { %v12514_v15 = vpack.c.bf16 %v8891_v42, %v8886_v60  ;;  %v12546_v42 = vpack.c.bf16 %v9229_v56, %v9224_v32 }
0x1f5c   : > { %12445 = vmatpush1.bf16.msra.mxu0 %v12444_v37  ;;  %v8928_v37 = vld [vmem:[#allocation48 + $0x1c0] sm:$0xff] }
0x1f5d   : > { %12479 = vmatprep.subr.bf16.mxu0 %v12478_v13  ;;  %v12466_v5 = vpack.c.bf16 %v8928_v37, %v8923_v38  ;;  %v8929_v13 = vld [vmem:[#allocation48 + $0x1c8] sm:$0xff]  ;;  %v8906_v38 = vld [vmem:[#allocation48 + $0x110] sm:$0xff]  ;;  %v8911_v37 = vld [vmem:[#allocation48 + $0x138] sm:$0xff] }
0x1f5e   : > { %v12500_v39 = vpack.c.bf16 %v8929_v13, %v8924_v43  ;;  %v8941_v13 = vld [vmem:[#allocation48 + $0x228] sm:$0xff] }
0x1f5f   : > { %8840 = vmatmul.mubr.f32.vlgmr.msra.gmra.mrb[188].mxu0 %v8550_v26  ;;  %v8894_v26 = vld [vmem:[#allocation48 + $0xb0] sm:$0xff]  ;;  %12467 = vmatprep.subr.bf16.mxu1 %v12466_v5  ;;  %v12520_v5 = vpack.c.bf16 %v8911_v37, %v8906_v38  ;;  %v9230_v38 = vld [vmem:[#allocation50 + $0x128] sm:$0xff] }
0x1f60   : > { %9087 = vmatprep.mubr.f32.mxu0 %v14090_v30  ;;  %12481 = vmatpush1.bf16.msra.mxu0 %v12480_v29  ;;  %v12488_v36 = vpack.c.bf16 %v8899_v53, %v8894_v26  ;;  %v12470_v29 = vpack.c.bf16 %v8938_v61, %v8933_v63  ;;  %v8944_v26 = vld [vmem:[#allocation48 + $0x240] sm:$0xff]  ;;  %v8949_v53 = vld [vmem:[#allocation48 + $0x268] sm:$0xff]  ;;  %v8946_v63 = vld [vmem:[#allocation48 + $0x250] sm:$0xff] }
0x1f61   : > { %12483 = vmatprep.subr.bf16.mxu0 %v12482_v41  ;;  %12469 = vmatpush1.bf16.msra.mxu1 %v12468_v49  ;;  %v12504_v41 = vpack.c.bf16 %v8939_v50, %v8934_v35  ;;  %v12508_v6 = vpack.c.bf16 %v8949_v53, %v8944_v26  ;;  %v8926_v49 = vld [vmem:[#allocation48 + $0x1b0] sm:$0xff]  ;;  %v8951_v61 = vld [vmem:[#allocation48 + $0x278] sm:$0xff]  ;;  %v9201_v50 = vld [vmem:[#allocation50 + $0x40] sm:$0xff] }
0x1f62   : > { %12471 = vmatprep.subr.bf16.mxu1 %v12470_v29  ;;  %v12526_v43 = vpack.c.bf16 %v8931_v9, %v8926_v49  ;;  %v12532_v29 = vpack.c.bf16 %v8951_v61, %v8946_v63  ;;  %v9196_v35 = vld [vmem:[#allocation50 + $0x18] sm:$0xff]  ;;  %v9206_v26 = vld [vmem:[#allocation50 + $0x68] sm:$0xff]  ;;  %v9211_v53 = vld [vmem:[#allocation50 + $0x90] sm:$0xff] }
0x1f63   : > { %v9233_v49 = vld [vmem:[#allocation50 + $0x140] sm:$0xff]  ;;  %v9238_v9 = vld [vmem:[#allocation50 + $0x168] sm:$0xff]  ;;  %v9240_v63 = vld [vmem:[#allocation50 + $0x178] sm:$0xff] }
0x1f64   : > { %12485 = vmatpush1.bf16.msra.mxu0 %v12484_v22  ;;  %v12474_v22 = vpack.c.bf16 %v8948_v3, %v8943_v31  ;;  %v9195_v31 = vld [vmem:[#allocation50 + $0x10] sm:$0xff]  ;;  %v9200_v3 = vld [vmem:[#allocation50 + $0x38] sm:$0xff] }
0x1f65   : > { %12487 = vmatprep.subr.bf16.mxu0 %v12486_v45  ;;  %12473 = vmatpush1.bf16.msra.mxu1 %v12472_v16  ;;  %v12534_v16 = vpack.c.bf16 %v9199_v2, %v9194_v19  ;;  %v9244_v19 = vld [vmem:[#allocation50 + $0x198] sm:$0xff]  ;;  %v9249_v2 = vld [vmem:[#allocation50 + $0x1c0] sm:$0xff] }
0x1f66   : > { %12475 = vmatprep.subr.bf16.mxu1 %v12474_v22  ;;  %v12568_v22 = vpack.c.bf16 %v9200_v3, %v9195_v31  ;;  %v9250_v3 = vld [vmem:[#allocation50 + $0x1c8] sm:$0xff] }
0x1f68   : > { %12489 = vmatpush1.bf16.msra.mxu0 %v12488_v36 }
0x1f69   : > { %12491 = vmatprep.subr.bf16.mxu0 %v12490_v47  ;;  %12477 = vmatpush1.bf16.msra.mxu1 %v12476_v10  ;;  %v12538_v10 = vpack.c.bf16 %v9209_v52, %v9204_v51  ;;  %v9259_v52 = vld [vmem:[#allocation50 + $0x210] sm:$0xff] }
0x1f6a   : > { %12510 = vmatprep.subr.bf16.mxu1 %v14087_v1 }
0x1f6c   : > { %12493 = vmatpush1.bf16.msra.mxu0 %v12492_v55 }
0x1f6d   : > { %12495 = vmatprep.subr.bf16.mxu0 %v12494_v54  ;;  %v8901_v54 = vld [vmem:[#allocation48 + $0xe8] sm:$0xff] }
0x1f70   : > { %12497 = vmatpush1.bf16.msra.mxu0 %v12496_v18  ;;  %v12517_v18 = vpack.c.bf16 %v8901_v54, %v8896_v57  ;;  %v9231_v57 = vld [vmem:[#allocation50 + $0x130] sm:$0xff] }
0x1f71   : > { %12499 = vmatprep.subr.bf16.mxu0 %v12498_v4  ;;  %v8936_v4 = vld [vmem:[#allocation48 + $0x200] sm:$0xff] }
0x1f74   : > { %12501 = vmatpush1.bf16.msra.mxu0 %v12500_v39  ;;  %v12529_v39 = vpack.c.bf16 %v8941_v13, %v8936_v4  ;;  %v12552_v4 = vpack.c.bf16 %v9238_v9, %v9233_v49  ;;  %v9241_v13 = vld [vmem:[#allocation50 + $0x180] sm:$0xff] }
0x1f75   : > { %12503 = vmatprep.subr.bf16.mxu0 %v12502_v62  ;;  %v12536_v62 = vpack.c.bf16 %v9198_v40, %v9193_v25  ;;  %v12554_v25 = vpack.c.bf16 %v9249_v2, %v9244_v19  ;;  %v9248_v40 = vld [vmem:[#allocation50 + $0x1b8] sm:$0xff]  ;;  %v9217_v19 = vld [vmem:[#allocation50 + $0xc0] sm:$0xff]  ;;  %v9222_v2 = vld [vmem:[#allocation50 + $0xe8] sm:$0xff] }
0x1f78   : > { %12505 = vmatpush1.bf16.msra.mxu0 %v12504_v41  ;;  %v12566_v41 = vpack.c.bf16 %v9201_v50, %v9196_v35  ;;  %v9246_v35 = vld [vmem:[#allocation50 + $0x1a8] sm:$0xff] }
0x1f79   : > { %12507 = vmatprep.subr.bf16.mxu0 %v12506_v7  ;;  %v12540_v7 = vpack.c.bf16 %v9208_v44, %v9203_v28  ;;  %v9253_v44 = vld [vmem:[#allocation50 + $0x1e0] sm:$0xff] }
0x1f7c   : > { %12509 = vmatpush1.bf16.msra.mxu0 %v12508_v6  ;;  %v9205_v6 = vld [vmem:[#allocation50 + $0x60] sm:$0xff] }
0x1f7d   : > { %12535 = vmatprep.subr.bf16.mxu0 %v12534_v16  ;;  %v9243_v16 = vld [vmem:[#allocation50 + $0x190] sm:$0xff] }
0x1f7e   : > { %v12556_v50 = vpack.c.bf16 %v9248_v40, %v9243_v16  ;;  %v9227_v16 = vld [vmem:[#allocation50 + $0x110] sm:$0xff]  ;;  %v9232_v40 = vld [vmem:[#allocation50 + $0x138] sm:$0xff] }
0x2012   : > { %v8668_v45 = vpop.f32.mrb[186].mxu0  ;;  %v8739_v0 = vpop.f32.mrb[194].mxu1 }
0x2013   : > { %v8670_v11 = vpop.f32.mrb[187].mxu0  ;;  %v11660_v27 = vpop.f32.mrb[195].mxu1  ;;  %v8851_v58 = vrot.slane %v8739_v0, 2  ;;  %v9210_v0 = vld [vmem:[#allocation50 + $0x88] sm:$0xff] }
0x2014   : > { %v8847_v36 = vrot.slane %v8670_v11, 1  ;;  %v9214_v11 = vld [vmem:[#allocation50 + $0xa8] sm:$0xff]  ;;  %v9219_v27 = vld [vmem:[#allocation50 + $0xd0] sm:$0xff] }
0x2016   : > { %v8849_v34 = vadd.f32 %v8847_v36, %v8668_v45  ;;  %v12570_v45 = vpack.c.bf16 %v9211_v53, %v9206_v26  ;;  %v12572_v36 = vpack.c.bf16 %v9210_v0, %v9205_v6  ;;  %v9261_v53 = vld [vmem:[#allocation50 + $0x220] sm:$0xff]  ;;  %v9255_v6 = vld [vmem:[#allocation50 + $0x1f0] sm:$0xff] }
0x2018   : > { %v8853_v21 = vadd.f32 %v8851_v58, %v8849_v34  ;;  %v12542_v34 = vpack.c.bf16 %v9219_v27, %v9214_v11  ;;  %v9213_v58 = vld [vmem:[#allocation50 + $0xa0] sm:$0xff]  ;;  %v9264_v27 = vld [vmem:[#allocation50 + $0x238] sm:$0xff] }
0x2032   : > { %v8841_v20 = vpop.f32.mrb[188].mxu0 }
0x2033   : > { %v8854_v47 = vadd.f32 %v8853_v21, %v8841_v20  ;;  %v8843_v12 = vpop.f32.mrb[189].mxu0  ;;  %v9218_v21 = vld [vmem:[#allocation50 + $0xc8] sm:$0xff]  ;;  %v9216_v20 = vld [vmem:[#allocation50 + $0xb8] sm:$0xff] }
0x2034   : > { %v8856_v59 = vrot.slane %v8843_v12, 1  ;;  %v9215_v12 = vld [vmem:[#allocation50 + $0xb0] sm:$0xff] }
0x2036   : > { %v8858_v55 = vadd.f32 %v8856_v59, %v8854_v47  ;;  %v9221_v47 = vld [vmem:[#allocation50 + $0xe0] sm:$0xff]  ;;  %v9220_v59 = vld [vmem:[#allocation50 + $0xd8] sm:$0xff] }
0x2037   : > { %v12576_v60 = vpack.c.bf16 %v9220_v59, %v9215_v12 }
0x2038   : > { %v17111_v48 = vadd.f32 %v10466_v17, %v8858_v55  ;;  %v12544_v17 = vpack.c.bf16 %v9218_v21, %v9213_v58  ;;  %v12574_v55 = vpack.c.bf16 %v9221_v47, %v9216_v20  ;;  %v9268_v21 = vld [vmem:[#allocation50 + $0x258] sm:$0xff]  ;;  %v9266_v20 = vld [vmem:[#allocation50 + $0x248] sm:$0xff]  ;;  %v9271_v47 = vld [vmem:[#allocation50 + $0x270] sm:$0xff] }
0x2039   : > { %v12594_v59 = vpack.c.bf16 %v9271_v47, %v9266_v20  ;;  %v9519_v20 = vld [vmem:[#allocation51 + $0x40] sm:$0xff]  ;;  %v9520_v47 = vld [vmem:[#allocation51 + $0x48] sm:$0xff] }
0x203a   : > { %v8867_v46 = vmax.f32 %v17111_v48, 0.0 }
0x203c   : > { %8870 = vst [vmem:[#allocation2 + $0x2] sm:$0x3] %v8867_v46 }
0x2043   : > { %v8871_v8 = vld [vmem:[#allocation2] sm:$0x3f] }
0x2044   : > { %9017 = vmatmul.mubr.f32.vlgmr.msra.gmra.mrb[196].mxu1 %v8871_v8  ;;  %9189 = vst [vmem:[#allocation2] sm:$0x3] %v14090_v30  ;;  %9190 = vst [vmem:[#allocation2 + $0x4] sm:$0x3] %v14090_v30  ;;  %9088 = vmatmul.mubr.f32.vlgmr.msra.gmra.mrb[190].mxu0 %v8871_v8 }
0x2045   : > { %12512 = vmatpush3.bf16.msra.mxu1 %v12511_v24  ;;  %11693 = vmatprep.mubr.msk.f32.mxu1 %vm14091_vm6, %v14090_v30  ;;  %v9223_v24 = vld [vmem:[#allocation50 + $0xf0] sm:$0xff] }
0x2046   : > { %12513 = vmatprep.subr.bf16.mxu1 %v14087_v1  ;;  %9337 = vmatprep.mubr.f32.mxu0 %v14090_v30 }
0x2047   : > { %12537 = vmatpush1.bf16.msra.mxu0 %v12536_v62  ;;  %v9251_v62 = vld [vmem:[#allocation50 + $0x1d0] sm:$0xff] }
0x2048   : > { %12539 = vmatprep.subr.bf16.mxu0 %v12538_v10  ;;  %v12586_v31 = vpack.c.bf16 %v9251_v62, %v9246_v35  ;;  %v9258_v10 = vld [vmem:[#allocation50 + $0x208] sm:$0xff]  ;;  %v12608_v35 = vpack.c.bf16 %v9232_v40, %v9227_v16 }
0x2049   : > { %12515 = vmatpush3.bf16.msra.mxu1 %v12514_v15  ;;  %v9226_v15 = vld [vmem:[#allocation50 + $0x108] sm:$0xff]  ;;  %v12560_v26 = vpack.c.bf16 %v9258_v10, %v9253_v44  ;;  %v9272_v44 = vld [vmem:[#allocation50 + $0x278] sm:$0xff] }
0x204a   : > { %12516 = vmatprep.subr.bf16.mxu1 %v14087_v1  ;;  %v12578_v54 = vpack.c.bf16 %v9231_v57, %v9226_v15  ;;  %v9242_v62 = vld [vmem:[#allocation50 + $0x188] sm:$0xff] }
0x204b   : > { %12541 = vmatpush1.bf16.msra.mxu0 %v12540_v7  ;;  %v9256_v7 = vld [vmem:[#allocation50 + $0x1f8] sm:$0xff] }
0x204c   : > { %12543 = vmatprep.subr.bf16.mxu0 %v12542_v34  ;;  %v12590_v0 = vpack.c.bf16 %v9261_v53, %v9256_v7  ;;  %v9263_v34 = vld [vmem:[#allocation50 + $0x230] sm:$0xff]  ;;  %v9511_v7 = vld [vmem:[#allocation51] sm:$0xff] }
0x204d   : > { %12518 = vmatpush3.bf16.msra.mxu1 %v12517_v18  ;;  %v9225_v18 = vld [vmem:[#allocation50 + $0x100] sm:$0xff]  ;;  %v12564_v12 = vpack.c.bf16 %v9268_v21, %v9263_v34  ;;  %v9513_v53 = vld [vmem:[#allocation51 + $0x10] sm:$0xff] }
0x204e   : > { %12519 = vmatprep.subr.bf16.mxu1 %v14087_v1  ;;  %v9517_v34 = vld [vmem:[#allocation51 + $0x30] sm:$0xff] }
0x204f   : > { %12545 = vmatpush1.bf16.msra.mxu0 %v12544_v17  ;;  %v9265_v17 = vld [vmem:[#allocation50 + $0x240] sm:$0xff] }
0x2050   : > { %12547 = vmatprep.subr.bf16.mxu0 %v12546_v42 }
0x2051   : > { %12521 = vmatpush3.bf16.msra.mxu1 %v12520_v5  ;;  %v12580_v5 = vpack.c.bf16 %v9230_v38, %v9225_v18 }
0x2052   : > { %12522 = vmatprep.subr.bf16.mxu1 %v14087_v1 }
0x2055   : > { %12524 = vmatpush3.bf16.msra.mxu1 %v12523_v33  ;;  %v12550_v33 = vpack.c.bf16 %v9239_v14, %v9234_v23  ;;  %v10467_v14 = vld [vmem:[%s17354_s10] ss:$0 sm:$0xff]  ;;  %s13878_s10 = sshll.u32 %s14096_s15, 4  ;;  %s13879_s10 = int_to_ptr.vmem [resolvable:$false] %s13878_s10 }
0x2056   : > { %12525 = vmatprep.subr.bf16.mxu1 %v14087_v1  ;;  %s13880_s12 = scalar_lea.vmem %s13879_s10, 64  ;;  %p13881_p1 = scmp.lt.s32.totalorder %s17159_s1, %s13879_s10 }
0x2057   : > { %p13882_p5 = scmp.lt.s32.totalorder %s13880_s12, %s13874_s13 }
0x2059   : > { %12527 = vmatpush3.bf16.msra.mxu1 %v12526_v43  ;;  %v9236_v43 = vld [vmem:[#allocation50 + $0x158] sm:$0xff]  ;;  %p13883_p6 = por %p13882_p5, %p13881_p1 }
0x205a   : > { %12528 = vmatprep.subr.bf16.mxu1 %v14087_v1  ;;  %v12582_v61 = vpack.c.bf16 %v9241_v13, %v9236_v43  ;;  %v9197_v43 = vld [vmem:[#allocation50 + $0x20] sm:$0xff] }
0x205b   : > { %p13884_p2 = pnand %p13883_p6, %p13877_p0 }
0x205d   : > { %12530 = vmatpush3.bf16.msra.mxu1 %v12529_v39  ;;  %v9235_v39 = vld [vmem:[#allocation50 + $0x150] sm:$0xff] }
0x205e   : > { %12531 = vmatprep.subr.bf16.mxu1 %v14087_v1 }
0x2061   : > { %12533 = vmatpush3.bf16.msra.mxu1 %v12532_v29  ;;  %v12584_v29 = vpack.c.bf16 %v9240_v63, %v9235_v39  ;;  %v9207_v39 = vld [vmem:[#allocation50 + $0x70] sm:$0xff]  ;;  %v9212_v63 = vld [vmem:[#allocation50 + $0x98] sm:$0xff] }
0x2062   : > { %12567 = vmatprep.subr.bf16.mxu1 %v12566_v41  ;;  %v9245_v41 = vld [vmem:[#allocation50 + $0x1a0] sm:$0xff] }
0x2063   : > { %v12588_v51 = vpack.c.bf16 %v9250_v3, %v9245_v41  ;;  %v9252_v3 = vld [vmem:[#allocation50 + $0x1d8] sm:$0xff] }
0x2064   : > { %11694 = vmatmul.mubr.f32.vlgmr.msra.gmra.mrb[198].mxu1 %v8871_v8  ;;  %v9228_v8 = vld [vmem:[#allocation50 + $0x118] sm:$0xff] }
0x2065   : > { %9408 = vmatprep.mubr.f32.mxu1 %v14090_v30  ;;  %12569 = vmatpush1.bf16.msra.mxu1 %v12568_v22  ;;  %v12548_v37 = vpack.c.bf16 %v9228_v8, %v9223_v24  ;;  %v9254_v22 = vld [vmem:[#allocation50 + $0x1e8] sm:$0xff] }
0x2066   : > { %12571 = vmatprep.subr.bf16.mxu1 %v12570_v45  ;;  %v12558_v28 = vpack.c.bf16 %v9259_v52, %v9254_v22  ;;  %v9260_v45 = vld [vmem:[#allocation50 + $0x218] sm:$0xff]  ;;  %v9262_v22 = vld [vmem:[#allocation50 + $0x228] sm:$0xff] }
0x2067   : > { %12549 = vmatpush1.bf16.msra.mxu0 %v12548_v37  ;;  %v12592_v11 = vpack.c.bf16 %v9260_v45, %v9255_v6  ;;  %v9514_v45 = vld [vmem:[#allocation51 + $0x18] sm:$0xff] }
0x2068   : > { %12551 = vmatprep.subr.bf16.mxu0 %v12550_v33 }
0x2069   : > { %12573 = vmatpush1.bf16.msra.mxu1 %v12572_v36  ;;  %v9269_v36 = vld [vmem:[#allocation50 + $0x260] sm:$0xff] }
0x206a   : > { %12575 = vmatprep.subr.bf16.mxu1 %v12574_v55  ;;  %v12562_v58 = vpack.c.bf16 %v9269_v36, %v9264_v27  ;;  %v9270_v55 = vld [vmem:[#allocation50 + $0x268] sm:$0xff] }
0x206b   : > { %12553 = vmatpush1.bf16.msra.mxu0 %v12552_v4  ;;  %v12596_v32 = vpack.c.bf16 %v9270_v55, %v9265_v17  ;;  %v9202_v4 = vld [vmem:[#allocation50 + $0x48] sm:$0xff]  ;;  %v9522_v17 = vld [vmem:[#allocation51 + $0x58] sm:$0xff] }
0x206c   : > { %12555 = vmatprep.subr.bf16.mxu0 %v12554_v25  ;;  %v12599_v13 = vpack.c.bf16 %v9202_v4, %v9197_v43  ;;  %v12605_v25 = vpack.c.bf16 %v9222_v2, %v9217_v19  ;;  %v9516_v27 = vld [vmem:[#allocation51 + $0x28] sm:$0xff] }
0x206d   : > { %12577 = vmatpush1.bf16.msra.mxu1 %v12576_v60  ;;  %v10468_v43 = vld [vmem:[%s14295_s17] ss:$0 sm:$0xff] }
0x206e   : > { %12579 = vmatprep.subr.bf16.mxu1 %v12578_v54 }
0x206f   : > { %12557 = vmatpush1.bf16.msra.mxu0 %v12556_v50  ;;  %v9237_v50 = vld [vmem:[#allocation50 + $0x160] sm:$0xff] }
0x2070   : > { %12559 = vmatprep.subr.bf16.mxu0 %v12558_v28  ;;  %v12611_v41 = vpack.c.bf16 %v9242_v62, %v9237_v50  ;;  %v9267_v28 = vld [vmem:[#allocation50 + $0x250] sm:$0xff] }
0x2071   : > { %12581 = vmatpush1.bf16.msra.mxu1 %v12580_v5  ;;  %v12620_v10 = vpack.c.bf16 %v9272_v44, %v9267_v28 }
0x2072   : > { %12583 = vmatprep.subr.bf16.mxu1 %v12582_v61 }
0x2073   : > { %12561 = vmatpush1.bf16.msra.mxu0 %v12560_v26  ;;  %v9512_v26 = vld [vmem:[#allocation51 + $0x8] sm:$0xff] }
0x2074   : > { %12563 = vmatprep.subr.bf16.mxu0 %v12562_v58  ;;  %v12623_v6 = vpack.c.bf16 %v9512_v26, %v9511_v7  ;;  %v9518_v58 = vld [vmem:[#allocation51 + $0x38] sm:$0xff] }
0x2075   : > { %12585 = vmatpush1.bf16.msra.mxu1 %v12584_v29  ;;  %v12602_v29 = vpack.c.bf16 %v9212_v63, %v9207_v39  ;;  %v12632_v21 = vpack.c.bf16 %v9518_v58, %v9517_v34 }
0x2076   : > { %12587 = vmatprep.subr.bf16.mxu1 %v12586_v31  ;;  %v9247_v31 = vld [vmem:[#allocation50 + $0x1b0] sm:$0xff] }
0x2077   : > { %12565 = vmatpush1.bf16.msra.mxu0 %v12564_v12  ;;  %v12635_v12 = vpack.c.bf16 %v9520_v47, %v9519_v20 }
0x2078   : > { %12598 = vmatprep.subr.bf16.mxu0 %v14087_v1 }
0x2079   : > { %12589 = vmatpush1.bf16.msra.mxu1 %v12588_v51  ;;  %v9257_v51 = vld [vmem:[#allocation50 + $0x200] sm:$0xff] }
0x207a   : > { %12591 = vmatprep.subr.bf16.mxu1 %v12590_v0  ;;  %v12617_v52 = vpack.c.bf16 %v9262_v22, %v9257_v51  ;;  %v12626_v0 = vpack.c.bf16 %v9514_v45, %v9513_v53 }
0x207d   : > { %12593 = vmatpush1.bf16.msra.mxu1 %v12592_v11  ;;  %v9515_v11 = vld [vmem:[#allocation51 + $0x20] sm:$0xff] }
0x207e   : > { %12595 = vmatprep.subr.bf16.mxu1 %v12594_v59  ;;  %v12629_v36 = vpack.c.bf16 %v9516_v27, %v9515_v11  ;;  %v9521_v59 = vld [vmem:[#allocation51 + $0x50] sm:$0xff] }
0x207f   : > { %v12638_v55 = vpack.c.bf16 %v9522_v17, %v9521_v59 }
0x2081   : > { %12597 = vmatpush1.bf16.msra.mxu1 %v12596_v32  ;;  %v9523_v32 = vld [vmem:[#allocation51 + $0x60] sm:$0xff] }
0x2082   : > { %12622 = vmatprep.subr.bf16.mxu1 %v14087_v1 }
0x2117   : > { %v9018_v56 = vpop.f32.mrb[196].mxu1  ;;  %v9089_v24 = vpop.f32.mrb[190].mxu0 }
0x2118   : > { %v9020_v60 = vpop.f32.mrb[197].mxu1  ;;  %v9091_v42 = vpop.f32.mrb[191].mxu0  ;;  %v9169_v15 = vrot.slane %v9089_v24, 2 }
0x2119   : > { %v9165_v8 = vrot.slane %v9020_v60, 1  ;;  %v9173_v18 = vrot.slane %v9091_v42, 3  ;;  %v9525_v60 = vld [vmem:[#allocation51 + $0x70] sm:$0xff]  ;;  %v9526_v42 = vld [vmem:[#allocation51 + $0x78] sm:$0xff] }
0x211b   : > { %v9167_v57 = vadd.f32 %v9165_v8, %v9018_v56  ;;  %v9524_v56 = vld [vmem:[#allocation51 + $0x68] sm:$0xff]  ;;  %v12644_v8 = vpack.c.bf16 %v9526_v42, %v9525_v60 }
0x211c   : > { %v12641_v24 = vpack.c.bf16 %v9524_v56, %v9523_v32 }
0x211d   : > { %v9171_v54 = vadd.f32 %v9169_v15, %v9167_v57 }
0x211f   : > { %v9175_v38 = vadd.f32 %v9173_v18, %v9171_v54 }
0x2137   : > { %v9160_v37 = vpop.f32.mrb[198].mxu1 }
0x2138   : > { %v9177_v5 = vrot.slane %v9160_v37, 4  ;;  %v11695_v23 = vpop.f32.mrb[199].mxu1 }
0x213a   : > { %v9179_v33 = vadd.f32 %v9177_v5, %v9175_v38 }
0x213c   : > { %v9187_v49 = vadd.f32 %v10467_v14, %v9179_v33 }
0x213e   : > { %v9188_v9 = vmax.f32 %v9187_v49, 0.0 }
0x2140   : > { %9191 = vst [vmem:[#allocation2 + $0x2] sm:$0x3] %v9188_v9 }
0x2147   : > { %v9192_v61 = vld [vmem:[#allocation2] sm:$0x3f] }
0x2148   : > { %9338 = vmatmul.mubr.f32.vlgmr.msra.gmra.mrb[192].mxu0 %v9192_v61  ;;  %9409 = vmatmul.mubr.f32.vlgmr.msra.gmra.mrb[200].mxu1 %v9192_v61 }
0x2149   : > { %12600 = vmatpush3.bf16.msra.mxu0 %v12599_v13  ;;  %11728 = vmatprep.mubr.msk.f32.mxu0 %vm14091_vm6, %v14090_v30 }
0x214a   : > { %12601 = vmatprep.subr.bf16.mxu0 %v14087_v1  ;;  %11763 = vmatprep.mubr.msk.f32.mxu1 %vm14091_vm6, %v14090_v30  ;;  %v12614_v30 = vpack.c.bf16 %v9252_v3, %v9247_v31 }
0x214b   : > { %12624 = vmatpush3.bf16.msra.mxu1 %v12623_v6 }
0x214c   : > { %12625 = vmatprep.subr.bf16.mxu1 %v14087_v1 }
0x214d   : > { %12603 = vmatpush3.bf16.msra.mxu0 %v12602_v29 }
0x214e   : > { %12604 = vmatprep.subr.bf16.mxu0 %v14087_v1 }
0x214f   : > { %12627 = vmatpush3.bf16.msra.mxu1 %v12626_v0 }
0x2150   : > { %12628 = vmatprep.subr.bf16.mxu1 %v14087_v1 }
0x2151   : > { %12606 = vmatpush3.bf16.msra.mxu0 %v12605_v25 }
0x2152   : > { %12607 = vmatprep.subr.bf16.mxu0 %v14087_v1 }
0x2153   : > { %12630 = vmatpush3.bf16.msra.mxu1 %v12629_v36 }
0x2154   : > { %12631 = vmatprep.subr.bf16.mxu1 %v14087_v1 }
0x2155   : > { %12609 = vmatpush3.bf16.msra.mxu0 %v12608_v35 }
0x2156   : > { %12610 = vmatprep.subr.bf16.mxu0 %v14087_v1 }
0x2157   : > { %12633 = vmatpush3.bf16.msra.mxu1 %v12632_v21 }
0x2158   : > { %12634 = vmatprep.subr.bf16.mxu1 %v14087_v1 }
0x2159   : > { %12612 = vmatpush3.bf16.msra.mxu0 %v12611_v41 }
0x215a   : > { %12613 = vmatprep.subr.bf16.mxu0 %v14087_v1 }
0x215b   : > { %12636 = vmatpush3.bf16.msra.mxu1 %v12635_v12 }
0x215c   : > { %12637 = vmatprep.subr.bf16.mxu1 %v14087_v1 }
0x215d   : > { %12615 = vmatpush3.bf16.msra.mxu0 %v12614_v30 }
0x215e   : > { %12616 = vmatprep.subr.bf16.mxu0 %v14087_v1 }
0x215f   : > { %12639 = vmatpush3.bf16.msra.mxu1 %v12638_v55 }
0x2160   : > { %12640 = vmatprep.subr.bf16.mxu1 %v14087_v1 }
0x2161   : > { %12618 = vmatpush3.bf16.msra.mxu0 %v12617_v52 }
0x2162   : > { %12619 = vmatprep.subr.bf16.mxu0 %v14087_v1 }
0x2163   : > { %12642 = vmatpush3.bf16.msra.mxu1 %v12641_v24 }
0x2164   : > { %12643 = vmatprep.subr.bf16.mxu1 %v14087_v1 }
0x2165   : > { %12621 = vmatpush3.bf16.msra.mxu0 %v12620_v10 }
0x2167   : > { %12645 = vmatpush3.bf16.msra.mxu1 %v12644_v8 }
0x2168   : > { %11729 = vmatmul.mubr.f32.vlgmr.msra.gmra.mrb[194].mxu0 %v9192_v61  ;;  %v10469_v61 = vld [vmem:[%s14305_s25] ss:$0 sm:$0xff] }
0x221b   : > { %v9339_v15 = vpop.f32.mrb[192].mxu0  ;;  %v9410_v57 = vpop.f32.mrb[200].mxu1 }
0x221c   : > { %v9341_v54 = vpop.f32.mrb[193].mxu0  ;;  %v9412_v18 = vpop.f32.mrb[201].mxu1  ;;  %v9490_v37 = vrot.slane %v9410_v57, 2 }
0x221d   : > { %v9486_v38 = vrot.slane %v9341_v54, 1  ;;  %v9494_v14 = vrot.slane %v9412_v18, 3 }
0x221f   : > { %v9488_v5 = vadd.f32 %v9486_v38, %v9339_v15 }
0x2221   : > { %v9492_v23 = vadd.f32 %v9490_v37, %v9488_v5 }
0x2223   : > { %v9496_v33 = vadd.f32 %v9494_v14, %v9492_v23 }
0x223b   : > { %v9481_v49 = vpop.f32.mrb[194].mxu0 }
0x223c   : > { %v9498_v1 = vrot.slane %v9481_v49, 4  ;;  %v11730_v9 = vpop.f32.mrb[195].mxu0 }
0x223e   : > { %v9500_v4 = vadd.f32 %v9498_v1, %v9496_v33 }
0x2240   : > { %v9508_v13 = vadd.f32 %v10468_v43, %v9500_v4 }
0x2242   : > { %v9509_v39 = vadd.f32 %v9508_v13, %v8867_v46 }
0x2244   : > { %v9510_v63 = vmax.f32 %v9509_v39, 0.0 }
0x2246   : > { %11764 = vmatmul.mubr.f32.vlgmr.msra.gmra.mrb[202].mxu1 %v9510_v63 }
0x2319   : > { %v9600_v29 = vpop.f32.mrb[202].mxu1 }
0x231a   : > { %v9601_v19 = vadd.f32 %v10469_v61, %v9600_v29  ;;  %v11765_v2 = vpop.f32.mrb[203].mxu1 }
0x231c   : > { %9604 = vst [vmem:[%s1668_s5] sm:$0x3] %v9601_v19 }
0x231d   : > { %13887 = shalt.err (!%p13884_p2)
}
0x231e   : > { %s13888_s16 = scalar_lea.hbm %s17157_s2, 32  ;;  %s13892_s14 = scalar_lea.hbm %s14310_s4, 64 }
0x231f   : > { %p13889_p3 = scmp.ne.s32.totalorder %s17157_s2, %s13888_s16  ;;  %p13893_p8 = scmp.lt.u32.totalorder %s17157_s2, %s14310_s4 }
0x2320   : > { %p13894_p11 = scmp.lt.u32.totalorder %s13892_s14, %s13888_s16  ;;  %p13896_p10 = scmp.lt.u32.totalorder %s13888_s16, %s17157_s2 }
0x2321   : > { %p13890_p4 = pnand %p13889_p3, %p17355_p12 }
0x2322   : > { %p13895_p9 = por %p13894_p11, %p13893_p8 }
0x2323   : > { %p13891_p7 = pneg %p13890_p4 }
0x2324   : > { %p13897_p13 = por %p13896_p10, %p13895_p9 }
0x2326   : > { %p13898_p0 = pnand %p13897_p13, %p13891_p7 }
0x2328   : > { %13901 = shalt.err (!%p13898_p0)
}
0x2329   : > { %12774 = dma.vmem_to_hbm [thread:$0]  (%p17355_p12), %s17159_s1, 32, %s17157_s2, %s9606_s8  }
0x232a PF: > { %s17356_s5 = sld [smem:[#allocation107_spill]]  ;;  %p12844_p1 = scmp.ge.s32.totalorder %s14004_s11, 2 }
0x232b   : > { %s9631_s13 = sand.u32 1, %s13992_s0  }
0x232c   : > { %s9632_s15 = scalar_lea.sflag [#allocation5], %s9631_s13 }
0x2330   : > { %p17357_p5 = scmp.ne.s32.totalorder %s17356_s5, 0 }
0x2332   : > { %p12777_p6 = pnand %p12844_p1, %p17357_p5 }
0x2334   : > { %13987 = dma.done.wait (!%p12777_p6), %s9632_s15, 32  }
0x2335   : > { %13989 = vsyncadd (!%p12777_p6), %s9632_s15, 4294967264  ;;  %s17358_s11 = sld [smem:[#allocation105_spill]]  ;;  %s17359_s10 = sld [smem:[#allocation104_spill]] }
0x2336   : > { %s17360_s12 = sld [smem:[#allocation106_spill]]  ;;  %s17361_s0 = smov %s13996_s7 }
0x233b   : > { %p110_p2 = scmp.ge.s32.totalorder %s17358_s11, 4   ;;  %s17362_s7 = smov %s17359_s10 }
0x233c   : > { %s17363_s10 = smov %s17360_s12 }
0x233d   :  { %112 = sbr.rel (!%p110_p2) target bundleno = 95 (0x5f), region = 389 }
0x2344   :  { %9637 = vsyncpa [#allocation4], 1 }
0x2345   :  { %9639 = vsyncpa [#allocation4 + $0x1], 1 }
0x2346   :  { %9640 = vsyncpa [#allocation7], 1 }
0x2347   :  { %9641 = vsyncpa [#allocation10], 1 }
0x2348   :  { %9642 = vsyncpa [#allocation13], 1 }
0x2349   :  { %9643 = vsyncpa [#allocation16], 1 }
0x234a   :  { %9644 = vsyncpa [#allocation19], 1 }
0x234b   :  { %9645 = vsyncpa [#allocation22], 1 }
0x234c   :  { %9646 = vsyncpa [#allocation25], 1 }
0x234d   :  { %9647 = vsyncpa [#allocation28], 1 }
0x234e   :  { %9648 = vsyncpa [#allocation31], 1 }
0x234f   :  { %9649 = vsyncpa [#allocation34], 1 }
0x2350   :  { %9650 = vsyncpa [#allocation37], 1 }
0x2351   :  { %9651 = vsyncpa [#allocation40], 1 }
0x2352   :  { %9652 = vsyncpa [#allocation43], 1 }
0x2353   :  { %9653 = vsyncpa [#allocation46], 1 }
0x2354   :  { %9654 = vsyncpa [#allocation49], 1 }
0x2355   :  { %9655 = vsyncpa [#allocation52], 1 }
0x2356   :  { %9656 = vsyncpa [#allocation5], 1 }
0x2357   :  { %9658 = vsyncpa [#allocation5 + $0x1], 1 }

</bundles_post_ra>
